<compile_context>
chip_gen: v5e
topology: v5e:2x2
jax: 0.10.0
libtpu: 0.0.40
codegen_flags: <defaults>
</compile_context>

<pallas_src>
import functools

import jax
import jax.numpy as jnp
from jax.experimental import pallas as pl
from jax.experimental.pallas import tpu as pltpu


def _gru_gates(gi, gh, h_prev, D):
    """PyTorch nn.GRUCell gate math, gate order (r, z, n)."""
    r = jax.nn.sigmoid(gi[:, :D] + gh[:, :D])
    z = jax.nn.sigmoid(gi[:, D:2 * D] + gh[:, D:2 * D])
    n = jnp.tanh(gi[:, 2 * D:] + r * gh[:, 2 * D:])
    return (1.0 - z) * n + z * h_prev


def decoder_step_kernel(
        # batch-resident inputs (block index constant along the t grid axis)
        xs_vh_ref, xs_mask_ref, uh_ref, s0_ref,
        # time-streamed inputs (one (1, bb, .) block per step)
        gi_ref, ysrc_ref, ymask_ref,
        # weights (constant block index -> fetched once per core)
        w_hh_ref, b_hh_ref, w_q_cwhh_ref, cb_hh_ref, cw_ih_ref, cb_ih_ref,
        w_a_ref, w_fin_ref, b_fin_ref, w_c_src_ref, w_s_src_ref, b_src_ref,
        # outputs (one (1, bb, .) block per step)
        logit_ref, attend_ref, ctx_ref,
        # scratch: recurrent state carried along the "arbitrary" t axis
        state_ref,
        *, D, H, mxu_dtype, l_last_softmax):
    f32 = jnp.float32
    mx = lambda x: x.astype(mxu_dtype)   # cast MXU operands only; accumulation stays f32
    t = pl.program_id(1)

    @pl.when(t == 0)
    def _():                              # new batch block -> reload the initial state
        state_ref[...] = s0_ref[...]

    s_tm1 = state_ref[...]                                   # (bb, D) f32
    y_m = ymask_ref[0]                                        # (bb, 1)
    xs_m = xs_mask_ref[...]                                   # (bb, L)
    bb, L = xs_m.shape

    # ---- first GRU cell (input half gi precomputed in the wrapper, incl. b_ih) ----
    gh = jnp.dot(mx(s_tm1), w_hh_ref[...], preferred_element_type=f32) + b_hh_ref[...]
    state = _gru_gates(gi_ref[0], gh, s_tm1, D) * y_m

    # ---- fused state matmul [W_q | cW_hh]: one MXU push instead of two; cgh issued
    #      before the attention block so it can overlap the softmax VPU/EUP phase ----
    qc = jnp.dot(mx(state), w_q_cwhh_ref[...], preferred_element_type=f32)   # (bb, 4D)
    q = qc[:, :D]
    cgh = qc[:, D:] + cb_hh_ref[...]

    # ---- multi-head additive attention ----
    hidden = jnp.tanh(mx(q)[:, None, :] + uh_ref[...])        # (bb, L, D) in mxu_dtype
    scores = jnp.dot(hidden.reshape(bb * L, D), w_a_ref[...],
                     preferred_element_type=f32).reshape(bb, L, H)
    if l_last_softmax:
        # L-last layout: softmax element-wise ops are lane-dense, reductions are lane
        # reductions; one small per-step (L, H) -> (H, L) trailing-dims transpose.
        s_hl = jnp.swapaxes(scores, 1, 2)                      # (bb, H, L)
        e = jnp.exp(s_hl - jnp.max(s_hl, axis=-1, keepdims=True)) * xs_m[:, None, :]
        alpha_h = e / (jnp.sum(e, axis=-1, keepdims=True) + 1e-20)
        alpha = jnp.mean(alpha_h, axis=1)                      # (bb, L) head-mean
        head_alpha = lambda h: alpha_h[:, h, :]                # (bb, L) sublane slice
    else:
        # conservative H-last fallback (matches the previously validated formulation)
        e = jnp.exp(scores - jnp.max(scores, axis=1, keepdims=True)) * xs_m[:, :, None]
        alpha_h = e / (jnp.sum(e, axis=1, keepdims=True) + 1e-20)
        alpha = jnp.mean(alpha_h, axis=-1)
        head_alpha = lambda h: alpha_h[:, :, h]

    # per-head weighted sum of head-major values + per-head W_fin blocks (no lane concat)
    acc = None
    for h in range(H):                                         # static unroll, H small
        a_h = head_alpha(h)                                    # (bb, L) f32
        c_h = jnp.sum(a_h[:, :, None] * xs_vh_ref[h], axis=1)  # (bb, dv) f32
        p_h = jnp.dot(mx(c_h), w_fin_ref[h], preferred_element_type=f32)   # (bb, 2E)
        acc = p_h if acc is None else acc + p_h
    attend = acc + b_fin_ref[...]
    context = attend * y_m                                     # (bb, 2E)

    # ---- conditional GRU cell (input = context) ----
    cgi = jnp.dot(mx(context), cw_ih_ref[...], preferred_element_type=f32) + cb_ih_ref[...]
    s_t = _gru_gates(cgi, cgh, state, D) * y_m

    # ---- step_out (max_out=False, eval dropout = identity); W_src folded in wrapper.
    #      Two dots (no lane-unaligned concat of [context, s_t]). ----
    logit = jnp.tanh(ysrc_ref[0]
                     + jnp.dot(mx(context), w_c_src_ref[...], preferred_element_type=f32)
                     + jnp.dot(mx(s_t), w_s_src_ref[...], preferred_element_type=f32)
                     + b_src_ref[...])

    logit_ref[0] = logit * y_m
    attend_ref[0] = alpha * y_m      # last dim L: lane-sparse store if L << 128 (perf only)
    ctx_ref[0] = context
    state_ref[...] = s_t             # carry the recurrence to the next t grid step


# -------------------------- wrapper / pallas_call plumbing --------------------------

def _device_kind():
    try:
        return jax.devices()[0].device_kind.lower()
    except Exception:
        return ""


def _is_two_core_chip():
    kind = _device_kind()
    return ('v7' in kind) or ('7x' in kind)


def _pick_batch_block(B, batch_block):
    """bb is the M dimension of every per-step MXU matmul: as large as possible
    (<=256, multiple of 8 or == B), but >=2 even blocks on 2-TensorCore chips."""
    if batch_block is not None:
        bb = batch_block
    else:
        cands = [d for d in range(1, B + 1)
                 if B % d == 0 and (d == B or d % 8 == 0) and d <= 256]
        bb = max(cands)
        if _is_two_core_chip():
            two = [d for d in cands if (B // d) >= 2 and (B // d) % 2 == 0]
            if two:
                bb = max(two)
    assert B % bb == 0 and (bb == B or bb % 8 == 0), (B, bb)
    return bb


def _padded_block_bytes(shape, dtype):
    s = [int(d) for d in shape]
    if len(s) >= 1:
        s[-1] = -(-s[-1] // 128) * 128
    if len(s) >= 2:
        s[-2] = -(-s[-2] // 8) * 8
    n = 1
    for d in s:
        n *= d
    return n * jnp.dtype(dtype).itemsize


def _vmem_limit_bytes(footprint):
    cap = (48 << 20) if _is_two_core_chip() else (100 << 20)   # v7x: 64 MiB physical
    return int(max(32 << 20, min(cap, 1.5 * footprint + (8 << 20))))


@functools.partial(jax.jit, static_argnames=('bb', 'mxu_dtype',
                                             'single_buffer_weights', 'l_last_softmax'))
def _decoder_impl(xs_h, ys_e, xs_mask, ys_mask, params, *, bb, mxu_dtype,
                  single_buffer_weights, l_last_softmax):
    p = params
    B, L, E2 = xs_h.shape
    T = ys_e.shape[1]
    D = p['w_q'].shape[0]
    H = p['w_a'].shape[1]
    dv = E2 // H
    f32 = jnp.float32
    n_blocks = B // bb

    # ---- recurrence-independent precompute: big, MXU-efficient matmuls ----
    uh = (xs_h.reshape(B * L, E2) @ p['w_keys']).reshape(B, L, D)
    ann = (xs_h * xs_mask[:, :, None]).sum(1) / xs_mask.sum(1, keepdims=True)
    s0 = jnp.tanh(ann @ p['w_sinit'] + p['b_sinit'])                        # (B, D)

    ys_e_t = jnp.transpose(ys_e, (1, 0, 2))                                 # (T, B, NE)
    ys_mask_t = jnp.transpose(ys_mask, (1, 0))[:, :, None]                  # (T, B, 1)
    gi_all = jnp.dot(ys_e_t, p['w_ih']) + p['b_ih']                         # (T, B, 3D)
    ysrc_all = jnp.dot(jnp.dot(ys_e_t, p['w_y'])
                       + (p['b_y'] + p['b_c'] + p['b_s']), p['w_src'])      # (T, B, 2E)

    # Weights pre-cast to mxu_dtype once here (no per-block in-kernel converts, halved
    # weight DMA/VMEM).  Biases / gate / softmax math stay f32.
    mxd = mxu_dtype
    w_hh = p['w_hh'].astype(mxd)
    w_q_cwhh = jnp.concatenate([p['w_q'], p['cw_hh']], axis=1).astype(mxd)  # (D, 4D)
    cw_ih = p['cw_ih'].astype(mxd)
    w_a = p['w_a'].astype(mxd)
    w_fin_h = p['w_fin'].reshape(H, dv, E2).astype(mxd)                     # (H, dv, 2E)
    w_c_src = (p['w_c'] @ p['w_src']).astype(mxd)                           # (2E, 2E)
    w_s_src = (p['w_s'] @ p['w_src']).astype(mxd)                           # (D, 2E)

    uh = uh.astype(mxd)                                                     # attention keys
    xs_vh = jnp.transpose(xs_h.reshape(B, L, H, dv),
                          (2, 0, 1, 3)).astype(mxd)                         # (H, B, L, dv)

    batched = [xs_vh, xs_mask, uh, s0, gi_all, ysrc_all, ys_mask_t]
    batched_specs = [
        pl.BlockSpec((H, bb, L, dv), lambda b, t: (0, b, 0, 0)),   # resident per block
        pl.BlockSpec((bb, L),        lambda b, t: (b, 0)),
        pl.BlockSpec((bb, L, D),     lambda b, t: (b, 0, 0)),
        pl.BlockSpec((bb, D),        lambda b, t: (b, 0)),
        pl.BlockSpec((1, bb, 3 * D), lambda b, t: (t, b, 0)),      # streamed over t
        pl.BlockSpec((1, bb, E2),    lambda b, t: (t, b, 0)),
        pl.BlockSpec((1, bb, 1),     lambda b, t: (t, b, 0)),
    ]

    weights = [w_hh, p['b_hh'], w_q_cwhh, p['cb_hh'], cw_ih, p['cb_ih'],
               w_a, w_fin_h, p['b_fin'], w_c_src, w_s_src, p['b_src']]

    def weight_spec(a):
        nd = a.ndim
        kwargs = {}
        if single_buffer_weights:
            kwargs['pipeline_mode'] = pl.Buffered(1)   # constant block -> no double buffer
        return pl.BlockSpec(a.shape, lambda b, t, _nd=nd: (0,) * _nd, **kwargs)

    weight_specs = [weight_spec(w) for w in weights]

    out_shapes = (jax.ShapeDtypeStruct((T, B, E2), f32),
                  jax.ShapeDtypeStruct((T, B, L), f32),
                  jax.ShapeDtypeStruct((T, B, E2), f32))
    out_specs = [pl.BlockSpec((1, bb, E2), lambda b, t: (t, b, 0)),
                 pl.BlockSpec((1, bb, L),  lambda b, t: (t, b, 0)),
                 pl.BlockSpec((1, bb, E2), lambda b, t: (t, b, 0))]

    # VMEM budget derived from the actual block footprint (+ headroom, per-gen cap).
    wbuf = 1 if single_buffer_weights else 2
    foot = sum(wbuf * _padded_block_bytes(a.shape, a.dtype) for a in weights)
    foot += sum(2 * _padded_block_bytes(s.block_shape, a.dtype)
                for a, s in zip(batched, batched_specs))
    foot += sum(2 * _padded_block_bytes(s.block_shape, o.dtype)
                for o, s in zip(out_shapes, out_specs))
    foot += _padded_block_bytes((bb, D), f32)              # recurrent-state scratch

    kernel = functools.partial(decoder_step_kernel, D=D, H=H,
                               mxu_dtype=mxd, l_last_softmax=l_last_softmax)

    logits_t, attends_t, ctx_t = pl.pallas_call(
        kernel,
        out_shape=out_shapes,
        grid_spec=pltpu.PrefetchScalarGridSpec(
            num_scalar_prefetch=0,
            grid=(n_blocks, T),
            in_specs=batched_specs + weight_specs,
            out_specs=out_specs,
            scratch_shapes=[pltpu.VMEM((bb, D), f32)]),
        compiler_params=pltpu.CompilerParams(
            dimension_semantics=("parallel", "arbitrary"),
            vmem_limit_bytes=_vmem_limit_bytes(foot)),
    )(*batched, *weights)

    return {'logit': jnp.transpose(logits_t, (1, 0, 2)),
            'attend': jnp.transpose(attends_t, (1, 0, 2)),
            'context': jnp.transpose(ctx_t, (1, 0, 2))}


def stacked_gru_decoder(xs_h, ys_e, xs_mask, ys_mask, params, *,
                        batch_block=None, mxu_dtype=jnp.float32):
    """Forward pass (eval, ss_prob=1).  mxu_dtype=bf16 is recommended on all TPU
    generations (bf16-native MXU); f32 default keeps the strict-accuracy path."""
    bb = _pick_batch_block(xs_h.shape[0], batch_block)
    # Preferred config first; fall back to more conservative pipeline configs if a
    # feature (single-buffered weight specs / L-last score transpose) does not lower
    # on this jax/libtpu version - the math is identical in all configs.
    configs = (dict(single_buffer_weights=True,  l_last_softmax=True),
               dict(single_buffer_weights=False, l_last_softmax=True),
               dict(single_buffer_weights=False, l_last_softmax=False))
    err = None
    for cfg in configs:
        try:
            out = _decoder_impl(xs_h, ys_e, xs_mask, ys_mask, params,
                                bb=bb, mxu_dtype=mxu_dtype, **cfg)
            jax.block_until_ready(out)
            return out
        except Exception as e:      # noqa: BLE001 - graceful degradation only
            err = e
    raise err


# ------------------------------- reference & test -------------------------------

def reference_decoder(xs_h, ys_e, xs_mask, ys_mask, params):
    """Pure-JAX reference mirroring the PyTorch forward (eval, ss_prob=1)."""
    p = params
    B, L, E2 = xs_h.shape
    T = ys_e.shape[1]
    D = p['w_q'].shape[0]
    H = p['w_a'].shape[1]
    dv = E2 // H

    uh = (xs_h.reshape(B * L, E2) @ p['w_keys']).reshape(B, L, D)
    ann = (xs_h * xs_mask[:, :, None]).sum(1) / xs_mask.sum(1, keepdims=True)
    s_tm1 = jnp.tanh(ann @ p['w_sinit'] + p['b_sinit'])

    logits, attends, contexts = [], [], []
    for k in range(T):
        y_tm1 = ys_e[:, k, :]
        y_m = ys_mask[:, k][:, None]
        gi = y_tm1 @ p['w_ih'] + p['b_ih']
        gh = s_tm1 @ p['w_hh'] + p['b_hh']
        state = _gru_gates(gi, gh, s_tm1, D) * y_m

        q = state @ p['w_q']
        hidden = jnp.tanh(q[:, None, :] + uh)
        scores = (hidden.reshape(B * L, D) @ p['w_a']).reshape(B, L, H)
        e = jnp.exp(scores - scores.max(1, keepdims=True)) * xs_mask[:, :, None]
        alpha_h = e / (e.sum(1, keepdims=True) + 1e-20)
        chunks = [jnp.sum(alpha_h[:, :, h][:, :, None]
                          * xs_h[:, :, h * dv:(h + 1) * dv], axis=1) for h in range(H)]
        attend = jnp.concatenate(chunks, axis=-1) @ p['w_fin'] + p['b_fin']
        alpha = alpha_h.mean(-1)
        context = attend * y_m

        cgi = context @ p['cw_ih'] + p['cb_ih']
        cgh = state @ p['cw_hh'] + p['cb_hh']
        s_t = _gru_gates(cgi, cgh, state, D) * y_m
        s_tm1 = s_t

        pre = (y_tm1 @ p['w_y'] + p['b_y'] + context @ p['w_c'] + p['b_c']
               + s_t @ p['w_s'] + p['b_s'])
        logit = jnp.tanh(pre @ p['w_src'] + p['b_src'])

        logits.append(logit * y_m)
        attends.append(alpha * y_m)
        contexts.append(context * y_m)

    return {'logit': jnp.stack(logits, axis=1),
            'attend': jnp.stack(attends, axis=1),
            'context': jnp.stack(contexts, axis=1)}


def init_params(key, NE, E, D, H):
    E2 = 2 * E
    shapes = {
        'w_keys': (E2, D),
        'w_sinit': (E2, D), 'b_sinit': (1, D),
        'w_ih': (NE, 3 * D), 'w_hh': (D, 3 * D), 'b_ih': (1, 3 * D), 'b_hh': (1, 3 * D),
        'cw_ih': (E2, 3 * D), 'cw_hh': (D, 3 * D), 'cb_ih': (1, 3 * D), 'cb_hh': (1, 3 * D),
        'w_q': (D, D), 'w_a': (D, H), 'w_fin': (E2, E2), 'b_fin': (1, E2),
        'w_y': (NE, D), 'b_y': (1, D),
        'w_c': (E2, D), 'b_c': (1, D),
        'w_s': (D, D), 'b_s': (1, D),
        'w_src': (D, E2), 'b_src': (1, E2),
    }
    keys = jax.random.split(key, len(shapes))
    return {name: (0.08 * jax.random.normal(k, shp)).astype(jnp.float32)
            for (name, shp), k in zip(shapes.items(), keys)}


if __name__ == "__main__":
    B, L, T = 16, 8, 8            # batch, src len, trg len
    E, D, NE, H = 32, 32, 32, 4   # enc_hid, dec_hid, n_embed, attention heads

    key = jax.random.PRNGKey(0)
    k1, k2, kp = jax.random.split(key, 3)
    xs_h = jax.random.normal(k1, (B, L, 2 * E), dtype=jnp.float32)
    ys_e = jax.random.normal(k2, (B, T, NE), dtype=jnp.float32)   # ys.dim()==3 path
    src_lens = 3 + (jnp.arange(B) % (L - 2))      # lengths in [3, L] (no empty rows)
    trg_lens = 2 + (jnp.arange(B) % (T - 1))      # lengths in [2, T]
    xs_mask = (jnp.arange(L)[None, :] < src_lens[:, None]).astype(jnp.float32)
    ys_mask = (jnp.arange(T)[None, :] < trg_lens[:, None]).astype(jnp.float32)

    params = init_params(kp, NE, E, D, H)
    ref = reference_decoder(xs_h, ys_e, xs_mask, ys_mask, params)

    # f32 MXU path, default (largest) batch block -- strict check
    out = stacked_gru_decoder(xs_h, ys_e, xs_mask, ys_mask, params)
    out = jax.tree_util.tree_map(jax.block_until_ready, out)
    for name in ('logit', 'attend', 'context'):
        assert out[name].shape == ref[name].shape, name
        assert jnp.allclose(out[name], ref[name], atol=2e-3, rtol=2e-3), name

    # multi-block grid (exercises the parallel batch axis + per-block state re-init)
    out_blk = stacked_gru_decoder(xs_h, ys_e, xs_mask, ys_mask, params, batch_block=8)
    out_blk = jax.tree_util.tree_map(jax.block_until_ready, out_blk)
    for name in ('logit', 'attend', 'context'):
        assert jnp.allclose(out_blk[name], ref[name], atol=2e-3, rtol=2e-3), name

    # bf16 MXU operands / attention keys-values, f32 accumulation -- loose sanity check
    out_bf16 = stacked_gru_decoder(xs_h, ys_e, xs_mask, ys_mask, params,
                                   mxu_dtype=jnp.bfloat16)
    out_bf16 = jax.tree_util.tree_map(jax.block_until_ready, out_bf16)
    for name in ('logit', 'attend', 'context'):
        assert jnp.allclose(out_bf16[name], ref[name], atol=1.5e-1, rtol=1.5e-1), name

    print("KERNEL_OK")
</pallas_src>

<mosaic_0001>
module attributes {stable_mosaic.version = 11 : i64} {
  func.func @decoder_step_kernel(%arg0: i32, %arg1: i32, %arg2: memref<4x16x8x16xf32, #tpu.memory_space<vmem>>, %arg3: memref<16x8xf32, #tpu.memory_space<vmem>>, %arg4: memref<16x8x32xf32, #tpu.memory_space<vmem>>, %arg5: memref<16x32xf32, #tpu.memory_space<vmem>>, %arg6: memref<1x16x96xf32, #tpu.memory_space<vmem>>, %arg7: memref<1x16x64xf32, #tpu.memory_space<vmem>>, %arg8: memref<1x16x1xf32, #tpu.memory_space<vmem>>, %arg9: memref<32x96xf32, #tpu.memory_space<vmem>>, %arg10: memref<1x96xf32, #tpu.memory_space<vmem>>, %arg11: memref<32x128xf32, #tpu.memory_space<vmem>>, %arg12: memref<1x96xf32, #tpu.memory_space<vmem>>, %arg13: memref<64x96xf32, #tpu.memory_space<vmem>>, %arg14: memref<1x96xf32, #tpu.memory_space<vmem>>, %arg15: memref<32x4xf32, #tpu.memory_space<vmem>>, %arg16: memref<4x16x64xf32, #tpu.memory_space<vmem>>, %arg17: memref<1x64xf32, #tpu.memory_space<vmem>>, %arg18: memref<64x64xf32, #tpu.memory_space<vmem>>, %arg19: memref<32x64xf32, #tpu.memory_space<vmem>>, %arg20: memref<1x64xf32, #tpu.memory_space<vmem>>, %arg21: memref<1x16x64xf32, #tpu.memory_space<vmem>>, %arg22: memref<1x16x8xf32, #tpu.memory_space<vmem>>, %arg23: memref<1x16x64xf32, #tpu.memory_space<vmem>>, %arg24: memref<16x32xf32, #tpu.memory_space<vmem>>) attributes {dimension_semantics = [#tpu.dimension_semantics<parallel>, #tpu.dimension_semantics<arbitrary>], iteration_bounds = array<i64: 1, 8>, scalar_prefetch = 0 : i64, scratch_operands = 1 : i64, tpu.core_type = #tpu.core_type<tc>, window_params = [{transform_indices = @transform_0, window_bounds = array<i64: 4, 16, 8, 16>}, {transform_indices = @transform_1, window_bounds = array<i64: 16, 8>}, {transform_indices = @transform_2, window_bounds = array<i64: 16, 8, 32>}, {transform_indices = @transform_3, window_bounds = array<i64: 16, 32>}, {transform_indices = @transform_4, window_bounds = array<i64: 1, 16, 96>}, {transform_indices = @transform_5, window_bounds = array<i64: 1, 16, 64>}, {transform_indices = @transform_6, window_bounds = array<i64: 1, 16, 1>}, {pipeline_mode = #tpu.pipeline_mode<synchronous>, transform_indices = @transform_7, window_bounds = array<i64: 32, 96>}, {pipeline_mode = #tpu.pipeline_mode<synchronous>, transform_indices = @transform_8, window_bounds = array<i64: 1, 96>}, {pipeline_mode = #tpu.pipeline_mode<synchronous>, transform_indices = @transform_9, window_bounds = array<i64: 32, 128>}, {pipeline_mode = #tpu.pipeline_mode<synchronous>, transform_indices = @transform_10, window_bounds = array<i64: 1, 96>}, {pipeline_mode = #tpu.pipeline_mode<synchronous>, transform_indices = @transform_11, window_bounds = array<i64: 64, 96>}, {pipeline_mode = #tpu.pipeline_mode<synchronous>, transform_indices = @transform_12, window_bounds = array<i64: 1, 96>}, {pipeline_mode = #tpu.pipeline_mode<synchronous>, transform_indices = @transform_13, window_bounds = array<i64: 32, 4>}, {pipeline_mode = #tpu.pipeline_mode<synchronous>, transform_indices = @transform_14, window_bounds = array<i64: 4, 16, 64>}, {pipeline_mode = #tpu.pipeline_mode<synchronous>, transform_indices = @transform_15, window_bounds = array<i64: 1, 64>}, {pipeline_mode = #tpu.pipeline_mode<synchronous>, transform_indices = @transform_16, window_bounds = array<i64: 64, 64>}, {pipeline_mode = #tpu.pipeline_mode<synchronous>, transform_indices = @transform_17, window_bounds = array<i64: 32, 64>}, {pipeline_mode = #tpu.pipeline_mode<synchronous>, transform_indices = @transform_18, window_bounds = array<i64: 1, 64>}, {transform_indices = @transform_19, window_bounds = array<i64: 1, 16, 64>}, {transform_indices = @transform_20, window_bounds = array<i64: 1, 16, 8>}, {transform_indices = @transform_21, window_bounds = array<i64: 1, 16, 64>}]} {
    %c0_i32 = arith.constant 0 : i32
    %0 = arith.cmpi eq, %arg1, %c0_i32 : i32
    %1 = arith.extui %0 : i1 to i32
    %c0_i32_0 = arith.constant 0 : i32
    %2 = arith.cmpi ne, %1, %c0_i32_0 : i32
    scf.if %2 {
      %c0_98 = arith.constant 0 : index
      %c0_99 = arith.constant 0 : index
      %187 = vector.load %arg5[%c0_98, %c0_99] : memref<16x32xf32, #tpu.memory_space<vmem>>, vector<16x32xf32>
      %c0_100 = arith.constant 0 : index
      %c0_101 = arith.constant 0 : index
      %188 = vector.load %arg24[%c0_100, %c0_101] : memref<16x32xf32, #tpu.memory_space<vmem>>, vector<16x32xf32>
      tpu.vector_store %arg24[%c0_100, %c0_101], %187 {strides = array<i32>} : memref<16x32xf32, #tpu.memory_space<vmem>>, vector<16x32xf32>,
    } else {
    }
    %c0 = arith.constant 0 : index
    %c0_1 = arith.constant 0 : index
    %3 = vector.load %arg24[%c0, %c0_1] : memref<16x32xf32, #tpu.memory_space<vmem>>, vector<16x32xf32>
    %c0_2 = arith.constant 0 : index
    %c0_3 = arith.constant 0 : index
    %c0_4 = arith.constant 0 : index
    %4 = vector.load %arg8[%c0_2, %c0_3, %c0_4] : memref<1x16x1xf32, #tpu.memory_space<vmem>>, vector<1x16x1xf32>
    %5 = vector.shape_cast %4 : vector<1x16x1xf32> to vector<16x1xf32>
    %c0_5 = arith.constant 0 : index
    %c0_6 = arith.constant 0 : index
    %6 = vector.load %arg3[%c0_5, %c0_6] : memref<16x8xf32, #tpu.memory_space<vmem>>, vector<16x8xf32>
    %c0_7 = arith.constant 0 : index
    %c0_8 = arith.constant 0 : index
    %7 = vector.load %arg9[%c0_7, %c0_8] : memref<32x96xf32, #tpu.memory_space<vmem>>, vector<32x96xf32>
    %cst = arith.constant dense<0.000000e+00> : vector<16x96xf32>
    %8 = tpu.matmul %3, %7, %cst {dimension_numbers = #tpu.dot_dimension_numbers<[1], [0], [0], [1], [0, 0, 1, 1], [], []>} : vector<16x32xf32>, vector<32x96xf32>, vector<16x96xf32> -> vector<16x96xf32>
    %c0_9 = arith.constant 0 : index
    %c0_10 = arith.constant 0 : index
    %9 = vector.load %arg10[%c0_9, %c0_10] : memref<1x96xf32, #tpu.memory_space<vmem>>, vector<1x96xf32>
    %10 = vector.broadcast %9 : vector<1x96xf32> to vector<16x96xf32>
    %11 = arith.addf %8, %10 : vector<16x96xf32>
    %c0_11 = arith.constant 0 : index
    %c0_12 = arith.constant 0 : index
    %c0_13 = arith.constant 0 : index
    %12 = vector.load %arg6[%c0_11, %c0_12, %c0_13] : memref<1x16x96xf32, #tpu.memory_space<vmem>>, vector<1x16x96xf32>
    %13 = vector.shape_cast %12 : vector<1x16x96xf32> to vector<16x96xf32>
    %14 = vector.extract_strided_slice %13 {offsets = [0, 0], sizes = [16, 32], strides = [1, 1]} : vector<16x96xf32> to vector<16x32xf32>
    %15 = vector.extract_strided_slice %11 {offsets = [0, 0], sizes = [16, 32], strides = [1, 1]} : vector<16x96xf32> to vector<16x32xf32>
    %16 = arith.addf %14, %15 : vector<16x32xf32>
    %17 = arith.negf %16 : vector<16x32xf32>
    %18 = math.exp %17 : vector<16x32xf32>
    %cst_14 = arith.constant 1.000000e+00 : f32
    %19 = vector.broadcast %cst_14 : f32 to vector<16x32xf32>
    %20 = arith.addf %19, %18 : vector<16x32xf32>
    %21 = arith.divf %19, %20 : vector<16x32xf32>
    %22 = vector.extract_strided_slice %13 {offsets = [0, 32], sizes = [16, 32], strides = [1, 1]} : vector<16x96xf32> to vector<16x32xf32>
    %23 = vector.extract_strided_slice %11 {offsets = [0, 32], sizes = [16, 32], strides = [1, 1]} : vector<16x96xf32> to vector<16x32xf32>
    %24 = arith.addf %22, %23 : vector<16x32xf32>
    %25 = arith.negf %24 : vector<16x32xf32>
    %26 = math.exp %25 : vector<16x32xf32>
    %cst_15 = arith.constant 1.000000e+00 : f32
    %27 = vector.broadcast %cst_15 : f32 to vector<16x32xf32>
    %28 = arith.addf %27, %26 : vector<16x32xf32>
    %29 = arith.divf %27, %28 : vector<16x32xf32>
    %30 = vector.extract_strided_slice %13 {offsets = [0, 64], sizes = [16, 32], strides = [1, 1]} : vector<16x96xf32> to vector<16x32xf32>
    %31 = vector.extract_strided_slice %11 {offsets = [0, 64], sizes = [16, 32], strides = [1, 1]} : vector<16x96xf32> to vector<16x32xf32>
    %32 = arith.mulf %21, %31 : vector<16x32xf32>
    %33 = arith.addf %30, %32 : vector<16x32xf32>
    %34 = math.tanh %33 : vector<16x32xf32>
    %cst_16 = arith.constant 1.000000e+00 : f32
    %35 = vector.broadcast %cst_16 : f32 to vector<16x32xf32>
    %36 = arith.subf %35, %29 : vector<16x32xf32>
    %37 = arith.mulf %36, %34 : vector<16x32xf32>
    %38 = arith.mulf %29, %3 : vector<16x32xf32>
    %39 = arith.addf %37, %38 : vector<16x32xf32>
    %40 = vector.broadcast %5 : vector<16x1xf32> to vector<16x32xf32>
    %41 = arith.mulf %39, %40 : vector<16x32xf32>
    %c0_17 = arith.constant 0 : index
    %c0_18 = arith.constant 0 : index
    %42 = vector.load %arg11[%c0_17, %c0_18] : memref<32x128xf32, #tpu.memory_space<vmem>>, vector<32x128xf32>
    %cst_19 = arith.constant dense<0.000000e+00> : vector<16x128xf32>
    %43 = tpu.matmul %41, %42, %cst_19 {dimension_numbers = #tpu.dot_dimension_numbers<[1], [0], [0], [1], [0, 0, 1, 1], [], []>} : vector<16x32xf32>, vector<32x128xf32>, vector<16x128xf32> -> vector<16x128xf32>
    %44 = vector.extract_strided_slice %43 {offsets = [0, 0], sizes = [16, 32], strides = [1, 1]} : vector<16x128xf32> to vector<16x32xf32>
    %45 = vector.extract_strided_slice %43 {offsets = [0, 32], sizes = [16, 96], strides = [1, 1]} : vector<16x128xf32> to vector<16x96xf32>
    %c0_20 = arith.constant 0 : index
    %c0_21 = arith.constant 0 : index
    %46 = vector.load %arg12[%c0_20, %c0_21] : memref<1x96xf32, #tpu.memory_space<vmem>>, vector<1x96xf32>
    %47 = vector.broadcast %46 : vector<1x96xf32> to vector<16x96xf32>
    %48 = arith.addf %45, %47 : vector<16x96xf32>
    %49 = vector.shape_cast %44 : vector<16x32xf32> to vector<16x1x32xf32>
    %c0_22 = arith.constant 0 : index
    %c0_23 = arith.constant 0 : index
    %c0_24 = arith.constant 0 : index
    %50 = vector.load %arg4[%c0_22, %c0_23, %c0_24] : memref<16x8x32xf32, #tpu.memory_space<vmem>>, vector<16x8x32xf32>
    %51 = vector.broadcast %49 : vector<16x1x32xf32> to vector<16x8x32xf32>
    %52 = arith.addf %51, %50 : vector<16x8x32xf32>
    %53 = math.tanh %52 : vector<16x8x32xf32>
    %54 = vector.shape_cast %53 : vector<16x8x32xf32> to vector<128x32xf32>
    %c0_25 = arith.constant 0 : index
    %c0_26 = arith.constant 0 : index
    %55 = vector.load %arg15[%c0_25, %c0_26] : memref<32x4xf32, #tpu.memory_space<vmem>>, vector<32x4xf32>
    %cst_27 = arith.constant dense<0.000000e+00> : vector<128x4xf32>
    %56 = tpu.matmul %54, %55, %cst_27 {dimension_numbers = #tpu.dot_dimension_numbers<[1], [0], [0], [1], [0, 0, 1, 1], [], []>} : vector<128x32xf32>, vector<32x4xf32>, vector<128x4xf32> -> vector<128x4xf32>
    %57 = vector.shape_cast %56 : vector<128x4xf32> to vector<16x8x4xf32>
    %58 = tpu.transpose %57, [0, 2, 1] : vector<16x8x4xf32> -> vector<16x4x8xf32>
    %cst_28 = arith.constant dense<0xFF800000> : vector<16x4xf32>
    %59 = vector.multi_reduction <maximumf>, %58, %cst_28 [2] : vector<16x4x8xf32> to vector<16x4xf32>
    %60 = vector.shape_cast %59 : vector<16x4xf32> to vector<16x4x1xf32>
    %61 = vector.broadcast %60 : vector<16x4x1xf32> to vector<16x4x8xf32>
    %62 = arith.subf %58, %61 : vector<16x4x8xf32>
    %63 = math.exp %62 : vector<16x4x8xf32>
    %64 = vector.shape_cast %6 : vector<16x8xf32> to vector<16x1x8xf32>
    %65 = vector.broadcast %64 : vector<16x1x8xf32> to vector<16x4x8xf32>
    %66 = arith.mulf %63, %65 : vector<16x4x8xf32>
    %cst_29 = arith.constant dense<0.000000e+00> : vector<16x4xf32>
    %67 = vector.multi_reduction <add>, %66, %cst_29 [2] : vector<16x4x8xf32> to vector<16x4xf32>
    %68 = vector.shape_cast %67 : vector<16x4xf32> to vector<16x4x1xf32>
    %cst_30 = arith.constant 9.99999968E-21 : f32
    %69 = vector.broadcast %cst_30 : f32 to vector<16x4x1xf32>
    %70 = arith.addf %68, %69 : vector<16x4x1xf32>
    %71 = vector.broadcast %70 : vector<16x4x1xf32> to vector<16x4x8xf32>
    %72 = arith.divf %66, %71 : vector<16x4x8xf32>
    %cst_31 = arith.constant dense<0.000000e+00> : vector<16x8xf32>
    %73 = vector.multi_reduction <add>, %72, %cst_31 [1] : vector<16x4x8xf32> to vector<16x8xf32>
    %cst_32 = arith.constant 4.000000e+00 : f32
    %74 = vector.broadcast %cst_32 : f32 to vector<16x8xf32>
    %75 = arith.divf %73, %74 : vector<16x8xf32>
    %76 = vector.extract_strided_slice %72 {offsets = [0, 0, 0], sizes = [16, 1, 8], strides = [1, 1, 1]} : vector<16x4x8xf32> to vector<16x1x8xf32>
    %77 = vector.shape_cast %76 : vector<16x1x8xf32> to vector<16x8xf32>
    %78 = vector.shape_cast %77 : vector<16x8xf32> to vector<16x8x1xf32>
    %c0_33 = arith.constant 0 : index
    %c0_34 = arith.constant 0 : index
    %c0_35 = arith.constant 0 : index
    %c0_36 = arith.constant 0 : index
    %79 = vector.load %arg2[%c0_33, %c0_34, %c0_35, %c0_36] : memref<4x16x8x16xf32, #tpu.memory_space<vmem>>, vector<1x16x8x16xf32>
    %80 = vector.shape_cast %79 : vector<1x16x8x16xf32> to vector<16x8x16xf32>
    %81 = vector.broadcast %78 : vector<16x8x1xf32> to vector<16x8x16xf32>
    %82 = arith.mulf %81, %80 : vector<16x8x16xf32>
    %cst_37 = arith.constant dense<0.000000e+00> : vector<16x16xf32>
    %83 = vector.multi_reduction <add>, %82, %cst_37 [1] : vector<16x8x16xf32> to vector<16x16xf32>
    %c0_38 = arith.constant 0 : index
    %c0_39 = arith.constant 0 : index
    %c0_40 = arith.constant 0 : index
    %84 = vector.load %arg16[%c0_38, %c0_39, %c0_40] : memref<4x16x64xf32, #tpu.memory_space<vmem>>, vector<1x16x64xf32>
    %85 = vector.shape_cast %84 : vector<1x16x64xf32> to vector<16x64xf32>
    %cst_41 = arith.constant dense<0.000000e+00> : vector<16x64xf32>
    %86 = tpu.matmul %83, %85, %cst_41 {dimension_numbers = #tpu.dot_dimension_numbers<[1], [0], [0], [1], [0, 0, 1, 1], [], []>} : vector<16x16xf32>, vector<16x64xf32>, vector<16x64xf32> -> vector<16x64xf32>
    %87 = vector.extract_strided_slice %72 {offsets = [0, 1, 0], sizes = [16, 1, 8], strides = [1, 1, 1]} : vector<16x4x8xf32> to vector<16x1x8xf32>
    %88 = vector.shape_cast %87 : vector<16x1x8xf32> to vector<16x8xf32>
    %89 = vector.shape_cast %88 : vector<16x8xf32> to vector<16x8x1xf32>
    %c1 = arith.constant 1 : index
    %c0_42 = arith.constant 0 : index
    %c0_43 = arith.constant 0 : index
    %c0_44 = arith.constant 0 : index
    %90 = vector.load %arg2[%c1, %c0_42, %c0_43, %c0_44] : memref<4x16x8x16xf32, #tpu.memory_space<vmem>>, vector<1x16x8x16xf32>
    %91 = vector.shape_cast %90 : vector<1x16x8x16xf32> to vector<16x8x16xf32>
    %92 = vector.broadcast %89 : vector<16x8x1xf32> to vector<16x8x16xf32>
    %93 = arith.mulf %92, %91 : vector<16x8x16xf32>
    %cst_45 = arith.constant dense<0.000000e+00> : vector<16x16xf32>
    %94 = vector.multi_reduction <add>, %93, %cst_45 [1] : vector<16x8x16xf32> to vector<16x16xf32>
    %c1_46 = arith.constant 1 : index
    %c0_47 = arith.constant 0 : index
    %c0_48 = arith.constant 0 : index
    %95 = vector.load %arg16[%c1_46, %c0_47, %c0_48] : memref<4x16x64xf32, #tpu.memory_space<vmem>>, vector<1x16x64xf32>
    %96 = vector.shape_cast %95 : vector<1x16x64xf32> to vector<16x64xf32>
    %cst_49 = arith.constant dense<0.000000e+00> : vector<16x64xf32>
    %97 = tpu.matmul %94, %96, %cst_49 {dimension_numbers = #tpu.dot_dimension_numbers<[1], [0], [0], [1], [0, 0, 1, 1], [], []>} : vector<16x16xf32>, vector<16x64xf32>, vector<16x64xf32> -> vector<16x64xf32>
    %98 = arith.addf %86, %97 : vector<16x64xf32>
    %99 = vector.extract_strided_slice %72 {offsets = [0, 2, 0], sizes = [16, 1, 8], strides = [1, 1, 1]} : vector<16x4x8xf32> to vector<16x1x8xf32>
    %100 = vector.shape_cast %99 : vector<16x1x8xf32> to vector<16x8xf32>
    %101 = vector.shape_cast %100 : vector<16x8xf32> to vector<16x8x1xf32>
    %c2 = arith.constant 2 : index
    %c0_50 = arith.constant 0 : index
    %c0_51 = arith.constant 0 : index
    %c0_52 = arith.constant 0 : index
    %102 = vector.load %arg2[%c2, %c0_50, %c0_51, %c0_52] : memref<4x16x8x16xf32, #tpu.memory_space<vmem>>, vector<1x16x8x16xf32>
    %103 = vector.shape_cast %102 : vector<1x16x8x16xf32> to vector<16x8x16xf32>
    %104 = vector.broadcast %101 : vector<16x8x1xf32> to vector<16x8x16xf32>
    %105 = arith.mulf %104, %103 : vector<16x8x16xf32>
    %cst_53 = arith.constant dense<0.000000e+00> : vector<16x16xf32>
    %106 = vector.multi_reduction <add>, %105, %cst_53 [1] : vector<16x8x16xf32> to vector<16x16xf32>
    %c2_54 = arith.constant 2 : index
    %c0_55 = arith.constant 0 : index
    %c0_56 = arith.constant 0 : index
    %107 = vector.load %arg16[%c2_54, %c0_55, %c0_56] : memref<4x16x64xf32, #tpu.memory_space<vmem>>, vector<1x16x64xf32>
    %108 = vector.shape_cast %107 : vector<1x16x64xf32> to vector<16x64xf32>
    %cst_57 = arith.constant dense<0.000000e+00> : vector<16x64xf32>
    %109 = tpu.matmul %106, %108, %cst_57 {dimension_numbers = #tpu.dot_dimension_numbers<[1], [0], [0], [1], [0, 0, 1, 1], [], []>} : vector<16x16xf32>, vector<16x64xf32>, vector<16x64xf32> -> vector<16x64xf32>
    %110 = arith.addf %98, %109 : vector<16x64xf32>
    %111 = vector.extract_strided_slice %72 {offsets = [0, 3, 0], sizes = [16, 1, 8], strides = [1, 1, 1]} : vector<16x4x8xf32> to vector<16x1x8xf32>
    %112 = vector.shape_cast %111 : vector<16x1x8xf32> to vector<16x8xf32>
    %113 = vector.shape_cast %112 : vector<16x8xf32> to vector<16x8x1xf32>
    %c3 = arith.constant 3 : index
    %c0_58 = arith.constant 0 : index
    %c0_59 = arith.constant 0 : index
    %c0_60 = arith.constant 0 : index
    %114 = vector.load %arg2[%c3, %c0_58, %c0_59, %c0_60] : memref<4x16x8x16xf32, #tpu.memory_space<vmem>>, vector<1x16x8x16xf32>
    %115 = vector.shape_cast %114 : vector<1x16x8x16xf32> to vector<16x8x16xf32>
    %116 = vector.broadcast %113 : vector<16x8x1xf32> to vector<16x8x16xf32>
    %117 = arith.mulf %116, %115 : vector<16x8x16xf32>
    %cst_61 = arith.constant dense<0.000000e+00> : vector<16x16xf32>
    %118 = vector.multi_reduction <add>, %117, %cst_61 [1] : vector<16x8x16xf32> to vector<16x16xf32>
    %c3_62 = arith.constant 3 : index
    %c0_63 = arith.constant 0 : index
    %c0_64 = arith.constant 0 : index
    %119 = vector.load %arg16[%c3_62, %c0_63, %c0_64] : memref<4x16x64xf32, #tpu.memory_space<vmem>>, vector<1x16x64xf32>
    %120 = vector.shape_cast %119 : vector<1x16x64xf32> to vector<16x64xf32>
    %cst_65 = arith.constant dense<0.000000e+00> : vector<16x64xf32>
    %121 = tpu.matmul %118, %120, %cst_65 {dimension_numbers = #tpu.dot_dimension_numbers<[1], [0], [0], [1], [0, 0, 1, 1], [], []>} : vector<16x16xf32>, vector<16x64xf32>, vector<16x64xf32> -> vector<16x64xf32>
    %122 = arith.addf %110, %121 : vector<16x64xf32>
    %c0_66 = arith.constant 0 : index
    %c0_67 = arith.constant 0 : index
    %123 = vector.load %arg17[%c0_66, %c0_67] : memref<1x64xf32, #tpu.memory_space<vmem>>, vector<1x64xf32>
    %124 = vector.broadcast %123 : vector<1x64xf32> to vector<16x64xf32>
    %125 = arith.addf %122, %124 : vector<16x64xf32>
    %126 = vector.broadcast %5 : vector<16x1xf32> to vector<16x64xf32>
    %127 = arith.mulf %125, %126 : vector<16x64xf32>
    %c0_68 = arith.constant 0 : index
    %c0_69 = arith.constant 0 : index
    %128 = vector.load %arg13[%c0_68, %c0_69] : memref<64x96xf32, #tpu.memory_space<vmem>>, vector<64x96xf32>
    %cst_70 = arith.constant dense<0.000000e+00> : vector<16x96xf32>
    %129 = tpu.matmul %127, %128, %cst_70 {dimension_numbers = #tpu.dot_dimension_numbers<[1], [0], [0], [1], [0, 0, 1, 1], [], []>} : vector<16x64xf32>, vector<64x96xf32>, vector<16x96xf32> -> vector<16x96xf32>
    %c0_71 = arith.constant 0 : index
    %c0_72 = arith.constant 0 : index
    %130 = vector.load %arg14[%c0_71, %c0_72] : memref<1x96xf32, #tpu.memory_space<vmem>>, vector<1x96xf32>
    %131 = vector.broadcast %130 : vector<1x96xf32> to vector<16x96xf32>
    %132 = arith.addf %129, %131 : vector<16x96xf32>
    %133 = vector.extract_strided_slice %132 {offsets = [0, 0], sizes = [16, 32], strides = [1, 1]} : vector<16x96xf32> to vector<16x32xf32>
    %134 = vector.extract_strided_slice %48 {offsets = [0, 0], sizes = [16, 32], strides = [1, 1]} : vector<16x96xf32> to vector<16x32xf32>
    %135 = arith.addf %133, %134 : vector<16x32xf32>
    %136 = arith.negf %135 : vector<16x32xf32>
    %137 = math.exp %136 : vector<16x32xf32>
    %cst_73 = arith.constant 1.000000e+00 : f32
    %138 = vector.broadcast %cst_73 : f32 to vector<16x32xf32>
    %139 = arith.addf %138, %137 : vector<16x32xf32>
    %140 = arith.divf %138, %139 : vector<16x32xf32>
    %141 = vector.extract_strided_slice %132 {offsets = [0, 32], sizes = [16, 32], strides = [1, 1]} : vector<16x96xf32> to vector<16x32xf32>
    %142 = vector.extract_strided_slice %48 {offsets = [0, 32], sizes = [16, 32], strides = [1, 1]} : vector<16x96xf32> to vector<16x32xf32>
    %143 = arith.addf %141, %142 : vector<16x32xf32>
    %144 = arith.negf %143 : vector<16x32xf32>
    %145 = math.exp %144 : vector<16x32xf32>
    %cst_74 = arith.constant 1.000000e+00 : f32
    %146 = vector.broadcast %cst_74 : f32 to vector<16x32xf32>
    %147 = arith.addf %146, %145 : vector<16x32xf32>
    %148 = arith.divf %146, %147 : vector<16x32xf32>
    %149 = vector.extract_strided_slice %132 {offsets = [0, 64], sizes = [16, 32], strides = [1, 1]} : vector<16x96xf32> to vector<16x32xf32>
    %150 = vector.extract_strided_slice %48 {offsets = [0, 64], sizes = [16, 32], strides = [1, 1]} : vector<16x96xf32> to vector<16x32xf32>
    %151 = arith.mulf %140, %150 : vector<16x32xf32>
    %152 = arith.addf %149, %151 : vector<16x32xf32>
    %153 = math.tanh %152 : vector<16x32xf32>
    %cst_75 = arith.constant 1.000000e+00 : f32
    %154 = vector.broadcast %cst_75 : f32 to vector<16x32xf32>
    %155 = arith.subf %154, %148 : vector<16x32xf32>
    %156 = arith.mulf %155, %153 : vector<16x32xf32>
    %157 = arith.mulf %148, %41 : vector<16x32xf32>
    %158 = arith.addf %156, %157 : vector<16x32xf32>
    %159 = vector.broadcast %5 : vector<16x1xf32> to vector<16x32xf32>
    %160 = arith.mulf %158, %159 : vector<16x32xf32>
    %c0_76 = arith.constant 0 : index
    %c0_77 = arith.constant 0 : index
    %c0_78 = arith.constant 0 : index
    %161 = vector.load %arg7[%c0_76, %c0_77, %c0_78] : memref<1x16x64xf32, #tpu.memory_space<vmem>>, vector<1x16x64xf32>
    %162 = vector.shape_cast %161 : vector<1x16x64xf32> to vector<16x64xf32>
    %c0_79 = arith.constant 0 : index
    %c0_80 = arith.constant 0 : index
    %163 = vector.load %arg18[%c0_79, %c0_80] : memref<64x64xf32, #tpu.memory_space<vmem>>, vector<64x64xf32>
    %cst_81 = arith.constant dense<0.000000e+00> : vector<16x64xf32>
    %164 = tpu.matmul %127, %163, %cst_81 {dimension_numbers = #tpu.dot_dimension_numbers<[1], [0], [0], [1], [0, 0, 1, 1], [], []>} : vector<16x64xf32>, vector<64x64xf32>, vector<16x64xf32> -> vector<16x64xf32>
    %165 = arith.addf %162, %164 : vector<16x64xf32>
    %c0_82 = arith.constant 0 : index
    %c0_83 = arith.constant 0 : index
    %166 = vector.load %arg19[%c0_82, %c0_83] : memref<32x64xf32, #tpu.memory_space<vmem>>, vector<32x64xf32>
    %cst_84 = arith.constant dense<0.000000e+00> : vector<16x64xf32>
    %167 = tpu.matmul %160, %166, %cst_84 {dimension_numbers = #tpu.dot_dimension_numbers<[1], [0], [0], [1], [0, 0, 1, 1], [], []>} : vector<16x32xf32>, vector<32x64xf32>, vector<16x64xf32> -> vector<16x64xf32>
    %168 = arith.addf %165, %167 : vector<16x64xf32>
    %c0_85 = arith.constant 0 : index
    %c0_86 = arith.constant 0 : index
    %169 = vector.load %arg20[%c0_85, %c0_86] : memref<1x64xf32, #tpu.memory_space<vmem>>, vector<1x64xf32>
    %170 = vector.broadcast %169 : vector<1x64xf32> to vector<16x64xf32>
    %171 = arith.addf %168, %170 : vector<16x64xf32>
    %172 = math.tanh %171 : vector<16x64xf32>
    %173 = vector.broadcast %5 : vector<16x1xf32> to vector<16x64xf32>
    %174 = arith.mulf %172, %173 : vector<16x64xf32>
    %c0_87 = arith.constant 0 : index
    %c0_88 = arith.constant 0 : index
    %c0_89 = arith.constant 0 : index
    %175 = vector.load %arg21[%c0_87, %c0_88, %c0_89] : memref<1x16x64xf32, #tpu.memory_space<vmem>>, vector<1x16x64xf32>
    %176 = vector.shape_cast %175 : vector<1x16x64xf32> to vector<16x64xf32>
    %177 = vector.shape_cast %174 : vector<16x64xf32> to vector<1x16x64xf32>
    tpu.vector_store %arg21[%c0_87, %c0_88, %c0_89], %177 {strides = array<i32>} : memref<1x16x64xf32, #tpu.memory_space<vmem>>, vector<1x16x64xf32>,
    %178 = vector.broadcast %5 : vector<16x1xf32> to vector<16x8xf32>
    %179 = arith.mulf %75, %178 : vector<16x8xf32>
    %c0_90 = arith.constant 0 : index
    %c0_91 = arith.constant 0 : index
    %c0_92 = arith.constant 0 : index
    %180 = vector.load %arg22[%c0_90, %c0_91, %c0_92] : memref<1x16x8xf32, #tpu.memory_space<vmem>>, vector<1x16x8xf32>
    %181 = vector.shape_cast %180 : vector<1x16x8xf32> to vector<16x8xf32>
    %182 = vector.shape_cast %179 : vector<16x8xf32> to vector<1x16x8xf32>
    tpu.vector_store %arg22[%c0_90, %c0_91, %c0_92], %182 {strides = array<i32>} : memref<1x16x8xf32, #tpu.memory_space<vmem>>, vector<1x16x8xf32>,
    %c0_93 = arith.constant 0 : index
    %c0_94 = arith.constant 0 : index
    %c0_95 = arith.constant 0 : index
    %183 = vector.load %arg23[%c0_93, %c0_94, %c0_95] : memref<1x16x64xf32, #tpu.memory_space<vmem>>, vector<1x16x64xf32>
    %184 = vector.shape_cast %183 : vector<1x16x64xf32> to vector<16x64xf32>
    %185 = vector.shape_cast %127 : vector<16x64xf32> to vector<1x16x64xf32>
    tpu.vector_store %arg23[%c0_93, %c0_94, %c0_95], %185 {strides = array<i32>} : memref<1x16x64xf32, #tpu.memory_space<vmem>>, vector<1x16x64xf32>,
    %c0_96 = arith.constant 0 : index
    %c0_97 = arith.constant 0 : index
    %186 = vector.load %arg24[%c0_96, %c0_97] : memref<16x32xf32, #tpu.memory_space<vmem>>, vector<16x32xf32>
    tpu.vector_store %arg24[%c0_96, %c0_97], %160 {strides = array<i32>} : memref<16x32xf32, #tpu.memory_space<vmem>>, vector<16x32xf32>,
    return
  }
  func.func @transform_0(%arg0: i32, %arg1: i32) -> (i32, i32, i32, i32) {
    %c0_i32 = arith.constant 0 : i32
    %c0_i32_0 = arith.constant 0 : i32
    %c0_i32_1 = arith.constant 0 : i32
    %c0_i32_2 = arith.constant 0 : i32
    return %c0_i32, %arg0, %c0_i32_0, %c0_i32_1 : i32, i32, i32, i32
  }
  func.func @transform_1(%arg0: i32, %arg1: i32) -> (i32, i32) {
    %c0_i32 = arith.constant 0 : i32
    %c0_i32_0 = arith.constant 0 : i32
    return %arg0, %c0_i32 : i32, i32
  }
  func.func @transform_2(%arg0: i32, %arg1: i32) -> (i32, i32, i32) {
    %c0_i32 = arith.constant 0 : i32
    %c0_i32_0 = arith.constant 0 : i32
    %c0_i32_1 = arith.constant 0 : i32
    return %arg0, %c0_i32, %c0_i32_0 : i32, i32, i32
  }
  func.func @transform_3(%arg0: i32, %arg1: i32) -> (i32, i32) {
    %c0_i32 = arith.constant 0 : i32
    %c0_i32_0 = arith.constant 0 : i32
    return %arg0, %c0_i32 : i32, i32
  }
  func.func @transform_4(%arg0: i32, %arg1: i32) -> (i32, i32, i32) {
    %c0_i32 = arith.constant 0 : i32
    %c0_i32_0 = arith.constant 0 : i32
    return %arg1, %arg0, %c0_i32 : i32, i32, i32
  }
  func.func @transform_5(%arg0: i32, %arg1: i32) -> (i32, i32, i32) {
    %c0_i32 = arith.constant 0 : i32
    %c0_i32_0 = arith.constant 0 : i32
    return %arg1, %arg0, %c0_i32 : i32, i32, i32
  }
  func.func @transform_6(%arg0: i32, %arg1: i32) -> (i32, i32, i32) {
    %c0_i32 = arith.constant 0 : i32
    %c0_i32_0 = arith.constant 0 : i32
    return %arg1, %arg0, %c0_i32 : i32, i32, i32
  }
  func.func @transform_7(%arg0: i32, %arg1: i32) -> (i32, i32) {
    %c0_i32 = arith.constant 0 : i32
    %c0_i32_0 = arith.constant 0 : i32
    %c0_i32_1 = arith.constant 0 : i32
    return %c0_i32, %c0_i32_0 : i32, i32
  }
  func.func @transform_8(%arg0: i32, %arg1: i32) -> (i32, i32) {
    %c0_i32 = arith.constant 0 : i32
    %c0_i32_0 = arith.constant 0 : i32
    %c0_i32_1 = arith.constant 0 : i32
    return %c0_i32, %c0_i32_0 : i32, i32
  }
  func.func @transform_9(%arg0: i32, %arg1: i32) -> (i32, i32) {
    %c0_i32 = arith.constant 0 : i32
    %c0_i32_0 = arith.constant 0 : i32
    %c0_i32_1 = arith.constant 0 : i32
    return %c0_i32, %c0_i32_0 : i32, i32
  }
  func.func @transform_10(%arg0: i32, %arg1: i32) -> (i32, i32) {
    %c0_i32 = arith.constant 0 : i32
    %c0_i32_0 = arith.constant 0 : i32
    %c0_i32_1 = arith.constant 0 : i32
    return %c0_i32, %c0_i32_0 : i32, i32
  }
  func.func @transform_11(%arg0: i32, %arg1: i32) -> (i32, i32) {
    %c0_i32 = arith.constant 0 : i32
    %c0_i32_0 = arith.constant 0 : i32
    %c0_i32_1 = arith.constant 0 : i32
    return %c0_i32, %c0_i32_0 : i32, i32
  }
  func.func @transform_12(%arg0: i32, %arg1: i32) -> (i32, i32) {
    %c0_i32 = arith.constant 0 : i32
    %c0_i32_0 = arith.constant 0 : i32
    %c0_i32_1 = arith.constant 0 : i32
    return %c0_i32, %c0_i32_0 : i32, i32
  }
  func.func @transform_13(%arg0: i32, %arg1: i32) -> (i32, i32) {
    %c0_i32 = arith.constant 0 : i32
    %c0_i32_0 = arith.constant 0 : i32
    %c0_i32_1 = arith.constant 0 : i32
    return %c0_i32, %c0_i32_0 : i32, i32
  }
  func.func @transform_14(%arg0: i32, %arg1: i32) -> (i32, i32, i32) {
    %c0_i32 = arith.constant 0 : i32
    %c0_i32_0 = arith.constant 0 : i32
    %c0_i32_1 = arith.constant 0 : i32
    %c0_i32_2 = arith.constant 0 : i32
    return %c0_i32, %c0_i32_0, %c0_i32_1 : i32, i32, i32
  }
  func.func @transform_15(%arg0: i32, %arg1: i32) -> (i32, i32) {
    %c0_i32 = arith.constant 0 : i32
    %c0_i32_0 = arith.constant 0 : i32
    %c0_i32_1 = arith.constant 0 : i32
    return %c0_i32, %c0_i32_0 : i32, i32
  }
  func.func @transform_16(%arg0: i32, %arg1: i32) -> (i32, i32) {
    %c0_i32 = arith.constant 0 : i32
    %c0_i32_0 = arith.constant 0 : i32
    %c0_i32_1 = arith.constant 0 : i32
    return %c0_i32, %c0_i32_0 : i32, i32
  }
  func.func @transform_17(%arg0: i32, %arg1: i32) -> (i32, i32) {
    %c0_i32 = arith.constant 0 : i32
    %c0_i32_0 = arith.constant 0 : i32
    %c0_i32_1 = arith.constant 0 : i32
    return %c0_i32, %c0_i32_0 : i32, i32
  }
  func.func @transform_18(%arg0: i32, %arg1: i32) -> (i32, i32) {
    %c0_i32 = arith.constant 0 : i32
    %c0_i32_0 = arith.constant 0 : i32
    %c0_i32_1 = arith.constant 0 : i32
    return %c0_i32, %c0_i32_0 : i32, i32
  }
  func.func @transform_19(%arg0: i32, %arg1: i32) -> (i32, i32, i32) {
    %c0_i32 = arith.constant 0 : i32
    %c0_i32_0 = arith.constant 0 : i32
    return %arg1, %arg0, %c0_i32 : i32, i32, i32
  }
  func.func @transform_20(%arg0: i32, %arg1: i32) -> (i32, i32, i32) {
    %c0_i32 = arith.constant 0 : i32
    %c0_i32_0 = arith.constant 0 : i32
    return %arg1, %arg0, %c0_i32 : i32, i32, i32
  }
  func.func @transform_21(%arg0: i32, %arg1: i32) -> (i32, i32, i32) {
    %c0_i32 = arith.constant 0 : i32
    %c0_i32_0 = arith.constant 0 : i32
    return %arg1, %arg0, %c0_i32 : i32, i32, i32
  }
}

module attributes {stable_mosaic.version = 11 : i64} {
  func.func @decoder_step_kernel(%arg0: i32, %arg1: i32, %arg2: memref<4x16x8x16xf32, #tpu.memory_space<vmem>>, %arg3: memref<16x8xf32, #tpu.memory_space<vmem>>, %arg4: memref<16x8x32xf32, #tpu.memory_space<vmem>>, %arg5: memref<16x32xf32, #tpu.memory_space<vmem>>, %arg6: memref<1x16x96xf32, #tpu.memory_space<vmem>>, %arg7: memref<1x16x64xf32, #tpu.memory_space<vmem>>, %arg8: memref<1x16x1xf32, #tpu.memory_space<vmem>>, %arg9: memref<32x96xf32, #tpu.memory_space<vmem>>, %arg10: memref<1x96xf32, #tpu.memory_space<vmem>>, %arg11: memref<32x128xf32, #tpu.memory_space<vmem>>, %arg12: memref<1x96xf32, #tpu.memory_space<vmem>>, %arg13: memref<64x96xf32, #tpu.memory_space<vmem>>, %arg14: memref<1x96xf32, #tpu.memory_space<vmem>>, %arg15: memref<32x4xf32, #tpu.memory_space<vmem>>, %arg16: memref<4x16x64xf32, #tpu.memory_space<vmem>>, %arg17: memref<1x64xf32, #tpu.memory_space<vmem>>, %arg18: memref<64x64xf32, #tpu.memory_space<vmem>>, %arg19: memref<32x64xf32, #tpu.memory_space<vmem>>, %arg20: memref<1x64xf32, #tpu.memory_space<vmem>>, %arg21: memref<1x16x64xf32, #tpu.memory_space<vmem>>, %arg22: memref<1x16x8xf32, #tpu.memory_space<vmem>>, %arg23: memref<1x16x64xf32, #tpu.memory_space<vmem>>, %arg24: memref<16x32xf32, #tpu.memory_space<vmem>>) attributes {dimension_semantics = [#tpu.dimension_semantics<parallel>, #tpu.dimension_semantics<arbitrary>], iteration_bounds = array<i64: 1, 8>, scalar_prefetch = 0 : i64, scratch_operands = 1 : i64, tpu.core_type = #tpu.core_type<tc>, window_params = [{transform_indices = @transform_0, window_bounds = array<i64: 4, 16, 8, 16>}, {transform_indices = @transform_1, window_bounds = array<i64: 16, 8>}, {transform_indices = @transform_2, window_bounds = array<i64: 16, 8, 32>}, {transform_indices = @transform_3, window_bounds = array<i64: 16, 32>}, {transform_indices = @transform_4, window_bounds = array<i64: 1, 16, 96>}, {transform_indices = @transform_5, window_bounds = array<i64: 1, 16, 64>}, {transform_indices = @transform_6, window_bounds = array<i64: 1, 16, 1>}, {pipeline_mode = #tpu.pipeline_mode<synchronous>, transform_indices = @transform_7, window_bounds = array<i64: 32, 96>}, {pipeline_mode = #tpu.pipeline_mode<synchronous>, transform_indices = @transform_8, window_bounds = array<i64: 1, 96>}, {pipeline_mode = #tpu.pipeline_mode<synchronous>, transform_indices = @transform_9, window_bounds = array<i64: 32, 128>}, {pipeline_mode = #tpu.pipeline_mode<synchronous>, transform_indices = @transform_10, window_bounds = array<i64: 1, 96>}, {pipeline_mode = #tpu.pipeline_mode<synchronous>, transform_indices = @transform_11, window_bounds = array<i64: 64, 96>}, {pipeline_mode = #tpu.pipeline_mode<synchronous>, transform_indices = @transform_12, window_bounds = array<i64: 1, 96>}, {pipeline_mode = #tpu.pipeline_mode<synchronous>, transform_indices = @transform_13, window_bounds = array<i64: 32, 4>}, {pipeline_mode = #tpu.pipeline_mode<synchronous>, transform_indices = @transform_14, window_bounds = array<i64: 4, 16, 64>}, {pipeline_mode = #tpu.pipeline_mode<synchronous>, transform_indices = @transform_15, window_bounds = array<i64: 1, 64>}, {pipeline_mode = #tpu.pipeline_mode<synchronous>, transform_indices = @transform_16, window_bounds = array<i64: 64, 64>}, {pipeline_mode = #tpu.pipeline_mode<synchronous>, transform_indices = @transform_17, window_bounds = array<i64: 32, 64>}, {pipeline_mode = #tpu.pipeline_mode<synchronous>, transform_indices = @transform_18, window_bounds = array<i64: 1, 64>}, {transform_indices = @transform_19, window_bounds = array<i64: 1, 16, 64>}, {transform_indices = @transform_20, window_bounds = array<i64: 1, 16, 8>}, {transform_indices = @transform_21, window_bounds = array<i64: 1, 16, 64>}]} {
    %c0_i32 = arith.constant 0 : i32
    %0 = arith.cmpi eq, %arg1, %c0_i32 : i32
    %1 = arith.extui %0 : i1 to i32
    %c0_i32_0 = arith.constant 0 : i32
    %2 = arith.cmpi ne, %1, %c0_i32_0 : i32
    scf.if %2 {
      %c0_98 = arith.constant 0 : index
      %c0_99 = arith.constant 0 : index
      %187 = vector.load %arg5[%c0_98, %c0_99] : memref<16x32xf32, #tpu.memory_space<vmem>>, vector<16x32xf32>
      %c0_100 = arith.constant 0 : index
      %c0_101 = arith.constant 0 : index
      %188 = vector.load %arg24[%c0_100, %c0_101] : memref<16x32xf32, #tpu.memory_space<vmem>>, vector<16x32xf32>
      tpu.vector_store %arg24[%c0_100, %c0_101], %187 {strides = array<i32>} : memref<16x32xf32, #tpu.memory_space<vmem>>, vector<16x32xf32>,
    } else {
    }
    %c0 = arith.constant 0 : index
    %c0_1 = arith.constant 0 : index
    %3 = vector.load %arg24[%c0, %c0_1] : memref<16x32xf32, #tpu.memory_space<vmem>>, vector<16x32xf32>
    %c0_2 = arith.constant 0 : index
    %c0_3 = arith.constant 0 : index
    %c0_4 = arith.constant 0 : index
    %4 = vector.load %arg8[%c0_2, %c0_3, %c0_4] : memref<1x16x1xf32, #tpu.memory_space<vmem>>, vector<1x16x1xf32>
    %5 = vector.shape_cast %4 : vector<1x16x1xf32> to vector<16x1xf32>
    %c0_5 = arith.constant 0 : index
    %c0_6 = arith.constant 0 : index
    %6 = vector.load %arg3[%c0_5, %c0_6] : memref<16x8xf32, #tpu.memory_space<vmem>>, vector<16x8xf32>
    %c0_7 = arith.constant 0 : index
    %c0_8 = arith.constant 0 : index
    %7 = vector.load %arg9[%c0_7, %c0_8] : memref<32x96xf32, #tpu.memory_space<vmem>>, vector<32x96xf32>
    %cst = arith.constant dense<0.000000e+00> : vector<16x96xf32>
    %8 = tpu.matmul %3, %7, %cst {dimension_numbers = #tpu.dot_dimension_numbers<[1], [0], [0], [1], [0, 0, 1, 1], [], []>} : vector<16x32xf32>, vector<32x96xf32>, vector<16x96xf32> -> vector<16x96xf32>
    %c0_9 = arith.constant 0 : index
    %c0_10 = arith.constant 0 : index
    %9 = vector.load %arg10[%c0_9, %c0_10] : memref<1x96xf32, #tpu.memory_space<vmem>>, vector<1x96xf32>
    %10 = vector.broadcast %9 : vector<1x96xf32> to vector<16x96xf32>
    %11 = arith.addf %8, %10 : vector<16x96xf32>
    %c0_11 = arith.constant 0 : index
    %c0_12 = arith.constant 0 : index
    %c0_13 = arith.constant 0 : index
    %12 = vector.load %arg6[%c0_11, %c0_12, %c0_13] : memref<1x16x96xf32, #tpu.memory_space<vmem>>, vector<1x16x96xf32>
    %13 = vector.shape_cast %12 : vector<1x16x96xf32> to vector<16x96xf32>
    %14 = vector.extract_strided_slice %13 {offsets = [0, 0], sizes = [16, 32], strides = [1, 1]} : vector<16x96xf32> to vector<16x32xf32>
    %15 = vector.extract_strided_slice %11 {offsets = [0, 0], sizes = [16, 32], strides = [1, 1]} : vector<16x96xf32> to vector<16x32xf32>
    %16 = arith.addf %14, %15 : vector<16x32xf32>
    %17 = arith.negf %16 : vector<16x32xf32>
    %18 = math.exp %17 : vector<16x32xf32>
    %cst_14 = arith.constant 1.000000e+00 : f32
    %19 = vector.broadcast %cst_14 : f32 to vector<16x32xf32>
    %20 = arith.addf %19, %18 : vector<16x32xf32>
    %21 = arith.divf %19, %20 : vector<16x32xf32>
    %22 = vector.extract_strided_slice %13 {offsets = [0, 32], sizes = [16, 32], strides = [1, 1]} : vector<16x96xf32> to vector<16x32xf32>
    %23 = vector.extract_strided_slice %11 {offsets = [0, 32], sizes = [16, 32], strides = [1, 1]} : vector<16x96xf32> to vector<16x32xf32>
    %24 = arith.addf %22, %23 : vector<16x32xf32>
    %25 = arith.negf %24 : vector<16x32xf32>
    %26 = math.exp %25 : vector<16x32xf32>
    %cst_15 = arith.constant 1.000000e+00 : f32
    %27 = vector.broadcast %cst_15 : f32 to vector<16x32xf32>
    %28 = arith.addf %27, %26 : vector<16x32xf32>
    %29 = arith.divf %27, %28 : vector<16x32xf32>
    %30 = vector.extract_strided_slice %13 {offsets = [0, 64], sizes = [16, 32], strides = [1, 1]} : vector<16x96xf32> to vector<16x32xf32>
    %31 = vector.extract_strided_slice %11 {offsets = [0, 64], sizes = [16, 32], strides = [1, 1]} : vector<16x96xf32> to vector<16x32xf32>
    %32 = arith.mulf %21, %31 : vector<16x32xf32>
    %33 = arith.addf %30, %32 : vector<16x32xf32>
    %34 = math.tanh %33 : vector<16x32xf32>
    %cst_16 = arith.constant 1.000000e+00 : f32
    %35 = vector.broadcast %cst_16 : f32 to vector<16x32xf32>
    %36 = arith.subf %35, %29 : vector<16x32xf32>
    %37 = arith.mulf %36, %34 : vector<16x32xf32>
    %38 = arith.mulf %29, %3 : vector<16x32xf32>
    %39 = arith.addf %37, %38 : vector<16x32xf32>
    %40 = vector.broadcast %5 : vector<16x1xf32> to vector<16x32xf32>
    %41 = arith.mulf %39, %40 : vector<16x32xf32>
    %c0_17 = arith.constant 0 : index
    %c0_18 = arith.constant 0 : index
    %42 = vector.load %arg11[%c0_17, %c0_18] : memref<32x128xf32, #tpu.memory_space<vmem>>, vector<32x128xf32>
    %cst_19 = arith.constant dense<0.000000e+00> : vector<16x128xf32>
    %43 = tpu.matmul %41, %42, %cst_19 {dimension_numbers = #tpu.dot_dimension_numbers<[1], [0], [0], [1], [0, 0, 1, 1], [], []>} : vector<16x32xf32>, vector<32x128xf32>, vector<16x128xf32> -> vector<16x128xf32>
    %44 = vector.extract_strided_slice %43 {offsets = [0, 0], sizes = [16, 32], strides = [1, 1]} : vector<16x128xf32> to vector<16x32xf32>
    %45 = vector.extract_strided_slice %43 {offsets = [0, 32], sizes = [16, 96], strides = [1, 1]} : vector<16x128xf32> to vector<16x96xf32>
    %c0_20 = arith.constant 0 : index
    %c0_21 = arith.constant 0 : index
    %46 = vector.load %arg12[%c0_20, %c0_21] : memref<1x96xf32, #tpu.memory_space<vmem>>, vector<1x96xf32>
    %47 = vector.broadcast %46 : vector<1x96xf32> to vector<16x96xf32>
    %48 = arith.addf %45, %47 : vector<16x96xf32>
    %49 = vector.shape_cast %44 : vector<16x32xf32> to vector<16x1x32xf32>
    %c0_22 = arith.constant 0 : index
    %c0_23 = arith.constant 0 : index
    %c0_24 = arith.constant 0 : index
    %50 = vector.load %arg4[%c0_22, %c0_23, %c0_24] : memref<16x8x32xf32, #tpu.memory_space<vmem>>, vector<16x8x32xf32>
    %51 = vector.broadcast %49 : vector<16x1x32xf32> to vector<16x8x32xf32>
    %52 = arith.addf %51, %50 : vector<16x8x32xf32>
    %53 = math.tanh %52 : vector<16x8x32xf32>
    %54 = vector.shape_cast %53 : vector<16x8x32xf32> to vector<128x32xf32>
    %c0_25 = arith.constant 0 : index
    %c0_26 = arith.constant 0 : index
    %55 = vector.load %arg15[%c0_25, %c0_26] : memref<32x4xf32, #tpu.memory_space<vmem>>, vector<32x4xf32>
    %cst_27 = arith.constant dense<0.000000e+00> : vector<128x4xf32>
    %56 = tpu.matmul %54, %55, %cst_27 {dimension_numbers = #tpu.dot_dimension_numbers<[1], [0], [0], [1], [0, 0, 1, 1], [], []>} : vector<128x32xf32>, vector<32x4xf32>, vector<128x4xf32> -> vector<128x4xf32>
    %57 = vector.shape_cast %56 : vector<128x4xf32> to vector<16x8x4xf32>
    %58 = tpu.transpose %57, [0, 2, 1] : vector<16x8x4xf32> -> vector<16x4x8xf32>
    %cst_28 = arith.constant dense<0xFF800000> : vector<16x4xf32>
    %59 = vector.multi_reduction <maximumf>, %58, %cst_28 [2] : vector<16x4x8xf32> to vector<16x4xf32>
    %60 = vector.shape_cast %59 : vector<16x4xf32> to vector<16x4x1xf32>
    %61 = vector.broadcast %60 : vector<16x4x1xf32> to vector<16x4x8xf32>
    %62 = arith.subf %58, %61 : vector<16x4x8xf32>
    %63 = math.exp %62 : vector<16x4x8xf32>
    %64 = vector.shape_cast %6 : vector<16x8xf32> to vector<16x1x8xf32>
    %65 = vector.broadcast %64 : vector<16x1x8xf32> to vector<16x4x8xf32>
    %66 = arith.mulf %63, %65 : vector<16x4x8xf32>
    %cst_29 = arith.constant dense<0.000000e+00> : vector<16x4xf32>
    %67 = vector.multi_reduction <add>, %66, %cst_29 [2] : vector<16x4x8xf32> to vector<16x4xf32>
    %68 = vector.shape_cast %67 : vector<16x4xf32> to vector<16x4x1xf32>
    %cst_30 = arith.constant 9.99999968E-21 : f32
    %69 = vector.broadcast %cst_30 : f32 to vector<16x4x1xf32>
    %70 = arith.addf %68, %69 : vector<16x4x1xf32>
    %71 = vector.broadcast %70 : vector<16x4x1xf32> to vector<16x4x8xf32>
    %72 = arith.divf %66, %71 : vector<16x4x8xf32>
    %cst_31 = arith.constant dense<0.000000e+00> : vector<16x8xf32>
    %73 = vector.multi_reduction <add>, %72, %cst_31 [1] : vector<16x4x8xf32> to vector<16x8xf32>
    %cst_32 = arith.constant 4.000000e+00 : f32
    %74 = vector.broadcast %cst_32 : f32 to vector<16x8xf32>
    %75 = arith.divf %73, %74 : vector<16x8xf32>
    %76 = vector.extract_strided_slice %72 {offsets = [0, 0, 0], sizes = [16, 1, 8], strides = [1, 1, 1]} : vector<16x4x8xf32> to vector<16x1x8xf32>
    %77 = vector.shape_cast %76 : vector<16x1x8xf32> to vector<16x8xf32>
    %78 = vector.shape_cast %77 : vector<16x8xf32> to vector<16x8x1xf32>
    %c0_33 = arith.constant 0 : index
    %c0_34 = arith.constant 0 : index
    %c0_35 = arith.constant 0 : index
    %c0_36 = arith.constant 0 : index
    %79 = vector.load %arg2[%c0_33, %c0_34, %c0_35, %c0_36] : memref<4x16x8x16xf32, #tpu.memory_space<vmem>>, vector<1x16x8x16xf32>
    %80 = vector.shape_cast %79 : vector<1x16x8x16xf32> to vector<16x8x16xf32>
    %81 = vector.broadcast %78 : vector<16x8x1xf32> to vector<16x8x16xf32>
    %82 = arith.mulf %81, %80 : vector<16x8x16xf32>
    %cst_37 = arith.constant dense<0.000000e+00> : vector<16x16xf32>
    %83 = vector.multi_reduction <add>, %82, %cst_37 [1] : vector<16x8x16xf32> to vector<16x16xf32>
    %c0_38 = arith.constant 0 : index
    %c0_39 = arith.constant 0 : index
    %c0_40 = arith.constant 0 : index
    %84 = vector.load %arg16[%c0_38, %c0_39, %c0_40] : memref<4x16x64xf32, #tpu.memory_space<vmem>>, vector<1x16x64xf32>
    %85 = vector.shape_cast %84 : vector<1x16x64xf32> to vector<16x64xf32>
    %cst_41 = arith.constant dense<0.000000e+00> : vector<16x64xf32>
    %86 = tpu.matmul %83, %85, %cst_41 {dimension_numbers = #tpu.dot_dimension_numbers<[1], [0], [0], [1], [0, 0, 1, 1], [], []>} : vector<16x16xf32>, vector<16x64xf32>, vector<16x64xf32> -> vector<16x64xf32>
    %87 = vector.extract_strided_slice %72 {offsets = [0, 1, 0], sizes = [16, 1, 8], strides = [1, 1, 1]} : vector<16x4x8xf32> to vector<16x1x8xf32>
    %88 = vector.shape_cast %87 : vector<16x1x8xf32> to vector<16x8xf32>
    %89 = vector.shape_cast %88 : vector<16x8xf32> to vector<16x8x1xf32>
    %c1 = arith.constant 1 : index
    %c0_42 = arith.constant 0 : index
    %c0_43 = arith.constant 0 : index
    %c0_44 = arith.constant 0 : index
    %90 = vector.load %arg2[%c1, %c0_42, %c0_43, %c0_44] : memref<4x16x8x16xf32, #tpu.memory_space<vmem>>, vector<1x16x8x16xf32>
    %91 = vector.shape_cast %90 : vector<1x16x8x16xf32> to vector<16x8x16xf32>
    %92 = vector.broadcast %89 : vector<16x8x1xf32> to vector<16x8x16xf32>
    %93 = arith.mulf %92, %91 : vector<16x8x16xf32>
    %cst_45 = arith.constant dense<0.000000e+00> : vector<16x16xf32>
    %94 = vector.multi_reduction <add>, %93, %cst_45 [1] : vector<16x8x16xf32> to vector<16x16xf32>
    %c1_46 = arith.constant 1 : index
    %c0_47 = arith.constant 0 : index
    %c0_48 = arith.constant 0 : index
    %95 = vector.load %arg16[%c1_46, %c0_47, %c0_48] : memref<4x16x64xf32, #tpu.memory_space<vmem>>, vector<1x16x64xf32>
    %96 = vector.shape_cast %95 : vector<1x16x64xf32> to vector<16x64xf32>
    %cst_49 = arith.constant dense<0.000000e+00> : vector<16x64xf32>
    %97 = tpu.matmul %94, %96, %cst_49 {dimension_numbers = #tpu.dot_dimension_numbers<[1], [0], [0], [1], [0, 0, 1, 1], [], []>} : vector<16x16xf32>, vector<16x64xf32>, vector<16x64xf32> -> vector<16x64xf32>
    %98 = arith.addf %86, %97 : vector<16x64xf32>
    %99 = vector.extract_strided_slice %72 {offsets = [0, 2, 0], sizes = [16, 1, 8], strides = [1, 1, 1]} : vector<16x4x8xf32> to vector<16x1x8xf32>
    %100 = vector.shape_cast %99 : vector<16x1x8xf32> to vector<16x8xf32>
    %101 = vector.shape_cast %100 : vector<16x8xf32> to vector<16x8x1xf32>
    %c2 = arith.constant 2 : index
    %c0_50 = arith.constant 0 : index
    %c0_51 = arith.constant 0 : index
    %c0_52 = arith.constant 0 : index
    %102 = vector.load %arg2[%c2, %c0_50, %c0_51, %c0_52] : memref<4x16x8x16xf32, #tpu.memory_space<vmem>>, vector<1x16x8x16xf32>
    %103 = vector.shape_cast %102 : vector<1x16x8x16xf32> to vector<16x8x16xf32>
    %104 = vector.broadcast %101 : vector<16x8x1xf32> to vector<16x8x16xf32>
    %105 = arith.mulf %104, %103 : vector<16x8x16xf32>
    %cst_53 = arith.constant dense<0.000000e+00> : vector<16x16xf32>
    %106 = vector.multi_reduction <add>, %105, %cst_53 [1] : vector<16x8x16xf32> to vector<16x16xf32>
    %c2_54 = arith.constant 2 : index
    %c0_55 = arith.constant 0 : index
    %c0_56 = arith.constant 0 : index
    %107 = vector.load %arg16[%c2_54, %c0_55, %c0_56] : memref<4x16x64xf32, #tpu.memory_space<vmem>>, vector<1x16x64xf32>
    %108 = vector.shape_cast %107 : vector<1x16x64xf32> to vector<16x64xf32>
    %cst_57 = arith.constant dense<0.000000e+00> : vector<16x64xf32>
    %109 = tpu.matmul %106, %108, %cst_57 {dimension_numbers = #tpu.dot_dimension_numbers<[1], [0], [0], [1], [0, 0, 1, 1], [], []>} : vector<16x16xf32>, vector<16x64xf32>, vector<16x64xf32> -> vector<16x64xf32>
    %110 = arith.addf %98, %109 : vector<16x64xf32>
    %111 = vector.extract_strided_slice %72 {offsets = [0, 3, 0], sizes = [16, 1, 8], strides = [1, 1, 1]} : vector<16x4x8xf32> to vector<16x1x8xf32>
    %112 = vector.shape_cast %111 : vector<16x1x8xf32> to vector<16x8xf32>
    %113 = vector.shape_cast %112 : vector<16x8xf32> to vector<16x8x1xf32>
    %c3 = arith.constant 3 : index
    %c0_58 = arith.constant 0 : index
    %c0_59 = arith.constant 0 : index
    %c0_60 = arith.constant 0 : index
    %114 = vector.load %arg2[%c3, %c0_58, %c0_59, %c0_60] : memref<4x16x8x16xf32, #tpu.memory_space<vmem>>, vector<1x16x8x16xf32>
    %115 = vector.shape_cast %114 : vector<1x16x8x16xf32> to vector<16x8x16xf32>
    %116 = vector.broadcast %113 : vector<16x8x1xf32> to vector<16x8x16xf32>
    %117 = arith.mulf %116, %115 : vector<16x8x16xf32>
    %cst_61 = arith.constant dense<0.000000e+00> : vector<16x16xf32>
    %118 = vector.multi_reduction <add>, %117, %cst_61 [1] : vector<16x8x16xf32> to vector<16x16xf32>
    %c3_62 = arith.constant 3 : index
    %c0_63 = arith.constant 0 : index
    %c0_64 = arith.constant 0 : index
    %119 = vector.load %arg16[%c3_62, %c0_63, %c0_64] : memref<4x16x64xf32, #tpu.memory_space<vmem>>, vector<1x16x64xf32>
    %120 = vector.shape_cast %119 : vector<1x16x64xf32> to vector<16x64xf32>
    %cst_65 = arith.constant dense<0.000000e+00> : vector<16x64xf32>
    %121 = tpu.matmul %118, %120, %cst_65 {dimension_numbers = #tpu.dot_dimension_numbers<[1], [0], [0], [1], [0, 0, 1, 1], [], []>} : vector<16x16xf32>, vector<16x64xf32>, vector<16x64xf32> -> vector<16x64xf32>
    %122 = arith.addf %110, %121 : vector<16x64xf32>
    %c0_66 = arith.constant 0 : index
    %c0_67 = arith.constant 0 : index
    %123 = vector.load %arg17[%c0_66, %c0_67] : memref<1x64xf32, #tpu.memory_space<vmem>>, vector<1x64xf32>
    %124 = vector.broadcast %123 : vector<1x64xf32> to vector<16x64xf32>
    %125 = arith.addf %122, %124 : vector<16x64xf32>
    %126 = vector.broadcast %5 : vector<16x1xf32> to vector<16x64xf32>
    %127 = arith.mulf %125, %126 : vector<16x64xf32>
    %c0_68 = arith.constant 0 : index
    %c0_69 = arith.constant 0 : index
    %128 = vector.load %arg13[%c0_68, %c0_69] : memref<64x96xf32, #tpu.memory_space<vmem>>, vector<64x96xf32>
    %cst_70 = arith.constant dense<0.000000e+00> : vector<16x96xf32>
    %129 = tpu.matmul %127, %128, %cst_70 {dimension_numbers = #tpu.dot_dimension_numbers<[1], [0], [0], [1], [0, 0, 1, 1], [], []>} : vector<16x64xf32>, vector<64x96xf32>, vector<16x96xf32> -> vector<16x96xf32>
    %c0_71 = arith.constant 0 : index
    %c0_72 = arith.constant 0 : index
    %130 = vector.load %arg14[%c0_71, %c0_72] : memref<1x96xf32, #tpu.memory_space<vmem>>, vector<1x96xf32>
    %131 = vector.broadcast %130 : vector<1x96xf32> to vector<16x96xf32>
    %132 = arith.addf %129, %131 : vector<16x96xf32>
    %133 = vector.extract_strided_slice %132 {offsets = [0, 0], sizes = [16, 32], strides = [1, 1]} : vector<16x96xf32> to vector<16x32xf32>
    %134 = vector.extract_strided_slice %48 {offsets = [0, 0], sizes = [16, 32], strides = [1, 1]} : vector<16x96xf32> to vector<16x32xf32>
    %135 = arith.addf %133, %134 : vector<16x32xf32>
    %136 = arith.negf %135 : vector<16x32xf32>
    %137 = math.exp %136 : vector<16x32xf32>
    %cst_73 = arith.constant 1.000000e+00 : f32
    %138 = vector.broadcast %cst_73 : f32 to vector<16x32xf32>
    %139 = arith.addf %138, %137 : vector<16x32xf32>
    %140 = arith.divf %138, %139 : vector<16x32xf32>
    %141 = vector.extract_strided_slice %132 {offsets = [0, 32], sizes = [16, 32], strides = [1, 1]} : vector<16x96xf32> to vector<16x32xf32>
    %142 = vector.extract_strided_slice %48 {offsets = [0, 32], sizes = [16, 32], strides = [1, 1]} : vector<16x96xf32> to vector<16x32xf32>
    %143 = arith.addf %141, %142 : vector<16x32xf32>
    %144 = arith.negf %143 : vector<16x32xf32>
    %145 = math.exp %144 : vector<16x32xf32>
    %cst_74 = arith.constant 1.000000e+00 : f32
    %146 = vector.broadcast %cst_74 : f32 to vector<16x32xf32>
    %147 = arith.addf %146, %145 : vector<16x32xf32>
    %148 = arith.divf %146, %147 : vector<16x32xf32>
    %149 = vector.extract_strided_slice %132 {offsets = [0, 64], sizes = [16, 32], strides = [1, 1]} : vector<16x96xf32> to vector<16x32xf32>
    %150 = vector.extract_strided_slice %48 {offsets = [0, 64], sizes = [16, 32], strides = [1, 1]} : vector<16x96xf32> to vector<16x32xf32>
    %151 = arith.mulf %140, %150 : vector<16x32xf32>
    %152 = arith.addf %149, %151 : vector<16x32xf32>
    %153 = math.tanh %152 : vector<16x32xf32>
    %cst_75 = arith.constant 1.000000e+00 : f32
    %154 = vector.broadcast %cst_75 : f32 to vector<16x32xf32>
    %155 = arith.subf %154, %148 : vector<16x32xf32>
    %156 = arith.mulf %155, %153 : vector<16x32xf32>
    %157 = arith.mulf %148, %41 : vector<16x32xf32>
    %158 = arith.addf %156, %157 : vector<16x32xf32>
    %159 = vector.broadcast %5 : vector<16x1xf32> to vector<16x32xf32>
    %160 = arith.mulf %158, %159 : vector<16x32xf32>
    %c0_76 = arith.constant 0 : index
    %c0_77 = arith.constant 0 : index
    %c0_78 = arith.constant 0 : index
    %161 = vector.load %arg7[%c0_76, %c0_77, %c0_78] : memref<1x16x64xf32, #tpu.memory_space<vmem>>, vector<1x16x64xf32>
    %162 = vector.shape_cast %161 : vector<1x16x64xf32> to vector<16x64xf32>
    %c0_79 = arith.constant 0 : index
    %c0_80 = arith.constant 0 : index
    %163 = vector.load %arg18[%c0_79, %c0_80] : memref<64x64xf32, #tpu.memory_space<vmem>>, vector<64x64xf32>
    %cst_81 = arith.constant dense<0.000000e+00> : vector<16x64xf32>
    %164 = tpu.matmul %127, %163, %cst_81 {dimension_numbers = #tpu.dot_dimension_numbers<[1], [0], [0], [1], [0, 0, 1, 1], [], []>} : vector<16x64xf32>, vector<64x64xf32>, vector<16x64xf32> -> vector<16x64xf32>
    %165 = arith.addf %162, %164 : vector<16x64xf32>
    %c0_82 = arith.constant 0 : index
    %c0_83 = arith.constant 0 : index
    %166 = vector.load %arg19[%c0_82, %c0_83] : memref<32x64xf32, #tpu.memory_space<vmem>>, vector<32x64xf32>
    %cst_84 = arith.constant dense<0.000000e+00> : vector<16x64xf32>
    %167 = tpu.matmul %160, %166, %cst_84 {dimension_numbers = #tpu.dot_dimension_numbers<[1], [0], [0], [1], [0, 0, 1, 1], [], []>} : vector<16x32xf32>, vector<32x64xf32>, vector<16x64xf32> -> vector<16x64xf32>
    %168 = arith.addf %165, %167 : vector<16x64xf32>
    %c0_85 = arith.constant 0 : index
    %c0_86 = arith.constant 0 : index
    %169 = vector.load %arg20[%c0_85, %c0_86] : memref<1x64xf32, #tpu.memory_space<vmem>>, vector<1x64xf32>
    %170 = vector.broadcast %169 : vector<1x64xf32> to vector<16x64xf32>
    %171 = arith.addf %168, %170 : vector<16x64xf32>
    %172 = math.tanh %171 : vector<16x64xf32>
    %173 = vector.broadcast %5 : vector<16x1xf32> to vector<16x64xf32>
    %174 = arith.mulf %172, %173 : vector<16x64xf32>
    %c0_87 = arith.constant 0 : index
    %c0_88 = arith.constant 0 : index
    %c0_89 = arith.constant 0 : index
    %175 = vector.load %arg21[%c0_87, %c0_88, %c0_89] : memref<1x16x64xf32, #tpu.memory_space<vmem>>, vector<1x16x64xf32>
    %176 = vector.shape_cast %175 : vector<1x16x64xf32> to vector<16x64xf32>
    %177 = vector.shape_cast %174 : vector<16x64xf32> to vector<1x16x64xf32>
    tpu.vector_store %arg21[%c0_87, %c0_88, %c0_89], %177 {strides = array<i32>} : memref<1x16x64xf32, #tpu.memory_space<vmem>>, vector<1x16x64xf32>,
    %178 = vector.broadcast %5 : vector<16x1xf32> to vector<16x8xf32>
    %179 = arith.mulf %75, %178 : vector<16x8xf32>
    %c0_90 = arith.constant 0 : index
    %c0_91 = arith.constant 0 : index
    %c0_92 = arith.constant 0 : index
    %180 = vector.load %arg22[%c0_90, %c0_91, %c0_92] : memref<1x16x8xf32, #tpu.memory_space<vmem>>, vector<1x16x8xf32>
    %181 = vector.shape_cast %180 : vector<1x16x8xf32> to vector<16x8xf32>
    %182 = vector.shape_cast %179 : vector<16x8xf32> to vector<1x16x8xf32>
    tpu.vector_store %arg22[%c0_90, %c0_91, %c0_92], %182 {strides = array<i32>} : memref<1x16x8xf32, #tpu.memory_space<vmem>>, vector<1x16x8xf32>,
    %c0_93 = arith.constant 0 : index
    %c0_94 = arith.constant 0 : index
    %c0_95 = arith.constant 0 : index
    %183 = vector.load %arg23[%c0_93, %c0_94, %c0_95] : memref<1x16x64xf32, #tpu.memory_space<vmem>>, vector<1x16x64xf32>
    %184 = vector.shape_cast %183 : vector<1x16x64xf32> to vector<16x64xf32>
    %185 = vector.shape_cast %127 : vector<16x64xf32> to vector<1x16x64xf32>
    tpu.vector_store %arg23[%c0_93, %c0_94, %c0_95], %185 {strides = array<i32>} : memref<1x16x64xf32, #tpu.memory_space<vmem>>, vector<1x16x64xf32>,
    %c0_96 = arith.constant 0 : index
    %c0_97 = arith.constant 0 : index
    %186 = vector.load %arg24[%c0_96, %c0_97] : memref<16x32xf32, #tpu.memory_space<vmem>>, vector<16x32xf32>
    tpu.vector_store %arg24[%c0_96, %c0_97], %160 {strides = array<i32>} : memref<16x32xf32, #tpu.memory_space<vmem>>, vector<16x32xf32>,
    return
  }
  func.func @transform_0(%arg0: i32, %arg1: i32) -> (i32, i32, i32, i32) {
    %c0_i32 = arith.constant 0 : i32
    %c0_i32_0 = arith.constant 0 : i32
    %c0_i32_1 = arith.constant 0 : i32
    %c0_i32_2 = arith.constant 0 : i32
    return %c0_i32, %arg0, %c0_i32_0, %c0_i32_1 : i32, i32, i32, i32
  }
  func.func @transform_1(%arg0: i32, %arg1: i32) -> (i32, i32) {
    %c0_i32 = arith.constant 0 : i32
    %c0_i32_0 = arith.constant 0 : i32
    return %arg0, %c0_i32 : i32, i32
  }
  func.func @transform_2(%arg0: i32, %arg1: i32) -> (i32, i32, i32) {
    %c0_i32 = arith.constant 0 : i32
    %c0_i32_0 = arith.constant 0 : i32
    %c0_i32_1 = arith.constant 0 : i32
    return %arg0, %c0_i32, %c0_i32_0 : i32, i32, i32
  }
  func.func @transform_3(%arg0: i32, %arg1: i32) -> (i32, i32) {
    %c0_i32 = arith.constant 0 : i32
    %c0_i32_0 = arith.constant 0 : i32
    return %arg0, %c0_i32 : i32, i32
  }
  func.func @transform_4(%arg0: i32, %arg1: i32) -> (i32, i32, i32) {
    %c0_i32 = arith.constant 0 : i32
    %c0_i32_0 = arith.constant 0 : i32
    return %arg1, %arg0, %c0_i32 : i32, i32, i32
  }
  func.func @transform_5(%arg0: i32, %arg1: i32) -> (i32, i32, i32) {
    %c0_i32 = arith.constant 0 : i32
    %c0_i32_0 = arith.constant 0 : i32
    return %arg1, %arg0, %c0_i32 : i32, i32, i32
  }
  func.func @transform_6(%arg0: i32, %arg1: i32) -> (i32, i32, i32) {
    %c0_i32 = arith.constant 0 : i32
    %c0_i32_0 = arith.constant 0 : i32
    return %arg1, %arg0, %c0_i32 : i32, i32, i32
  }
  func.func @transform_7(%arg0: i32, %arg1: i32) -> (i32, i32) {
    %c0_i32 = arith.constant 0 : i32
    %c0_i32_0 = arith.constant 0 : i32
    %c0_i32_1 = arith.constant 0 : i32
    return %c0_i32, %c0_i32_0 : i32, i32
  }
  func.func @transform_8(%arg0: i32, %arg1: i32) -> (i32, i32) {
    %c0_i32 = arith.constant 0 : i32
    %c0_i32_0 = arith.constant 0 : i32
    %c0_i32_1 = arith.constant 0 : i32
    return %c0_i32, %c0_i32_0 : i32, i32
  }
  func.func @transform_9(%arg0: i32, %arg1: i32) -> (i32, i32) {
    %c0_i32 = arith.constant 0 : i32
    %c0_i32_0 = arith.constant 0 : i32
    %c0_i32_1 = arith.constant 0 : i32
    return %c0_i32, %c0_i32_0 : i32, i32
  }
  func.func @transform_10(%arg0: i32, %arg1: i32) -> (i32, i32) {
    %c0_i32 = arith.constant 0 : i32
    %c0_i32_0 = arith.constant 0 : i32
    %c0_i32_1 = arith.constant 0 : i32
    return %c0_i32, %c0_i32_0 : i32, i32
  }
  func.func @transform_11(%arg0: i32, %arg1: i32) -> (i32, i32) {
    %c0_i32 = arith.constant 0 : i32
    %c0_i32_0 = arith.constant 0 : i32
    %c0_i32_1 = arith.constant 0 : i32
    return %c0_i32, %c0_i32_0 : i32, i32
  }
  func.func @transform_12(%arg0: i32, %arg1: i32) -> (i32, i32) {
    %c0_i32 = arith.constant 0 : i32
    %c0_i32_0 = arith.constant 0 : i32
    %c0_i32_1 = arith.constant 0 : i32
    return %c0_i32, %c0_i32_0 : i32, i32
  }
  func.func @transform_13(%arg0: i32, %arg1: i32) -> (i32, i32) {
    %c0_i32 = arith.constant 0 : i32
    %c0_i32_0 = arith.constant 0 : i32
    %c0_i32_1 = arith.constant 0 : i32
    return %c0_i32, %c0_i32_0 : i32, i32
  }
  func.func @transform_14(%arg0: i32, %arg1: i32) -> (i32, i32, i32) {
    %c0_i32 = arith.constant 0 : i32
    %c0_i32_0 = arith.constant 0 : i32
    %c0_i32_1 = arith.constant 0 : i32
    %c0_i32_2 = arith.constant 0 : i32
    return %c0_i32, %c0_i32_0, %c0_i32_1 : i32, i32, i32
  }
  func.func @transform_15(%arg0: i32, %arg1: i32) -> (i32, i32) {
    %c0_i32 = arith.constant 0 : i32
    %c0_i32_0 = arith.constant 0 : i32
    %c0_i32_1 = arith.constant 0 : i32
    return %c0_i32, %c0_i32_0 : i32, i32
  }
  func.func @transform_16(%arg0: i32, %arg1: i32) -> (i32, i32) {
    %c0_i32 = arith.constant 0 : i32
    %c0_i32_0 = arith.constant 0 : i32
    %c0_i32_1 = arith.constant 0 : i32
    return %c0_i32, %c0_i32_0 : i32, i32
  }
  func.func @transform_17(%arg0: i32, %arg1: i32) -> (i32, i32) {
    %c0_i32 = arith.constant 0 : i32
    %c0_i32_0 = arith.constant 0 : i32
    %c0_i32_1 = arith.constant 0 : i32
    return %c0_i32, %c0_i32_0 : i32, i32
  }
  func.func @transform_18(%arg0: i32, %arg1: i32) -> (i32, i32) {
    %c0_i32 = arith.constant 0 : i32
    %c0_i32_0 = arith.constant 0 : i32
    %c0_i32_1 = arith.constant 0 : i32
    return %c0_i32, %c0_i32_0 : i32, i32
  }
  func.func @transform_19(%arg0: i32, %arg1: i32) -> (i32, i32, i32) {
    %c0_i32 = arith.constant 0 : i32
    %c0_i32_0 = arith.constant 0 : i32
    return %arg1, %arg0, %c0_i32 : i32, i32, i32
  }
  func.func @transform_20(%arg0: i32, %arg1: i32) -> (i32, i32, i32) {
    %c0_i32 = arith.constant 0 : i32
    %c0_i32_0 = arith.constant 0 : i32
    return %arg1, %arg0, %c0_i32 : i32, i32, i32
  }
  func.func @transform_21(%arg0: i32, %arg1: i32) -> (i32, i32, i32) {
    %c0_i32 = arith.constant 0 : i32
    %c0_i32_0 = arith.constant 0 : i32
    return %arg1, %arg0, %c0_i32 : i32, i32, i32
  }
}

module attributes {stable_mosaic.version = 11 : i64} {
  func.func @decoder_step_kernel(%arg0: i32, %arg1: i32, %arg2: memref<4x16x8x16xf32, #tpu.memory_space<vmem>>, %arg3: memref<16x8xf32, #tpu.memory_space<vmem>>, %arg4: memref<16x8x32xf32, #tpu.memory_space<vmem>>, %arg5: memref<16x32xf32, #tpu.memory_space<vmem>>, %arg6: memref<1x16x96xf32, #tpu.memory_space<vmem>>, %arg7: memref<1x16x64xf32, #tpu.memory_space<vmem>>, %arg8: memref<1x16x1xf32, #tpu.memory_space<vmem>>, %arg9: memref<32x96xf32, #tpu.memory_space<vmem>>, %arg10: memref<1x96xf32, #tpu.memory_space<vmem>>, %arg11: memref<32x128xf32, #tpu.memory_space<vmem>>, %arg12: memref<1x96xf32, #tpu.memory_space<vmem>>, %arg13: memref<64x96xf32, #tpu.memory_space<vmem>>, %arg14: memref<1x96xf32, #tpu.memory_space<vmem>>, %arg15: memref<32x4xf32, #tpu.memory_space<vmem>>, %arg16: memref<4x16x64xf32, #tpu.memory_space<vmem>>, %arg17: memref<1x64xf32, #tpu.memory_space<vmem>>, %arg18: memref<64x64xf32, #tpu.memory_space<vmem>>, %arg19: memref<32x64xf32, #tpu.memory_space<vmem>>, %arg20: memref<1x64xf32, #tpu.memory_space<vmem>>, %arg21: memref<1x16x64xf32, #tpu.memory_space<vmem>>, %arg22: memref<1x16x8xf32, #tpu.memory_space<vmem>>, %arg23: memref<1x16x64xf32, #tpu.memory_space<vmem>>, %arg24: memref<16x32xf32, #tpu.memory_space<vmem>>) attributes {dimension_semantics = [#tpu.dimension_semantics<parallel>, #tpu.dimension_semantics<arbitrary>], iteration_bounds = array<i64: 1, 8>, scalar_prefetch = 0 : i64, scratch_operands = 1 : i64, tpu.core_type = #tpu.core_type<tc>, window_params = [{transform_indices = @transform_0, window_bounds = array<i64: 4, 16, 8, 16>}, {transform_indices = @transform_1, window_bounds = array<i64: 16, 8>}, {transform_indices = @transform_2, window_bounds = array<i64: 16, 8, 32>}, {transform_indices = @transform_3, window_bounds = array<i64: 16, 32>}, {transform_indices = @transform_4, window_bounds = array<i64: 1, 16, 96>}, {transform_indices = @transform_5, window_bounds = array<i64: 1, 16, 64>}, {transform_indices = @transform_6, window_bounds = array<i64: 1, 16, 1>}, {pipeline_mode = #tpu.pipeline_mode<synchronous>, transform_indices = @transform_7, window_bounds = array<i64: 32, 96>}, {pipeline_mode = #tpu.pipeline_mode<synchronous>, transform_indices = @transform_8, window_bounds = array<i64: 1, 96>}, {pipeline_mode = #tpu.pipeline_mode<synchronous>, transform_indices = @transform_9, window_bounds = array<i64: 32, 128>}, {pipeline_mode = #tpu.pipeline_mode<synchronous>, transform_indices = @transform_10, window_bounds = array<i64: 1, 96>}, {pipeline_mode = #tpu.pipeline_mode<synchronous>, transform_indices = @transform_11, window_bounds = array<i64: 64, 96>}, {pipeline_mode = #tpu.pipeline_mode<synchronous>, transform_indices = @transform_12, window_bounds = array<i64: 1, 96>}, {pipeline_mode = #tpu.pipeline_mode<synchronous>, transform_indices = @transform_13, window_bounds = array<i64: 32, 4>}, {pipeline_mode = #tpu.pipeline_mode<synchronous>, transform_indices = @transform_14, window_bounds = array<i64: 4, 16, 64>}, {pipeline_mode = #tpu.pipeline_mode<synchronous>, transform_indices = @transform_15, window_bounds = array<i64: 1, 64>}, {pipeline_mode = #tpu.pipeline_mode<synchronous>, transform_indices = @transform_16, window_bounds = array<i64: 64, 64>}, {pipeline_mode = #tpu.pipeline_mode<synchronous>, transform_indices = @transform_17, window_bounds = array<i64: 32, 64>}, {pipeline_mode = #tpu.pipeline_mode<synchronous>, transform_indices = @transform_18, window_bounds = array<i64: 1, 64>}, {transform_indices = @transform_19, window_bounds = array<i64: 1, 16, 64>}, {transform_indices = @transform_20, window_bounds = array<i64: 1, 16, 8>}, {transform_indices = @transform_21, window_bounds = array<i64: 1, 16, 64>}]} {
    %c0_i32 = arith.constant 0 : i32
    %0 = arith.cmpi eq, %arg1, %c0_i32 : i32
    %1 = arith.extui %0 : i1 to i32
    %c0_i32_0 = arith.constant 0 : i32
    %2 = arith.cmpi ne, %1, %c0_i32_0 : i32
    scf.if %2 {
      %c0_98 = arith.constant 0 : index
      %c0_99 = arith.constant 0 : index
      %186 = vector.load %arg5[%c0_98, %c0_99] : memref<16x32xf32, #tpu.memory_space<vmem>>, vector<16x32xf32>
      %c0_100 = arith.constant 0 : index
      %c0_101 = arith.constant 0 : index
      %187 = vector.load %arg24[%c0_100, %c0_101] : memref<16x32xf32, #tpu.memory_space<vmem>>, vector<16x32xf32>
      tpu.vector_store %arg24[%c0_100, %c0_101], %186 {strides = array<i32>} : memref<16x32xf32, #tpu.memory_space<vmem>>, vector<16x32xf32>,
    } else {
    }
    %c0 = arith.constant 0 : index
    %c0_1 = arith.constant 0 : index
    %3 = vector.load %arg24[%c0, %c0_1] : memref<16x32xf32, #tpu.memory_space<vmem>>, vector<16x32xf32>
    %c0_2 = arith.constant 0 : index
    %c0_3 = arith.constant 0 : index
    %c0_4 = arith.constant 0 : index
    %4 = vector.load %arg8[%c0_2, %c0_3, %c0_4] : memref<1x16x1xf32, #tpu.memory_space<vmem>>, vector<1x16x1xf32>
    %5 = vector.shape_cast %4 : vector<1x16x1xf32> to vector<16x1xf32>
    %c0_5 = arith.constant 0 : index
    %c0_6 = arith.constant 0 : index
    %6 = vector.load %arg3[%c0_5, %c0_6] : memref<16x8xf32, #tpu.memory_space<vmem>>, vector<16x8xf32>
    %c0_7 = arith.constant 0 : index
    %c0_8 = arith.constant 0 : index
    %7 = vector.load %arg9[%c0_7, %c0_8] : memref<32x96xf32, #tpu.memory_space<vmem>>, vector<32x96xf32>
    %cst = arith.constant dense<0.000000e+00> : vector<16x96xf32>
    %8 = tpu.matmul %3, %7, %cst {dimension_numbers = #tpu.dot_dimension_numbers<[1], [0], [0], [1], [0, 0, 1, 1], [], []>} : vector<16x32xf32>, vector<32x96xf32>, vector<16x96xf32> -> vector<16x96xf32>
    %c0_9 = arith.constant 0 : index
    %c0_10 = arith.constant 0 : index
    %9 = vector.load %arg10[%c0_9, %c0_10] : memref<1x96xf32, #tpu.memory_space<vmem>>, vector<1x96xf32>
    %10 = vector.broadcast %9 : vector<1x96xf32> to vector<16x96xf32>
    %11 = arith.addf %8, %10 : vector<16x96xf32>
    %c0_11 = arith.constant 0 : index
    %c0_12 = arith.constant 0 : index
    %c0_13 = arith.constant 0 : index
    %12 = vector.load %arg6[%c0_11, %c0_12, %c0_13] : memref<1x16x96xf32, #tpu.memory_space<vmem>>, vector<1x16x96xf32>
    %13 = vector.shape_cast %12 : vector<1x16x96xf32> to vector<16x96xf32>
    %14 = vector.extract_strided_slice %13 {offsets = [0, 0], sizes = [16, 32], strides = [1, 1]} : vector<16x96xf32> to vector<16x32xf32>
    %15 = vector.extract_strided_slice %11 {offsets = [0, 0], sizes = [16, 32], strides = [1, 1]} : vector<16x96xf32> to vector<16x32xf32>
    %16 = arith.addf %14, %15 : vector<16x32xf32>
    %17 = arith.negf %16 : vector<16x32xf32>
    %18 = math.exp %17 : vector<16x32xf32>
    %cst_14 = arith.constant 1.000000e+00 : f32
    %19 = vector.broadcast %cst_14 : f32 to vector<16x32xf32>
    %20 = arith.addf %19, %18 : vector<16x32xf32>
    %21 = arith.divf %19, %20 : vector<16x32xf32>
    %22 = vector.extract_strided_slice %13 {offsets = [0, 32], sizes = [16, 32], strides = [1, 1]} : vector<16x96xf32> to vector<16x32xf32>
    %23 = vector.extract_strided_slice %11 {offsets = [0, 32], sizes = [16, 32], strides = [1, 1]} : vector<16x96xf32> to vector<16x32xf32>
    %24 = arith.addf %22, %23 : vector<16x32xf32>
    %25 = arith.negf %24 : vector<16x32xf32>
    %26 = math.exp %25 : vector<16x32xf32>
    %cst_15 = arith.constant 1.000000e+00 : f32
    %27 = vector.broadcast %cst_15 : f32 to vector<16x32xf32>
    %28 = arith.addf %27, %26 : vector<16x32xf32>
    %29 = arith.divf %27, %28 : vector<16x32xf32>
    %30 = vector.extract_strided_slice %13 {offsets = [0, 64], sizes = [16, 32], strides = [1, 1]} : vector<16x96xf32> to vector<16x32xf32>
    %31 = vector.extract_strided_slice %11 {offsets = [0, 64], sizes = [16, 32], strides = [1, 1]} : vector<16x96xf32> to vector<16x32xf32>
    %32 = arith.mulf %21, %31 : vector<16x32xf32>
    %33 = arith.addf %30, %32 : vector<16x32xf32>
    %34 = math.tanh %33 : vector<16x32xf32>
    %cst_16 = arith.constant 1.000000e+00 : f32
    %35 = vector.broadcast %cst_16 : f32 to vector<16x32xf32>
    %36 = arith.subf %35, %29 : vector<16x32xf32>
    %37 = arith.mulf %36, %34 : vector<16x32xf32>
    %38 = arith.mulf %29, %3 : vector<16x32xf32>
    %39 = arith.addf %37, %38 : vector<16x32xf32>
    %40 = vector.broadcast %5 : vector<16x1xf32> to vector<16x32xf32>
    %41 = arith.mulf %39, %40 : vector<16x32xf32>
    %c0_17 = arith.constant 0 : index
    %c0_18 = arith.constant 0 : index
    %42 = vector.load %arg11[%c0_17, %c0_18] : memref<32x128xf32, #tpu.memory_space<vmem>>, vector<32x128xf32>
    %cst_19 = arith.constant dense<0.000000e+00> : vector<16x128xf32>
    %43 = tpu.matmul %41, %42, %cst_19 {dimension_numbers = #tpu.dot_dimension_numbers<[1], [0], [0], [1], [0, 0, 1, 1], [], []>} : vector<16x32xf32>, vector<32x128xf32>, vector<16x128xf32> -> vector<16x128xf32>
    %44 = vector.extract_strided_slice %43 {offsets = [0, 0], sizes = [16, 32], strides = [1, 1]} : vector<16x128xf32> to vector<16x32xf32>
    %45 = vector.extract_strided_slice %43 {offsets = [0, 32], sizes = [16, 96], strides = [1, 1]} : vector<16x128xf32> to vector<16x96xf32>
    %c0_20 = arith.constant 0 : index
    %c0_21 = arith.constant 0 : index
    %46 = vector.load %arg12[%c0_20, %c0_21] : memref<1x96xf32, #tpu.memory_space<vmem>>, vector<1x96xf32>
    %47 = vector.broadcast %46 : vector<1x96xf32> to vector<16x96xf32>
    %48 = arith.addf %45, %47 : vector<16x96xf32>
    %49 = vector.shape_cast %44 : vector<16x32xf32> to vector<16x1x32xf32>
    %c0_22 = arith.constant 0 : index
    %c0_23 = arith.constant 0 : index
    %c0_24 = arith.constant 0 : index
    %50 = vector.load %arg4[%c0_22, %c0_23, %c0_24] : memref<16x8x32xf32, #tpu.memory_space<vmem>>, vector<16x8x32xf32>
    %51 = vector.broadcast %49 : vector<16x1x32xf32> to vector<16x8x32xf32>
    %52 = arith.addf %51, %50 : vector<16x8x32xf32>
    %53 = math.tanh %52 : vector<16x8x32xf32>
    %54 = vector.shape_cast %53 : vector<16x8x32xf32> to vector<128x32xf32>
    %c0_25 = arith.constant 0 : index
    %c0_26 = arith.constant 0 : index
    %55 = vector.load %arg15[%c0_25, %c0_26] : memref<32x4xf32, #tpu.memory_space<vmem>>, vector<32x4xf32>
    %cst_27 = arith.constant dense<0.000000e+00> : vector<128x4xf32>
    %56 = tpu.matmul %54, %55, %cst_27 {dimension_numbers = #tpu.dot_dimension_numbers<[1], [0], [0], [1], [0, 0, 1, 1], [], []>} : vector<128x32xf32>, vector<32x4xf32>, vector<128x4xf32> -> vector<128x4xf32>
    %57 = vector.shape_cast %56 : vector<128x4xf32> to vector<16x8x4xf32>
    %cst_28 = arith.constant dense<0xFF800000> : vector<16x4xf32>
    %58 = vector.multi_reduction <maximumf>, %57, %cst_28 [1] : vector<16x8x4xf32> to vector<16x4xf32>
    %59 = vector.shape_cast %58 : vector<16x4xf32> to vector<16x1x4xf32>
    %60 = vector.broadcast %59 : vector<16x1x4xf32> to vector<16x8x4xf32>
    %61 = arith.subf %57, %60 : vector<16x8x4xf32>
    %62 = math.exp %61 : vector<16x8x4xf32>
    %63 = vector.shape_cast %6 : vector<16x8xf32> to vector<16x8x1xf32>
    %64 = vector.broadcast %63 : vector<16x8x1xf32> to vector<16x8x4xf32>
    %65 = arith.mulf %62, %64 : vector<16x8x4xf32>
    %cst_29 = arith.constant dense<0.000000e+00> : vector<16x4xf32>
    %66 = vector.multi_reduction <add>, %65, %cst_29 [1] : vector<16x8x4xf32> to vector<16x4xf32>
    %67 = vector.shape_cast %66 : vector<16x4xf32> to vector<16x1x4xf32>
    %cst_30 = arith.constant 9.99999968E-21 : f32
    %68 = vector.broadcast %cst_30 : f32 to vector<16x1x4xf32>
    %69 = arith.addf %67, %68 : vector<16x1x4xf32>
    %70 = vector.broadcast %69 : vector<16x1x4xf32> to vector<16x8x4xf32>
    %71 = arith.divf %65, %70 : vector<16x8x4xf32>
    %cst_31 = arith.constant dense<0.000000e+00> : vector<16x8xf32>
    %72 = vector.multi_reduction <add>, %71, %cst_31 [2] : vector<16x8x4xf32> to vector<16x8xf32>
    %cst_32 = arith.constant 4.000000e+00 : f32
    %73 = vector.broadcast %cst_32 : f32 to vector<16x8xf32>
    %74 = arith.divf %72, %73 : vector<16x8xf32>
    %75 = vector.extract_strided_slice %71 {offsets = [0, 0, 0], sizes = [16, 8, 1], strides = [1, 1, 1]} : vector<16x8x4xf32> to vector<16x8x1xf32>
    %76 = vector.shape_cast %75 : vector<16x8x1xf32> to vector<16x8xf32>
    %77 = vector.shape_cast %76 : vector<16x8xf32> to vector<16x8x1xf32>
    %c0_33 = arith.constant 0 : index
    %c0_34 = arith.constant 0 : index
    %c0_35 = arith.constant 0 : index
    %c0_36 = arith.constant 0 : index
    %78 = vector.load %arg2[%c0_33, %c0_34, %c0_35, %c0_36] : memref<4x16x8x16xf32, #tpu.memory_space<vmem>>, vector<1x16x8x16xf32>
    %79 = vector.shape_cast %78 : vector<1x16x8x16xf32> to vector<16x8x16xf32>
    %80 = vector.broadcast %77 : vector<16x8x1xf32> to vector<16x8x16xf32>
    %81 = arith.mulf %80, %79 : vector<16x8x16xf32>
    %cst_37 = arith.constant dense<0.000000e+00> : vector<16x16xf32>
    %82 = vector.multi_reduction <add>, %81, %cst_37 [1] : vector<16x8x16xf32> to vector<16x16xf32>
    %c0_38 = arith.constant 0 : index
    %c0_39 = arith.constant 0 : index
    %c0_40 = arith.constant 0 : index
    %83 = vector.load %arg16[%c0_38, %c0_39, %c0_40] : memref<4x16x64xf32, #tpu.memory_space<vmem>>, vector<1x16x64xf32>
    %84 = vector.shape_cast %83 : vector<1x16x64xf32> to vector<16x64xf32>
    %cst_41 = arith.constant dense<0.000000e+00> : vector<16x64xf32>
    %85 = tpu.matmul %82, %84, %cst_41 {dimension_numbers = #tpu.dot_dimension_numbers<[1], [0], [0], [1], [0, 0, 1, 1], [], []>} : vector<16x16xf32>, vector<16x64xf32>, vector<16x64xf32> -> vector<16x64xf32>
    %86 = vector.extract_strided_slice %71 {offsets = [0, 0, 1], sizes = [16, 8, 1], strides = [1, 1, 1]} : vector<16x8x4xf32> to vector<16x8x1xf32>
    %87 = vector.shape_cast %86 : vector<16x8x1xf32> to vector<16x8xf32>
    %88 = vector.shape_cast %87 : vector<16x8xf32> to vector<16x8x1xf32>
    %c1 = arith.constant 1 : index
    %c0_42 = arith.constant 0 : index
    %c0_43 = arith.constant 0 : index
    %c0_44 = arith.constant 0 : index
    %89 = vector.load %arg2[%c1, %c0_42, %c0_43, %c0_44] : memref<4x16x8x16xf32, #tpu.memory_space<vmem>>, vector<1x16x8x16xf32>
    %90 = vector.shape_cast %89 : vector<1x16x8x16xf32> to vector<16x8x16xf32>
    %91 = vector.broadcast %88 : vector<16x8x1xf32> to vector<16x8x16xf32>
    %92 = arith.mulf %91, %90 : vector<16x8x16xf32>
    %cst_45 = arith.constant dense<0.000000e+00> : vector<16x16xf32>
    %93 = vector.multi_reduction <add>, %92, %cst_45 [1] : vector<16x8x16xf32> to vector<16x16xf32>
    %c1_46 = arith.constant 1 : index
    %c0_47 = arith.constant 0 : index
    %c0_48 = arith.constant 0 : index
    %94 = vector.load %arg16[%c1_46, %c0_47, %c0_48] : memref<4x16x64xf32, #tpu.memory_space<vmem>>, vector<1x16x64xf32>
    %95 = vector.shape_cast %94 : vector<1x16x64xf32> to vector<16x64xf32>
    %cst_49 = arith.constant dense<0.000000e+00> : vector<16x64xf32>
    %96 = tpu.matmul %93, %95, %cst_49 {dimension_numbers = #tpu.dot_dimension_numbers<[1], [0], [0], [1], [0, 0, 1, 1], [], []>} : vector<16x16xf32>, vector<16x64xf32>, vector<16x64xf32> -> vector<16x64xf32>
    %97 = arith.addf %85, %96 : vector<16x64xf32>
    %98 = vector.extract_strided_slice %71 {offsets = [0, 0, 2], sizes = [16, 8, 1], strides = [1, 1, 1]} : vector<16x8x4xf32> to vector<16x8x1xf32>
    %99 = vector.shape_cast %98 : vector<16x8x1xf32> to vector<16x8xf32>
    %100 = vector.shape_cast %99 : vector<16x8xf32> to vector<16x8x1xf32>
    %c2 = arith.constant 2 : index
    %c0_50 = arith.constant 0 : index
    %c0_51 = arith.constant 0 : index
    %c0_52 = arith.constant 0 : index
    %101 = vector.load %arg2[%c2, %c0_50, %c0_51, %c0_52] : memref<4x16x8x16xf32, #tpu.memory_space<vmem>>, vector<1x16x8x16xf32>
    %102 = vector.shape_cast %101 : vector<1x16x8x16xf32> to vector<16x8x16xf32>
    %103 = vector.broadcast %100 : vector<16x8x1xf32> to vector<16x8x16xf32>
    %104 = arith.mulf %103, %102 : vector<16x8x16xf32>
    %cst_53 = arith.constant dense<0.000000e+00> : vector<16x16xf32>
    %105 = vector.multi_reduction <add>, %104, %cst_53 [1] : vector<16x8x16xf32> to vector<16x16xf32>
    %c2_54 = arith.constant 2 : index
    %c0_55 = arith.constant 0 : index
    %c0_56 = arith.constant 0 : index
    %106 = vector.load %arg16[%c2_54, %c0_55, %c0_56] : memref<4x16x64xf32, #tpu.memory_space<vmem>>, vector<1x16x64xf32>
    %107 = vector.shape_cast %106 : vector<1x16x64xf32> to vector<16x64xf32>
    %cst_57 = arith.constant dense<0.000000e+00> : vector<16x64xf32>
    %108 = tpu.matmul %105, %107, %cst_57 {dimension_numbers = #tpu.dot_dimension_numbers<[1], [0], [0], [1], [0, 0, 1, 1], [], []>} : vector<16x16xf32>, vector<16x64xf32>, vector<16x64xf32> -> vector<16x64xf32>
    %109 = arith.addf %97, %108 : vector<16x64xf32>
    %110 = vector.extract_strided_slice %71 {offsets = [0, 0, 3], sizes = [16, 8, 1], strides = [1, 1, 1]} : vector<16x8x4xf32> to vector<16x8x1xf32>
    %111 = vector.shape_cast %110 : vector<16x8x1xf32> to vector<16x8xf32>
    %112 = vector.shape_cast %111 : vector<16x8xf32> to vector<16x8x1xf32>
    %c3 = arith.constant 3 : index
    %c0_58 = arith.constant 0 : index
    %c0_59 = arith.constant 0 : index
    %c0_60 = arith.constant 0 : index
    %113 = vector.load %arg2[%c3, %c0_58, %c0_59, %c0_60] : memref<4x16x8x16xf32, #tpu.memory_space<vmem>>, vector<1x16x8x16xf32>
    %114 = vector.shape_cast %113 : vector<1x16x8x16xf32> to vector<16x8x16xf32>
    %115 = vector.broadcast %112 : vector<16x8x1xf32> to vector<16x8x16xf32>
    %116 = arith.mulf %115, %114 : vector<16x8x16xf32>
    %cst_61 = arith.constant dense<0.000000e+00> : vector<16x16xf32>
    %117 = vector.multi_reduction <add>, %116, %cst_61 [1] : vector<16x8x16xf32> to vector<16x16xf32>
    %c3_62 = arith.constant 3 : index
    %c0_63 = arith.constant 0 : index
    %c0_64 = arith.constant 0 : index
    %118 = vector.load %arg16[%c3_62, %c0_63, %c0_64] : memref<4x16x64xf32, #tpu.memory_space<vmem>>, vector<1x16x64xf32>
    %119 = vector.shape_cast %118 : vector<1x16x64xf32> to vector<16x64xf32>
    %cst_65 = arith.constant dense<0.000000e+00> : vector<16x64xf32>
    %120 = tpu.matmul %117, %119, %cst_65 {dimension_numbers = #tpu.dot_dimension_numbers<[1], [0], [0], [1], [0, 0, 1, 1], [], []>} : vector<16x16xf32>, vector<16x64xf32>, vector<16x64xf32> -> vector<16x64xf32>
    %121 = arith.addf %109, %120 : vector<16x64xf32>
    %c0_66 = arith.constant 0 : index
    %c0_67 = arith.constant 0 : index
    %122 = vector.load %arg17[%c0_66, %c0_67] : memref<1x64xf32, #tpu.memory_space<vmem>>, vector<1x64xf32>
    %123 = vector.broadcast %122 : vector<1x64xf32> to vector<16x64xf32>
    %124 = arith.addf %121, %123 : vector<16x64xf32>
    %125 = vector.broadcast %5 : vector<16x1xf32> to vector<16x64xf32>
    %126 = arith.mulf %124, %125 : vector<16x64xf32>
    %c0_68 = arith.constant 0 : index
    %c0_69 = arith.constant 0 : index
    %127 = vector.load %arg13[%c0_68, %c0_69] : memref<64x96xf32, #tpu.memory_space<vmem>>, vector<64x96xf32>
    %cst_70 = arith.constant dense<0.000000e+00> : vector<16x96xf32>
    %128 = tpu.matmul %126, %127, %cst_70 {dimension_numbers = #tpu.dot_dimension_numbers<[1], [0], [0], [1], [0, 0, 1, 1], [], []>} : vector<16x64xf32>, vector<64x96xf32>, vector<16x96xf32> -> vector<16x96xf32>
    %c0_71 = arith.constant 0 : index
    %c0_72 = arith.constant 0 : index
    %129 = vector.load %arg14[%c0_71, %c0_72] : memref<1x96xf32, #tpu.memory_space<vmem>>, vector<1x96xf32>
    %130 = vector.broadcast %129 : vector<1x96xf32> to vector<16x96xf32>
    %131 = arith.addf %128, %130 : vector<16x96xf32>
    %132 = vector.extract_strided_slice %131 {offsets = [0, 0], sizes = [16, 32], strides = [1, 1]} : vector<16x96xf32> to vector<16x32xf32>
    %133 = vector.extract_strided_slice %48 {offsets = [0, 0], sizes = [16, 32], strides = [1, 1]} : vector<16x96xf32> to vector<16x32xf32>
    %134 = arith.addf %132, %133 : vector<16x32xf32>
    %135 = arith.negf %134 : vector<16x32xf32>
    %136 = math.exp %135 : vector<16x32xf32>
    %cst_73 = arith.constant 1.000000e+00 : f32
    %137 = vector.broadcast %cst_73 : f32 to vector<16x32xf32>
    %138 = arith.addf %137, %136 : vector<16x32xf32>
    %139 = arith.divf %137, %138 : vector<16x32xf32>
    %140 = vector.extract_strided_slice %131 {offsets = [0, 32], sizes = [16, 32], strides = [1, 1]} : vector<16x96xf32> to vector<16x32xf32>
    %141 = vector.extract_strided_slice %48 {offsets = [0, 32], sizes = [16, 32], strides = [1, 1]} : vector<16x96xf32> to vector<16x32xf32>
    %142 = arith.addf %140, %141 : vector<16x32xf32>
    %143 = arith.negf %142 : vector<16x32xf32>
    %144 = math.exp %143 : vector<16x32xf32>
    %cst_74 = arith.constant 1.000000e+00 : f32
    %145 = vector.broadcast %cst_74 : f32 to vector<16x32xf32>
    %146 = arith.addf %145, %144 : vector<16x32xf32>
    %147 = arith.divf %145, %146 : vector<16x32xf32>
    %148 = vector.extract_strided_slice %131 {offsets = [0, 64], sizes = [16, 32], strides = [1, 1]} : vector<16x96xf32> to vector<16x32xf32>
    %149 = vector.extract_strided_slice %48 {offsets = [0, 64], sizes = [16, 32], strides = [1, 1]} : vector<16x96xf32> to vector<16x32xf32>
    %150 = arith.mulf %139, %149 : vector<16x32xf32>
    %151 = arith.addf %148, %150 : vector<16x32xf32>
    %152 = math.tanh %151 : vector<16x32xf32>
    %cst_75 = arith.constant 1.000000e+00 : f32
    %153 = vector.broadcast %cst_75 : f32 to vector<16x32xf32>
    %154 = arith.subf %153, %147 : vector<16x32xf32>
    %155 = arith.mulf %154, %152 : vector<16x32xf32>
    %156 = arith.mulf %147, %41 : vector<16x32xf32>
    %157 = arith.addf %155, %156 : vector<16x32xf32>
    %158 = vector.broadcast %5 : vector<16x1xf32> to vector<16x32xf32>
    %159 = arith.mulf %157, %158 : vector<16x32xf32>
    %c0_76 = arith.constant 0 : index
    %c0_77 = arith.constant 0 : index
    %c0_78 = arith.constant 0 : index
    %160 = vector.load %arg7[%c0_76, %c0_77, %c0_78] : memref<1x16x64xf32, #tpu.memory_space<vmem>>, vector<1x16x64xf32>
    %161 = vector.shape_cast %160 : vector<1x16x64xf32> to vector<16x64xf32>
    %c0_79 = arith.constant 0 : index
    %c0_80 = arith.constant 0 : index
    %162 = vector.load %arg18[%c0_79, %c0_80] : memref<64x64xf32, #tpu.memory_space<vmem>>, vector<64x64xf32>
    %cst_81 = arith.constant dense<0.000000e+00> : vector<16x64xf32>
    %163 = tpu.matmul %126, %162, %cst_81 {dimension_numbers = #tpu.dot_dimension_numbers<[1], [0], [0], [1], [0, 0, 1, 1], [], []>} : vector<16x64xf32>, vector<64x64xf32>, vector<16x64xf32> -> vector<16x64xf32>
    %164 = arith.addf %161, %163 : vector<16x64xf32>
    %c0_82 = arith.constant 0 : index
    %c0_83 = arith.constant 0 : index
    %165 = vector.load %arg19[%c0_82, %c0_83] : memref<32x64xf32, #tpu.memory_space<vmem>>, vector<32x64xf32>
    %cst_84 = arith.constant dense<0.000000e+00> : vector<16x64xf32>
    %166 = tpu.matmul %159, %165, %cst_84 {dimension_numbers = #tpu.dot_dimension_numbers<[1], [0], [0], [1], [0, 0, 1, 1], [], []>} : vector<16x32xf32>, vector<32x64xf32>, vector<16x64xf32> -> vector<16x64xf32>
    %167 = arith.addf %164, %166 : vector<16x64xf32>
    %c0_85 = arith.constant 0 : index
    %c0_86 = arith.constant 0 : index
    %168 = vector.load %arg20[%c0_85, %c0_86] : memref<1x64xf32, #tpu.memory_space<vmem>>, vector<1x64xf32>
    %169 = vector.broadcast %168 : vector<1x64xf32> to vector<16x64xf32>
    %170 = arith.addf %167, %169 : vector<16x64xf32>
    %171 = math.tanh %170 : vector<16x64xf32>
    %172 = vector.broadcast %5 : vector<16x1xf32> to vector<16x64xf32>
    %173 = arith.mulf %171, %172 : vector<16x64xf32>
    %c0_87 = arith.constant 0 : index
    %c0_88 = arith.constant 0 : index
    %c0_89 = arith.constant 0 : index
    %174 = vector.load %arg21[%c0_87, %c0_88, %c0_89] : memref<1x16x64xf32, #tpu.memory_space<vmem>>, vector<1x16x64xf32>
    %175 = vector.shape_cast %174 : vector<1x16x64xf32> to vector<16x64xf32>
    %176 = vector.shape_cast %173 : vector<16x64xf32> to vector<1x16x64xf32>
    tpu.vector_store %arg21[%c0_87, %c0_88, %c0_89], %176 {strides = array<i32>} : memref<1x16x64xf32, #tpu.memory_space<vmem>>, vector<1x16x64xf32>,
    %177 = vector.broadcast %5 : vector<16x1xf32> to vector<16x8xf32>
    %178 = arith.mulf %74, %177 : vector<16x8xf32>
    %c0_90 = arith.constant 0 : index
    %c0_91 = arith.constant 0 : index
    %c0_92 = arith.constant 0 : index
    %179 = vector.load %arg22[%c0_90, %c0_91, %c0_92] : memref<1x16x8xf32, #tpu.memory_space<vmem>>, vector<1x16x8xf32>
    %180 = vector.shape_cast %179 : vector<1x16x8xf32> to vector<16x8xf32>
    %181 = vector.shape_cast %178 : vector<16x8xf32> to vector<1x16x8xf32>
    tpu.vector_store %arg22[%c0_90, %c0_91, %c0_92], %181 {strides = array<i32>} : memref<1x16x8xf32, #tpu.memory_space<vmem>>, vector<1x16x8xf32>,
    %c0_93 = arith.constant 0 : index
    %c0_94 = arith.constant 0 : index
    %c0_95 = arith.constant 0 : index
    %182 = vector.load %arg23[%c0_93, %c0_94, %c0_95] : memref<1x16x64xf32, #tpu.memory_space<vmem>>, vector<1x16x64xf32>
    %183 = vector.shape_cast %182 : vector<1x16x64xf32> to vector<16x64xf32>
    %184 = vector.shape_cast %126 : vector<16x64xf32> to vector<1x16x64xf32>
    tpu.vector_store %arg23[%c0_93, %c0_94, %c0_95], %184 {strides = array<i32>} : memref<1x16x64xf32, #tpu.memory_space<vmem>>, vector<1x16x64xf32>,
    %c0_96 = arith.constant 0 : index
    %c0_97 = arith.constant 0 : index
    %185 = vector.load %arg24[%c0_96, %c0_97] : memref<16x32xf32, #tpu.memory_space<vmem>>, vector<16x32xf32>
    tpu.vector_store %arg24[%c0_96, %c0_97], %159 {strides = array<i32>} : memref<16x32xf32, #tpu.memory_space<vmem>>, vector<16x32xf32>,
    return
  }
  func.func @transform_0(%arg0: i32, %arg1: i32) -> (i32, i32, i32, i32) {
    %c0_i32 = arith.constant 0 : i32
    %c0_i32_0 = arith.constant 0 : i32
    %c0_i32_1 = arith.constant 0 : i32
    %c0_i32_2 = arith.constant 0 : i32
    return %c0_i32, %arg0, %c0_i32_0, %c0_i32_1 : i32, i32, i32, i32
  }
  func.func @transform_1(%arg0: i32, %arg1: i32) -> (i32, i32) {
    %c0_i32 = arith.constant 0 : i32
    %c0_i32_0 = arith.constant 0 : i32
    return %arg0, %c0_i32 : i32, i32
  }
  func.func @transform_2(%arg0: i32, %arg1: i32) -> (i32, i32, i32) {
    %c0_i32 = arith.constant 0 : i32
    %c0_i32_0 = arith.constant 0 : i32
    %c0_i32_1 = arith.constant 0 : i32
    return %arg0, %c0_i32, %c0_i32_0 : i32, i32, i32
  }
  func.func @transform_3(%arg0: i32, %arg1: i32) -> (i32, i32) {
    %c0_i32 = arith.constant 0 : i32
    %c0_i32_0 = arith.constant 0 : i32
    return %arg0, %c0_i32 : i32, i32
  }
  func.func @transform_4(%arg0: i32, %arg1: i32) -> (i32, i32, i32) {
    %c0_i32 = arith.constant 0 : i32
    %c0_i32_0 = arith.constant 0 : i32
    return %arg1, %arg0, %c0_i32 : i32, i32, i32
  }
  func.func @transform_5(%arg0: i32, %arg1: i32) -> (i32, i32, i32) {
    %c0_i32 = arith.constant 0 : i32
    %c0_i32_0 = arith.constant 0 : i32
    return %arg1, %arg0, %c0_i32 : i32, i32, i32
  }
  func.func @transform_6(%arg0: i32, %arg1: i32) -> (i32, i32, i32) {
    %c0_i32 = arith.constant 0 : i32
    %c0_i32_0 = arith.constant 0 : i32
    return %arg1, %arg0, %c0_i32 : i32, i32, i32
  }
  func.func @transform_7(%arg0: i32, %arg1: i32) -> (i32, i32) {
    %c0_i32 = arith.constant 0 : i32
    %c0_i32_0 = arith.constant 0 : i32
    %c0_i32_1 = arith.constant 0 : i32
    return %c0_i32, %c0_i32_0 : i32, i32
  }
  func.func @transform_8(%arg0: i32, %arg1: i32) -> (i32, i32) {
    %c0_i32 = arith.constant 0 : i32
    %c0_i32_0 = arith.constant 0 : i32
    %c0_i32_1 = arith.constant 0 : i32
    return %c0_i32, %c0_i32_0 : i32, i32
  }
  func.func @transform_9(%arg0: i32, %arg1: i32) -> (i32, i32) {
    %c0_i32 = arith.constant 0 : i32
    %c0_i32_0 = arith.constant 0 : i32
    %c0_i32_1 = arith.constant 0 : i32
    return %c0_i32, %c0_i32_0 : i32, i32
  }
  func.func @transform_10(%arg0: i32, %arg1: i32) -> (i32, i32) {
    %c0_i32 = arith.constant 0 : i32
    %c0_i32_0 = arith.constant 0 : i32
    %c0_i32_1 = arith.constant 0 : i32
    return %c0_i32, %c0_i32_0 : i32, i32
  }
  func.func @transform_11(%arg0: i32, %arg1: i32) -> (i32, i32) {
    %c0_i32 = arith.constant 0 : i32
    %c0_i32_0 = arith.constant 0 : i32
    %c0_i32_1 = arith.constant 0 : i32
    return %c0_i32, %c0_i32_0 : i32, i32
  }
  func.func @transform_12(%arg0: i32, %arg1: i32) -> (i32, i32) {
    %c0_i32 = arith.constant 0 : i32
    %c0_i32_0 = arith.constant 0 : i32
    %c0_i32_1 = arith.constant 0 : i32
    return %c0_i32, %c0_i32_0 : i32, i32
  }
  func.func @transform_13(%arg0: i32, %arg1: i32) -> (i32, i32) {
    %c0_i32 = arith.constant 0 : i32
    %c0_i32_0 = arith.constant 0 : i32
    %c0_i32_1 = arith.constant 0 : i32
    return %c0_i32, %c0_i32_0 : i32, i32
  }
  func.func @transform_14(%arg0: i32, %arg1: i32) -> (i32, i32, i32) {
    %c0_i32 = arith.constant 0 : i32
    %c0_i32_0 = arith.constant 0 : i32
    %c0_i32_1 = arith.constant 0 : i32
    %c0_i32_2 = arith.constant 0 : i32
    return %c0_i32, %c0_i32_0, %c0_i32_1 : i32, i32, i32
  }
  func.func @transform_15(%arg0: i32, %arg1: i32) -> (i32, i32) {
    %c0_i32 = arith.constant 0 : i32
    %c0_i32_0 = arith.constant 0 : i32
    %c0_i32_1 = arith.constant 0 : i32
    return %c0_i32, %c0_i32_0 : i32, i32
  }
  func.func @transform_16(%arg0: i32, %arg1: i32) -> (i32, i32) {
    %c0_i32 = arith.constant 0 : i32
    %c0_i32_0 = arith.constant 0 : i32
    %c0_i32_1 = arith.constant 0 : i32
    return %c0_i32, %c0_i32_0 : i32, i32
  }
  func.func @transform_17(%arg0: i32, %arg1: i32) -> (i32, i32) {
    %c0_i32 = arith.constant 0 : i32
    %c0_i32_0 = arith.constant 0 : i32
    %c0_i32_1 = arith.constant 0 : i32
    return %c0_i32, %c0_i32_0 : i32, i32
  }
  func.func @transform_18(%arg0: i32, %arg1: i32) -> (i32, i32) {
    %c0_i32 = arith.constant 0 : i32
    %c0_i32_0 = arith.constant 0 : i32
    %c0_i32_1 = arith.constant 0 : i32
    return %c0_i32, %c0_i32_0 : i32, i32
  }
  func.func @transform_19(%arg0: i32, %arg1: i32) -> (i32, i32, i32) {
    %c0_i32 = arith.constant 0 : i32
    %c0_i32_0 = arith.constant 0 : i32
    return %arg1, %arg0, %c0_i32 : i32, i32, i32
  }
  func.func @transform_20(%arg0: i32, %arg1: i32) -> (i32, i32, i32) {
    %c0_i32 = arith.constant 0 : i32
    %c0_i32_0 = arith.constant 0 : i32
    return %arg1, %arg0, %c0_i32 : i32, i32, i32
  }
  func.func @transform_21(%arg0: i32, %arg1: i32) -> (i32, i32, i32) {
    %c0_i32 = arith.constant 0 : i32
    %c0_i32_0 = arith.constant 0 : i32
    return %arg1, %arg0, %c0_i32 : i32, i32, i32
  }
}

</mosaic_0001>

<bundles_post_ra>
// kernel: _decoder_impl.1
= control target key start
LH: loop header
LB: loop body
LE: loop exit
PB: predicated region body
PF: predicated region fallthrough
CT: control target
= control target key end

     0   :  { %s4743_s25 = smov 0   ;;  %s4745_s26 = smov 0   ;;  %s6091_s0 = inlined_call_operand.vmem [shape: f32[4,16,8,16], index: 0, kind: input, shape index: {}]   ;;  %s6092_s1 = inlined_call_operand.vmem [shape: f32[16,8], index: 1, kind: input, shape index: {}]   ;;  %s6093_s2 = inlined_call_operand.vmem [shape: f32[16,8,32], index: 2, kind: input, shape index: {}]   ;;  %s6094_s3 = inlined_call_operand.vmem [shape: f32[16,32], index: 3, kind: input, shape index: {}]   ;;  %s6095_s4 = inlined_call_operand.vmem [shape: f32[8,16,96], index: 4, kind: input, shape index: {}]   ;;  %s6096_s5 = inlined_call_operand.vmem [shape: f32[8,16,64], index: 5, kind: input, shape index: {}]   ;;  %s6097_s6 = inlined_call_operand.vmem [shape: f32[8,16,1], index: 6, kind: input, shape index: {}]   ;;  %s6098_s7 = inlined_call_operand.vmem [shape: f32[32,96], index: 7, kind: input, shape index: {}]   ;;  %s6099_s8 = inlined_call_operand.vmem [shape: f32[1,96], index: 8, kind: input, shape index: {}]   ;;  %s6100_s9 = inlined_call_operand.vmem [shape: f32[32,128], index: 9, kind: input, shape index: {}]   ;;  %s6101_s10 = inlined_call_operand.vmem [shape: f32[1,96], index: 10, kind: input, shape index: {}]   ;;  %s6102_s11 = inlined_call_operand.vmem [shape: f32[64,96], index: 11, kind: input, shape index: {}]   ;;  %s6103_s12 = inlined_call_operand.vmem [shape: f32[1,96], index: 12, kind: input, shape index: {}]   ;;  %s6104_s13 = inlined_call_operand.vmem [shape: f32[32,4], index: 13, kind: input, shape index: {}]   ;;  %s6105_s14 = inlined_call_operand.vmem [shape: f32[4,16,64], index: 14, kind: input, shape index: {}]   ;;  %s6106_s15 = inlined_call_operand.vmem [shape: f32[1,64], index: 15, kind: input, shape index: {}]   ;;  %s6107_s16 = inlined_call_operand.vmem [shape: f32[64,64], index: 16, kind: input, shape index: {}]   ;;  %s6108_s17 = inlined_call_operand.vmem [shape: f32[32,64], index: 17, kind: input, shape index: {}]   ;;  %s6109_s18 = inlined_call_operand.vmem [shape: f32[1,64], index: 18, kind: input, shape index: {}]   ;;  %s6110_s19 = inlined_call_operand.vmem [shape: f32[8,16,64], index: 19, kind: output, shape index: {0}]   ;;  %s6111_s20 = inlined_call_operand.vmem [shape: f32[8,16,8], index: 20, kind: output, shape index: {1}]   ;;  %s6112_s21 = inlined_call_operand.vmem [shape: f32[8,16,64], index: 21, kind: output, shape index: {2}]  }
   0x1   :  { %6122 = sst [smem:[#allocation6_spill]] %s6091_s0 }
   0x2   :  { %6123 = sst [smem:[#allocation7_spill]] %s6092_s1 }
   0x3   :  { %6124 = sst [smem:[#allocation8_spill]] %s6093_s2  ;;  %s4741_s2 = smov 0  }
   0x4   :  { %6125 = sst [smem:[#allocation9_spill]] %s6094_s3 }
   0x5   :  { %6126 = sst [smem:[#allocation10_spill]] %s6095_s4 }
   0x6   :  { %6127 = sst [smem:[#allocation11_spill]] %s6096_s5 }
   0x7   :  { %6128 = sst [smem:[#allocation12_spill]] %s6103_s12 }
   0x8   :  { %6129 = sst [smem:[#allocation13_spill]] %s6108_s17 }
   0x9   :  { %6130 = sst [smem:[#allocation14_spill]] %s6109_s18 }
   0xa LB: > { %6131 = sst [smem:[#allocation3_spill]] %s4620_s25  ;;  %s41_s27 = sadd.s32 1, %s4620_s25  ;;  %s4624_s26 = sphi %s4745_s26, %s32_s26   ;;  %s4620_s25 = sphi %s4743_s25, %s6162_s25   ;;  %s4616_s2 = sphi %s4741_s2, %s6161_s2  }
   0xb   : > { %6132 = sst [smem:[#allocation4_spill]] %s4624_s26  ;;  %p4314_p0 = scmp.ge.s32.totalorder %s4624_s26, 1 }
   0xc   : > { %p42_p1 = scmp.ge.s32.totalorder %s41_s27, 8  ;;  %p695_p2 = scmp.lt.s32.totalorder %s4624_s26, 9 }
   0xe   : > { %s6164_s27 = smov (%p42_p1, %s41_s27), 0  ;;  %p696_p3 = pnand %p4314_p0, %p695_p2 }
   0xf   : > { %6133 = sst [smem:[#allocation5_spill]] %s6164_s27  ;;  %p844_p4 = scmp.lt.s32.totalorder (!%p696_p3), %s4616_s2, 7 }
  0x10   : > { %699 = sbr.rel (%p696_p3) target bundleno = 2530 (0x9e2), region = 96  ;;  %s6134_s4 = sld [smem:[#allocation10_spill]] (!%p696_p3) }
  0x11   : > { %s6135_s23 = sld [smem:[#allocation11_spill]] (!%p696_p3)  ;;  %p4327_p5 = scmp.ne.s32.totalorder (!%p696_p3), %s4616_s2, 0 }
  0x15   : > { %s845_s3 = scalar_select %p844_p4, %s4616_s2, 7 }
  0x16   : > { %906 = sbr.rel (%p4327_p5) target bundleno = 36 (0x24), region = 100 }
  0x17   : > { %s4422_s28 = sshll.u32 %s845_s3, 4 }
  0x18   : > { %s4762_s30 = scalar_lea.vmem %s6134_s4, %s4422_s28  ;;  %s4767_s1 = scalar_lea.vmem %s6135_s23, %s4422_s28 }
  0x19   : > { %s4772_s26 = scalar_lea.vmem %s6097_s6, %s4422_s28  ;;  %s4777_s17 = scalar_lea.vmem %s6110_s19, %s4422_s28 }
  0x1a   : > { %s4782_s29 = scalar_lea.vmem %s6111_s20, %s4422_s28  ;;  %s4787_s5 = scalar_lea.vmem %s6112_s21, %s4422_s28 }
  0x1b   : > { %s6136_s23 = sld [smem:[#allocation9_spill]]  ;;  %vm909_vm0 = vcmask 261120  }
  0x21   : > { %v907_v0 = vld [vmem:[%s6136_s23] sm:$0xff]  ;;  %v908_v1 = vld [vmem:[%s6136_s23 + $0x8] sm:$0xff] }
  0x22   : > { %910 = vst.msk [vmem:[#allocation2] sm:$0xff] %vm909_vm0, %v907_v0 }
  0x23   : > { %911 = vst.msk [vmem:[#allocation2 + $0x8] sm:$0xff] %vm909_vm0, %v908_v1 }
  0x24 PF: > { %v921_v2 = vld [vmem:[%s6098_s7 + $0x18] sm:$0xff]  ;;  %v920_v3 = vld [vmem:[%s6098_s7 + $0x10] sm:$0xff]  ;;  %v919_v5 = vld [vmem:[%s6098_s7 + $0x8] sm:$0xff]  ;;  %s4626_s4 = smov 32   ;;  %vm926_vm1 = vcmask 261120   ;;  %s4627_s12 = smov 64  }
  0x25   : > { %945 = vmatpush.msra.mxu1 %v921_v2  ;;  %v918_v6 = vld [vmem:[%s6098_s7] sm:$0xff]  ;;  %v957_v16 = vld [vmem:[%s4762_s30 + $0x8] sm:$0xff]  ;;  %v4628_v22 = vmov 0   ;;  %v1057_v2 = vld [vmem:[%s6100_s9 + $0x18] sm:$0xff]  ;;  %s6137_s18 = sld [smem:[#allocation8_spill]]  ;;  %vm1824_vm10 = vcmask 60416  }
  0x26   : > { %v4471_v8 = vld [vmem:[%s6099_s8] ss:$0 sm:$0xff]  ;;  %4467 = vset.pattern.permute.xlu1 %v4628_v22  ;;  %4466 = vset.pattern.permute.xlu0 %v4628_v22  ;;  %v915_v41 = vld [vmem:[%s4772_s26 + $0x8] sm:$0xff]  ;;  %s6138_s2 = sld [smem:[#allocation7_spill]] }
  0x27   : > { %946 = vmatpush.msra.mxu1 %v920_v3  ;;  %v956_v13 = vld [vmem:[%s4762_s30] sm:$0xff]  ;;  %v1056_v3 = vld [vmem:[%s6100_s9 + $0x10] sm:$0xff]  ;;  %s6148_s24 = sld [smem:[#allocation6_spill]] }
  0x28   : > { %v914_v27 = vld [vmem:[%s4772_s26] sm:$0xff]  ;;  %s6120_s26 = smov 96  }
  0x29   : > { %v912_v4 = vld [vmem:[#allocation2] sm:$0xff]  ;;  %947 = vmatpush.msra.mxu1 %v919_v5 }
  0x2a   : > { %1032 = vrot.lane.b32.xlu2 %v912_v4, %s4626_s4  ;;  %v913_v7 = vld [vmem:[#allocation2 + $0x8] sm:$0xff]  ;;  %v1054_v5 = vld [vmem:[%s6100_s9] sm:$0xff] }
  0x2b   : > { %948 = vmatpush.msra.mxu1 %v918_v6 }
  0x2c   : > { %4328 = vmatmul.msk.f32.vlgmr.msra.gmra.mxu1 %vm926_vm1, %v912_v4  ;;  %v1055_v4 = vld [vmem:[%s6100_s9 + $0x8] sm:$0xff]  ;;  %s6139_s0 = smov %s6138_s2 }
  0x2d   : > { %1080 = vmatpush.msrb.mxu1 %v1057_v2  ;;  %v1128_v2 = vld [vmem:[%s6137_s18 + $0x68] sm:$0xff] }
  0x2f   : > { %1081 = vmatpush.msrb.mxu1 %v1056_v3 }
  0x31   : > { %1082 = vmatpush.msrb.mxu1 %v1055_v4 }
  0x32   : > { %1034 = vrot.lane.b32.xlu2 %v913_v7, %s4626_s4 }
  0x33   : > { %1083 = vmatpush.msrb.mxu1 %v1054_v5 }
  0x34   : > { %4329 = vmatmul.msk.f32.gmra.mxu1 %vm926_vm1, %v913_v7 }
  0x84   : > { %v1033_v57 = vpop.permute.xlu2 %1032 }
  0x8c   : > { %v1035_v58 = vpop.permute.xlu2 %1034 }
  0xa9   : > { %v950_v9 = vpop.f32.mrf.mxu1 }
  0xaa   : > { %v951_v10 = vadd.f32 %v4471_v8, %v950_v9 }
  0xac   : > { %1000 = vrot.lane.b32.xlu0 %v951_v10, %s4627_s12  ;;  %v958_v14 = vadd.f32 %v956_v13, %v951_v10 }
  0xae   : > { %v4330_v15 = vmul.f32 -1.442695, %v958_v14  ;;  %v1198_v14 = vld [vmem:[%s6104_s13 + $0x18] sm:$0xff] }
  0xaf   : > { %1259 = vmatpush.msra.mxu0 %v1198_v14  ;;  %4428 = vmatpush.msra.mxu2 %v1198_v14 }
  0xb0   : > { %4476 = vpow2.f32 %v4330_v15  ;;  %v1197_v15 = vld [vmem:[%s6104_s13 + $0x10] sm:$0xff]  ;;  %4429 = vmatpush.msra.mxu3 %v1198_v14 }
  0xb1   : > { %v953_v11 = vpop.f32.mrf.mxu1  ;;  %1260 = vmatpush.msra.mxu0 %v1197_v15  ;;  %4430 = vmatpush.msra.mxu2 %v1197_v15 }
  0xb2   : > { %v954_v12 = vadd.f32 %v4471_v8, %v953_v11  ;;  %4431 = vmatpush.msra.mxu3 %v1197_v15 }
  0xb4   : > { %1002 = vrot.lane.b32.xlu0 %v954_v12, %s4627_s12  ;;  %v959_v18 = vadd.f32 %v957_v16, %v954_v12 }
  0xb6   : > { %v4477_v17 = vpop.eup %4476  ;;  %v4331_v20 = vmul.f32 -1.442695, %v959_v18 }
  0xb7   : > { %v966_v19 = vadd.f32 1.0, %v4477_v17  ;;  %v1195_v17 = vld [vmem:[%s6104_s13] sm:$0xff] }
  0xb9   : > { %4478 = vrcp.f32 %v966_v19  ;;  %v979_v31 = vand.u32 2147483648, %v966_v19  ;;  %vm973_vm3 = vweird.f32 %v966_v19  ;;  %v977_v32 = vand.u32 2147483647, %v966_v19 }
  0xba   : > { %4480 = vpow2.f32 %v4331_v20 }
  0xbb   : > { %v980_v35 = vor.u32 1.1754944e-38, %v979_v31  ;;  %vm978_vm5 = vcmp.eq.f32.partialorder %v977_v32, 8.507059e+37  ;;  %v1120_v31 = vld [vmem:[%s6137_s18 + $0x28] sm:$0xff] }
  0xbc   : > { %1044 = vperm.xlu0 %4466, %v914_v27  }
  0xbf   : > { %v4479_v21 = vpop.eup %4478 }
  0xc0   : > { %v4481_v23 = vpop.eup %4480  ;;  %v969_v24 = vmul.f32 %v4479_v21, %v966_v19  ;;  %vm974_vm2 = vweird.f32 %v4479_v21  ;;  %v1115_v19 = vld [vmem:[%s6137_s18] sm:$0xff] }
  0xc1   : > { %v967_v25 = vadd.f32 1.0, %v4481_v23  ;;  %vm975_vm4 = vmor %vm973_vm3, %vm974_vm2  ;;  %v1119_v23 = vld [vmem:[%s6137_s18 + $0x20] sm:$0xff] }
  0xc2   : > { %v970_v26 = vsub.f32 1.0, %v969_v24 }
  0xc3   : > { %4482 = vrcp.f32 %v967_v25  ;;  %vm988_vm6 = vweird.f32 %v967_v25  ;;  %v994_v43 = vand.u32 2147483648, %v967_v25  ;;  %v992_v44 = vand.u32 2147483647, %v967_v25 }
  0xc4   : > { %v971_v28 = vmul.f32 %v4479_v21, %v970_v26 }
  0xc5   : > { %v995_v46 = vor.u32 1.1754944e-38, %v994_v43  ;;  %vm993_vm9 = vcmp.eq.f32.partialorder %v992_v44, 8.507059e+37 }
  0xc6   : > { %v972_v29 = vadd.f32 %v4479_v21, %v971_v28 }
  0xc8   : > { %v976_v33 = vsel %vm975_vm4, %v4479_v21, %v972_v29  ;;  %v1116_v29 = vld [vmem:[%s6137_s18 + $0x8] sm:$0xff] }
  0xc9   : > { %v4483_v30 = vpop.eup %4482  ;;  %v981_v36 = vsel %vm978_vm5, %v980_v35, %v976_v33 }
  0xca   : > { %v984_v34 = vmul.f32 %v4483_v30, %v967_v25  ;;  %vm989_vm7 = vweird.f32 %v4483_v30  ;;  %v1020_v59 = vsub.f32 1.0, %v981_v36  ;;  %v1038_v61 = vmul.f32 %v1033_v57, %v981_v36 }
  0xcb   : > { %vm990_vm8 = vmor %vm988_vm6, %vm989_vm7 }
  0xcc   : > { %v985_v38 = vsub.f32 1.0, %v984_v34 }
  0xce   : > { %v986_v40 = vmul.f32 %v4483_v30, %v985_v38 }
  0xd0   : > { %v987_v42 = vadd.f32 %v4483_v30, %v986_v40 }
  0xd2   : > { %v991_v45 = vsel %vm990_vm8, %v4483_v30, %v987_v42  ;;  %vm2959_vm8 = vcmask 1041409  }
  0xd3   : > { %v996_v48 = vsel %vm993_vm9, %v995_v46, %v991_v45 }
  0xd4   : > { %v1021_v6 = vsub.f32 1.0, %v996_v48  ;;  %v1039_v8 = vmul.f32 %v1035_v58, %v996_v48 }
 0x11e   : > { %v1001_v37 = vpop.permute.xlu0 %1000 }
 0x11f   : > { %v1006_v39 = vmul.f32 %v1001_v37, %v981_v36 }
 0x121   : > { %1010 = vrot.lane.b32.xlu1 %v1006_v39, %s4627_s12  ;;  %v1117_v39 = vld [vmem:[%s6137_s18 + $0x10] sm:$0xff] }
 0x126   : > { %v1003_v47 = vpop.permute.xlu0 %1002 }
 0x127   : > { %v1007_v49 = vmul.f32 %v1003_v47, %v996_v48 }
 0x129   : > { %1049 = vperm.xlu1 %4467, %v915_v41   ;;  %v1121_v41 = vld [vmem:[%s6137_s18 + $0x30] sm:$0xff] }
 0x12e   : > { %v4826_v63 = vpop.permute.xlu0 %1044 }
 0x131   : > { %1012 = vrot.lane.b32.xlu1 %v1007_v49, %s4627_s12  ;;  %v1118_v49 = vld [vmem:[%s6137_s18 + $0x18] sm:$0xff] }
 0x193   : > { %v1011_v50 = vpop.permute.xlu1 %1010 }
 0x194   : > { %v1016_v51 = vadd.f32 %v1011_v50, %v956_v13 }
 0x196   : > { %4484 = vtanh.f32 %v1016_v51  ;;  %v1122_v51 = vld [vmem:[%s6137_s18 + $0x38] sm:$0xff] }
 0x19b   : > { %v4822_v52 = vpop.permute.xlu1 %1049 }
 0x19c   : > { %v4485_v53 = vpop.eup %4484 }
 0x19d   : > { %1024 = vrot.lane.b32.xlu2 %v4485_v53, %s6120_s26 }
 0x1a3   : > { %v1013_v54 = vpop.permute.xlu1 %1012 }
 0x1a4   : > { %v1017_v55 = vadd.f32 %v1013_v54, %v957_v16  ;;  %v1196_v16 = vld [vmem:[%s6104_s13 + $0x8] sm:$0xff] }
 0x1a5   : > { %1261 = vmatpush.msra.mxu0 %v1196_v16  ;;  %4432 = vmatpush.msra.mxu2 %v1196_v16 }
 0x1a6   : > { %4486 = vtanh.f32 %v1017_v55  ;;  %4433 = vmatpush.msra.mxu3 %v1196_v16 }
 0x1a7   : > { %1262 = vmatpush.msra.mxu0 %v1195_v17  ;;  %4434 = vmatpush.msra.mxu2 %v1195_v17 }
 0x1a8   : > { %4435 = vmatpush.msra.mxu3 %v1195_v17 }
 0x1ac   : > { %v4487_v56 = vpop.eup %4486 }
 0x1ad   : > { %1026 = vrot.lane.b32.xlu1 %v4487_v56, %s6120_s26 }
 0x1f7   : > { %v1025_v60 = vpop.permute.xlu2 %1024 }
 0x1f8   : > { %v1030_v62 = vmul.f32 %v1025_v60, %v1020_v59  ;;  %v1123_v60 = vld [vmem:[%s6137_s18 + $0x40] sm:$0xff] }
 0x1fa   : > { %v1040_v0 = vadd.f32 %v1038_v61, %v1030_v62 }
 0x1fc   : > { %v4829_v1 = vmul.f32 %v4826_v63, %v1040_v0 }
 0x1fe   : > { %1060 = vrot.lane.b32.xlu2 %v4829_v1, %s6120_s26 }
 0x21f   : > { %v1027_v7 = vpop.permute.xlu1 %1026 }
 0x220   : > { %v1031_v9 = vmul.f32 %v1027_v7, %v1021_v6 }
 0x222   : > { %v1041_v10 = vadd.f32 %v1039_v8, %v1031_v9  ;;  %v1124_v8 = vld [vmem:[%s6137_s18 + $0x48] sm:$0xff] }
 0x224   : > { %v4846_v11 = vmul.f32 %v4822_v52, %v1041_v10  ;;  %v1129_v10 = vld [vmem:[%s6137_s18 + $0x70] sm:$0xff] }
 0x226   : > { %1062 = vrot.lane.b32.xlu0 %v4846_v11, %s6120_s26 }
 0x258   : > { %v1061_v12 = vpop.permute.xlu2 %1060 }
 0x259   : > { %4332 = vmatmul.msk.f32.vlgmr.msrb.gmra.mxu1 %vm926_vm1, %v1061_v12 }
 0x298   : > { %v1063_v13 = vpop.permute.xlu0 %1062 }
 0x299   : > { %4333 = vmatmul.msk.f32.gmra.mxu1 %vm926_vm1, %v1063_v13 }
 0x2d6   : > { %v4864_v18 = vpop.f32.mrf.mxu1 }
 0x2d7   : > { %v1131_v20 = vperm.slane %v4864_v18, 0  ;;  %v1104_v21 = vrot.slane %v4864_v18, 4  ;;  %v1101_v22 = vrot.slane %v4864_v18, 1  ;;  %v1105_v26 = vrot.slane %v4864_v18, 5 }
 0x2d8   : > { %v1102_v33 = vrot.slane %v4864_v18, 2  ;;  %v1106_v36 = vrot.slane %v4864_v18, 6  ;;  %v1103_v43 = vrot.slane %v4864_v18, 3  ;;  %v1107_v46 = vrot.slane %v4864_v18, 7 }
 0x2d9   : > { %v1163_v24 = vadd.f32 %v1131_v20, %v1115_v19  ;;  %v1135_v25 = vperm.slane %v1104_v21, 0  ;;  %v1132_v28 = vperm.slane %v1101_v22, 0  ;;  %v1136_v30 = vperm.slane %v1105_v26, 0  ;;  %v1125_v20 = vld [vmem:[%s6137_s18 + $0x50] sm:$0xff]  ;;  %v1130_v22 = vld [vmem:[%s6137_s18 + $0x78] sm:$0xff] }
 0x2da   : > { %v1133_v38 = vperm.slane %v1102_v33, 0  ;;  %v1137_v40 = vperm.slane %v1106_v36, 0  ;;  %v1134_v48 = vperm.slane %v1103_v43, 0  ;;  %v1138_v50 = vperm.slane %v1107_v46, 0 }
 0x2db   : > { %4488 = vtanh.f32 %v1163_v24  ;;  %v1167_v27 = vadd.f32 %v1135_v25, %v1119_v23  ;;  %v1164_v32 = vadd.f32 %v1132_v28, %v1116_v29  ;;  %v1168_v35 = vadd.f32 %v1136_v30, %v1120_v31  ;;  %v1126_v29 = vld [vmem:[%s6137_s18 + $0x58] sm:$0xff] }
 0x2dc   : > { %v1165_v42 = vadd.f32 %v1133_v38, %v1117_v39  ;;  %v1169_v45 = vadd.f32 %v1137_v40, %v1121_v41  ;;  %v1166_v53 = vadd.f32 %v1134_v48, %v1118_v49  ;;  %v1170_v55 = vadd.f32 %v1138_v50, %v1122_v51 }
 0x2dd   : > { %4490 = vtanh.f32 %v1167_v27 }
 0x2de   : > { %4492 = vtanh.f32 %v1164_v32 }
 0x2df   : > { %4494 = vtanh.f32 %v1168_v35  ;;  %v1127_v35 = vld [vmem:[%s6137_s18 + $0x60] sm:$0xff] }
 0x2e0   : > { %4496 = vtanh.f32 %v1165_v42 }
 0x2e1   : > { %v4489_v34 = vpop.eup %4488  ;;  %4498 = vtanh.f32 %v1169_v45 }
 0x2e2   : > { %4334 = vmatmul.msk.f32.vlgmr.msra.gmra.mxu0 %vm926_vm1, %v4489_v34  ;;  %4500 = vtanh.f32 %v1166_v53 }
 0x2e3   : > { %v4491_v37 = vpop.eup %4490  ;;  %4502 = vtanh.f32 %v1170_v55 }
 0x2e4   : > { %4338 = vmatmul.msk.f32.vlgmr.msra.gmra.mxu2 %vm926_vm1, %v4491_v37  ;;  %v4493_v44 = vpop.eup %4492 }
 0x2e5   : > { %v4495_v47 = vpop.eup %4494 }
 0x2e6   : > { %v4497_v54 = vpop.eup %4496 }
 0x2e7   : > { %v4499_v56 = vpop.eup %4498 }
 0x2e8   : > { %v4501_v57 = vpop.eup %4500 }
 0x2e9   : > { %v4503_v58 = vpop.eup %4502 }
 0x2ea   : > { %4335 = vmatmul.msk.f32.gmra.mxu0 %vm926_vm1, %v4493_v44 }
 0x2ec   : > { %4339 = vmatmul.msk.f32.gmra.mxu2 %vm926_vm1, %v4495_v47 }
 0x2f2   : > { %4336 = vmatmul.msk.f32.gmra.mxu0 %vm926_vm1, %v4497_v54 }
 0x2f4   : > { %4340 = vmatmul.msk.f32.gmra.mxu2 %vm926_vm1, %v4499_v56 }
 0x2fa   : > { %4337 = vmatmul.msk.f32.gmra.mxu0 %vm926_vm1, %v4501_v57 }
 0x2fc   : > { %4341 = vmatmul.msk.f32.gmra.mxu2 %vm926_vm1, %v4503_v58 }
 0x316   : > { %v4906_v59 = vpop.f32.mrf.mxu1 }
 0x317   : > { %v1139_v61 = vperm.slane %v4906_v59, 0  ;;  %v1112_v62 = vrot.slane %v4906_v59, 5  ;;  %v1108_v0 = vrot.slane %v4906_v59, 1  ;;  %v1113_v5 = vrot.slane %v4906_v59, 6 }
 0x318   : > { %v1109_v13 = vrot.slane %v4906_v59, 2  ;;  %v1114_v16 = vrot.slane %v4906_v59, 7  ;;  %v1110_v24 = vrot.slane %v4906_v59, 3  ;;  %v1111_v31 = vrot.slane %v4906_v59, 4 }
 0x319   : > { %v1171_v3 = vadd.f32 %v1139_v61, %v1123_v60  ;;  %v1144_v4 = vperm.slane %v1112_v62, 0  ;;  %v1140_v7 = vperm.slane %v1108_v0, 0  ;;  %v1145_v9 = vperm.slane %v1113_v5, 0 }
 0x31a   : > { %v1141_v19 = vperm.slane %v1109_v13, 0  ;;  %v1146_v21 = vperm.slane %v1114_v16, 0  ;;  %v1142_v28 = vperm.slane %v1110_v24, 0  ;;  %v1143_v34 = vperm.slane %v1111_v31, 0 }
 0x31b   : > { %4504 = vtanh.f32 %v1171_v3  ;;  %v1176_v6 = vadd.f32 %v1144_v4, %v1128_v2  ;;  %v1172_v12 = vadd.f32 %v1140_v7, %v1124_v8  ;;  %v1177_v15 = vadd.f32 %v1145_v9, %v1129_v10 }
 0x31c   : > { %v1173_v23 = vadd.f32 %v1141_v19, %v1125_v20  ;;  %v1178_v26 = vadd.f32 %v1146_v21, %v1130_v22  ;;  %v1174_v30 = vadd.f32 %v1142_v28, %v1126_v29  ;;  %v1175_v36 = vadd.f32 %v1143_v34, %v1127_v35 }
 0x31d   : > { %4506 = vtanh.f32 %v1176_v6 }
 0x31e   : > { %4508 = vtanh.f32 %v1172_v12 }
 0x31f   : > { %4510 = vtanh.f32 %v1177_v15 }
 0x320   : > { %4512 = vtanh.f32 %v1173_v23 }
 0x321   : > { %v4505_v14 = vpop.eup %4504  ;;  %4514 = vtanh.f32 %v1178_v26 }
 0x322   : > { %4342 = vmatmul.msk.f32.gmra.mxu2 %vm926_vm1, %v4505_v14  ;;  %4516 = vtanh.f32 %v1174_v30  ;;  %v4994_v30 = vld [vmem:[%s6138_s2] sm:$0xff]  ;;  %s6159_s2 = sld [smem:[#allocation14_spill]] }
 0x323   : > { %v4507_v17 = vpop.eup %4506  ;;  %4518 = vtanh.f32 %v1175_v36  ;;  %v1923_v31 = vrot.slane %v4994_v30, 1 }
 0x324   : > { %4347 = vmatmul.msk.f32.vlgmr.msra.gmra.mxu3 %vm926_vm1, %v4507_v17  ;;  %v4509_v25 = vpop.eup %4508 }
 0x325   : > { %v4511_v27 = vpop.eup %4510 }
 0x326   : > { %v4513_v32 = vpop.eup %4512 }
 0x327   : > { %v4515_v33 = vpop.eup %4514 }
 0x328   : > { %v4517_v37 = vpop.eup %4516 }
 0x329   : > { %v4519_v38 = vpop.eup %4518 }
 0x32a   : > { %4343 = vmatmul.msk.f32.gmra.mxu2 %vm926_vm1, %v4509_v25 }
 0x32c   : > { %4348 = vmatmul.msk.f32.gmra.mxu3 %vm926_vm1, %v4511_v27 }
 0x332   : > { %4344 = vmatmul.msk.f32.gmra.mxu2 %vm926_vm1, %v4513_v32 }
 0x334   : > { %4349 = vmatmul.msk.f32.gmra.mxu3 %vm926_vm1, %v4515_v33 }
 0x33a   : > { %4345 = vmatmul.msk.f32.gmra.mxu2 %vm926_vm1, %v4517_v37  ;;  %v1938_v37 = vperm.slane %v1923_v31, 0  ;;  %v1925_v31 = vrot.slane %v4994_v30, 3 }
 0x342   : > { %4346 = vmatmul.msk.f32.gmra.mxu2 %vm926_vm1, %v4519_v38 }
 0x35f   : > { %v1264_v39 = vpop.f32.mrf.mxu0 }
 0x360   : > { %1312 = vxpose.xlu1.b32.start.end [1/1] (short) (narrow) %v1264_v39, 8 }
 0x367   : > { %v1267_v40 = vpop.f32.mrf.mxu0  ;;  %v1276_v41 = vpop.f32.mrf.mxu2 }
 0x368   : > { %1344 = vxpose.xlu2.b32.start.end [1/1] (short) (narrow) %v1267_v40, 8  ;;  %1440 = vxpose.xlu0.b32.start.end [1/1] (short) (narrow) %v1276_v41, 8 }
 0x36f   : > { %v1270_v42 = vpop.f32.mrf.mxu0  ;;  %v1279_v43 = vpop.f32.mrf.mxu2 }
 0x370   : > { %1472 = vxpose.xlu2.b32.start.end [1/1] (short) (narrow) %v1279_v43, 8  ;;  %1376 = vxpose.xlu0.b32.start.end [1/1] (short) (narrow) %v1270_v42, 8  ;;  %v1926_v42 = vrot.slane %v4994_v30, 4 }
 0x377   : > { %v1273_v44 = vpop.f32.mrf.mxu0  ;;  %v1282_v45 = vpop.f32.mrf.mxu2 }
 0x378   : > { %1408 = vxpose.xlu2.b32.start.end [1/1] (short) (narrow) %v1273_v44, 8  ;;  %1504 = vxpose.xlu0.b32.start.end [1/1] (short) (narrow) %v1282_v45, 8  ;;  %v1941_v45 = vperm.slane %v1926_v42, 0 }
 0x37f   : > { %v1285_v47 = vpop.f32.mrf.mxu2 }
 0x3a5   : > { %v1288_v49 = vpop.f32.mrf.mxu2 }
 0x3a7   : > { %v1303_v46 = vpop.f32.mrf.mxu3 }
 0x3a8   : > { %1728 = vxpose.xlu1.b32.start.end [1/1] (short) (narrow) %v1303_v46, 8 }
 0x3ad   : > { %v1291_v51 = vpop.f32.mrf.mxu2 }
 0x3af   : > { %v1306_v48 = vpop.f32.mrf.mxu3 }
 0x3b0   : > { %1536 = vxpose.xlu1.b32.start.end [1/1] (short) (narrow) %v1285_v47, 8  ;;  %1760 = vxpose.xlu2.b32.start.end [1/1] (short) (narrow) %v1306_v48, 8  ;;  %v5010_v47 = vld [vmem:[%s6139_s0 + $0x8] sm:$0xff] }
 0x3b1   : > { %v1935_v42 = vrot.slane %v5010_v47, 6 }
 0x3b5   : > { %v1294_v62 = vpop.f32.mrf.mxu2 }
 0x3b7   : > { %v1309_v50 = vpop.f32.mrf.mxu3 }
 0x3b8   : > { %1568 = vxpose.xlu2.b32.start.end [1/1] (short) (narrow) %v1288_v49, 8  ;;  %1792 = vxpose.xlu0.b32.start.end [1/1] (short) (narrow) %v1309_v50, 8  ;;  %v1937_v50 = vperm.slane %v4994_v30, 0 }
 0x3bd   : > { %v1297_v3 = vpop.f32.mrf.mxu2 }
 0x3c0   : > { %1600 = vxpose.xlu0.b32.start.end [1/1] (short) (narrow) %v1291_v51, 8 }
 0x3c5   : > { %v1300_v4 = vpop.f32.mrf.mxu2 }
 0x401   : > { %v1360_v57 = vpop.trf.xlu2 }
 0x402   : > { %v1828_v58 = vsel %vm1824_vm10, %v1360_v57, -inf }
 0x404   : > { %v4948_v53 = vpop.trf.xlu1 }
 0x405   : > { %v1825_v54 = vsel %vm1824_vm10, %v4948_v53, -inf }
 0x409   : > { %v4959_v5 = vpop.trf.xlu2 }
 0x40a   : > { %v1840_v6 = vsel %vm1824_vm10, %v4959_v5, -inf }
 0x40c   : > { %v1456_v55 = vpop.trf.xlu0 }
 0x40d   : > { %v1837_v56 = vsel %vm1824_vm10, %v1456_v55, -inf }
 0x410   : > { %1826 = vmax.xlane.f32.xlu1 %v1825_v54  ;;  %v1934_v54 = vrot.slane %v5010_v47, 5 }
 0x411   : > { %v4963_v7 = vpop.trf.xlu2 }
 0x412   : > { %v1834_v8 = vsel %vm1824_vm10, %v4963_v7, -inf }
 0x414   : > { %v4954_v60 = vpop.trf.xlu0 }
 0x415   : > { %v1831_v61 = vsel %vm1824_vm10, %v4954_v60, -inf }
 0x418   : > { %1838 = vmax.xlane.f32.xlu1 %v1837_v56 }
 0x41c   : > { %v4967_v9 = vpop.trf.xlu0 }
 0x41d   : > { %v1843_v13 = vsel %vm1824_vm10, %v4967_v9, -inf }
 0x429   : > { %1829 = vmax.xlane.f32.xlu2 %v1828_v58 }
 0x431   : > { %1832 = vmax.xlane.f32.xlu0 %v1831_v61 }
 0x449   : > { %v4969_v10 = vpop.trf.xlu2 }
 0x44a   : > { %v1867_v12 = vsel %vm1824_vm10, %v4969_v10, -inf }
 0x44c   : > { %v1744_v0 = vpop.trf.xlu1 }
 0x44d   : > { %v1864_v2 = vsel %vm1824_vm10, %v1744_v0, -inf }
 0x44e   : > { %1865 = vmax.xlane.f32.xlu0 %v1864_v2 }
 0x451   : > { %v4977_v15 = vpop.trf.xlu2 }
 0x452   : > { %1664 = vxpose.xlu2.b32.start.end [1/1] (short) (narrow) %v1297_v3, 8  ;;  %1632 = vxpose.xlu1.b32.start.end [1/1] (short) (narrow) %v1294_v62, 8  ;;  %v1849_v16 = vsel %vm1824_vm10, %v4977_v15, -inf }
 0x454   : > { %v4985_v20 = vpop.trf.xlu1 }
 0x455   : > { %v1846_v28 = vsel %vm1824_vm10, %v4985_v20, -inf }
 0x45c   : > { %v4975_v14 = vpop.trf.xlu0 }
 0x45d   : > { %v1870_v17 = vsel %vm1824_vm10, %v4975_v14, -inf }
 0x464   : > { %v4983_v19 = vpop.trf.xlu0 }
 0x465   : > { %v1852_v21 = vsel %vm1824_vm10, %v4983_v19, -inf }
 0x477   : > { %1696 = vxpose.xlu0.b32.start.end [1/1] (short) (narrow) %v1300_v4, 8  ;;  %v1924_v4 = vrot.slane %v4994_v30, 2 }
 0x483   : > { %v1827_v22 = vpop.xlane.xlu1 %1826 }
 0x484   : > { %v1873_v32 = vsub.f32 %v4948_v53, %v1827_v22 }
 0x486   : > { %v1889_v39 = vmul.f32 1.442695, %v1873_v32 }
 0x48b   : > { %v1839_v26 = vpop.xlane.xlu1 %1838 }
 0x48c   : > { %v1877_v29 = vsub.f32 %v1456_v55, %v1839_v26 }
 0x48e   : > { %v1897_v33 = vmul.f32 1.442695, %v1877_v29 }
 0x49c   : > { %v1830_v23 = vpop.xlane.xlu2 %1829 }
 0x49d   : > { %v1874_v24 = vsub.f32 %v1360_v57, %v1830_v23  ;;  %v1950_v57 = vperm.slane %v1934_v54, 0  ;;  %v1927_v23 = vrot.slane %v4994_v30, 5 }
 0x49f   : > { %v1891_v25 = vmul.f32 1.442695, %v1874_v24 }
 0x4a1   : > { %4520 = vpow2.f32 %v1891_v25  ;;  %v1942_v25 = vperm.slane %v1927_v23, 0 }
 0x4a2   : > { %4522 = vpow2.f32 %v1897_v33  ;;  %v1940_v33 = vperm.slane %v1925_v31, 0 }
 0x4a3   : > { %4524 = vpow2.f32 %v1889_v39 }
 0x4a4   : > { %v1833_v27 = vpop.xlane.xlu0 %1832 }
 0x4a5   : > { %v1875_v2 = vsub.f32 %v4954_v60, %v1833_v27 }
 0x4a7   : > { %v4521_v38 = vpop.eup %4520  ;;  %v1893_v3 = vmul.f32 1.442695, %v1875_v2 }
 0x4a8   : > { %v5002_v41 = vmul.f32 %v4521_v38, %v1938_v37  ;;  %v4523_v46 = vpop.eup %4522 }
 0x4a9   : > { %v4525_v51 = vpop.eup %4524  ;;  %v5017_v53 = vmul.f32 %v4523_v46, %v1941_v45 }
 0x4aa   : > { %v1988_v44 = vsel %vm1824_vm10, %v5002_v41, 0.0  ;;  %v5020_v55 = vmul.f32 %v4525_v51, %v1937_v50 }
 0x4ab   : > { %v1997_v56 = vsel %vm1824_vm10, %v5017_v53, 0.0 }
 0x4ac   : > { %v1985_v61 = vsel %vm1824_vm10, %v5020_v55, 0.0 }
 0x4b2   : > { %1841 = vmax.xlane.f32.xlu1 %v1840_v6 }
 0x4ba   : > { %1835 = vmax.xlane.f32.xlu1 %v1834_v8 }
 0x4c1   : > { %v1866_v35 = vpop.xlane.xlu0 %1865 }
 0x4c2   : > { %1868 = vmax.xlane.f32.xlu1 %v1867_v12  ;;  %v1886_v40 = vsub.f32 %v1744_v0, %v1866_v35  ;;  %v1939_v12 = vperm.slane %v1924_v4, 0 }
 0x4c3   : > { %1844 = vmax.xlane.f32.xlu2 %v1843_v13 }
 0x4c4   : > { %v1915_v43 = vmul.f32 1.442695, %v1886_v40 }
 0x4c6   : > { %4526 = vpow2.f32 %v1915_v43  ;;  %v1928_v43 = vrot.slane %v4994_v30, 6 }
 0x4c7   : > { %4528 = vpow2.f32 %v1893_v3 }
 0x4ca   : > { %1850 = vmax.xlane.f32.xlu1 %v1849_v16 }
 0x4cb   : > { %1871 = vmax.xlane.f32.xlu2 %v1870_v17 }
 0x4cc   : > { %v4527_v58 = vpop.eup %4526 }
 0x4cd   : > { %v5026_v62 = vmul.f32 %v4527_v58, %v1950_v57  ;;  %v4529_v13 = vpop.eup %4528 }
 0x4ce   : > { %v5036_v16 = vmul.f32 %v4529_v13, %v1939_v12 }
 0x4cf   : > { %v2024_v0 = vsel %vm1824_vm10, %v5026_v62, 0.0 }
 0x4d0   : > { %v1991_v17 = vsel %vm1824_vm10, %v5036_v16, 0.0 }
 0x4d3   : > { %1853 = vmax.xlane.f32.xlu2 %v1852_v21 }
 0x4e8   : > { %1847 = vmax.xlane.f32.xlu0 %v1846_v28 }
 0x4eb   : > { %v4998_v34 = vpop.trf.xlu2 }
 0x4ec   : > { %v1858_v36 = vsel %vm1824_vm10, %v4998_v34, -inf }
 0x4ed   : > { %1859 = vmax.xlane.f32.xlu1 %v1858_v36 }
 0x4f5   : > { %1989 = vadd.xlane.f32.xlu1 %v1988_v44 }
 0x4f6   : > { %v5012_v48 = vpop.trf.xlu1 }
 0x4f7   : > { %v1855_v49 = vsel %vm1824_vm10, %v5012_v48, -inf }
 0x4f8   : > { %1856 = vmax.xlane.f32.xlu0 %v1855_v49  ;;  %v1943_v49 = vperm.slane %v1928_v43, 0 }
 0x4fd   : > { %1998 = vadd.xlane.f32.xlu1 %v1997_v56 }
 0x500   : > { %1986 = vadd.xlane.f32.xlu0 %v1985_v61 }
 0x505   : > { %2025 = vadd.xlane.f32.xlu1 %v2024_v0  ;;  %v1936_v0 = vrot.slane %v5010_v47, 7 }
 0x507   : > { %v1952_v4 = vperm.slane %v1936_v0, 0 }
 0x51b   : > { %v5032_v6 = vpop.trf.xlu0 }
 0x51c   : > { %v1861_v8 = vsel %vm1824_vm10, %v5032_v6, -inf }
 0x51d   : > { %1862 = vmax.xlane.f32.xlu2 %v1861_v8 }
 0x525   : > { %1992 = vadd.xlane.f32.xlu2 %v1991_v17  ;;  %v1842_v21 = vpop.xlane.xlu1 %1841 }
 0x526   : > { %v1878_v60 = vsub.f32 %v4959_v5, %v1842_v21 }
 0x528   : > { %v1899_v22 = vmul.f32 1.442695, %v1878_v60 }
 0x52a   : > { %4530 = vpow2.f32 %v1899_v22  ;;  %v1930_v22 = vrot.slane %v5010_v47, 1 }
 0x52d   : > { %v1836_v24 = vpop.xlane.xlu1 %1835 }
 0x52e   : > { %v1876_v26 = vsub.f32 %v4963_v7, %v1836_v24 }
 0x530   : > { %v4531_v27 = vpop.eup %4530  ;;  %v1895_v28 = vmul.f32 1.442695, %v1876_v26 }
 0x531   : > { %v5043_v29 = vmul.f32 %v4531_v27, %v1942_v25  ;;  %v1946_v25 = vperm.slane %v1930_v22, 0 }
 0x532   : > { %4532 = vpow2.f32 %v1895_v28 }
 0x533   : > { %v2000_v32 = vsel %vm1824_vm10, %v5043_v29, 0.0 }
 0x534   : > { %2001 = vadd.xlane.f32.xlu2 %v2000_v32 }
 0x535   : > { %v1869_v5 = vpop.xlane.xlu1 %1868 }
 0x536   : > { %v1887_v35 = vsub.f32 %v4969_v10, %v1869_v5  ;;  %v1845_v36 = vpop.xlane.xlu2 %1844  ;;  %v1951_v10 = vperm.slane %v1935_v42, 0  ;;  %v1929_v5 = vrot.slane %v4994_v30, 7 }
 0x537   : > { %v1879_v37 = vsub.f32 %v4967_v9, %v1845_v36 }
 0x538   : > { %v4533_v38 = vpop.eup %4532  ;;  %v1917_v7 = vmul.f32 1.442695, %v1887_v35 }
 0x539   : > { %v1901_v39 = vmul.f32 1.442695, %v1879_v37  ;;  %v5050_v40 = vmul.f32 %v4533_v38, %v1940_v33  ;;  %v1944_v37 = vperm.slane %v1929_v5, 0  ;;  %v1932_v38 = vrot.slane %v5010_v47, 3 }
 0x53a   : > { %4534 = vpow2.f32 %v1917_v7  ;;  %v2425_v7 = vlaneseq }
 0x53b   : > { %4536 = vpow2.f32 %v1901_v39  ;;  %v1994_v44 = vsel %vm1824_vm10, %v5050_v40, 0.0 }
 0x53c   : > { %1995 = vadd.xlane.f32.xlu0 %v1994_v44  ;;  %v2426_v43 = vshrl.u32 %v2425_v7, 7 }
 0x53d   : > { %v1851_v45 = vpop.xlane.xlu1 %1850 }
 0x53e   : > { %v1881_v46 = vsub.f32 %v4977_v15, %v1851_v45  ;;  %v1872_v9 = vpop.xlane.xlu2 %1871  ;;  %v1948_v45 = vperm.slane %v1932_v38, 0  ;;  %4469 = vset.pattern.permute.xlu2 %v2426_v43  ;;  %4468 = vset.pattern.permute.xlu1 %v2426_v43 }
 0x53f   : > { %v1888_v50 = vsub.f32 %v4975_v14, %v1872_v9  ;;  %v1945_v14 = vperm.slane %v5010_v47, 0  ;;  %4470 = vset.pattern.permute.xlu0 %v2426_v43 }
 0x540   : > { %v4535_v51 = vpop.eup %4534  ;;  %v1905_v54 = vmul.f32 1.442695, %v1881_v46 }
 0x541   : > { %v4537_v56 = vpop.eup %4536  ;;  %v1919_v57 = vmul.f32 1.442695, %v1888_v50  ;;  %v5058_v58 = vmul.f32 %v4535_v51, %v1951_v10  ;;  %v1931_v51 = vrot.slane %v5010_v47, 2 }
 0x542   : > { %4538 = vpow2.f32 %v1905_v54  ;;  %v5060_v61 = vmul.f32 %v4537_v56, %v1943_v49 }
 0x543   : > { %4540 = vpow2.f32 %v1919_v57  ;;  %v2027_v2 = vsel %vm1824_vm10, %v5058_v58, 0.0  ;;  %v1947_v0 = vperm.slane %v1931_v51, 0 }
 0x544   : > { %2028 = vadd.xlane.f32.xlu2 %v2027_v2  ;;  %v2003_v15 = vsel %vm1824_vm10, %v5060_v61, 0.0  ;;  %v4630_v2 = vmov 4.0  }
 0x545   : > { %2004 = vadd.xlane.f32.xlu0 %v2003_v15 }
 0x546   : > { %v1854_v3 = vpop.xlane.xlu2 %1853 }
 0x547   : > { %v1882_v8 = vsub.f32 %v4983_v19, %v1854_v3 }
 0x548   : > { %v4539_v12 = vpop.eup %4538 }
 0x549   : > { %v4541_v13 = vpop.eup %4540  ;;  %v1907_v17 = vmul.f32 1.442695, %v1882_v8  ;;  %v5069_v21 = vmul.f32 %v4539_v12, %v1945_v14 }
 0x54a   : > { %v5071_v60 = vmul.f32 %v4541_v13, %v1952_v4 }
 0x54b   : > { %4542 = vpow2.f32 %v1907_v17  ;;  %v2009_v23 = vsel %vm1824_vm10, %v5069_v21, 0.0 }
 0x54c   : > { %2010 = vadd.xlane.f32.xlu2 %v2009_v23  ;;  %v2030_v24 = vsel %vm1824_vm10, %v5071_v60, 0.0 }
 0x54d   : > { %2031 = vadd.xlane.f32.xlu0 %v2030_v24 }
 0x551   : > { %v4543_v19 = vpop.eup %4542 }
 0x552   : > { %v5078_v26 = vmul.f32 %v4543_v19, %v1946_v25 }
 0x554   : > { %v2012_v27 = vsel %vm1824_vm10, %v5078_v26, 0.0 }
 0x555   : > { %2013 = vadd.xlane.f32.xlu0 %v2012_v27 }
 0x55b   : > { %v1848_v28 = vpop.xlane.xlu0 %1847 }
 0x55c   : > { %v1880_v31 = vsub.f32 %v4985_v20, %v1848_v28 }
 0x55e   : > { %v1903_v32 = vmul.f32 1.442695, %v1880_v31 }
 0x560   : > { %4544 = vpow2.f32 %v1903_v32  ;;  %v1860_v33 = vpop.xlane.xlu1 %1859 }
 0x561   : > { %v1884_v35 = vsub.f32 %v4998_v34, %v1860_v33 }
 0x563   : > { %v1911_v36 = vmul.f32 1.442695, %v1884_v35 }
 0x565   : > { %4546 = vpow2.f32 %v1911_v36 }
 0x566   : > { %v4545_v39 = vpop.eup %4544 }
 0x567   : > { %v5086_v42 = vmul.f32 %v4545_v39, %v1944_v37 }
 0x568   : > { %v1990_v44 = vpop.xlane.xlu1 %1989 }
 0x569   : > { %v2034_v20 = vadd.f32 1e-20, %v1990_v44  ;;  %v2006_v30 = vsel %vm1824_vm10, %v5086_v42, 0.0 }
 0x56a   : > { %2007 = vadd.xlane.f32.xlu1 %v2006_v30 }
 0x56b   : > { %v4547_v34 = vpop.eup %4546  ;;  %4548 = vrcp.f32 %v2034_v20  ;;  %v1857_v10 = vpop.xlane.xlu0 %1856  ;;  %v2075_v3 = vand.u32 2147483648, %v2034_v20  ;;  %v2073_v8 = vand.u32 2147483647, %v2034_v20  ;;  %vm2069_vm12 = vweird.f32 %v2034_v20 }
 0x56c   : > { %v1883_v46 = vsub.f32 %v5012_v48, %v1857_v10  ;;  %v5091_v9 = vmul.f32 %v4547_v34, %v1948_v45 }
 0x56d   : > { %v2076_v23 = vor.u32 1.1754944e-38, %v2075_v3  ;;  %vm2074_vm14 = vcmp.eq.f32.partialorder %v2073_v8, 8.507059e+37 }
 0x56e   : > { %v1909_v49 = vmul.f32 1.442695, %v1883_v46  ;;  %v2018_v50 = vsel %vm1824_vm10, %v5091_v9, 0.0 }
 0x56f   : > { %2019 = vadd.xlane.f32.xlu2 %v2018_v50 }
 0x570   : > { %4550 = vpow2.f32 %v1909_v49  ;;  %v1999_v12 = vpop.xlane.xlu1 %1998 }
 0x571   : > { %v4549_v54 = vpop.eup %4548  ;;  %4552 = vrcp.f32 %v4630_v2  ;;  %v5100_v19 = vadd.f32 1e-20, %v1999_v12 }
 0x572   : > { %v2065_v56 = vmul.f32 %v4549_v54, %v2034_v20  ;;  %vm2070_vm11 = vweird.f32 %v4549_v54 }
 0x573   : > { %v1987_v57 = vpop.xlane.xlu0 %1986  ;;  %vm2071_vm13 = vmor %vm2069_vm12, %vm2070_vm11  ;;  %vm2114_vm6 = vweird.f32 %v5100_v19 }
 0x574   : > { %v2066_v15 = vsub.f32 1.0, %v2065_v56  ;;  %v2033_v14 = vadd.f32 1e-20, %v1987_v57 }
 0x576   : > { %v4551_v48 = vpop.eup %4550  ;;  %v2067_v4 = vmul.f32 %v4549_v54, %v2066_v15  ;;  %4554 = vrcp.f32 %v2033_v14  ;;  %v2060_v37 = vand.u32 2147483648, %v2033_v14  ;;  %v2058_v39 = vand.u32 2147483647, %v2033_v14 }
 0x577   : > { %v5096_v13 = vmul.f32 %v4551_v48, %v1947_v0  ;;  %v4553_v22 = vpop.eup %4552  ;;  %4556 = vrcp.f32 %v5100_v19  ;;  %vm2054_vm0 = vweird.f32 %v2033_v14 }
 0x578   : > { %v2068_v17 = vadd.f32 %v4549_v54, %v2067_v4  ;;  %v2402_v31 = vmul.f32 4.0, %v4553_v22  ;;  %vm2059_vm3 = vcmp.eq.f32.partialorder %v2058_v39, 8.507059e+37  ;;  %vm2406_vm4 = vweird.f32 %v4553_v22 }
 0x579   : > { %v2015_v24 = vsel %vm1824_vm10, %v5096_v13, 0.0 }
 0x57a   : > { %v2072_v25 = vsel %vm2071_vm13, %v4549_v54, %v2068_v17  ;;  %2016 = vadd.xlane.f32.xlu1 %v2015_v24  ;;  %v2403_v38 = vsub.f32 1.0, %v2402_v31 }
 0x57b   : > { %v2077_v27 = vsel %vm2074_vm14, %v2076_v23, %v2072_v25 }
 0x57c   : > { %v4555_v28 = vpop.eup %4554  ;;  %v5103_v32 = vmul.f32 %v2077_v27, %v5002_v41  ;;  %v2061_v41 = vor.u32 1.1754944e-38, %v2060_v37  ;;  %v2404_v34 = vmul.f32 %v4553_v22, %v2403_v38  ;;  %v3924_v27 = vrot.slane %v4826_v63, 1 }
 0x57d   : > { %v2050_v5 = vmul.f32 %v4555_v28, %v2033_v14  ;;  %vm2055_vm15 = vweird.f32 %v4555_v28  ;;  %v4557_v20 = vpop.eup %4556 }
 0x57e   : > { %v2296_v33 = vsel %vm1824_vm10, %v5103_v32, 0.0  ;;  %vm2056_vm2 = vmor %vm2054_vm0, %vm2055_vm15  ;;  %v2110_v49 = vmul.f32 %v4557_v20, %v5100_v19  ;;  %v2405_v56 = vadd.f32 %v4553_v22, %v2404_v34  ;;  %vm2115_vm5 = vweird.f32 %v4557_v20 }
 0x57f   : > { %v2051_v35 = vsub.f32 1.0, %v2050_v5  ;;  %v2297_v36 = vrot.slane %v2296_v33, 4  ;;  %vm2116_vm7 = vmor %vm2114_vm6, %vm2115_vm5 }
 0x580   : > { %v2111_v2 = vsub.f32 1.0, %v2110_v49  ;;  %v5111_v3 = vsel %vm2406_vm4, %v4553_v22, %v2405_v56  ;;  %v2120_v22 = vand.u32 2147483648, %v5100_v19 }
 0x581   : > { %v2052_v7 = vmul.f32 %v4555_v28, %v2051_v35  ;;  %v2298_v43 = vadd.f32 %v2297_v36, %v2296_v33  ;;  %v1933_v35 = vrot.slane %v5010_v47, 4  ;;  %v2026_v36 = vpop.xlane.xlu1 %2025 }
 0x582   : > { %v2112_v4 = vmul.f32 %v4557_v20, %v2111_v2 }
 0x583   : > { %v2053_v44 = vadd.f32 %v4555_v28, %v2052_v7  ;;  %v2299_v45 = vrot.slane %v2298_v43, 2  ;;  %v2121_v7 = vor.u32 1.1754944e-38, %v2120_v22 }
 0x585   : > { %v2057_v30 = vsel %vm2056_vm2, %v4555_v28, %v2053_v44  ;;  %v2300_v10 = vadd.f32 %v2299_v45, %v2298_v43  ;;  %v2113_v28 = vadd.f32 %v4557_v20, %v2112_v4  ;;  %v1949_v45 = vperm.slane %v1933_v35, 0 }
 0x586   : > { %v2062_v46 = vsel %vm2059_vm3, %v2061_v41, %v2057_v30  ;;  %v5122_v41 = vadd.f32 1e-20, %v2026_v36  ;;  %v2690_v30 = vperm.slane %v5103_v32, 1 }
 0x587   : > { %v2063_v50 = vmul.f32 %v2062_v46, %v5020_v55  ;;  %v2301_v51 = vrot.slane %v2300_v10, 1  ;;  %v2117_v38 = vsel %vm2116_vm7, %v4557_v20, %v2113_v28 }
 0x588   : > { %vm2249_vm13 = vweird.f32 %v5122_v41 }
 0x589   : > { %v2289_v54 = vsel %vm1824_vm10, %v2063_v50, 0.0  ;;  %v3064_v57 = vperm.slane %v2063_v50, 2  ;;  %v2302_v14 = vadd.f32 %v2301_v51, %v2300_v10  ;;  %v2683_v23 = vperm.slane %v2063_v50, 1 }
 0x58a   : > { %v2290_v0 = vrot.slane %v2289_v54, 4  ;;  %v3383_v24 = vperm.slane %v2063_v50, 3  ;;  %v2424_v47 = vperm.slane %v2063_v50, 0 }
 0x58b   : > { %3069 = vperm.xlu2 %4469, %v3064_v57   ;;  %v2409_v17 = vmul.f32 %v5111_v3, %v2302_v14 }
 0x58c   : > { %v2291_v15 = vadd.f32 %v2290_v0, %v2289_v54 }
 0x58d   : > { %v3953_v33 = vmul.f32 %v3924_v27, %v2409_v17 }
 0x58e   : > { %v2292_v48 = vrot.slane %v2291_v15, 2 }
 0x58f   : > { %v3984_v44 = vrot.slane %v3953_v33, 7 }
 0x590   : > { %v2293_v8 = vadd.f32 %v2292_v48, %v2291_v15  ;;  %v1863_v12 = vpop.xlane.xlu2 %1862 }
 0x591   : > { %v1885_v55 = vsub.f32 %v5032_v6, %v1863_v12  ;;  %v2118_v6 = vand.u32 2147483647, %v5100_v19 }
 0x592   : > { %v2294_v25 = vrot.slane %v2293_v8, 1 }
 0x593   : > { %v1913_v31 = vmul.f32 1.442695, %v1885_v55  ;;  %2688 = vperm.xlu1 %4468, %v2683_v23   ;;  %3388 = vperm.xlu2 %4469, %v3383_v24   ;;  %vm2119_vm9 = vcmp.eq.f32.partialorder %v2118_v6, 8.507059e+37  ;;  %v3071_v24 = vperm.slane %v5103_v32, 2 }
 0x594   : > { %v2295_v5 = vadd.f32 %v2294_v25, %v2293_v8  ;;  %v2122_v19 = vsel %vm2119_vm9, %v2121_v7, %v2117_v38  ;;  %v2255_v38 = vand.u32 2147483648, %v5122_v41 }
 0x595   : > { %4558 = vpow2.f32 %v1913_v31  ;;  %v5132_v49 = vmul.f32 %v2122_v19, %v5017_v53  ;;  %v2431_v53 = vperm.slane %v5103_v32, 0 }
 0x596   : > { %v2408_v37 = vmul.f32 %v5111_v3, %v2295_v5  ;;  %4560 = vrcp.f32 %v5122_v41 }
 0x597   : > { %v2711_v51 = vperm.slane %v5132_v49, 1  ;;  %v2452_v25 = vperm.slane %v5132_v49, 0 }
 0x598   : > { %v3952_v39 = vmul.f32 %v2408_v37, %v4826_v63  ;;  %v1993_v43 = vpop.xlane.xlu2 %1992  ;;  %v2253_v37 = vand.u32 2147483647, %v5122_v41 }
 0x599   : > { %v2035_v34 = vadd.f32 1e-20, %v1993_v43  ;;  %v3092_v43 = vperm.slane %v5132_v49, 2 }
 0x59a   : > { %v5126_v10 = vsel %vm2959_vm8, %v3984_v44, %v3952_v39  ;;  %v3390_v39 = vperm.slane %v5103_v32, 3  ;;  %vm2254_vm7 = vcmp.eq.f32.partialorder %v2253_v37, 8.507059e+37 }
 0x59b   : > { %v4559_v46 = vpop.eup %4558  ;;  %2429 = vperm.xlu1 %4468, %v2424_v47   ;;  %2695 = vperm.xlu2 %4469, %v2690_v30   ;;  %4562 = vrcp.f32 %v2035_v34  ;;  %v2088_v22 = vand.u32 2147483647, %v2035_v34  ;;  %v2090_v5 = vand.u32 2147483648, %v2035_v34  ;;  %vm2084_vm15 = vweird.f32 %v2035_v34 }
 0x59c   : > { %v5128_v20 = vmul.f32 %v4559_v46, %v1949_v45  ;;  %v5137_v54 = vpop.eup %4560 }
 0x59d   : > { %v2245_v57 = vmul.f32 %v5137_v54, %v5122_v41  ;;  %vm2250_vm11 = vweird.f32 %v5137_v54  ;;  %vm2089_vm4 = vcmp.eq.f32.partialorder %v2088_v22, 8.507059e+37  ;;  %v2091_v19 = vor.u32 1.1754944e-38, %v2090_v5 }
 0x59e   : > { %v2021_v50 = vsel %vm1824_vm10, %v5128_v20, 0.0  ;;  %vm5151_vm14 = vmor %vm2249_vm13, %vm2250_vm11 }
 0x59f   : > { %2022 = vadd.xlane.f32.xlu0 %v2021_v50  ;;  %v2246_v14 = vsub.f32 1.0, %v2245_v57  ;;  %v2256_v57 = vor.u32 1.1754944e-38, %v2255_v38 }
 0x5a1   : > { %v4563_v56 = vpop.eup %4562  ;;  %v2247_v4 = vmul.f32 %v5137_v54, %v2246_v14 }
 0x5a2   : > { %v2080_v0 = vmul.f32 %v4563_v56, %v2035_v34  ;;  %vm2085_vm12 = vweird.f32 %v4563_v56 }
 0x5a3   : > { %2716 = vperm.xlu2 %4469, %v2711_v51   ;;  %v2248_v27 = vadd.f32 %v5137_v54, %v2247_v4  ;;  %vm5158_vm2 = vmor %vm2084_vm15, %vm2085_vm12 }
 0x5a4   : > { %v2081_v48 = vsub.f32 1.0, %v2080_v0 }
 0x5a5   : > { %v2252_v44 = vsel %vm5151_vm14, %v5137_v54, %v2248_v27 }
 0x5a6   : > { %v2082_v8 = vmul.f32 %v4563_v56, %v2081_v48 }
 0x5a7   : > { %v2002_v2 = vpop.xlane.xlu2 %2001 }
 0x5a8   : > { %v2038_v15 = vadd.f32 1e-20, %v2002_v2  ;;  %v2083_v28 = vadd.f32 %v4563_v56, %v2082_v8 }
 0x5aa   : > { %4564 = vrcp.f32 %v2038_v15  ;;  %v2135_v33 = vand.u32 2147483648, %v2038_v15  ;;  %v2133_v36 = vand.u32 2147483647, %v2038_v15  ;;  %v2087_v45 = vsel %vm5158_vm2, %v4563_v56, %v2083_v28 }
 0x5ab   : > { %2436 = vperm.xlu2 %4469, %v2431_v53   ;;  %vm2129_vm3 = vweird.f32 %v2038_v15  ;;  %v2092_v0 = vsel %vm2089_vm4, %v2091_v19, %v2087_v45 }
 0x5ac   : > { %v2136_v34 = vor.u32 1.1754944e-38, %v2135_v33  ;;  %vm2134_vm6 = vcmp.eq.f32.partialorder %v2133_v36, 8.507059e+37  ;;  %v5179_v4 = vmul.f32 %v2092_v0, %v5036_v16 }
 0x5af   : > { %v1996_v12 = vpop.xlane.xlu0 %1995 }
 0x5b0   : > { %v4565_v17 = vpop.eup %4564  ;;  %v5143_v55 = vadd.f32 1e-20, %v1996_v12 }
 0x5b1   : > { %v2125_v23 = vmul.f32 %v4565_v17, %v2038_v15  ;;  %vm2130_vm0 = vweird.f32 %v4565_v17  ;;  %v2257_v15 = vsel %vm2254_vm7, %v2256_v57, %v2252_v44  ;;  %vm2961_vm7 = vcmask 1042434  }
 0x5b2   : > { %4566 = vrcp.f32 %v5143_v55  ;;  %vm2131_vm5 = vmor %vm2129_vm3, %vm2130_vm0  ;;  %v2105_v48 = vand.u32 2147483648, %v5143_v55  ;;  %v2103_v8 = vand.u32 2147483647, %v5143_v55  ;;  %vm2099_vm11 = vweird.f32 %v5143_v55 }
 0x5b3   : > { %v2126_v31 = vsub.f32 1.0, %v2125_v23  ;;  %3076 = vperm.xlu0 %4470, %v3071_v24   ;;  %2457 = vperm.xlu2 %4469, %v2452_v25   ;;  %v5188_v24 = vmul.f32 %v2257_v15, %v5026_v62  ;;  %v2303_v62 = vsel %vm1824_vm10, %v5179_v4, 0.0 }
 0x5b4   : > { %v2106_v16 = vor.u32 1.1754944e-38, %v2105_v48  ;;  %vm2104_vm13 = vcmp.eq.f32.partialorder %v2103_v8, 8.507059e+37 }
 0x5b5   : > { %v2127_v6 = vmul.f32 %v4565_v17, %v2126_v31  ;;  %v3078_v31 = vperm.slane %v5179_v4, 2  ;;  %v2774_v37 = vperm.slane %v5188_v24, 1 }
 0x5b7   : > { %v2128_v47 = vadd.f32 %v4565_v17, %v2127_v6  ;;  %v2029_v30 = vpop.xlane.xlu2 %2028 }
 0x5b8   : > { %v4567_v41 = vpop.eup %4566  ;;  %v5170_v46 = vadd.f32 1e-20, %v2029_v30  ;;  %v2005_v32 = vpop.xlane.xlu0 %2004 }
 0x5b9   : > { %v2132_v50 = vsel %vm2131_vm5, %v4565_v17, %v2128_v47  ;;  %v2095_v51 = vmul.f32 %v4567_v41, %v5143_v55  ;;  %v2039_v54 = vadd.f32 1e-20, %v2005_v32  ;;  %vm2100_vm9 = vweird.f32 %v4567_v41 }
 0x5ba   : > { %v2137_v56 = vsel %vm2134_vm6, %v2136_v34, %v2132_v50  ;;  %4568 = vrcp.f32 %v5170_v46  ;;  %vm2101_vm12 = vmor %vm2099_vm11, %vm2100_vm9  ;;  %v2317_v55 = vsel %vm1824_vm10, %v5132_v49, 0.0  ;;  %v2697_v47 = vperm.slane %v5179_v4, 1 }
 0x5bb   : > { %v2096_v2 = vsub.f32 1.0, %v2095_v51  ;;  %4570 = vrcp.f32 %v2039_v54  ;;  %3395 = vperm.xlu0 %4470, %v3390_v39   ;;  %3097 = vperm.xlu2 %4469, %v3092_v43   ;;  %v5175_v53 = vmul.f32 %v2137_v56, %v5043_v29  ;;  %v3411_v29 = vperm.slane %v5132_v49, 3 }
 0x5bc   : > { %v2318_v6 = vrot.slane %v2317_v55, 4  ;;  %v2150_v36 = vand.u32 2147483648, %v2039_v54  ;;  %v2148_v7 = vand.u32 2147483647, %v2039_v54  ;;  %v2304_v43 = vrot.slane %v2303_v62, 4 }
 0x5bd   : > { %v2097_v14 = vmul.f32 %v4567_v41, %v2096_v2  ;;  %v2718_v12 = vperm.slane %v5175_v53, 1  ;;  %vm2144_vm15 = vweird.f32 %v2039_v54  ;;  %v3099_v30 = vperm.slane %v5175_v53, 2 }
 0x5be   : > { %v2151_v45 = vor.u32 1.1754944e-38, %v2150_v36  ;;  %vm2149_vm2 = vcmp.eq.f32.partialorder %v2148_v7, 8.507059e+37  ;;  %v2305_v50 = vadd.f32 %v2304_v43, %v2303_v62  ;;  %v2270_v51 = vand.u32 2147483648, %v5170_v46 }
 0x5bf   : > { %v2098_v17 = vadd.f32 %v4567_v41, %v2097_v14  ;;  %2723 = vperm.xlu1 %4468, %v2718_v12   ;;  %vm2264_vm4 = vweird.f32 %v5170_v46  ;;  %v2515_v2 = vperm.slane %v5188_v24, 0  ;;  %v2438_v12 = vperm.slane %v5179_v4, 0 }
 0x5c0   : > { %v5184_v23 = vpop.eup %4568  ;;  %v2032_v56 = vpop.xlane.xlu0 %2031  ;;  %v2306_v48 = vrot.slane %v2305_v50, 2  ;;  %v2271_v8 = vor.u32 1.1754944e-38, %v2270_v51  ;;  %v2459_v62 = vperm.slane %v5175_v53, 0 }
 0x5c1   : > { %v4571_v25 = vpop.eup %4570  ;;  %v2102_v27 = vsel %vm2101_vm12, %v4567_v41, %v2098_v17  ;;  %v2260_v28 = vmul.f32 %v5184_v23, %v5170_v46  ;;  %v2319_v41 = vadd.f32 %v2318_v6, %v2317_v55  ;;  %vm2265_vm3 = vweird.f32 %v5184_v23 }
 0x5c2   : > { %v2140_v22 = vmul.f32 %v4571_v25, %v2039_v54  ;;  %v2107_v5 = vsel %vm2104_vm13, %v2106_v16, %v2102_v27  ;;  %vm2145_vm14 = vweird.f32 %v4571_v25  ;;  %v2268_v54 = vand.u32 2147483647, %v5170_v46  ;;  %vm2266_vm5 = vmor %vm2264_vm4, %vm2265_vm3 }
 0x5c3   : > { %v2261_v33 = vsub.f32 1.0, %v2260_v28  ;;  %3416 = vperm.xlu0 %4470, %v3411_v29   ;;  %3083 = vperm.xlu2 %4469, %v3078_v31   ;;  %v5199_v39 = vmul.f32 %v2107_v5, %v5050_v40  ;;  %vm2146_vm0 = vmor %vm2144_vm15, %vm2145_vm14  ;;  %v2320_v15 = vrot.slane %v2319_v41, 2  ;;  %v5217_v17 = vadd.f32 1e-20, %v2032_v56  ;;  %v2011_v28 = vpop.xlane.xlu2 %2010 }
 0x5c4   : > { %v2141_v35 = vsub.f32 1.0, %v2140_v22  ;;  %vm2269_vm6 = vcmp.eq.f32.partialorder %v2268_v54, 8.507059e+37  ;;  %v2307_v27 = vadd.f32 %v2306_v48, %v2305_v50  ;;  %v5225_v5 = vadd.f32 1e-20, %v2011_v28 }
 0x5c5   : > { %v2262_v49 = vmul.f32 %v5184_v23, %v2261_v33  ;;  %v2310_v34 = vsel %vm1824_vm10, %v5199_v39, 0.0  ;;  %4572 = vrcp.f32 %v5217_v17  ;;  %v2704_v55 = vperm.slane %v5199_v39, 1 }
 0x5c6   : > { %v2142_v38 = vmul.f32 %v4571_v25, %v2141_v35  ;;  %v2311_v0 = vrot.slane %v2310_v34, 4  ;;  %v2308_v33 = vrot.slane %v2307_v27, 1  ;;  %4574 = vrcp.f32 %v5225_v5 }
 0x5c7   : > { %2779 = vperm.xlu1 %4468, %v2774_v37   ;;  %v2263_v40 = vadd.f32 %v5184_v23, %v2262_v49  ;;  %v2324_v49 = vsel %vm1824_vm10, %v5175_v53, 0.0  ;;  %v3397_v54 = vperm.slane %v5179_v4, 3  ;;  %vm2279_vm9 = vweird.f32 %v5217_v17 }
 0x5c8   : > { %v2143_v44 = vadd.f32 %v4571_v25, %v2142_v38  ;;  %v2309_v38 = vadd.f32 %v2308_v33, %v2307_v27  ;;  %v2325_v50 = vrot.slane %v2324_v49, 4  ;;  %vm2963_vm12 = vcmask 1043459  }
 0x5c9   : > { %v2267_v14 = vsel %vm2266_vm5, %v5184_v23, %v2263_v40 }
 0x5ca   : > { %v2147_v19 = vsel %vm2146_vm0, %v4571_v25, %v2143_v44  ;;  %v2272_v29 = vsel %vm2269_vm6, %v2271_v8, %v2267_v14  ;;  %v2321_v25 = vadd.f32 %v2320_v15, %v2319_v41  ;;  %v2014_v44 = vpop.xlane.xlu0 %2013  ;;  %v2410_v41 = vmul.f32 %v5111_v3, %v2309_v38 }
 0x5cb   : > { %v2152_v32 = vsel %vm2149_vm2, %v2151_v45, %v2147_v19  ;;  %2702 = vperm.xlu0 %4470, %v2697_v47   ;;  %3104 = vperm.xlu2 %4469, %v3099_v30   ;;  %v5222_v31 = vmul.f32 %v2272_v29, %v5058_v58  ;;  %v5229_v36 = vpop.eup %4572  ;;  %v2445_v47 = vperm.slane %v5199_v39, 0  ;;  %v3927_v19 = vrot.slane %v4826_v63, 4 }
 0x5cc   : > { %v5212_v57 = vmul.f32 %v2152_v32, %v5060_v61  ;;  %v2312_v61 = vadd.f32 %v2311_v0, %v2310_v34  ;;  %v2322_v22 = vrot.slane %v2321_v25, 1  ;;  %v2275_v43 = vmul.f32 %v5229_v36, %v5217_v17  ;;  %v5245_v32 = vpop.eup %4574 }
 0x5cd   : > { %v2781_v6 = vperm.slane %v5222_v31, 1  ;;  %v3925_v34 = vrot.slane %v4826_v63, 2  ;;  %v5247_v51 = vadd.f32 1e-20, %v2014_v44  ;;  %v2170_v8 = vmul.f32 %v5245_v32, %v5225_v5 }
 0x5ce   : > { %v2725_v46 = vperm.slane %v5212_v57, 1  ;;  %v2313_v16 = vrot.slane %v2312_v61, 2  ;;  %v2323_v37 = vadd.f32 %v2322_v22, %v2321_v25  ;;  %v3106_v0 = vperm.slane %v5212_v57, 2 }
 0x5cf   : > { %2520 = vperm.xlu1 %4468, %v2515_v2   ;;  %v2276_v56 = vsub.f32 1.0, %v2275_v43  ;;  %v3926_v2 = vrot.slane %v4826_v63, 3  ;;  %v3954_v48 = vmul.f32 %v3925_v34, %v2410_v41  ;;  %v2331_v29 = vsel %vm1824_vm10, %v5212_v57, 0.0 }
 0x5d0   : > { %v2314_v23 = vadd.f32 %v2313_v16, %v2312_v61  ;;  %v2412_v30 = vmul.f32 %v5111_v3, %v2323_v37  ;;  %v2466_v25 = vperm.slane %v5212_v57, 0  ;;  %v3418_v22 = vperm.slane %v5175_v53, 3 }
 0x5d1   : > { %v2277_v4 = vmul.f32 %v5229_v36, %v2276_v56  ;;  %v3986_v16 = vrot.slane %v3954_v48, 6  ;;  %vm2280_vm11 = vweird.f32 %v5229_v36  ;;  %v2283_v44 = vand.u32 2147483647, %v5217_v17 }
 0x5d2   : > { %v2315_v35 = vrot.slane %v2314_v23, 1  ;;  %v3956_v14 = vmul.f32 %v3927_v19, %v2412_v30  ;;  %vm5278_vm14 = vmor %vm2279_vm9, %vm2280_vm11  ;;  %vm2965_vm0 = vcmask 1044484   ;;  %vm2175_vm5 = vweird.f32 %v5245_v32 }
 0x5d3   : > { %2443 = vperm.xlu0 %4470, %v2438_v12   ;;  %2730 = vperm.xlu2 %4469, %v2725_v46   ;;  %v2326_v46 = vadd.f32 %v2325_v50, %v2324_v49  ;;  %v3987_v49 = vsel %vm2961_vm7, %v3986_v16, %v5126_v10  ;;  %vm2284_vm4 = vcmp.eq.f32.partialorder %v2283_v44, 8.507059e+37  ;;  %v2180_v16 = vand.u32 2147483648, %v5225_v5 }
 0x5d4   : > { %v2316_v58 = vadd.f32 %v2315_v35, %v2314_v23  ;;  %v3990_v27 = vrot.slane %v3956_v14, 4  ;;  %v2171_v23 = vsub.f32 1.0, %v2170_v8  ;;  %v2332_v35 = vrot.slane %v2331_v29, 4 }
 0x5d5   : > { %v2327_v33 = vrot.slane %v2326_v46, 2  ;;  %vm2174_vm6 = vweird.f32 %v5225_v5 }
 0x5d6   : > { %v2411_v40 = vmul.f32 %v5111_v3, %v2316_v58  ;;  %v2172_v43 = vmul.f32 %v5245_v32, %v2171_v23  ;;  %v2333_v19 = vadd.f32 %v2332_v35, %v2331_v29  ;;  %vm5318_vm9 = vmor %vm2174_vm6, %vm2175_vm5 }
 0x5d7   : > { %2709 = vperm.xlu1 %4468, %v2704_v55   ;;  %v2328_v8 = vadd.f32 %v2327_v33, %v2326_v46  ;;  %v2178_v46 = vand.u32 2147483647, %v5225_v5 }
 0x5d8   : > { %v3955_v12 = vmul.f32 %v3926_v2, %v2411_v40  ;;  %v2334_v29 = vrot.slane %v2333_v19, 2 }
 0x5d9   : > { %vm2179_vm11 = vcmp.eq.f32.partialorder %v2178_v46, 8.507059e+37 }
 0x5da   : > { %v3988_v55 = vrot.slane %v3955_v12, 5  ;;  %v3404_v12 = vperm.slane %v5199_v39, 3  ;;  %v2335_v35 = vadd.f32 %v2334_v29, %v2333_v19 }
 0x5db   : > { %2464 = vperm.xlu0 %4470, %v2459_v62   ;;  %2786 = vperm.xlu2 %4469, %v2781_v6   ;;  %v2278_v6 = vadd.f32 %v5229_v36, %v2277_v4 }
 0x5dc   : > { %v3989_v30 = vsel %vm2963_vm12, %v3988_v55, %v3987_v49  ;;  %v2195_v49 = vand.u32 2147483648, %v5247_v51  ;;  %v2336_v41 = vrot.slane %v2335_v35, 1 }
 0x5dd   : > { %v2008_v7 = vpop.xlane.xlu1 %2007 }
 0x5de   : > { %v5236_v45 = vadd.f32 1e-20, %v2008_v7  ;;  %v2196_v29 = vor.u32 1.1754944e-38, %v2195_v49  ;;  %v3930_v49 = vrot.slane %v4826_v63, 7 }
 0x5df   : > { %2450 = vperm.xlu1 %4468, %v2445_v47   ;;  %v2285_v47 = vand.u32 2147483648, %v5217_v17  ;;  %v3085_v17 = vperm.slane %v5199_v39, 2  ;;  %v2329_v39 = vrot.slane %v2328_v8, 1 }
 0x5e0   : > { %4576 = vrcp.f32 %v5236_v45  ;;  %v2165_v37 = vand.u32 2147483648, %v5236_v45  ;;  %v2163_v53 = vand.u32 2147483647, %v5236_v45  ;;  %vm2159_vm15 = vweird.f32 %v5236_v45 }
 0x5e1   : > { %4578 = vrcp.f32 %v5247_v51  ;;  %v2286_v2 = vor.u32 1.1754944e-38, %v2285_v47 }
 0x5e2   : > { %v2020_v15 = vpop.xlane.xlu2 %2019  ;;  %v2166_v50 = vor.u32 1.1754944e-38, %v2165_v37  ;;  %vm2164_vm3 = vcmp.eq.f32.partialorder %v2163_v53, 8.507059e+37  ;;  %v2181_v37 = vor.u32 1.1754944e-38, %v2180_v16  ;;  %v2330_v53 = vadd.f32 %v2329_v39, %v2328_v8 }
 0x5e3   : > { %3402 = vperm.xlu0 %4470, %v3397_v54   ;;  %3111 = vperm.xlu2 %4469, %v3106_v0   ;;  %v2282_v0 = vsel %vm5278_vm14, %v5229_v36, %v2278_v6  ;;  %v5295_v48 = vadd.f32 1e-20, %v2020_v15  ;;  %vm2189_vm14 = vweird.f32 %v5247_v51  ;;  %v3928_v16 = vrot.slane %v4826_v63, 5 }
 0x5e4   : > { %v2287_v36 = vsel %vm2284_vm4, %v2286_v2, %v2282_v0 }
 0x5e5   : > { %v5314_v23 = vmul.f32 %v2287_v36, %v5071_v60  ;;  %v2337_v36 = vadd.f32 %v2336_v41, %v2335_v35 }
 0x5e6   : > { %v4577_v61 = vpop.eup %4576 }
 0x5e7   : > { %v2155_v28 = vmul.f32 %v4577_v61, %v5236_v45  ;;  %2471 = vperm.xlu1 %4468, %v2466_v25   ;;  %v5267_v58 = vpop.eup %4578  ;;  %vm2160_vm13 = vweird.f32 %v4577_v61  ;;  %v5293_v45 = vsel %vm2965_vm0, %v3990_v27, %v3989_v30  ;;  %v2173_v27 = vadd.f32 %v5245_v32, %v2172_v43 }
 0x5e8   : > { %v2185_v10 = vmul.f32 %v5267_v58, %v5247_v51  ;;  %vm2161_vm2 = vmor %vm2159_vm15, %vm2160_vm13  ;;  %v2788_v44 = vperm.slane %v5314_v23, 1  ;;  %vm2190_vm13 = vweird.f32 %v5267_v58  ;;  %vm2568_vm15 = vcmask 130048  }
 0x5e9   : > { %v2156_v62 = vsub.f32 1.0, %v2155_v28  ;;  %v2177_v5 = vsel %vm5318_vm9, %v5245_v32, %v2173_v27 }
 0x5ea   : > { %v5265_v38 = vpop.permute.xlu2 %3069  ;;  %v2182_v32 = vsel %vm2179_vm11, %v2181_v37, %v2177_v5  ;;  %v4350_v5 = vld [vmem:[%s6148_s24 + $0x80] sm:$0xff] }
 0x5eb   : > { %v2157_v7 = vmul.f32 %v4577_v61, %v2156_v62  ;;  %3423 = vperm.xlu0 %4470, %v3418_v22   ;;  %v2522_v62 = vperm.slane %v5222_v31, 0  ;;  %v5349_v8 = vmul.f32 %v2182_v32, %v5069_v21  ;;  %v2414_v22 = vmul.f32 %v5111_v3, %v2337_v36 }
 0x5ed   : > { %v2158_v34 = vadd.f32 %v4577_v61, %v2157_v7  ;;  %v2017_v40 = vpop.xlane.xlu1 %2016  ;;  %v4351_v7 = vld [vmem:[%s6148_s24 + $0x88] sm:$0xff]  ;;  %v2480_v39 = vperm.slane %v5349_v8, 0 }
 0x5ee   : > { %v5286_v54 = vadd.f32 1e-20, %v2017_v40 }
 0x5ef   : > { %v2162_v56 = vsel %vm2161_vm2, %v4577_v61, %v2158_v34  ;;  %3090 = vperm.xlu1 %4468, %v3085_v17   ;;  %v2186_v61 = vsub.f32 1.0, %v2185_v10  ;;  %v2193_v17 = vand.u32 2147483647, %v5247_v51  ;;  %vm5341_vm2 = vmor %vm2189_vm14, %vm2190_vm13  ;;  %vm2967_vm13 = vcmask 1045509  }
 0x5f0   : > { %v2167_v14 = vsel %vm2164_vm3, %v2166_v50, %v2162_v56  ;;  %4580 = vrcp.f32 %v5286_v54  ;;  %vm2204_vm5 = vweird.f32 %v5286_v54  ;;  %vm2219_vm14 = vweird.f32 %v5295_v48 }
 0x5f1   : > { %v5300_v4 = vmul.f32 %v2167_v14, %v5086_v42  ;;  %4582 = vrcp.f32 %v5295_v48  ;;  %v2187_v33 = vmul.f32 %v5267_v58, %v2186_v61  ;;  %v3425_v61 = vperm.slane %v5212_v57, 3 }
 0x5f2   : > { %v5302_v25 = vpop.permute.xlu2 %3388  ;;  %vm2194_vm3 = vcmp.eq.f32.partialorder %v2193_v17, 8.507059e+37  ;;  %v2739_v57 = vperm.slane %v5349_v8, 1  ;;  %v2537_v17 = vld [vmem:[%s6148_s24 + $0x8] sm:$0xff] }
 0x5f3   : > { %3409 = vperm.xlu0 %4470, %v3404_v12   ;;  %v2473_v15 = vperm.slane %v5300_v4, 0  ;;  %v2338_v42 = vsel %vm1824_vm10, %v5300_v4, 0.0  ;;  %v2188_v30 = vadd.f32 %v5267_v58, %v2187_v33  ;;  %v3113_v50 = vperm.slane %v5300_v4, 2 }
 0x5f4   : > { %v2339_v28 = vrot.slane %v2338_v42, 4  ;;  %v2413_v12 = vmul.f32 %v5111_v3, %v2330_v53  ;;  %v2208_v53 = vand.u32 2147483647, %v5286_v54  ;;  %v2732_v41 = vperm.slane %v5300_v4, 1 }
 0x5f5   : > { %2478 = vperm.xlu2 %4469, %v2473_v15   ;;  %v2192_v51 = vsel %vm5341_vm2, %v5267_v58, %v2188_v30  ;;  %vm2969_vm2 = vcmask 1046534  }
 0x5f6   : > { %v5316_v55 = vpop.eup %4580  ;;  %v2340_v60 = vadd.f32 %v2339_v28, %v2338_v42  ;;  %v2197_v21 = vsel %vm2194_vm3, %v2196_v29, %v2192_v51  ;;  %v3957_v28 = vmul.f32 %v3928_v16, %v2413_v12  ;;  %vm2209_vm11 = vcmp.eq.f32.partialorder %v2208_v53, 8.507059e+37 }
 0x5f7   : > { %v2200_v6 = vmul.f32 %v5316_v55, %v5286_v54  ;;  %2527 = vperm.xlu1 %4468, %v2522_v62   ;;  %v5334_v47 = vpop.eup %4582  ;;  %vm2205_vm4 = vweird.f32 %v5316_v55  ;;  %v5372_v37 = vmul.f32 %v2197_v21, %v5078_v26  ;;  %v2225_v16 = vand.u32 2147483648, %v5295_v48 }
 0x5f8   : > { %v2341_v43 = vrot.slane %v2340_v60, 2  ;;  %v2215_v56 = vmul.f32 %v5334_v47, %v5295_v48  ;;  %vm5380_vm6 = vmor %vm2204_vm5, %vm2205_vm4  ;;  %vm2220_vm9 = vweird.f32 %v5334_v47  ;;  %v2529_v21 = vperm.slane %v5314_v23, 0 }
 0x5f9   : > { %v2201_v34 = vsub.f32 1.0, %v2200_v6  ;;  %v3929_v6 = vrot.slane %v4826_v63, 6  ;;  %v2746_v0 = vperm.slane %v5372_v37, 1  ;;  %vm5402_vm3 = vmor %vm2219_vm14, %vm2220_vm9  ;;  %vm2971_vm4 = vcmask 1047559  }
 0x5fa   : > { %v2696_v19 = vpop.permute.xlu2 %2695  ;;  %v2342_v40 = vadd.f32 %v2341_v43, %v2340_v60  ;;  %v2216_v42 = vsub.f32 1.0, %v2215_v56  ;;  %v2210_v60 = vand.u32 2147483648, %v5286_v54  ;;  %vm4014_vm5 = vcmask 64512  }
 0x5fb   : > { %v2813_v10 = vmul.f32 %v4351_v7, %v2696_v19  ;;  %2793 = vperm.xlu0 %4470, %v2788_v44   ;;  %v2202_v27 = vmul.f32 %v5316_v55, %v2201_v34  ;;  %v3992_v44 = vrot.slane %v3957_v28, 3  ;;  %v3958_v32 = vmul.f32 %v3929_v6, %v2414_v22 }
 0x5fc   : > { %v2343_v2 = vrot.slane %v2342_v40, 1  ;;  %v2217_v7 = vmul.f32 %v5334_v47, %v2216_v42 }
 0x5fd   : > { %v2835_v14 = vsel %vm2568_vm15, %v2813_v10, 0.0  ;;  %3118 = vperm.xlu2 %4469, %v3113_v50   ;;  %v2203_v33 = vadd.f32 %v5316_v55, %v2202_v27  ;;  %v2211_v10 = vor.u32 1.1754944e-38, %v2210_v60  ;;  %v2536_v27 = vld [vmem:[%s6148_s24] sm:$0xff]  ;;  %v3993_v42 = vsel %vm2967_vm13, %v3992_v44, %v5293_v45 }
 0x5fe   : > { %v2344_v15 = vadd.f32 %v2343_v2, %v2342_v40  ;;  %v2836_v46 = vrot.slane %v2835_v14, 4  ;;  %v3120_v40 = vperm.slane %v5349_v8, 2  ;;  %v2218_v56 = vadd.f32 %v5334_v47, %v2217_v7 }
 0x5ff   : > { %3430 = vperm.xlu1 %4468, %v3425_v61   ;;  %v2207_v19 = vsel %vm5380_vm6, %v5316_v55, %v2203_v33  ;;  %v3994_v2 = vrot.slane %v3958_v32, 2 }
 0x600   : > { %v2415_v35 = vmul.f32 %v5111_v3, %v2344_v15  ;;  %v2837_v62 = vadd.f32 %v2836_v46, %v2835_v14  ;;  %v2212_v14 = vsel %vm2209_vm11, %v2211_v10, %v2207_v19  ;;  %v2223_v46 = vand.u32 2147483647, %v5295_v48  ;;  %v4392_v15 = vld [vmem:[%s6148_s24 + $0x180] sm:$0xff] }
 0x601   : > { %v5416_v48 = vmul.f32 %v2212_v14, %v5096_v13  ;;  %v3127_v13 = vperm.slane %v5372_v37, 2 }
 0x602   : > { %v5360_v58 = vpop.permute.xlu2 %2716  ;;  %v3959_v54 = vmul.f32 %v3930_v49, %v2415_v35  ;;  %v2838_v34 = vrot.slane %v2837_v62, 2  ;;  %vm2224_vm6 = vcmp.eq.f32.partialorder %v2223_v46, 8.507059e+37  ;;  %v2345_v46 = vsel %vm1824_vm10, %v5349_v8, 0.0 }
 0x603   : > { %2485 = vperm.xlu0 %4470, %v2480_v39   ;;  %v2222_v39 = vsel %vm5402_vm3, %v5334_v47, %v2218_v56  ;;  %v2226_v47 = vor.u32 1.1754944e-38, %v2225_v16 }
 0x604   : > { %v3996_v51 = vrot.slane %v3959_v54, 1  ;;  %v2839_v36 = vadd.f32 %v2838_v34, %v2837_v62  ;;  %v3995_v62 = vsel %vm2969_vm2, %v3994_v2, %v3993_v42  ;;  %v2352_v2 = vsel %vm1824_vm10, %v5372_v37, 0.0 }
 0x605   : > { %2744 = vperm.xlu2 %4469, %v2739_v57   ;;  %v2689_v43 = vpop.permute.xlu1 %2688  ;;  %v2380_v42 = vsel %vm1824_vm10, %v5188_v24, 0.0 }
 0x606   : > { %v2812_v26 = vmul.f32 %v4350_v5, %v2689_v43  ;;  %v2840_v5 = vrot.slane %v2839_v36, 1  ;;  %v3997_v6 = vsel %vm2971_vm4, %v3996_v51, %v3995_v62  ;;  %v2227_v43 = vsel %vm2224_vm6, %v2226_v47, %v2222_v39 }
 0x607   : > { %2737 = vperm.xlu1 %4468, %v2732_v41   ;;  %4015 = vst.msk [vmem:[%s4782_s29] sm:$0xff] %vm4014_vm5, %v3997_v6  ;;  %v2387_v39 = vsel %vm1824_vm10, %v5222_v31, 0.0  ;;  %v3512_v62 = vmul.f32 %v4392_v15, %v5302_v25 }
 0x608   : > { %v2828_v50 = vsel %vm2568_vm15, %v2812_v26, 0.0  ;;  %v3134_v26 = vperm.slane %v5416_v48, 2  ;;  %v2841_v41 = vadd.f32 %v2840_v5, %v2839_v36  ;;  %v2346_v5 = vrot.slane %v2345_v46, 4 }
 0x609   : > { %v2829_v55 = vrot.slane %v2828_v50, 4 }
 0x60a   : > { %v2437_v12 = vpop.permute.xlu2 %2436 }
 0x60b   : > { %v2830_v61 = vadd.f32 %v2829_v55, %v2828_v50  ;;  %v2553_v29 = vmul.f32 %v2537_v17, %v2437_v12  ;;  %2751 = vperm.xlu0 %4470, %v2746_v0   ;;  %v5431_v17 = vmul.f32 %v2227_v43, %v5091_v9  ;;  %v3432_v0 = vperm.slane %v5300_v4, 3 }
 0x60c   : > { %v2359_v12 = vsel %vm1824_vm10, %v5416_v48, 0.0  ;;  %v2353_v9 = vrot.slane %v2352_v2, 4  ;;  %v2388_v43 = vrot.slane %v2387_v39, 4 }
 0x60d   : > { %v2831_v28 = vrot.slane %v2830_v61, 2  ;;  %v2576_v22 = vsel %vm2568_vm15, %v2553_v29, 0.0  ;;  %3125 = vperm.xlu2 %4469, %v3120_v40   ;;  %v2430_v57 = vpop.permute.xlu1 %2429  ;;  %v2501_v51 = vperm.slane %v5431_v17, 0  ;;  %v2760_v4 = vperm.slane %v5431_v17, 1 }
 0x60e   : > { %v2577_v33 = vrot.slane %v2576_v22, 4  ;;  %v2552_v35 = vmul.f32 %v2536_v27, %v2430_v57 }
 0x60f   : > { %v2832_v45 = vadd.f32 %v2831_v28, %v2830_v61  ;;  %2534 = vperm.xlu1 %4468, %v2529_v21   ;;  %v2360_v21 = vrot.slane %v2359_v12, 4 }
 0x610   : > { %v2578_v60 = vadd.f32 %v2577_v33, %v2576_v22  ;;  %v2569_v7 = vsel %vm2568_vm15, %v2552_v35, 0.0  ;;  %v2394_v22 = vsel %vm1824_vm10, %v5314_v23, 0.0  ;;  %v2366_v33 = vsel %vm1824_vm10, %v5431_v17, 0.0 }
 0x611   : > { %v2833_v53 = vrot.slane %v2832_v45, 1  ;;  %v2570_v49 = vrot.slane %v2569_v7, 4  ;;  %v3439_v35 = vperm.slane %v5349_v8, 3  ;;  %v2347_v8 = vadd.f32 %v2346_v5, %v2345_v46 }
 0x612   : > { %v2579_v44 = vrot.slane %v2578_v60, 2  ;;  %v2023_v32 = vpop.xlane.xlu0 %2022  ;;  %v5424_v30 = vpop.permute.xlu2 %2457 }
 0x613   : > { %v2834_v19 = vadd.f32 %v2833_v53, %v2832_v45  ;;  %v2571_v54 = vadd.f32 %v2570_v49, %v2569_v7  ;;  %v2045_v34 = vadd.f32 1e-20, %v2023_v32  ;;  %3132 = vperm.xlu0 %4470, %v3127_v13   ;;  %v2354_v45 = vadd.f32 %v2353_v9, %v2352_v2 }
 0x614   : > { %v2580_v40 = vadd.f32 %v2579_v44, %v2578_v60  ;;  %v2361_v7 = vadd.f32 %v2360_v21, %v2359_v12  ;;  %v2381_v53 = vrot.slane %v2380_v42, 4  ;;  %v2367_v49 = vrot.slane %v2366_v33, 4 }
 0x615   : > { %v5428_v10 = vsel %vm2959_vm8, %v2841_v41, %v2834_v19  ;;  %v2572_v50 = vrot.slane %v2571_v54, 2  ;;  %4584 = vrcp.f32 %v2045_v34  ;;  %3139 = vperm.xlu2 %4469, %v3134_v26   ;;  %v2240_v6 = vand.u32 2147483648, %v2045_v34 }
 0x616   : > { %v2581_v56 = vrot.slane %v2580_v40, 1  ;;  %v2238_v60 = vand.u32 2147483647, %v2045_v34  ;;  %v3141_v13 = vperm.slane %v5431_v17, 2  ;;  %v2395_v44 = vrot.slane %v2394_v22, 4 }
 0x617   : > { %v2573_v55 = vadd.f32 %v2572_v50, %v2571_v54  ;;  %3437 = vperm.xlu1 %4468, %v3432_v0   ;;  %vm2234_vm11 = vweird.f32 %v2045_v34  ;;  %v2355_v25 = vrot.slane %v2354_v45, 2  ;;  %v2241_v41 = vor.u32 1.1754944e-38, %v2240_v6 }
 0x618   : > { %v2582_v29 = vadd.f32 %v2581_v56, %v2580_v40  ;;  %v3446_v19 = vperm.slane %v5372_v37, 3  ;;  %v3528_v54 = vsel %vm2568_vm15, %v3512_v62, 0.0  ;;  %vm2239_vm3 = vcmp.eq.f32.partialorder %v2238_v60, 8.507059e+37 }
 0x619   : > { %v2574_v14 = vrot.slane %v2573_v55, 1  ;;  %v2362_v50 = vrot.slane %v2361_v7, 2  ;;  %v2368_v56 = vadd.f32 %v2367_v49, %v2366_v33  ;;  %v2389_v2 = vadd.f32 %v2388_v43, %v2387_v39 }
 0x61a   : > { %v5439_v36 = vpop.permute.xlu2 %3097  ;;  %v2396_v9 = vadd.f32 %v2395_v44, %v2394_v22  ;;  %v4393_v22 = vld [vmem:[%s6148_s24 + $0x188] sm:$0xff]  ;;  %v3155_v33 = vperm.slane %v5188_v24, 2  ;;  %v2753_v49 = vperm.slane %v5416_v48, 1 }
 0x61b   : > { %v4585_v61 = vpop.eup %4584  ;;  %v2575_v27 = vadd.f32 %v2574_v14, %v2573_v55  ;;  %2506 = vperm.xlu0 %4470, %v2501_v51   ;;  %v2487_v14 = vperm.slane %v5372_v37, 0  ;;  %v3529_v51 = vrot.slane %v3528_v54, 4  ;;  %v2369_v15 = vrot.slane %v2368_v56, 2 }
 0x61c   : > { %v2230_v16 = vmul.f32 %v4585_v61, %v2045_v34  ;;  %vm2235_vm9 = vweird.f32 %v4585_v61  ;;  %v2382_v34 = vadd.f32 %v2381_v53, %v2380_v42  ;;  %v2390_v42 = vrot.slane %v2389_v2, 2 }
 0x61d   : > { %v5452_v28 = vsel %vm2959_vm8, %v2582_v29, %v2575_v27  ;;  %2765 = vperm.xlu2 %4469, %v2760_v4   ;;  %vm2236_vm14 = vmor %vm2234_vm11, %vm2235_vm9  ;;  %v2356_v29 = vadd.f32 %v2355_v25, %v2354_v45  ;;  %v2348_v27 = vrot.slane %v2347_v8, 2  ;;  %v2363_v4 = vadd.f32 %v2362_v50, %v2361_v7 }
 0x61e   : > { %v2231_v57 = vsub.f32 1.0, %v2230_v16  ;;  %v2383_v21 = vrot.slane %v2382_v34, 2  ;;  %v3530_v37 = vadd.f32 %v3529_v51, %v3528_v54  ;;  %v2370_v45 = vadd.f32 %v2369_v15, %v2368_v56 }
 0x61f   : > { %3444 = vperm.xlu1 %4468, %v3439_v35   ;;  %v2397_v35 = vrot.slane %v2396_v9, 2  ;;  %v2349_v62 = vadd.f32 %v2348_v27, %v2347_v8  ;;  %v2364_v5 = vrot.slane %v2363_v4, 1  ;;  %v2391_v7 = vadd.f32 %v2390_v42, %v2389_v2 }
 0x620   : > { %v2232_v47 = vmul.f32 %v4585_v61, %v2231_v57  ;;  %v2384_v60 = vadd.f32 %v2383_v21, %v2382_v34  ;;  %v2371_v8 = vrot.slane %v2370_v45, 1  ;;  %v3460_v50 = vperm.slane %v5431_v17, 3 }
 0x621   : > { %v2350_v25 = vrot.slane %v2349_v62, 1  ;;  %v2392_v56 = vrot.slane %v2391_v7, 1  ;;  %v3931_v17 = vrot.slane %v4822_v52, 1 }
 0x622   : > { %v2233_v32 = vadd.f32 %v4585_v61, %v2232_v47  ;;  %v5461_v26 = vpop.permute.xlu2 %3083 }
 0x623   : > { %3146 = vperm.xlu0 %4470, %v3141_v13   ;;  %v3531_v13 = vrot.slane %v3530_v37, 2 }
 0x624   : > { %v2237_v40 = vsel %vm2236_vm14, %v4585_v61, %v2233_v32  ;;  %v2398_v32 = vadd.f32 %v2397_v35, %v2396_v9 }
 0x625   : > { %v2242_v0 = vsel %vm2239_vm3, %v2241_v41, %v2237_v40  ;;  %v5465_v55 = vpop.permute.xlu0 %3076  ;;  %3451 = vperm.xlu2 %4469, %v3446_v19   ;;  %v2365_v41 = vadd.f32 %v2364_v5, %v2363_v4  ;;  %v3532_v2 = vadd.f32 %v3531_v13, %v3530_v37  ;;  %v2351_v4 = vadd.f32 %v2350_v25, %v2349_v62 }
 0x626   : > { %v5469_v12 = vmul.f32 %v2242_v0, %v5128_v20  ;;  %v2357_v20 = vrot.slane %v2356_v29, 1  ;;  %v2385_v0 = vrot.slane %v2384_v60, 1  ;;  %v2399_v27 = vrot.slane %v2398_v32, 1 }
 0x627   : > { %2492 = vperm.xlu1 %4468, %v2487_v14   ;;  %v2393_v37 = vadd.f32 %v2392_v56, %v2391_v7  ;;  %v2416_v5 = vmul.f32 %v5111_v3, %v2351_v4  ;;  %v3169_v7 = vperm.slane %v5314_v23, 2  ;;  %v3934_v25 = vrot.slane %v4822_v52, 4 }
 0x628   : > { %v2373_v61 = vsel %vm1824_vm10, %v5469_v12, 0.0  ;;  %v2767_v16 = vperm.slane %v5469_v12, 1  ;;  %v2358_v43 = vadd.f32 %v2357_v20, %v2356_v29  ;;  %v3467_v9 = vperm.slane %v5469_v12, 3 }
 0x629   : > { %v2374_v46 = vrot.slane %v2373_v61, 4  ;;  %v2386_v42 = vadd.f32 %v2385_v0, %v2384_v60  ;;  %v3932_v20 = vrot.slane %v4822_v52, 2  ;;  %v2400_v62 = vadd.f32 %v2399_v27, %v2398_v32 }
 0x62a   : > { %v5474_v39 = vpop.permute.xlu2 %3104  ;;  %v2417_v14 = vmul.f32 %v5111_v3, %v2358_v43  ;;  %v2422_v13 = vmul.f32 %v5111_v3, %v2393_v37  ;;  %v4372_v43 = vld [vmem:[%s6148_s24 + $0x100] sm:$0xff]  ;;  %v3933_v32 = vrot.slane %v4822_v52, 3  ;;  %v3960_v56 = vmul.f32 %v2416_v5, %v4822_v52 }
 0x62b   : > { %v2375_v57 = vadd.f32 %v2374_v46, %v2373_v61  ;;  %2772 = vperm.xlu0 %4470, %v2767_v16   ;;  %v2418_v61 = vmul.f32 %v5111_v3, %v2365_v41  ;;  %v2372_v46 = vadd.f32 %v2371_v8, %v2370_v45  ;;  %v3935_v45 = vrot.slane %v4822_v52, 5 }
 0x62c   : > { %v2423_v0 = vmul.f32 %v5111_v3, %v2400_v62  ;;  %vm3722_vm10 = vcmask 523264  }
 0x62d   : > { %v2376_v6 = vrot.slane %v2375_v57, 2  ;;  %v3396_v47 = vpop.permute.xlu0 %3395  ;;  %3160 = vperm.xlu2 %4469, %v3155_v33   ;;  %v3961_v33 = vmul.f32 %v3931_v17, %v2417_v14 }
 0x62e   : > { %v3513_v53 = vmul.f32 %v4393_v22, %v3396_v47  ;;  %v3533_v22 = vrot.slane %v3532_v2, 1 }
 0x62f   : > { %v2377_v44 = vadd.f32 %v2376_v6, %v2375_v57  ;;  %2758 = vperm.xlu1 %4468, %v2753_v49   ;;  %v2494_v57 = vperm.slane %v5416_v48, 0  ;;  %v3962_v6 = vmul.f32 %v3932_v20, %v2418_v61  ;;  %v2421_v49 = vmul.f32 %v5111_v3, %v2386_v42 }
 0x630   : > { %v3535_v19 = vsel %vm2568_vm15, %v3513_v53, 0.0  ;;  %v2419_v53 = vmul.f32 %v5111_v3, %v2372_v46  ;;  %v3998_v8 = vrot.slane %v3961_v33, 7  ;;  %v3937_v46 = vrot.slane %v4822_v52, 7 }
 0x631   : > { %v2378_v54 = vrot.slane %v2377_v44, 1  ;;  %v3536_v40 = vrot.slane %v3535_v19, 4  ;;  %v5483_v34 = vpop.permute.xlu1 %2723  ;;  %v4000_v14 = vrot.slane %v3962_v6, 6  ;;  %v3453_v42 = vperm.slane %v5416_v48, 3 }
 0x632   : > { %v5486_v29 = vpop.permute.xlu2 %2730  ;;  %v3963_v4 = vmul.f32 %v3933_v32, %v2419_v53  ;;  %v3965_v37 = vmul.f32 %v3935_v45, %v2421_v49  ;;  %v3148_v6 = vperm.slane %v5469_v12, 2  ;;  %v4355_v45 = vld [vmem:[%s6148_s24 + $0xa8] sm:$0xff] }
 0x633   : > { %v3537_v51 = vadd.f32 %v3536_v40, %v3535_v19  ;;  %3465 = vperm.xlu0 %4470, %v3460_v50   ;;  %v2379_v15 = vadd.f32 %v2378_v54, %v2377_v44  ;;  %v4354_v44 = vld [vmem:[%s6148_s24 + $0xa0] sm:$0xff]  ;;  %v3534_v19 = vadd.f32 %v3533_v22, %v3532_v2  ;;  %v3481_v50 = vperm.slane %v5222_v31, 3 }
 0x634   : > { %v2540_v54 = vld [vmem:[%s6148_s24 + $0x20] sm:$0xff]  ;;  %v3193_v2 = vmul.f32 %v4372_v43, %v5265_v38  ;;  %v2816_v27 = vmul.f32 %v4354_v44, %v5360_v58  ;;  %v3999_v38 = vsel %vm2959_vm8, %v3998_v8, %v3960_v56  ;;  %v4002_v5 = vrot.slane %v3963_v4, 5 }
 0x635   : > { %v3538_v16 = vrot.slane %v3537_v51, 2  ;;  %v5491_v21 = vpop.permute.xlu0 %3416  ;;  %3472 = vperm.xlu2 %4469, %v3467_v9   ;;  %v2420_v47 = vmul.f32 %v5111_v3, %v2379_v15  ;;  %v4352_v9 = vld [vmem:[%s6148_s24 + $0x90] sm:$0xff]  ;;  %v3936_v3 = vrot.slane %v4822_v52, 6  ;;  %v4001_v33 = vsel %vm2961_vm7, %v4000_v14, %v3999_v38 }
 0x636   : > { %v2856_v62 = vsel %vm2568_vm15, %v2816_v27, 0.0  ;;  %v4353_v27 = vld [vmem:[%s6148_s24 + $0x98] sm:$0xff] }
 0x637   : > { %v3539_v35 = vadd.f32 %v3538_v16, %v3537_v51  ;;  %2499 = vperm.xlu1 %4468, %v2494_v57   ;;  %v3964_v51 = vmul.f32 %v3934_v25, %v2420_v47  ;;  %v2556_v16 = vmul.f32 %v2540_v54, %v5424_v30  ;;  %v3966_v20 = vmul.f32 %v3936_v3, %v2422_v13 }
 0x638   : > { %v3967_v57 = vmul.f32 %v3937_v46, %v2423_v0  ;;  %v4006_v47 = vrot.slane %v3965_v37, 3  ;;  %v2857_v13 = vrot.slane %v2856_v62, 4  ;;  %v2817_v54 = vmul.f32 %v4355_v45, %v5483_v34 }
 0x639   : > { %v3540_v60 = vrot.slane %v3539_v35, 1  ;;  %v5510_v41 = vpop.permute.xlu1 %2779  ;;  %v4004_v22 = vrot.slane %v3964_v51, 4  ;;  %v2597_v30 = vsel %vm2568_vm15, %v2556_v16, 0.0  ;;  %v4008_v44 = vrot.slane %v3966_v20, 2 }
 0x63a   : > { %v5526_v15 = vpop.permute.xlu2 %2786  ;;  %v4010_v32 = vrot.slane %v3967_v57, 1  ;;  %v2598_v25 = vrot.slane %v2597_v30, 4  ;;  %v2508_v0 = vperm.slane %v5469_v12, 0  ;;  %v4373_v12 = vld [vmem:[%s6148_s24 + $0x108] sm:$0xff]  ;;  %v3488_v3 = vperm.slane %v5314_v23, 3 }
 0x63b   : > { %v3541_v40 = vadd.f32 %v3540_v60, %v3539_v35  ;;  %3174 = vperm.xlu0 %4470, %v3169_v7   ;;  %v3209_v35 = vsel %vm2568_vm15, %v3193_v2, 0.0  ;;  %v2538_v60 = vld [vmem:[%s6148_s24 + $0x10] sm:$0xff]  ;;  %v4003_v7 = vsel %vm2963_vm12, %v4002_v5, %v4001_v33  ;;  %v2863_v46 = vsel %vm2568_vm15, %v2817_v54, 0.0 }
 0x63c   : > { %v3210_v49 = vrot.slane %v3209_v35, 4  ;;  %v4005_v43 = vsel %vm2965_vm0, %v4004_v22, %v4003_v7  ;;  %v2599_v4 = vadd.f32 %v2598_v25, %v2597_v30  ;;  %v4376_v22 = vld [vmem:[%s6148_s24 + $0x120] sm:$0xff]  ;;  %v3194_v23 = vmul.f32 %v4373_v12, %v5465_v55  ;;  %v4374_v7 = vld [vmem:[%s6148_s24 + $0x110] sm:$0xff]  ;;  %v2539_v25 = vld [vmem:[%s6148_s24 + $0x18] sm:$0xff] }
 0x63d   : > { %v5524_v61 = vsel %vm2959_vm8, %v3541_v40, %v3534_v19  ;;  %v2703_v17 = vpop.permute.xlu0 %2702  ;;  %3486 = vperm.xlu2 %4469, %v3481_v50   ;;  %v4007_v8 = vsel %vm2967_vm13, %v4006_v47, %v4005_v43 }
 0x63e   : > { %v2814_v58 = vmul.f32 %v4352_v9, %v2703_v17  ;;  %v4009_v14 = vsel %vm2969_vm2, %v4008_v44, %v4007_v8  ;;  %v3211_v51 = vadd.f32 %v3210_v49, %v3209_v35  ;;  %v2858_v9 = vadd.f32 %v2857_v13, %v2856_v62 }
 0x63f   : > { %3458 = vperm.xlu1 %4468, %v3453_v42   ;;  %v4011_v34 = vsel %vm2971_vm4, %v4010_v32, %v4009_v14  ;;  %v2600_v33 = vrot.slane %v2599_v4, 2  ;;  %v2864_v35 = vrot.slane %v2863_v46, 4  ;;  %v3216_v44 = vsel %vm2568_vm15, %v3194_v23, 0.0 }
 0x640   : > { %v2842_v53 = vsel %vm2568_vm15, %v2814_v58, 0.0  ;;  %4016 = vst.msk [vmem:[%s4782_s29 + $0x8] sm:$0xff] %vm4014_vm5, %v4011_v34  ;;  %v2541_v58 = vld [vmem:[%s6148_s24 + $0x28] sm:$0xff]  ;;  %v3212_v20 = vrot.slane %v3211_v51, 2  ;;  %v2859_v57 = vrot.slane %v2858_v9, 2  ;;  %s6155_s29 = sld [smem:[#allocation12_spill]] }
 0x641   : > { %v5538_v48 = vpop.permute.xlu1 %2520  ;;  %v2843_v40 = vrot.slane %v2842_v53, 4 }
 0x642   : > { %v5552_v56 = vpop.permute.xlu2 %3111  ;;  %v3213_v55 = vadd.f32 %v3212_v20, %v3211_v51  ;;  %v2860_v43 = vadd.f32 %v2859_v57, %v2858_v9  ;;  %v3217_v51 = vrot.slane %v3216_v44, 4 }
 0x643   : > { %3153 = vperm.xlu0 %4470, %v3148_v6   ;;  %v2844_v16 = vadd.f32 %v2843_v40, %v2842_v53  ;;  %v3162_v53 = vperm.slane %v5222_v31, 2  ;;  %v2865_v31 = vadd.f32 %v2864_v35, %v2863_v46 }
 0x644   : > { %v2861_v34 = vrot.slane %v2860_v43, 1 }
 0x645   : > { %v2444_v19 = vpop.permute.xlu0 %2443  ;;  %v2845_v30 = vrot.slane %v2844_v16, 2 }
 0x646   : > { %v2554_v50 = vmul.f32 %v2538_v60, %v2444_v19  ;;  %v3197_v60 = vmul.f32 %v4376_v22, %v5439_v36  ;;  %v2601_v19 = vadd.f32 %v2600_v33, %v2599_v4  ;;  %v3195_v36 = vmul.f32 %v4374_v7, %v5461_v26  ;;  %v4377_v4 = vld [vmem:[%s6148_s24 + $0x128] sm:$0xff]  ;;  %v4394_v7 = vld [vmem:[%s6148_s24 + $0x190] sm:$0xff] }
 0x647   : > { %2513 = vperm.xlu1 %4468, %v2508_v0   ;;  %v2846_v54 = vadd.f32 %v2845_v30, %v2844_v16  ;;  %v2866_v26 = vrot.slane %v2865_v31, 2  ;;  %v3218_v22 = vadd.f32 %v3217_v51, %v3216_v44  ;;  %v2862_v35 = vadd.f32 %v2861_v34, %v2860_v43  ;;  %v4472_v51 = vld [vmem:[%s6101_s10] ss:$0 sm:$0xff] }
 0x648   : > { %v2583_v2 = vsel %vm2568_vm15, %v2554_v50, 0.0  ;;  %v3237_v14 = vsel %vm2568_vm15, %v3197_v60, 0.0  ;;  %v2602_v57 = vrot.slane %v2601_v19, 1 }
 0x649   : > { %v2584_v17 = vrot.slane %v2583_v2, 4  ;;  %v2710_v42 = vpop.permute.xlu1 %2709 }
 0x64a   : > { %v2815_v38 = vmul.f32 %v4353_v27, %v2710_v42  ;;  %v3214_v27 = vrot.slane %v3213_v55, 1 }
 0x64b   : > { %v2585_v37 = vadd.f32 %v2584_v17, %v2583_v2  ;;  %3493 = vperm.xlu0 %4470, %v3488_v3   ;;  %v3474_v17 = vperm.slane %v5188_v24, 3  ;;  %v4378_v24 = vld [vmem:[%s6148_s24 + $0x130] sm:$0xff] }
 0x64c   : > { %v2849_v5 = vsel %vm2568_vm15, %v2815_v38, 0.0  ;;  %v3223_v38 = vsel %vm2568_vm15, %v3195_v36, 0.0  ;;  %v5603_v33 = vadd.f32 %v3214_v27, %v3213_v55 }
 0x64d   : > { %v2586_v62 = vrot.slane %v2585_v37, 2  ;;  %v2465_v6 = vpop.permute.xlu0 %2464  ;;  %v2850_v47 = vrot.slane %v2849_v5, 4 }
 0x64e   : > { %v2557_v45 = vmul.f32 %v2541_v58, %v2465_v6  ;;  %v2847_v58 = vrot.slane %v2846_v54, 1  ;;  %v4379_v6 = vld [vmem:[%s6148_s24 + $0x138] sm:$0xff] }
 0x64f   : > { %v2587_v49 = vadd.f32 %v2586_v62, %v2585_v37  ;;  %v2479_v13 = vpop.permute.xlu2 %2478  ;;  %v2851_v32 = vadd.f32 %v2850_v47, %v2849_v5  ;;  %3167 = vperm.xlu1 %4468, %v3162_v53   ;;  %v3238_v37 = vrot.slane %v3237_v14, 4  ;;  %v3198_v62 = vmul.f32 %v4377_v4, %v5474_v39  ;;  %v2542_v39 = vld [vmem:[%s6148_s24 + $0x30] sm:$0xff] }
 0x650   : > { %v2604_v50 = vsel %vm2568_vm15, %v2557_v45, 0.0  ;;  %v3224_v47 = vrot.slane %v3223_v38, 4  ;;  %v2867_v45 = vadd.f32 %v2866_v26, %v2865_v31  ;;  %v3199_v53 = vmul.f32 %v4378_v24, %v5552_v56 }
 0x651   : > { %v2588_v8 = vrot.slane %v2587_v49, 1  ;;  %v2852_v40 = vrot.slane %v2851_v32, 2  ;;  %v2451_v0 = vpop.permute.xlu1 %2450  ;;  %v2605_v46 = vrot.slane %v2604_v50, 4  ;;  %v2848_v55 = vadd.f32 %v2847_v58, %v2846_v54 }
 0x652   : > { %v2555_v2 = vmul.f32 %v2539_v25, %v2451_v0  ;;  %v5618_v25 = vadd.f32 %v2602_v57, %v2601_v19  ;;  %v3219_v31 = vrot.slane %v3218_v22, 2  ;;  %v3244_v36 = vsel %vm2568_vm15, %v3198_v62, 0.0 }
 0x653   : > { %v2589_v9 = vadd.f32 %v2588_v8, %v2587_v49  ;;  %v2853_v12 = vadd.f32 %v2852_v40, %v2851_v32  ;;  %v2606_v60 = vadd.f32 %v2605_v46, %v2604_v50  ;;  %v5616_v49 = vadd.f32 %v3238_v37, %v3237_v14 }
 0x654   : > { %v2590_v16 = vsel %vm2568_vm15, %v2555_v2, 0.0  ;;  %v3225_v14 = vadd.f32 %v3224_v47, %v3223_v38  ;;  %v3251_v19 = vsel %vm2568_vm15, %v3199_v53, 0.0  ;;  %v2962_v27 = vsel %vm2961_vm7, %v2848_v55, %v5428_v10 }
 0x655   : > { %v5593_v3 = vsel %vm2961_vm7, %v2589_v9, %v5452_v28  ;;  %v3403_v42 = vpop.permute.xlu0 %3402  ;;  %v2591_v20 = vrot.slane %v2590_v16, 4  ;;  %v2854_v23 = vrot.slane %v2853_v12, 1  ;;  %v2543_v28 = vld [vmem:[%s6148_s24 + $0x38] sm:$0xff]  ;;  %v2868_v9 = vrot.slane %v2867_v45, 1 }
 0x656   : > { %v2559_v43 = vmul.f32 %v2543_v28, %v2479_v13  ;;  %v3514_v50 = vmul.f32 %v4394_v7, %v3403_v42  ;;  %v4396_v13 = vld [vmem:[%s6148_s24 + $0x1a0] sm:$0xff]  ;;  %v2607_v54 = vrot.slane %v2606_v60, 2  ;;  %v3245_v4 = vrot.slane %v3244_v36, 4  ;;  %v4389_v28 = vld [vmem:[%s6105_s14 + $0x28] sm:$0xff] }
 0x657   : > { %v2592_v5 = vadd.f32 %v2591_v20, %v2590_v16  ;;  %v3119_v30 = vpop.permute.xlu2 %3118  ;;  %3479 = vperm.xlu1 %4468, %v3474_v17   ;;  %v2855_v8 = vadd.f32 %v2854_v23, %v2853_v12  ;;  %v3220_v42 = vadd.f32 %v3219_v31, %v3218_v22  ;;  %v3516_v37 = vmul.f32 %v4396_v13, %v5491_v21  ;;  %v4375_v23 = vld [vmem:[%s6148_s24 + $0x118] sm:$0xff]  ;;  %v4388_v21 = vld [vmem:[%s6105_s14 + $0x20] sm:$0xff] }
 0x658   : > { %v3200_v56 = vmul.f32 %v4379_v6, %v3119_v30  ;;  %v2618_v34 = vsel %vm2568_vm15, %v2559_v43, 0.0  ;;  %v3542_v58 = vsel %vm2568_vm15, %v3514_v50, 0.0  ;;  %v3252_v10 = vrot.slane %v3251_v19, 4  ;;  %3372 = vmatpush.msrb.mxu0 %v4389_v28 }
 0x659   : > { %v2593_v44 = vrot.slane %v2592_v5, 2  ;;  %v2472_v32 = vpop.permute.xlu1 %2471  ;;  %v2964_v26 = vsel %vm2963_vm12, %v2855_v8, %v2962_v27  ;;  %v2608_v24 = vadd.f32 %v2607_v54, %v2606_v60  ;;  %v2619_v20 = vrot.slane %v2618_v34, 4 }
 0x65a   : > { %v2558_v0 = vmul.f32 %v2542_v39, %v2472_v32  ;;  %v3258_v46 = vsel %vm2568_vm15, %v3200_v56, 0.0  ;;  %v2869_v22 = vadd.f32 %v2868_v9, %v2867_v45  ;;  %v2966_v30 = vsel %vm2965_vm0, %v2862_v35, %v2964_v26  ;;  %v4395_v39 = vld [vmem:[%s6148_s24 + $0x198] sm:$0xff]  ;;  %3373 = vmatpush.msrb.mxu0 %v4388_v21 }
 0x65b   : > { %v2594_v40 = vadd.f32 %v2593_v44, %v2592_v5  ;;  %v3259_v5 = vrot.slane %v3258_v46, 4  ;;  %v3240_v47 = vrot.slane %v5616_v49, 2  ;;  %v3246_v53 = vadd.f32 %v3245_v4, %v3244_v36 }
 0x65c   : > { %v2611_v17 = vsel %vm2568_vm15, %v2558_v0, 0.0  ;;  %v3543_v60 = vrot.slane %v3542_v58, 4  ;;  %v3226_v55 = vrot.slane %v3225_v14, 2  ;;  %v3221_v43 = vrot.slane %v3220_v42, 1 }
 0x65d   : > { %v5628_v2 = vpop.permute.xlu0 %3423  ;;  %v2595_v12 = vrot.slane %v2594_v40, 1  ;;  %v2612_v16 = vrot.slane %v2611_v17, 4  ;;  %v3556_v44 = vsel %vm2568_vm15, %v3516_v37, 0.0  ;;  %v3253_v32 = vadd.f32 %v3252_v10, %v3251_v19  ;;  %v4356_v19 = vld [vmem:[%s6148_s24 + $0xb0] sm:$0xff] }
 0x65e   : > { %v2609_v35 = vrot.slane %v2608_v24, 1  ;;  %v2620_v31 = vadd.f32 %v2619_v20, %v2618_v34  ;;  %v3260_v56 = vadd.f32 %v3259_v5, %v3258_v46  ;;  %v3241_v0 = vadd.f32 %v3240_v47, %v5616_v49 }
 0x65f   : > { %v2596_v38 = vadd.f32 %v2595_v12, %v2594_v40  ;;  %1094 = vrot.lane.b32.xlu1 %v4472_v51, %s4626_s4  ;;  %v2613_v57 = vadd.f32 %v2612_v16, %v2611_v17  ;;  %v3247_v51 = vrot.slane %v3246_v53, 2  ;;  %v3544_v9 = vadd.f32 %v3543_v60, %v3542_v58 }
 0x660   : > { %v3227_v54 = vadd.f32 %v3226_v55, %v3225_v14  ;;  %v3222_v27 = vadd.f32 %v3221_v43, %v3220_v42  ;;  %v3557_v12 = vrot.slane %v3556_v44, 4  ;;  %v3254_v34 = vrot.slane %v3253_v32, 2 }
 0x661   : > { %v3025_v62 = vsel %vm2963_vm12, %v2596_v38, %v5593_v3  ;;  %v3091_v6 = vpop.permute.xlu1 %3090  ;;  %v2614_v7 = vrot.slane %v2613_v57, 2  ;;  %v5656_v3 = vsel %vm2967_vm13, %v2869_v22, %v2966_v30  ;;  %v2621_v4 = vrot.slane %v2620_v31, 2 }
 0x662   : > { %v3196_v45 = vmul.f32 %v4375_v23, %v3091_v6  ;;  %v2610_v16 = vadd.f32 %v2609_v35, %v2608_v24  ;;  %v3261_v37 = vrot.slane %v3260_v56, 2  ;;  %v3026_v14 = vsel %vm2965_vm0, %v5618_v25, %v3025_v62  ;;  %v5671_v24 = vpop.permute.xlu2 %2744 }
 0x663   : > { %v2615_v36 = vadd.f32 %v2614_v7, %v2613_v57  ;;  %v3248_v42 = vadd.f32 %v3247_v51, %v3246_v53  ;;  %v3545_v58 = vrot.slane %v3544_v9, 2  ;;  %v3228_v57 = vrot.slane %v3227_v54, 1 }
 0x664   : > { %v3230_v40 = vsel %vm2568_vm15, %v3196_v45, 0.0  ;;  %v2818_v23 = vmul.f32 %v4356_v19, %v5486_v29  ;;  %v3558_v28 = vadd.f32 %v3557_v12, %v3556_v44  ;;  %v3027_v21 = vsel %vm2967_vm13, %v2610_v16, %v3026_v14 }
 0x665   : > { %v3410_v8 = vpop.permute.xlu0 %3409  ;;  %v3231_v13 = vrot.slane %v3230_v40, 4  ;;  %v2616_v38 = vrot.slane %v2615_v36, 1  ;;  %v3255_v22 = vadd.f32 %v3254_v34, %v3253_v32  ;;  %v2622_v5 = vadd.f32 %v2621_v4, %v2620_v31  ;;  %v4367_v4 = vld [vmem:[%s6105_s14 + $0x18] sm:$0xff] }
 0x666   : > { %v3515_v50 = vmul.f32 %v4395_v39, %v3410_v8  ;;  %v3242_v60 = vrot.slane %v3241_v0, 1  ;;  %v3262_v25 = vadd.f32 %v3261_v37, %v3260_v56  ;;  %v3340_v53 = vsel %vm2959_vm8, %v3222_v27, %v5603_v33  ;;  %2998 = vmatpush.msrb.mxu3 %v4367_v4 }
 0x667   : > { %v3232_v26 = vadd.f32 %v3231_v13, %v3230_v40  ;;  %v2617_v62 = vadd.f32 %v2616_v38, %v2615_v36  ;;  %v3249_v7 = vrot.slane %v3248_v42, 1  ;;  %v3546_v39 = vadd.f32 %v3545_v58, %v3544_v9 }
 0x668   : > { %v3549_v17 = vsel %vm2568_vm15, %v3515_v50, 0.0  ;;  %v3229_v55 = vadd.f32 %v3228_v57, %v3227_v54  ;;  %v2870_v43 = vsel %vm2568_vm15, %v2818_v23, 0.0  ;;  %v3559_v44 = vrot.slane %v3558_v28, 2  ;;  %v4398_v23 = vld [vmem:[%s6148_s24 + $0x1b0] sm:$0xff] }
 0x669   : > { %v3550_v46 = vrot.slane %v3549_v17, 4  ;;  %v5665_v49 = vpop.permute.xlu1 %2527  ;;  %v3233_v10 = vrot.slane %v3232_v26, 2  ;;  %v3256_v32 = vrot.slane %v3255_v22, 1  ;;  %v2623_v35 = vrot.slane %v2622_v5, 1 }
 0x66a   : > { %v3243_v8 = vadd.f32 %v3242_v60, %v3241_v0  ;;  %v3263_v40 = vrot.slane %v3262_v25, 1  ;;  %v3341_v50 = vsel %vm2961_vm7, %v3229_v55, %v3340_v53  ;;  %v3028_v36 = vsel %vm2969_vm2, %v2617_v62, %v3027_v21  ;;  %v5691_v38 = vpop.permute.xlu2 %3125 }
 0x66b   : > { %v3551_v20 = vadd.f32 %v3550_v46, %v3549_v17  ;;  %v3234_v6 = vadd.f32 %v3233_v10, %v3232_v26  ;;  %v3250_v51 = vadd.f32 %v3249_v7, %v3248_v42  ;;  %v2871_v33 = vrot.slane %v2870_v43, 4  ;;  %v4366_v26 = vld [vmem:[%s6105_s14 + $0x10] sm:$0xff] }
 0x66c   : > { %v3547_v13 = vrot.slane %v3546_v39, 1  ;;  %v3560_v12 = vadd.f32 %v3559_v44, %v3558_v28  ;;  %v3257_v17 = vadd.f32 %v3256_v32, %v3255_v22  ;;  %v2624_v19 = vadd.f32 %v2623_v35, %v2622_v5  ;;  %2999 = vmatpush.msrb.mxu3 %v4366_v26  ;;  %v4397_v28 = vld [vmem:[%s6148_s24 + $0x1a8] sm:$0xff] }
 0x66d   : > { %v3552_v30 = vrot.slane %v3551_v20, 2  ;;  %v5673_v47 = vpop.permute.xlu0 %2793  ;;  %v3235_v29 = vrot.slane %v3234_v6, 1  ;;  %v3264_v46 = vadd.f32 %v3263_v40, %v3262_v25  ;;  %v2872_v16 = vadd.f32 %v2871_v33, %v2870_v43 }
 0x66e   : > { %v3548_v37 = vadd.f32 %v3547_v13, %v3546_v39  ;;  %v5695_v42 = vsel %vm2971_vm4, %v2624_v19, %v3028_v36  ;;  %v3561_v57 = vrot.slane %v3560_v12, 1  ;;  %v3517_v53 = vmul.f32 %v4397_v28, %v5628_v2 }
 0x66f   : > { %v3553_v45 = vadd.f32 %v3552_v30, %v3551_v20  ;;  %v3236_v31 = vadd.f32 %v3235_v29, %v3234_v6  ;;  %v4357_v20 = vld [vmem:[%s6148_s24 + $0xb8] sm:$0xff]  ;;  %v2873_v22 = vrot.slane %v2872_v16, 2  ;;  %v4363_v30 = vld [vmem:[%s6148_s24 + $0xe8] sm:$0xff] }
 0x670   : > { %v3660_v5 = vsel %vm2961_vm7, %v3548_v37, %v5524_v61  ;;  %v3562_v62 = vadd.f32 %v3561_v57, %v3560_v12  ;;  %v2825_v43 = vmul.f32 %v4363_v30, %v5510_v41  ;;  %v3563_v2 = vsel %vm2568_vm15, %v3517_v53, 0.0 }
 0x671   : > { %v3431_v56 = vpop.permute.xlu1 %3430  ;;  %v3342_v9 = vsel %vm2963_vm12, %v3236_v31, %v3341_v50  ;;  %v3554_v54 = vrot.slane %v3553_v45, 1  ;;  %v2874_v55 = vadd.f32 %v2873_v22, %v2872_v16  ;;  %v2549_v31 = vld [vmem:[%s6148_s24 + $0x68] sm:$0xff]  ;;  %v3564_v33 = vrot.slane %v3563_v2, 4 }
 0x672   : > { %v3343_v27 = vsel %vm2965_vm0, %v3243_v8, %v3342_v9  ;;  %v3518_v25 = vmul.f32 %v4398_v23, %v3431_v56  ;;  %v3140_v35 = vpop.permute.xlu2 %3139  ;;  %v2919_v50 = vsel %vm2568_vm15, %v2825_v43, 0.0  ;;  %v2565_v9 = vmul.f32 %v2549_v31, %v5538_v48  ;;  %v4380_v48 = vld [vmem:[%s6148_s24 + $0x140] sm:$0xff] }
 0x673   : > { %v3344_v0 = vsel %vm2967_vm13, %v3250_v51, %v3343_v27  ;;  %v3555_v58 = vadd.f32 %v3554_v54, %v3553_v45  ;;  %v4364_v45 = vld [vmem:[%s6148_s24 + $0xf0] sm:$0xff]  ;;  %v2875_v41 = vrot.slane %v2874_v55, 1  ;;  %v4409_v51 = vld [vmem:[%s6105_s14 + $0x38] sm:$0xff]  ;;  %v2920_v12 = vrot.slane %v2919_v50, 4 }
 0x674   : > { %v3345_v14 = vsel %vm2969_vm2, %v3257_v17, %v3344_v0  ;;  %v3570_v44 = vsel %vm2568_vm15, %v3518_v25, 0.0  ;;  %v2826_v56 = vmul.f32 %v4364_v45, %v5526_v15  ;;  %3691 = vmatpush.msra.mxu1 %v4409_v51  ;;  %v4408_v27 = vld [vmem:[%s6105_s14 + $0x30] sm:$0xff]  ;;  %v4358_v15 = vld [vmem:[%s6148_s24 + $0xc0] sm:$0xff]  ;;  %v3565_v26 = vadd.f32 %v3564_v33, %v3563_v2 }
 0x675   : > { %v5682_v34 = vpop.permute.xlu0 %2485  ;;  %v3346_v10 = vsel %vm2971_vm4, %v3264_v46, %v3345_v14  ;;  %v3661_v60 = vsel %vm2963_vm12, %v3555_v58, %v3660_v5  ;;  %v3571_v36 = vrot.slane %v3570_v44, 4  ;;  %v2876_v19 = vadd.f32 %v2875_v41, %v2874_v55  ;;  %v2550_v46 = vld [vmem:[%s6148_s24 + $0x70] sm:$0xff]  ;;  %v4399_v58 = vld [vmem:[%s6148_s24 + $0x1b8] sm:$0xff] }
 0x676   : > { %4390 = vmatmul.msk.f32.vlgmr.msrb.gmra.mxu0 %vm2568_vm15, %v3346_v10  ;;  %v5720_v61 = vsel %vm2965_vm0, %v3562_v62, %v3661_v60  ;;  %3692 = vmatpush.msra.mxu1 %v4408_v27  ;;  %v2926_v0 = vsel %vm2568_vm15, %v2826_v56, 0.0  ;;  %v2660_v37 = vsel %vm2568_vm15, %v2565_v9, 0.0  ;;  %v2820_v14 = vmul.f32 %v4358_v15, %v5671_v24  ;;  %v4382_v24 = vld [vmem:[%s6148_s24 + $0x150] sm:$0xff]  ;;  %v4365_v62 = vld [vmem:[%s6148_s24 + $0xf8] sm:$0xff] }
 0x677   : > { %v3572_v4 = vadd.f32 %v3571_v36, %v3570_v44  ;;  %v2970_v10 = vsel %vm2969_vm2, %v2876_v19, %v5656_v3  ;;  %v2927_v57 = vrot.slane %v2926_v0, 4  ;;  %v2566_v22 = vmul.f32 %v2550_v46, %v5665_v49  ;;  %v4361_v9 = vld [vmem:[%s6148_s24 + $0xd8] sm:$0xff] }
 0x678   : > { %v2661_v30 = vrot.slane %v2660_v37, 4  ;;  %v3566_v60 = vrot.slane %v3565_v26, 2  ;;  %v2884_v25 = vsel %vm2568_vm15, %v2820_v14, 0.0  ;;  %v2827_v41 = vmul.f32 %v4365_v62, %v5673_v47 }
 0x679   : > { %v2738_v21 = vpop.permute.xlu1 %2737  ;;  %v3573_v5 = vrot.slane %v3572_v4, 2  ;;  %v2928_v53 = vadd.f32 %v2927_v57, %v2926_v0  ;;  %v2667_v45 = vsel %vm2568_vm15, %v2566_v22, 0.0 }
 0x67a   : > { %v2819_v6 = vmul.f32 %v4357_v20, %v2738_v21  ;;  %v2921_v20 = vadd.f32 %v2920_v12, %v2919_v50  ;;  %v3201_v21 = vmul.f32 %v4380_v48, %v5691_v38  ;;  %v2662_v2 = vadd.f32 %v2661_v30, %v2660_v37 }
 0x67b   : > { %v3574_v44 = vadd.f32 %v3573_v5, %v3572_v4  ;;  %v3567_v31 = vadd.f32 %v3566_v60, %v3565_v26  ;;  %v2929_v36 = vrot.slane %v2928_v53, 2  ;;  %v2668_v33 = vrot.slane %v2667_v45, 4 }
 0x67c   : > { %v2877_v7 = vsel %vm2568_vm15, %v2819_v6, 0.0  ;;  %v2766_v6 = vpop.permute.xlu2 %2765  ;;  %v2922_v49 = vrot.slane %v2921_v20, 2  ;;  %v3265_v43 = vsel %vm2568_vm15, %v3201_v21, 0.0  ;;  %v2663_v19 = vrot.slane %v2662_v2, 2 }
 0x67d   : > { %v5716_v39 = vpop.permute.xlu0 %2751  ;;  %v2878_v29 = vrot.slane %v2877_v7, 4  ;;  %v3266_v51 = vrot.slane %v3265_v43, 4  ;;  %v3575_v47 = vrot.slane %v3574_v44, 1  ;;  %v3568_v0 = vrot.slane %v3567_v31, 1 }
 0x67e   : > { %v2923_v12 = vadd.f32 %v2922_v49, %v2921_v20  ;;  %v2933_v4 = vsel %vm2568_vm15, %v2827_v41, 0.0  ;;  %v2823_v46 = vmul.f32 %v4361_v9, %v2766_v6  ;;  %v2669_v20 = vadd.f32 %v2668_v33, %v2667_v45  ;;  %v4381_v45 = vld [vmem:[%s6148_s24 + $0x148] sm:$0xff] }
 0x67f   : > { %v2879_v32 = vadd.f32 %v2878_v29, %v2877_v7  ;;  %v3203_v7 = vmul.f32 %v4382_v24, %v3140_v35  ;;  %v2544_v29 = vld [vmem:[%s6148_s24 + $0x40] sm:$0xff]  ;;  %v4359_v35 = vld [vmem:[%s6148_s24 + $0xc8] sm:$0xff]  ;;  %v2934_v57 = vrot.slane %v2933_v4, 4  ;;  %v2664_v24 = vadd.f32 %v2663_v19, %v2662_v2 }
 0x680   : > { %v2560_v50 = vmul.f32 %v2544_v29, %v5682_v34  ;;  %v2821_v15 = vmul.f32 %v4359_v35, %v5716_v39  ;;  %v2924_v22 = vrot.slane %v2923_v12, 1  ;;  %v3569_v5 = vadd.f32 %v3568_v0, %v3567_v31 }
 0x681   : > { %v2880_v8 = vrot.slane %v2879_v32, 2  ;;  %v5730_v40 = vpop.permute.xlu1 %2534 }
 0x682   : > { %v2625_v48 = vsel %vm2568_vm15, %v2560_v50, 0.0  ;;  %v2891_v39 = vsel %vm2568_vm15, %v2821_v15, 0.0  ;;  %v5813_v35 = vadd.f32 %v2924_v22, %v2923_v12  ;;  %v2665_v50 = vrot.slane %v2664_v24, 1  ;;  %v4385_v12 = vld [vmem:[%s6148_s24 + $0x168] sm:$0xff] }
 0x683   : > { %v2881_v13 = vadd.f32 %v2880_v8, %v2879_v32  ;;  %v2885_v8 = vrot.slane %v2884_v25, 4  ;;  %v2626_v6 = vrot.slane %v2625_v48, 4  ;;  %v2892_v62 = vrot.slane %v2891_v39, 4 }
 0x685   : > { %v5738_v54 = vpop.permute.xlu0 %3132  ;;  %v2882_v17 = vrot.slane %v2881_v13, 1  ;;  %v2886_v34 = vadd.f32 %v2885_v8, %v2884_v25  ;;  %v2627_v31 = vadd.f32 %v2626_v6, %v2625_v48  ;;  %v2893_v33 = vadd.f32 %v2892_v62, %v2891_v39 }
 0x686   : > { %v3202_v9 = vmul.f32 %v4381_v45, %v5738_v54 }
 0x687   : > { %v2883_v16 = vadd.f32 %v2882_v17, %v2881_v13  ;;  %v3279_v13 = vsel %vm2568_vm15, %v3203_v7, 0.0  ;;  %v2887_v30 = vrot.slane %v2886_v34, 2  ;;  %v3663_v7 = vsel %vm2967_vm13, %v3569_v5, %v5720_v61  ;;  %v2551_v61 = vld [vmem:[%s6148_s24 + $0x78] sm:$0xff] }
 0x688   : > { %v3280_v26 = vrot.slane %v3279_v13, 4  ;;  %v2567_v0 = vmul.f32 %v2551_v61, %v5730_v40  ;;  %v4360_v40 = vld [vmem:[%s6148_s24 + $0xd0] sm:$0xff] }
 0x689   : > { %v3438_v23 = vpop.permute.xlu1 %3437  ;;  %v2972_v28 = vsel %vm2971_vm4, %v2883_v16, %v2970_v10  ;;  %v3452_v16 = vpop.permute.xlu2 %3451  ;;  %v3267_v10 = vadd.f32 %v3266_v51, %v3265_v43  ;;  %v2935_v43 = vadd.f32 %v2934_v57, %v2933_v4  ;;  %v3272_v57 = vsel %vm2568_vm15, %v3202_v9, 0.0  ;;  %v4383_v9 = vld [vmem:[%s6148_s24 + $0x158] sm:$0xff] }
 0x68a   : > { %4368 = vmatmul.msk.f32.vlgmr.msrb.gmra.mxu3 %vm2568_vm15, %v2972_v28  ;;  %v3519_v3 = vmul.f32 %v4399_v58, %v3438_v23  ;;  %v2930_v58 = vadd.f32 %v2929_v36, %v2928_v53  ;;  %v3576_v23 = vadd.f32 %v3575_v47, %v3574_v44  ;;  %v4401_v28 = vld [vmem:[%s6148_s24 + $0x1c8] sm:$0xff]  ;;  %v3281_v60 = vadd.f32 %v3280_v26, %v3279_v13 }
 0x68b   : > { %v3521_v49 = vmul.f32 %v4401_v28, %v3452_v16  ;;  %v3268_v29 = vrot.slane %v3267_v10, 2  ;;  %v2936_v19 = vrot.slane %v2935_v43, 2  ;;  %v2628_v26 = vrot.slane %v2627_v31, 2 }
 0x68c   : > { %v3577_v55 = vsel %vm2568_vm15, %v3519_v3, 0.0  ;;  %v2905_v3 = vsel %vm2568_vm15, %v2823_v46, 0.0  ;;  %v3664_v44 = vsel %vm2969_vm2, %v3576_v23, %v3663_v7  ;;  %v2931_v2 = vrot.slane %v2930_v58, 1 }
 0x68d   : > { %v5771_v38 = vpop.permute.xlu0 %2506  ;;  %v3578_v32 = vrot.slane %v3577_v55, 4  ;;  %v2906_v8 = vrot.slane %v2905_v3, 4  ;;  %v3282_v36 = vrot.slane %v3281_v60, 2  ;;  %v3591_v13 = vsel %vm2568_vm15, %v3521_v49, 0.0 }
 0x68e   : > { %v3269_v15 = vadd.f32 %v3268_v29, %v3267_v10  ;;  %v5822_v4 = vadd.f32 %v2931_v2, %v2930_v58  ;;  %v5825_v16 = vadd.f32 %v2665_v50, %v2664_v24  ;;  %v3592_v10 = vrot.slane %v3591_v13, 4  ;;  %v2545_v58 = vld [vmem:[%s6148_s24 + $0x48] sm:$0xff] }
 0x68f   : > { %v3579_v56 = vadd.f32 %v3578_v32, %v3577_v55  ;;  %v2670_v55 = vrot.slane %v2669_v20, 2  ;;  %v4362_v32 = vld [vmem:[%s6148_s24 + $0xe0] sm:$0xff]  ;;  %v2907_v48 = vadd.f32 %v2906_v8, %v2905_v3  ;;  %v2937_v24 = vadd.f32 %v2936_v19, %v2935_v43 }
 0x690   : > { %v2674_v5 = vsel %vm2568_vm15, %v2567_v0, 0.0  ;;  %v2629_v6 = vadd.f32 %v2628_v26, %v2627_v31  ;;  %v3593_v62 = vadd.f32 %v3592_v10, %v3591_v13  ;;  %v3273_v49 = vrot.slane %v3272_v57, 4 }
 0x691   : > { %v5788_v27 = vpop.permute.xlu1 %3444  ;;  %v3580_v17 = vrot.slane %v3579_v56, 2  ;;  %v2675_v45 = vrot.slane %v2674_v5, 4 }
 0x692   : > { %v2630_v50 = vrot.slane %v2629_v6, 1 }
 0x693   : > { %v3581_v37 = vadd.f32 %v3580_v17, %v3579_v56  ;;  %v2888_v56 = vadd.f32 %v2887_v30, %v2886_v34  ;;  %v2671_v17 = vadd.f32 %v2670_v55, %v2669_v20  ;;  %v3161_v34 = vpop.permute.xlu2 %3160  ;;  %v2894_v20 = vrot.slane %v2893_v33, 2 }
 0x694   : > { %v3206_v23 = vmul.f32 %v4385_v12, %v3161_v34  ;;  %v2908_v30 = vrot.slane %v2907_v48, 2  ;;  %v3594_v12 = vrot.slane %v3593_v62, 2  ;;  %v2676_v34 = vadd.f32 %v2675_v45, %v2674_v5  ;;  %v4404_v45 = vld [vmem:[%s6148_s24 + $0x1e0] sm:$0xff] }
 0x695   : > { %v5793_v14 = vpop.permute.xlu0 %3146  ;;  %v3582_v21 = vrot.slane %v3581_v37, 1  ;;  %v2889_v54 = vrot.slane %v2888_v56, 1  ;;  %v2672_v22 = vrot.slane %v2671_v17, 1  ;;  %v2895_v55 = vadd.f32 %v2894_v20, %v2893_v33 }
 0x696   : > { %v3274_v33 = vadd.f32 %v3273_v49, %v3272_v57  ;;  %v3204_v57 = vmul.f32 %v4383_v9, %v5793_v14  ;;  %v5869_v5 = vadd.f32 %v3594_v12, %v3593_v62 }
 0x697   : > { %v3583_v25 = vadd.f32 %v3582_v21, %v3581_v37  ;;  %v3283_v37 = vadd.f32 %v3282_v36, %v3281_v60  ;;  %v3270_v21 = vrot.slane %v3269_v15, 1  ;;  %v2890_v2 = vadd.f32 %v2889_v54, %v2888_v56  ;;  %v2682_v56 = vld [vmem:[%s6105_s14 + $0x8] sm:$0xff] }
 0x698   : > { %v5841_v61 = vadd.f32 %v2672_v22, %v2671_v17  ;;  %v2909_v36 = vadd.f32 %v2908_v30, %v2907_v48  ;;  %3055 = vmatpush.msra.mxu3 %v2682_v56  ;;  %v2681_v17 = vld [vmem:[%s6105_s14] sm:$0xff]  ;;  %v2896_v0 = vrot.slane %v2895_v55, 1  ;;  %v2677_v30 = vrot.slane %v2676_v34, 2 }
 0x699   : > { %v2493_v53 = vpop.permute.xlu1 %2492  ;;  %v3665_v41 = vsel %vm2971_vm4, %v3583_v25, %v3664_v44  ;;  %v3284_v25 = vrot.slane %v3283_v37, 1  ;;  %v3300_v44 = vsel %vm2568_vm15, %v3206_v23, 0.0  ;;  %v5839_v43 = vadd.f32 %v3270_v21, %v3269_v15 }
 0x69a   : > { %4410 = vmatmul.msk.f32.vlgmr.msra.gmra.mxu1 %vm2568_vm15, %v3665_v41  ;;  %v2561_v7 = vmul.f32 %v2545_v58, %v2493_v53  ;;  %v2938_v41 = vrot.slane %v2937_v24, 1  ;;  %v2547_v53 = vld [vmem:[%s6148_s24 + $0x58] sm:$0xff]  ;;  %v3301_v13 = vrot.slane %v3300_v44, 4  ;;  %3056 = vmatpush.msra.mxu3 %v2681_v17  ;;  %v2910_v20 = vrot.slane %v2909_v36, 1 }
 0x69b   : > { %v5859_v19 = vadd.f32 %v3284_v25, %v3283_v37  ;;  %v2563_v48 = vmul.f32 %v2547_v53, %v5771_v38  ;;  %v3275_v58 = vrot.slane %v3274_v33, 2  ;;  %v4400_v37 = vld [vmem:[%s6148_s24 + $0x1c0] sm:$0xff]  ;;  %v2897_v22 = vadd.f32 %v2896_v0, %v2895_v55  ;;  %v4402_v53 = vld [vmem:[%s6148_s24 + $0x1d0] sm:$0xff] }
 0x69c   : > { %v2939_v49 = vadd.f32 %v2938_v41, %v2937_v24  ;;  %v3596_v41 = vrot.slane %v5869_v5, 1 }
 0x69d   : > { %v2773_v51 = vpop.permute.xlu0 %2772  ;;  %v3276_v62 = vadd.f32 %v3275_v58, %v3274_v33  ;;  %v2973_v24 = vsel %vm2959_vm8, %v2897_v22, %v2890_v2  ;;  %v4406_v22 = vld [vmem:[%s6148_s24 + $0x1f0] sm:$0xff] }
 0x69e   : > { %v2824_v47 = vmul.f32 %v4362_v32, %v2773_v51  ;;  %v2546_v51 = vld [vmem:[%s6148_s24 + $0x50] sm:$0xff] }
 0x6a0   : > { %v2912_v46 = vsel %vm2568_vm15, %v2824_v47, 0.0  ;;  %v2632_v47 = vsel %vm2568_vm15, %v2561_v7, 0.0  ;;  %v2911_v7 = vadd.f32 %v2910_v20, %v2909_v36  ;;  %v5882_v36 = vadd.f32 %v2677_v30, %v2676_v34  ;;  %v4403_v20 = vld [vmem:[%s6148_s24 + $0x1d8] sm:$0xff] }
 0x6a1   : > { %v2913_v39 = vrot.slane %v2912_v46, 4  ;;  %v2759_v28 = vpop.permute.xlu1 %2758  ;;  %v2633_v23 = vrot.slane %v2632_v47, 4  ;;  %v3277_v34 = vrot.slane %v3276_v62, 1 }
 0x6a2   : > { %v2822_v3 = vmul.f32 %v4360_v40, %v2759_v28  ;;  %v5862_v40 = vadd.f32 %v2630_v50, %v2629_v6  ;;  %v3473_v6 = vpop.permute.xlu2 %3472 }
 0x6a3   : > { %v2914_v60 = vadd.f32 %v2913_v39, %v2912_v46  ;;  %v3302_v39 = vadd.f32 %v3301_v13, %v3300_v44  ;;  %v3520_v44 = vmul.f32 %v4400_v37, %v5788_v27  ;;  %v2634_v55 = vadd.f32 %v2633_v23, %v2632_v47  ;;  %v4387_v47 = vld [vmem:[%s6148_s24 + $0x178] sm:$0xff] }
 0x6a4   : > { %v2898_v32 = vsel %vm2568_vm15, %v2822_v3, 0.0  ;;  %v2646_v3 = vsel %vm2568_vm15, %v2563_v48, 0.0  ;;  %v3524_v27 = vmul.f32 %v4404_v45, %v3473_v6  ;;  %v3278_v45 = vadd.f32 %v3277_v34, %v3276_v62 }
 0x6a5   : > { %v5835_v29 = vpop.permute.xlu0 %3465  ;;  %v2915_v8 = vrot.slane %v2914_v60, 2  ;;  %v2899_v31 = vrot.slane %v2898_v32, 4  ;;  %v3584_v2 = vsel %vm2568_vm15, %v3520_v44, 0.0  ;;  %v2635_v17 = vrot.slane %v2634_v55, 2 }
 0x6a6   : > { %v3612_v37 = vsel %vm2568_vm15, %v3524_v27, 0.0 }
 0x6a7   : > { %v2900_v15 = vadd.f32 %v2899_v31, %v2898_v32  ;;  %v2916_v46 = vadd.f32 %v2915_v8, %v2914_v60  ;;  %v3286_v32 = vsel %vm2568_vm15, %v3204_v57, 0.0  ;;  %v3303_v8 = vrot.slane %v3302_v39, 2 }
 0x6a8   : > { %v3287_v13 = vrot.slane %v3286_v32, 4  ;;  %v2636_v6 = vadd.f32 %v2635_v17, %v2634_v55 }
 0x6a9   : > { %v2500_v26 = vpop.permute.xlu1 %2499  ;;  %v2901_v54 = vrot.slane %v2900_v15, 2  ;;  %v2917_v14 = vrot.slane %v2916_v46, 1 }
 0x6aa   : > { %v2562_v10 = vmul.f32 %v2546_v51, %v2500_v26  ;;  %v2647_v51 = vrot.slane %v2646_v3, 4  ;;  %v5893_v26 = vadd.f32 %v3303_v8, %v3302_v39  ;;  %v3487_v30 = vpop.permute.xlu2 %3486 }
 0x6ab   : > { %v2902_v28 = vadd.f32 %v2901_v54, %v2900_v15  ;;  %v2918_v9 = vadd.f32 %v2917_v14, %v2916_v46  ;;  %v4384_v15 = vld [vmem:[%s6148_s24 + $0x160] sm:$0xff]  ;;  %v2679_v14 = vrot.slane %v5882_v36, 1 }
 0x6ac   : > { %v2639_v21 = vsel %vm2568_vm15, %v2562_v10, 0.0  ;;  %v2648_v10 = vadd.f32 %v2647_v51, %v2646_v3  ;;  %v3305_v51 = vrot.slane %v5893_v26, 1 }
 0x6ad   : > { %v3175_v38 = vpop.permute.xlu0 %3174  ;;  %v2640_v60 = vrot.slane %v2639_v21, 4  ;;  %v2903_v25 = vrot.slane %v2902_v28, 1 }
 0x6ae   : > { %v3208_v57 = vmul.f32 %v4387_v47, %v3175_v38  ;;  %v2649_v44 = vrot.slane %v2648_v10, 2 }
 0x6af   : > { %v2904_v31 = vadd.f32 %v2903_v25, %v2902_v28  ;;  %v2641_v50 = vadd.f32 %v2640_v60, %v2639_v21  ;;  %v3585_v28 = vrot.slane %v3584_v2, 4  ;;  %v3288_v21 = vadd.f32 %v3287_v13, %v3286_v32 }
 0x6b0   : > { %v3613_v32 = vrot.slane %v3612_v37, 4  ;;  %v3314_v55 = vsel %vm2568_vm15, %v3208_v57, 0.0  ;;  %v2637_v13 = vrot.slane %v2636_v6, 1 }
 0x6b1   : > { %v3459_v56 = vpop.permute.xlu1 %3458  ;;  %v2974_v33 = vsel %vm2961_vm7, %v2904_v31, %v2973_v24  ;;  %v2642_v48 = vrot.slane %v2641_v50, 2  ;;  %v3526_v31 = vmul.f32 %v4406_v22, %v3487_v30  ;;  %v3289_v27 = vrot.slane %v3288_v21, 2 }
 0x6b2   : > { %v3522_v0 = vmul.f32 %v4402_v53, %v3459_v56  ;;  %v2975_v12 = vsel %vm2963_vm12, %v2911_v7, %v2974_v33  ;;  %v3586_v56 = vadd.f32 %v3585_v28, %v3584_v2  ;;  %v3614_v17 = vadd.f32 %v3613_v32, %v3612_v37 }
 0x6b3   : > { %v2976_v54 = vsel %vm2965_vm0, %v2918_v9, %v2975_v12  ;;  %v2643_v25 = vadd.f32 %v2642_v48, %v2641_v50  ;;  %v3315_v9 = vrot.slane %v3314_v55, 4  ;;  %v3347_v2 = vsel %vm2959_vm8, %v3278_v45, %v5839_v43 }
 0x6b4   : > { %v2977_v58 = vsel %vm2967_vm13, %v5813_v35, %v2976_v54  ;;  %v3598_v60 = vsel %vm2568_vm15, %v3522_v0, 0.0  ;;  %v2548_v35 = vld [vmem:[%s6148_s24 + $0x60] sm:$0xff]  ;;  %v3626_v34 = vsel %vm2568_vm15, %v3526_v31, 0.0  ;;  %v3587_v54 = vrot.slane %v3586_v56, 2 }
 0x6b5   : > { %v3154_v46 = vpop.permute.xlu0 %3153  ;;  %v2978_v39 = vsel %vm2969_vm2, %v5822_v4, %v2977_v58  ;;  %v3523_v4 = vmul.f32 %v4403_v20, %v5835_v29  ;;  %v4407_v29 = vld [vmem:[%s6148_s24 + $0x1f8] sm:$0xff]  ;;  %v2644_v50 = vrot.slane %v2643_v25, 1  ;;  %v2638_v20 = vadd.f32 %v2637_v13, %v2636_v6  ;;  %v4386_v58 = vld [vmem:[%s6148_s24 + $0x170] sm:$0xff] }
 0x6b6   : > { %v3205_v23 = vmul.f32 %v4384_v15, %v3154_v46  ;;  %v2979_v3 = vsel %vm2971_vm4, %v2939_v49, %v2978_v39  ;;  %v3599_v49 = vrot.slane %v3598_v60, 4  ;;  %v2650_v15 = vadd.f32 %v2649_v44, %v2648_v10 }
 0x6b7   : > { %4369 = vmatmul.msk.f32.gmra.mxu3 %vm2568_vm15, %v2979_v3  ;;  %v3605_v62 = vsel %vm2568_vm15, %v3523_v4, 0.0  ;;  %v3290_v28 = vadd.f32 %v3289_v27, %v3288_v21  ;;  %v2645_v10 = vadd.f32 %v2644_v50, %v2643_v25  ;;  %v3316_v37 = vadd.f32 %v3315_v9, %v3314_v55 }
 0x6b8   : > { %v3293_v38 = vsel %vm2568_vm15, %v3205_v23, 0.0  ;;  %v3600_v48 = vadd.f32 %v3599_v49, %v3598_v60  ;;  %v3606_v57 = vrot.slane %v3605_v62, 4  ;;  %v2680_v43 = vadd.f32 %v2679_v14, %v5882_v36 }
 0x6b9   : > { %v3294_v7 = vrot.slane %v3293_v38, 4  ;;  %v2514_v8 = vpop.permute.xlu1 %2513  ;;  %v2651_v39 = vrot.slane %v2650_v15, 1  ;;  %v3615_v22 = vrot.slane %v3614_v17, 2  ;;  %v3627_v6 = vrot.slane %v3626_v34, 4 }
 0x6ba   : > { %v2564_v24 = vmul.f32 %v2548_v35, %v2514_v8  ;;  %v3601_v3 = vrot.slane %v3600_v48, 2  ;;  %v3030_v21 = vsel %vm2959_vm8, %v2638_v20, %v5862_v40  ;;  %v3607_v25 = vadd.f32 %v3606_v57, %v3605_v62  ;;  %v4405_v62 = vld [vmem:[%s6148_s24 + $0x1e8] sm:$0xff] }
 0x6bb   : > { %v3295_v53 = vadd.f32 %v3294_v7, %v3293_v38  ;;  %v3588_v7 = vadd.f32 %v3587_v54, %v3586_v56  ;;  %v3291_v44 = vrot.slane %v3290_v28, 1  ;;  %v3317_v36 = vrot.slane %v3316_v37, 2 }
 0x6bc   : > { %v2653_v33 = vsel %vm2568_vm15, %v2564_v24, 0.0  ;;  %v2652_v49 = vadd.f32 %v2651_v39, %v2650_v15  ;;  %v3628_v24 = vadd.f32 %v3627_v6, %v3626_v34  ;;  %v3602_v56 = vadd.f32 %v3601_v3, %v3600_v48 }
 0x6bd   : > { %v3494_v47 = vpop.permute.xlu0 %3493  ;;  %v3296_v0 = vrot.slane %v3295_v53, 2  ;;  %v2654_v12 = vrot.slane %v2653_v33, 4  ;;  %v3589_v27 = vrot.slane %v3588_v7, 1  ;;  %v3608_v13 = vrot.slane %v3607_v25, 2 }
 0x6be   : > { %v3527_v46 = vmul.f32 %v4407_v29, %v3494_v47  ;;  %v3292_v50 = vadd.f32 %v3291_v44, %v3290_v28  ;;  %v3318_v9 = vadd.f32 %v3317_v36, %v3316_v37  ;;  %v3348_v47 = vsel %vm2961_vm7, %v5859_v19, %v3347_v2 }
 0x6bf   : > { %v2655_v23 = vadd.f32 %v2654_v12, %v2653_v33  ;;  %4370 = vmatmul.msk.f32.vlgmr.msra.gmra.mxu3 %vm2568_vm15, %v5695_v42  ;;  %v3297_v30 = vadd.f32 %v3296_v0, %v3295_v53  ;;  %v3031_v42 = vsel %vm2961_vm7, %v2645_v10, %v3030_v21  ;;  %v5937_v53 = vadd.f32 %v3615_v22, %v3614_v17 }
 0x6c0   : > { %v3633_v35 = vsel %vm2568_vm15, %v3527_v46, 0.0  ;;  %v3032_v33 = vsel %vm2963_vm12, %v2652_v49, %v3031_v42  ;;  %v3629_v48 = vrot.slane %v3628_v24, 2  ;;  %v3603_v46 = vrot.slane %v3602_v56, 1 }
 0x6c1   : > { %v2656_v60 = vrot.slane %v2655_v23, 2  ;;  %v3168_v38 = vpop.permute.xlu1 %3167  ;;  %v3298_v32 = vrot.slane %v3297_v30, 1  ;;  %v3634_v8 = vrot.slane %v3633_v35, 4  ;;  %v3590_v57 = vadd.f32 %v3589_v27, %v3588_v7 }
 0x6c2   : > { %v3207_v4 = vmul.f32 %v4386_v58, %v3168_v38  ;;  %v3319_v10 = vrot.slane %v3318_v9, 1  ;;  %v3349_v37 = vsel %vm2963_vm12, %v3292_v50, %v3348_v47  ;;  %v3604_v38 = vadd.f32 %v3603_v46, %v3602_v56  ;;  %v3716_v50 = vld [vmem:[%s6102_s11 + $0x30] sm:$0xff]  ;;  %v3845_v47 = vld [vmem:[%s6107_s16 + $0x28] sm:$0xff] }
 0x6c3   : > { %v2657_v45 = vadd.f32 %v2656_v60, %v2655_v23  ;;  %v3299_v15 = vadd.f32 %v3298_v32, %v3297_v30  ;;  %v3635_v17 = vadd.f32 %v3634_v8, %v3633_v35  ;;  %v3609_v23 = vadd.f32 %v3608_v13, %v3607_v25 }
 0x6c4   : > { %v3307_v14 = vsel %vm2568_vm15, %v3207_v4, 0.0  ;;  %v3306_v60 = vadd.f32 %v3305_v51, %v5893_v26  ;;  %v3617_v35 = vrot.slane %v5937_v53, 1  ;;  %v3630_v4 = vadd.f32 %v3629_v48, %v3628_v24  ;;  %v3842_v48 = vld [vmem:[%s6107_s16 + $0x10] sm:$0xff] }
 0x6c5   : > { %v2658_v55 = vrot.slane %v2657_v45, 1  ;;  %v3308_v31 = vrot.slane %v3307_v14, 4  ;;  %v3636_v39 = vrot.slane %v3635_v17, 2  ;;  %v3610_v6 = vrot.slane %v3609_v23, 1 }
 0x6c6   : > { %v3320_v7 = vadd.f32 %v3319_v10, %v3318_v9  ;;  %v3846_v9 = vld [vmem:[%s6107_s16 + $0x30] sm:$0xff] }
 0x6c7   : > { %v2659_v40 = vadd.f32 %v2658_v55, %v2657_v45  ;;  %v3309_v29 = vadd.f32 %v3308_v31, %v3307_v14  ;;  %v3637_v45 = vadd.f32 %v3636_v39, %v3635_v17  ;;  %v3611_v14 = vadd.f32 %v3610_v6, %v3609_v23  ;;  %v3844_v17 = vld [vmem:[%s6107_s16 + $0x20] sm:$0xff] }
 0x6c8   : > { %v3631_v55 = vrot.slane %v3630_v4, 1  ;;  %v3840_v23 = vld [vmem:[%s6107_s16] sm:$0xff] }
 0x6c9   : > { %v3310_v0 = vrot.slane %v3309_v29, 2  ;;  %v3480_v12 = vpop.permute.xlu1 %3479  ;;  %v3033_v34 = vsel %vm2965_vm0, %v2659_v40, %v3032_v33  ;;  %v3638_v8 = vrot.slane %v3637_v45, 1  ;;  %v3715_v33 = vld [vmem:[%s6102_s11 + $0x28] sm:$0xff] }
 0x6ca   : > { %v3525_v54 = vmul.f32 %v4405_v62, %v3480_v12  ;;  %v3034_v20 = vsel %vm2967_vm13, %v5825_v16, %v3033_v34  ;;  %v3350_v16 = vsel %vm2965_vm0, %v3299_v15, %v3349_v37  ;;  %v3632_v24 = vadd.f32 %v3631_v55, %v3630_v4  ;;  %v3717_v62 = vld [vmem:[%s6102_s11 + $0x38] sm:$0xff]  ;;  %v3714_v15 = vld [vmem:[%s6102_s11 + $0x20] sm:$0xff]  ;;  %v3712_v34 = vld [vmem:[%s6102_s11 + $0x10] sm:$0xff] }
 0x6cb   : > { %v3311_v58 = vadd.f32 %v3310_v0, %v3309_v29  ;;  %v3035_v28 = vsel %vm2969_vm2, %v5841_v61, %v3034_v20  ;;  %v3597_v61 = vadd.f32 %v3596_v41, %v5869_v5  ;;  %v3351_v21 = vsel %vm2967_vm13, %v3306_v60, %v3350_v16  ;;  %3737 = vmatpush.msrb.mxu3 %v3717_v62  ;;  %v3713_v0 = vld [vmem:[%s6102_s11 + $0x18] sm:$0xff]  ;;  %v3841_v20 = vld [vmem:[%s6107_s16 + $0x8] sm:$0xff]  ;;  %v4473_v37 = vld [vmem:[%s6106_s15] ss:$0 sm:$0xff] }
 0x6cc   : > { %v3619_v19 = vsel %vm2568_vm15, %v3525_v54, 0.0  ;;  %v3036_v2 = vsel %vm2971_vm4, %v2680_v43, %v3035_v28  ;;  %v3639_v27 = vadd.f32 %v3638_v8, %v3637_v45  ;;  %v3843_v12 = vld [vmem:[%s6107_s16 + $0x18] sm:$0xff]  ;;  %v3711_v54 = vld [vmem:[%s6102_s11 + $0x8] sm:$0xff] }
 0x6cd   : > { %v3312_v22 = vrot.slane %v3311_v58, 1  ;;  %v3620_v30 = vrot.slane %v3619_v19, 4  ;;  %4371 = vmatmul.msk.f32.gmra.mxu3 %vm2568_vm15, %v3036_v2  ;;  %v3666_v25 = vsel %vm2959_vm8, %v3597_v61, %v3590_v57  ;;  %v3710_v57 = vld [vmem:[%s6102_s11] sm:$0xff] }
 0x6ce   : > { %v3667_v51 = vsel %vm2961_vm7, %v3604_v38, %v3666_v25  ;;  %3738 = vmatpush.msrb.mxu3 %v3716_v50 }
 0x6cf   : > { %v3313_v43 = vadd.f32 %v3312_v22, %v3311_v58  ;;  %v3621_v3 = vadd.f32 %v3620_v30, %v3619_v19  ;;  %v3668_v49 = vsel %vm2963_vm12, %v3611_v14, %v3667_v51 }
 0x6d0   : > { %3739 = vmatpush.msrb.mxu3 %v3715_v33 }
 0x6d1   : > { %v3622_v44 = vrot.slane %v3621_v3, 2  ;;  %v1095_v42 = vpop.permute.xlu1 %1094  ;;  %v3352_v26 = vsel %vm2969_vm2, %v3313_v43, %v3351_v21 }
 0x6d2   : > { %v1097_v5 = vadd.f32 %v1095_v42, %v4864_v18  ;;  %v1098_v41 = vadd.f32 %v1095_v42, %v4906_v59  ;;  %v3353_v36 = vsel %vm2971_vm4, %v3320_v7, %v3352_v26  ;;  %v3618_v18 = vadd.f32 %v3617_v35, %v5937_v53  ;;  %v3847_v53 = vld [vmem:[%s6107_s16 + $0x38] sm:$0xff]  ;;  %3740 = vmatpush.msrb.mxu3 %v3714_v15  ;;  %v4474_v7 = vld [vmem:[%s6155_s29] ss:$0 sm:$0xff] }
 0x6d3   : > { %v3623_v32 = vadd.f32 %v3622_v44, %v3621_v3  ;;  %4391 = vmatmul.msk.f32.gmra.mxu0 %vm2568_vm15, %v3353_v36 }
 0x6d4   : > { %3756 = vrot.lane.b32.xlu0 %v1098_v41, %s6120_s26  ;;  %3800 = vrot.lane.b32.xlu1 %v1097_v5, %s4626_s4  ;;  %v3669_v56 = vsel %vm2965_vm0, %v3618_v18, %v3668_v49 }
 0x6d5   : > { %v3624_v31 = vrot.slane %v3623_v32, 1  ;;  %3754 = vrot.lane.b32.xlu2 %v1097_v5, %s6120_s26  ;;  %3856 = vmatpush.msra.mxu0 %v3847_v53  ;;  %s6157_s26 = sld [smem:[#allocation13_spill]] }
 0x6d6   : > { %3741 = vmatpush.msrb.mxu3 %v3713_v0 }
 0x6d7   : > { %v3625_v59 = vadd.f32 %v3624_v31, %v3623_v32  ;;  %3857 = vmatpush.msra.mxu0 %v3846_v9 }
 0x6d8   : > { %3742 = vmatpush.msrb.mxu3 %v3712_v34 }
 0x6d9   : > { %v3670_v13 = vsel %vm2967_vm13, %v3625_v59, %v3669_v56  ;;  %3858 = vmatpush.msra.mxu0 %v3845_v47 }
 0x6da   : > { %v3671_v40 = vsel %vm2969_vm2, %v3632_v24, %v3670_v13  ;;  %3743 = vmatpush.msrb.mxu3 %v3711_v54 }
 0x6db   : > { %v3672_v29 = vsel %vm2971_vm4, %v3639_v27, %v3671_v40  ;;  %3859 = vmatpush.msra.mxu0 %v3844_v17 }
 0x6dc   : > { %4411 = vmatmul.msk.f32.gmra.mxu1 %vm2568_vm15, %v3672_v29  ;;  %3744 = vmatpush.msrb.mxu3 %v3710_v57 }
 0x6dd   : > { %3802 = vrot.lane.b32.xlu2 %v1098_v41, %s4626_s4  ;;  %3860 = vmatpush.msra.mxu0 %v3843_v12  ;;  %s6158_s4 = smov %s6157_s26 }
 0x6df   : > { %3861 = vmatpush.msra.mxu0 %v3842_v48 }
 0x6e1   : > { %3862 = vmatpush.msra.mxu0 %v3841_v20 }
 0x6e3   : > { %3863 = vmatpush.msra.mxu0 %v3840_v23 }
 0x6f3   : > { %v3375_v19 = vpop.f32.mrf.mxu0 }
 0x70d   : > { %v3001_v46 = vpop.f32.mrf.mxu3 }
 0x717   : > { %v3694_v39 = vpop.f32.mrf.mxu1 }
 0x72f   : > { %v3755_v45 = vpop.permute.xlu2 %3754 }
 0x737   : > { %v3803_v48 = vpop.permute.xlu2 %3802 }
 0x73a   : > { %v3004_v58 = vpop.f32.mrf.mxu3 }
 0x742   : > { %v3058_v28 = vpop.f32.mrf.mxu3 }
 0x743   : > { %v3059_v10 = vadd.f32 %v3058_v28, %v3001_v46 }
 0x745   : > { %v3381_v2 = vadd.f32 %v3375_v19, %v3059_v10 }
 0x746   : > { %v3757_v36 = vpop.permute.xlu0 %3756  ;;  %v3801_v40 = vpop.permute.xlu1 %3800 }
 0x747   : > { %v3700_v22 = vadd.f32 %v3694_v39, %v3381_v2 }
 0x749   : > { %v3706_v30 = vadd.f32 %v4473_v37, %v3700_v22 }
 0x74b   : > { %v3708_v16 = vmul.f32 %v3706_v30, %v4826_v63 }
 0x74d   : > { %4017 = vst.msk [vmem:[%s4787_s5] sm:$0xff] %vm3722_vm10, %v3708_v16  ;;  %4412 = vmatmul.msk.f32.vlgmr.msrb.gmra.mxu3 %vm3722_vm10, %v3708_v16  ;;  %4416 = vmatmul.msk.f32.vlgmr.msra.gmra.mxu0 %vm3722_vm10, %v3708_v16  ;;  %v3876_v16 = vld [vmem:[%s6157_s26 + $0x18] sm:$0xff] }
 0x74e   : > { %3899 = vmatpush.msrb.mxu1 %v3876_v16 }
 0x750   : > { %v3061_v60 = vpop.f32.mrf.mxu3  ;;  %v3378_v61 = vpop.f32.mrf.mxu0 }
 0x751   : > { %v3062_v38 = vadd.f32 %v3061_v60, %v3004_v58  ;;  %v3875_v60 = vld [vmem:[%s6158_s4 + $0x10] sm:$0xff] }
 0x752   : > { %3900 = vmatpush.msrb.mxu1 %v3875_v60 }
 0x753   : > { %v3382_v6 = vadd.f32 %v3378_v61, %v3062_v38  ;;  %v3874_v38 = vld [vmem:[%s6158_s4 + $0x8] sm:$0xff] }
 0x754   : > { %3901 = vmatpush.msrb.mxu1 %v3874_v38 }
 0x759   : > { %v3697_v43 = vpop.f32.mrf.mxu1 }
 0x75a   : > { %v3701_v3 = vadd.f32 %v3697_v43, %v3382_v6 }
 0x75c   : > { %v3707_v35 = vadd.f32 %v4473_v37, %v3701_v3 }
 0x75e   : > { %v3709_v4 = vmul.f32 %v3707_v35, %v4822_v52 }
 0x760   : > { %4413 = vmatmul.msk.f32.gmra.mxu3 %vm3722_vm10, %v3709_v4  ;;  %4018 = vst.msk [vmem:[%s4787_s5 + $0x8] sm:$0xff] %vm3722_vm10, %v3709_v4  ;;  %4417 = vmatmul.msk.f32.gmra.mxu0 %vm3722_vm10, %v3709_v4  ;;  %s6156_s5 = smov 96  }
 0x7d0   : > { %v3746_v21 = vpop.f32.mrf.mxu3 }
 0x7d1   : > { %v3747_v25 = vadd.f32 %v4474_v7, %v3746_v21 }
 0x7d3   : > { %v3760_v44 = vadd.f32 %v3755_v45, %v3747_v25 }
 0x7d5   : > { %v4414_v42 = vmul.f32 -1.442695, %v3760_v44  ;;  %v4475_v44 = vld [vmem:[%s6159_s2] ss:$0 sm:$0xff] }
 0x7d7   : > { %4586 = vpow2.f32 %v4414_v42 }
 0x7dd   : > { %v4587_v26 = vpop.eup %4586 }
 0x7de   : > { %v3768_v51 = vadd.f32 1.0, %v4587_v26 }
 0x7e0   : > { %4588 = vrcp.f32 %v3768_v51  ;;  %v3781_v49 = vand.u32 2147483648, %v3768_v51  ;;  %v3779_v59 = vand.u32 2147483647, %v3768_v51  ;;  %vm3775_vm7 = vweird.f32 %v3768_v51 }
 0x7e2   : > { %v3782_v56 = vor.u32 1.1754944e-38, %v3781_v49  ;;  %vm3780_vm0 = vcmp.eq.f32.partialorder %v3779_v59, 8.507059e+37 }
 0x7e3   : > { %v3749_v5 = vpop.f32.mrf.mxu3 }
 0x7e4   : > { %v3750_v41 = vadd.f32 %v4474_v7, %v3749_v5 }
 0x7e6   : > { %v3761_v14 = vadd.f32 %v3757_v36, %v3750_v41  ;;  %v4589_v32 = vpop.eup %4588  ;;  %v3839_v36 = vld [vmem:[%s4767_s1 + $0x8] sm:$0xff] }
 0x7e7   : > { %v3771_v8 = vmul.f32 %v4589_v32, %v3768_v51  ;;  %vm3776_vm8 = vweird.f32 %v4589_v32 }
 0x7e8   : > { %v4415_v55 = vmul.f32 -1.442695, %v3761_v14  ;;  %vm3777_vm12 = vmor %vm3775_vm7, %vm3776_vm8 }
 0x7e9   : > { %v3772_v31 = vsub.f32 1.0, %v3771_v8 }
 0x7ea   : > { %4590 = vpow2.f32 %v4415_v55 }
 0x7eb   : > { %v3773_v18 = vmul.f32 %v4589_v32, %v3772_v31 }
 0x7ed   : > { %v3774_v24 = vadd.f32 %v4589_v32, %v3773_v18 }
 0x7ef   : > { %v3778_v13 = vsel %vm3777_vm12, %v4589_v32, %v3774_v24 }
 0x7f0   : > { %v4591_v27 = vpop.eup %4590  ;;  %v3783_v62 = vsel %vm3780_vm0, %v3782_v56, %v3778_v13 }
 0x7f1   : > { %v3769_v29 = vadd.f32 1.0, %v4591_v27  ;;  %v3806_v53 = vmul.f32 %v3801_v40, %v3783_v62  ;;  %v3820_v19 = vsub.f32 1.0, %v3783_v62  ;;  %v3832_v37 = vmul.f32 %v3783_v62, %v4829_v1  ;;  %v3873_v1 = vld [vmem:[%s6158_s4] sm:$0xff] }
 0x7f2   : > { %3902 = vmatpush.msrb.mxu1 %v3873_v1 }
 0x7f3   : > { %4592 = vrcp.f32 %v3769_v29  ;;  %3810 = vrot.lane.b32.xlu0 %v3806_v53, %s4627_s12  ;;  %v3796_v47 = vand.u32 2147483648, %v3769_v29  ;;  %v3794_v17 = vand.u32 2147483647, %v3769_v29  ;;  %vm3790_vm13 = vweird.f32 %v3769_v29 }
 0x7f5   : > { %v3797_v12 = vor.u32 1.1754944e-38, %v3796_v47  ;;  %vm3795_vm4 = vcmp.eq.f32.partialorder %v3794_v17, 8.507059e+37 }
 0x7f9   : > { %v4593_v50 = vpop.eup %4592 }
 0x7fa   : > { %v3786_v9 = vmul.f32 %v4593_v50, %v3769_v29  ;;  %vm3791_vm15 = vweird.f32 %v4593_v50 }
 0x7fb   : > { %vm3792_vm2 = vmor %vm3790_vm13, %vm3791_vm15 }
 0x7fc   : > { %v3787_v33 = vsub.f32 1.0, %v3786_v9 }
 0x7fe   : > { %v3788_v15 = vmul.f32 %v4593_v50, %v3787_v33 }
 0x800   : > { %v3789_v0 = vadd.f32 %v4593_v50, %v3788_v15 }
 0x802   : > { %v3793_v34 = vsel %vm3792_vm2, %v4593_v50, %v3789_v0 }
 0x803   : > { %v3798_v46 = vsel %vm3795_vm4, %v3797_v12, %v3793_v34 }
 0x804   : > { %v3807_v54 = vmul.f32 %v3803_v48, %v3798_v46  ;;  %v3821_v61 = vsub.f32 1.0, %v3798_v46  ;;  %v3833_v43 = vmul.f32 %v3798_v46, %v4846_v11  ;;  %v3865_v11 = vpop.f32.mrf.mxu0 }
 0x806   : > { %3812 = vrot.lane.b32.xlu1 %v3807_v54, %s4627_s12 }
 0x80c   : > { %v3868_v14 = vpop.f32.mrf.mxu0 }
 0x80d   : > { %v3872_v32 = vadd.f32 %v3868_v14, %v3839_v36 }
 0x865   : > { %v3811_v20 = vpop.permute.xlu0 %3810 }
 0x866   : > { %v3816_v57 = vadd.f32 %v3811_v20, %v3747_v25  ;;  %v3838_v25 = vld [vmem:[%s4767_s1] sm:$0xff] }
 0x867   : > { %v3871_v45 = vadd.f32 %v3865_v11, %v3838_v25 }
 0x868   : > { %4594 = vtanh.f32 %v3816_v57 }
 0x86e   : > { %v4595_v23 = vpop.eup %4594 }
 0x86f   : > { %3824 = vrot.lane.b32.xlu2 %v4595_v23, %s6156_s5 }
 0x878   : > { %v3813_v58 = vpop.permute.xlu1 %3812 }
 0x879   : > { %v3817_v28 = vadd.f32 %v3813_v58, %v3750_v41 }
 0x87b   : > { %4596 = vtanh.f32 %v3817_v28 }
 0x881   : > { %v4597_v10 = vpop.eup %4596 }
 0x882   : > { %3826 = vrot.lane.b32.xlu0 %v4597_v10, %s6156_s5 }
 0x8c9   : > { %v3825_v2 = vpop.permute.xlu2 %3824 }
 0x8ca   : > { %v3830_v39 = vmul.f32 %v3825_v2, %v3820_v19 }
 0x8cc   : > { %v3834_v22 = vadd.f32 %v3832_v37, %v3830_v39 }
 0x8ce   : > { %v3836_v30 = vmul.f32 %v3834_v22, %v4826_v63 }
 0x8d0   : > { %3879 = vrot.lane.b32.xlu1 %v3836_v30, %s6156_s5 }
 0x8f4   : > { %v3827_v6 = vpop.permute.xlu0 %3826 }
 0x8f5   : > { %v3831_v3 = vmul.f32 %v3827_v6, %v3821_v61 }
 0x8f7   : > { %v3835_v35 = vadd.f32 %v3833_v43, %v3831_v3 }
 0x8f9   : > { %v3837_v4 = vmul.f32 %v3835_v35, %v4822_v52 }
 0x8fb   : > { %3881 = vrot.lane.b32.xlu2 %v3837_v4, %s6156_s5 }
 0x942   : > { %v3880_v7 = vpop.permute.xlu1 %3879 }
 0x943   : > { %4021 = vst.msk [vmem:[#allocation2] sm:$0xff] %vm926_vm1, %v3880_v7  ;;  %4418 = vmatmul.msk.f32.vlgmr.msrb.gmra.mxu1 %vm926_vm1, %v3880_v7 }
 0x955   : > { %v3882_v21 = vpop.permute.xlu2 %3881 }
 0x956   : > { %4022 = vst.msk [vmem:[#allocation2 + $0x8] sm:$0xff] %vm926_vm1, %v3882_v21  ;;  %4419 = vmatmul.msk.f32.gmra.mxu1 %vm926_vm1, %v3882_v21 }
 0x9c0   : > { %v3904_v42 = vpop.f32.mrf.mxu1 }
 0x9c1   : > { %v3910_v26 = vadd.f32 %v3904_v42, %v3871_v45 }
 0x9c3   : > { %v3916_v51 = vadd.f32 %v4475_v44, %v3910_v26 }
 0x9c5   : > { %4598 = vtanh.f32 %v3916_v51 }
 0x9cb   : > { %v4599_v5 = vpop.eup %4598 }
 0x9cc   : > { %v3920_v41 = vmul.f32 %v4599_v5, %v4826_v63 }
 0x9ce   : > { %3922 = vst.msk [vmem:[%s4777_s17] sm:$0xff] %vm3722_vm10, %v3920_v41 }
 0x9d3   : > { %v3907_v55 = vpop.f32.mrf.mxu1 }
 0x9d4   : > { %v3911_v8 = vadd.f32 %v3907_v55, %v3872_v32 }
 0x9d6   : > { %v3917_v31 = vadd.f32 %v4475_v44, %v3911_v8 }
 0x9d8   : > { %4600 = vtanh.f32 %v3917_v31 }
 0x9de   : > { %v4601_v49 = vpop.eup %4600 }
 0x9df   : > { %v3921_v18 = vmul.f32 %v4601_v49, %v4822_v52 }
 0x9e1   : > { %3923 = vst.msk [vmem:[%s4777_s17 + $0x8] sm:$0xff] %vm3722_vm10, %v3921_v18 }
 0x9e2 PF: > { %s6160_s5 = sld [smem:[#allocation4_spill]] }
 0x9e3   : > { %s6161_s2 = sld [smem:[#allocation3_spill]] }
 0x9e4   : > { %s6162_s25 = sld [smem:[#allocation5_spill]] }
 0x9e8   : > { %s32_s26 = sadd.s32 1, %s6160_s5  }
 0x9e9   : > { %p29_p6 = scmp.ge.s32.totalorder %s32_s26, 10  }
 0x9eb   :  { %31 = sbr.rel (!%p29_p6) target bundleno = 10 (0xa), region = 178 }

// kernel: _decoder_impl.1
= control target key start
LH: loop header
LB: loop body
LE: loop exit
PB: predicated region body
PF: predicated region fallthrough
CT: control target
= control target key end

     0   :  { %s4743_s25 = smov 0   ;;  %s4745_s26 = smov 0   ;;  %s6091_s0 = inlined_call_operand.vmem [shape: f32[4,16,8,16], index: 0, kind: input, shape index: {}]   ;;  %s6092_s1 = inlined_call_operand.vmem [shape: f32[16,8], index: 1, kind: input, shape index: {}]   ;;  %s6093_s2 = inlined_call_operand.vmem [shape: f32[16,8,32], index: 2, kind: input, shape index: {}]   ;;  %s6094_s3 = inlined_call_operand.vmem [shape: f32[16,32], index: 3, kind: input, shape index: {}]   ;;  %s6095_s4 = inlined_call_operand.vmem [shape: f32[8,16,96], index: 4, kind: input, shape index: {}]   ;;  %s6096_s5 = inlined_call_operand.vmem [shape: f32[8,16,64], index: 5, kind: input, shape index: {}]   ;;  %s6097_s6 = inlined_call_operand.vmem [shape: f32[8,16,1], index: 6, kind: input, shape index: {}]   ;;  %s6098_s7 = inlined_call_operand.vmem [shape: f32[32,96], index: 7, kind: input, shape index: {}]   ;;  %s6099_s8 = inlined_call_operand.vmem [shape: f32[1,96], index: 8, kind: input, shape index: {}]   ;;  %s6100_s9 = inlined_call_operand.vmem [shape: f32[32,128], index: 9, kind: input, shape index: {}]   ;;  %s6101_s10 = inlined_call_operand.vmem [shape: f32[1,96], index: 10, kind: input, shape index: {}]   ;;  %s6102_s11 = inlined_call_operand.vmem [shape: f32[64,96], index: 11, kind: input, shape index: {}]   ;;  %s6103_s12 = inlined_call_operand.vmem [shape: f32[1,96], index: 12, kind: input, shape index: {}]   ;;  %s6104_s13 = inlined_call_operand.vmem [shape: f32[32,4], index: 13, kind: input, shape index: {}]   ;;  %s6105_s14 = inlined_call_operand.vmem [shape: f32[4,16,64], index: 14, kind: input, shape index: {}]   ;;  %s6106_s15 = inlined_call_operand.vmem [shape: f32[1,64], index: 15, kind: input, shape index: {}]   ;;  %s6107_s16 = inlined_call_operand.vmem [shape: f32[64,64], index: 16, kind: input, shape index: {}]   ;;  %s6108_s17 = inlined_call_operand.vmem [shape: f32[32,64], index: 17, kind: input, shape index: {}]   ;;  %s6109_s18 = inlined_call_operand.vmem [shape: f32[1,64], index: 18, kind: input, shape index: {}]   ;;  %s6110_s19 = inlined_call_operand.vmem [shape: f32[8,16,64], index: 19, kind: output, shape index: {0}]   ;;  %s6111_s20 = inlined_call_operand.vmem [shape: f32[8,16,8], index: 20, kind: output, shape index: {1}]   ;;  %s6112_s21 = inlined_call_operand.vmem [shape: f32[8,16,64], index: 21, kind: output, shape index: {2}]  }
   0x1   :  { %6122 = sst [smem:[#allocation6_spill]] %s6091_s0 }
   0x2   :  { %6123 = sst [smem:[#allocation7_spill]] %s6092_s1 }
   0x3   :  { %6124 = sst [smem:[#allocation8_spill]] %s6093_s2  ;;  %s4741_s2 = smov 0  }
   0x4   :  { %6125 = sst [smem:[#allocation9_spill]] %s6094_s3 }
   0x5   :  { %6126 = sst [smem:[#allocation10_spill]] %s6095_s4 }
   0x6   :  { %6127 = sst [smem:[#allocation11_spill]] %s6096_s5 }
   0x7   :  { %6128 = sst [smem:[#allocation12_spill]] %s6103_s12 }
   0x8   :  { %6129 = sst [smem:[#allocation13_spill]] %s6108_s17 }
   0x9   :  { %6130 = sst [smem:[#allocation14_spill]] %s6109_s18 }
   0xa LB: > { %6131 = sst [smem:[#allocation3_spill]] %s4620_s25  ;;  %s41_s27 = sadd.s32 1, %s4620_s25  ;;  %s4624_s26 = sphi %s4745_s26, %s32_s26   ;;  %s4620_s25 = sphi %s4743_s25, %s6162_s25   ;;  %s4616_s2 = sphi %s4741_s2, %s6161_s2  }
   0xb   : > { %6132 = sst [smem:[#allocation4_spill]] %s4624_s26  ;;  %p4314_p0 = scmp.ge.s32.totalorder %s4624_s26, 1 }
   0xc   : > { %p42_p1 = scmp.ge.s32.totalorder %s41_s27, 8  ;;  %p695_p2 = scmp.lt.s32.totalorder %s4624_s26, 9 }
   0xe   : > { %s6164_s27 = smov (%p42_p1, %s41_s27), 0  ;;  %p696_p3 = pnand %p4314_p0, %p695_p2 }
   0xf   : > { %6133 = sst [smem:[#allocation5_spill]] %s6164_s27  ;;  %p844_p4 = scmp.lt.s32.totalorder (!%p696_p3), %s4616_s2, 7 }
  0x10   : > { %699 = sbr.rel (%p696_p3) target bundleno = 2530 (0x9e2), region = 96  ;;  %s6134_s4 = sld [smem:[#allocation10_spill]] (!%p696_p3) }
  0x11   : > { %s6135_s23 = sld [smem:[#allocation11_spill]] (!%p696_p3)  ;;  %p4327_p5 = scmp.ne.s32.totalorder (!%p696_p3), %s4616_s2, 0 }
  0x15   : > { %s845_s3 = scalar_select %p844_p4, %s4616_s2, 7 }
  0x16   : > { %906 = sbr.rel (%p4327_p5) target bundleno = 36 (0x24), region = 100 }
  0x17   : > { %s4422_s28 = sshll.u32 %s845_s3, 4 }
  0x18   : > { %s4762_s30 = scalar_lea.vmem %s6134_s4, %s4422_s28  ;;  %s4767_s1 = scalar_lea.vmem %s6135_s23, %s4422_s28 }
  0x19   : > { %s4772_s26 = scalar_lea.vmem %s6097_s6, %s4422_s28  ;;  %s4777_s17 = scalar_lea.vmem %s6110_s19, %s4422_s28 }
  0x1a   : > { %s4782_s29 = scalar_lea.vmem %s6111_s20, %s4422_s28  ;;  %s4787_s5 = scalar_lea.vmem %s6112_s21, %s4422_s28 }
  0x1b   : > { %s6136_s23 = sld [smem:[#allocation9_spill]]  ;;  %vm909_vm0 = vcmask 261120  }
  0x21   : > { %v907_v0 = vld [vmem:[%s6136_s23] sm:$0xff]  ;;  %v908_v1 = vld [vmem:[%s6136_s23 + $0x8] sm:$0xff] }
  0x22   : > { %910 = vst.msk [vmem:[#allocation2] sm:$0xff] %vm909_vm0, %v907_v0 }
  0x23   : > { %911 = vst.msk [vmem:[#allocation2 + $0x8] sm:$0xff] %vm909_vm0, %v908_v1 }
  0x24 PF: > { %v921_v2 = vld [vmem:[%s6098_s7 + $0x18] sm:$0xff]  ;;  %v920_v3 = vld [vmem:[%s6098_s7 + $0x10] sm:$0xff]  ;;  %v919_v5 = vld [vmem:[%s6098_s7 + $0x8] sm:$0xff]  ;;  %s4626_s4 = smov 32   ;;  %vm926_vm1 = vcmask 261120   ;;  %s4627_s12 = smov 64  }
  0x25   : > { %945 = vmatpush.msra.mxu1 %v921_v2  ;;  %v918_v6 = vld [vmem:[%s6098_s7] sm:$0xff]  ;;  %v957_v16 = vld [vmem:[%s4762_s30 + $0x8] sm:$0xff]  ;;  %v4628_v22 = vmov 0   ;;  %v1057_v2 = vld [vmem:[%s6100_s9 + $0x18] sm:$0xff]  ;;  %s6137_s18 = sld [smem:[#allocation8_spill]]  ;;  %vm1824_vm10 = vcmask 60416  }
  0x26   : > { %v4471_v8 = vld [vmem:[%s6099_s8] ss:$0 sm:$0xff]  ;;  %4467 = vset.pattern.permute.xlu1 %v4628_v22  ;;  %4466 = vset.pattern.permute.xlu0 %v4628_v22  ;;  %v915_v41 = vld [vmem:[%s4772_s26 + $0x8] sm:$0xff]  ;;  %s6138_s2 = sld [smem:[#allocation7_spill]] }
  0x27   : > { %946 = vmatpush.msra.mxu1 %v920_v3  ;;  %v956_v13 = vld [vmem:[%s4762_s30] sm:$0xff]  ;;  %v1056_v3 = vld [vmem:[%s6100_s9 + $0x10] sm:$0xff]  ;;  %s6148_s24 = sld [smem:[#allocation6_spill]] }
  0x28   : > { %v914_v27 = vld [vmem:[%s4772_s26] sm:$0xff]  ;;  %s6120_s26 = smov 96  }
  0x29   : > { %v912_v4 = vld [vmem:[#allocation2] sm:$0xff]  ;;  %947 = vmatpush.msra.mxu1 %v919_v5 }
  0x2a   : > { %1032 = vrot.lane.b32.xlu2 %v912_v4, %s4626_s4  ;;  %v913_v7 = vld [vmem:[#allocation2 + $0x8] sm:$0xff]  ;;  %v1054_v5 = vld [vmem:[%s6100_s9] sm:$0xff] }
  0x2b   : > { %948 = vmatpush.msra.mxu1 %v918_v6 }
  0x2c   : > { %4328 = vmatmul.msk.f32.vlgmr.msra.gmra.mxu1 %vm926_vm1, %v912_v4  ;;  %v1055_v4 = vld [vmem:[%s6100_s9 + $0x8] sm:$0xff]  ;;  %s6139_s0 = smov %s6138_s2 }
  0x2d   : > { %1080 = vmatpush.msrb.mxu1 %v1057_v2  ;;  %v1128_v2 = vld [vmem:[%s6137_s18 + $0x68] sm:$0xff] }
  0x2f   : > { %1081 = vmatpush.msrb.mxu1 %v1056_v3 }
  0x31   : > { %1082 = vmatpush.msrb.mxu1 %v1055_v4 }
  0x32   : > { %1034 = vrot.lane.b32.xlu2 %v913_v7, %s4626_s4 }
  0x33   : > { %1083 = vmatpush.msrb.mxu1 %v1054_v5 }
  0x34   : > { %4329 = vmatmul.msk.f32.gmra.mxu1 %vm926_vm1, %v913_v7 }
  0x84   : > { %v1033_v57 = vpop.permute.xlu2 %1032 }
  0x8c   : > { %v1035_v58 = vpop.permute.xlu2 %1034 }
  0xa9   : > { %v950_v9 = vpop.f32.mrf.mxu1 }
  0xaa   : > { %v951_v10 = vadd.f32 %v4471_v8, %v950_v9 }
  0xac   : > { %1000 = vrot.lane.b32.xlu0 %v951_v10, %s4627_s12  ;;  %v958_v14 = vadd.f32 %v956_v13, %v951_v10 }
  0xae   : > { %v4330_v15 = vmul.f32 -1.442695, %v958_v14  ;;  %v1198_v14 = vld [vmem:[%s6104_s13 + $0x18] sm:$0xff] }
  0xaf   : > { %1259 = vmatpush.msra.mxu0 %v1198_v14  ;;  %4428 = vmatpush.msra.mxu2 %v1198_v14 }
  0xb0   : > { %4476 = vpow2.f32 %v4330_v15  ;;  %v1197_v15 = vld [vmem:[%s6104_s13 + $0x10] sm:$0xff]  ;;  %4429 = vmatpush.msra.mxu3 %v1198_v14 }
  0xb1   : > { %v953_v11 = vpop.f32.mrf.mxu1  ;;  %1260 = vmatpush.msra.mxu0 %v1197_v15  ;;  %4430 = vmatpush.msra.mxu2 %v1197_v15 }
  0xb2   : > { %v954_v12 = vadd.f32 %v4471_v8, %v953_v11  ;;  %4431 = vmatpush.msra.mxu3 %v1197_v15 }
  0xb4   : > { %1002 = vrot.lane.b32.xlu0 %v954_v12, %s4627_s12  ;;  %v959_v18 = vadd.f32 %v957_v16, %v954_v12 }
  0xb6   : > { %v4477_v17 = vpop.eup %4476  ;;  %v4331_v20 = vmul.f32 -1.442695, %v959_v18 }
  0xb7   : > { %v966_v19 = vadd.f32 1.0, %v4477_v17  ;;  %v1195_v17 = vld [vmem:[%s6104_s13] sm:$0xff] }
  0xb9   : > { %4478 = vrcp.f32 %v966_v19  ;;  %v979_v31 = vand.u32 2147483648, %v966_v19  ;;  %vm973_vm3 = vweird.f32 %v966_v19  ;;  %v977_v32 = vand.u32 2147483647, %v966_v19 }
  0xba   : > { %4480 = vpow2.f32 %v4331_v20 }
  0xbb   : > { %v980_v35 = vor.u32 1.1754944e-38, %v979_v31  ;;  %vm978_vm5 = vcmp.eq.f32.partialorder %v977_v32, 8.507059e+37  ;;  %v1120_v31 = vld [vmem:[%s6137_s18 + $0x28] sm:$0xff] }
  0xbc   : > { %1044 = vperm.xlu0 %4466, %v914_v27  }
  0xbf   : > { %v4479_v21 = vpop.eup %4478 }
  0xc0   : > { %v4481_v23 = vpop.eup %4480  ;;  %v969_v24 = vmul.f32 %v4479_v21, %v966_v19  ;;  %vm974_vm2 = vweird.f32 %v4479_v21  ;;  %v1115_v19 = vld [vmem:[%s6137_s18] sm:$0xff] }
  0xc1   : > { %v967_v25 = vadd.f32 1.0, %v4481_v23  ;;  %vm975_vm4 = vmor %vm973_vm3, %vm974_vm2  ;;  %v1119_v23 = vld [vmem:[%s6137_s18 + $0x20] sm:$0xff] }
  0xc2   : > { %v970_v26 = vsub.f32 1.0, %v969_v24 }
  0xc3   : > { %4482 = vrcp.f32 %v967_v25  ;;  %vm988_vm6 = vweird.f32 %v967_v25  ;;  %v994_v43 = vand.u32 2147483648, %v967_v25  ;;  %v992_v44 = vand.u32 2147483647, %v967_v25 }
  0xc4   : > { %v971_v28 = vmul.f32 %v4479_v21, %v970_v26 }
  0xc5   : > { %v995_v46 = vor.u32 1.1754944e-38, %v994_v43  ;;  %vm993_vm9 = vcmp.eq.f32.partialorder %v992_v44, 8.507059e+37 }
  0xc6   : > { %v972_v29 = vadd.f32 %v4479_v21, %v971_v28 }
  0xc8   : > { %v976_v33 = vsel %vm975_vm4, %v4479_v21, %v972_v29  ;;  %v1116_v29 = vld [vmem:[%s6137_s18 + $0x8] sm:$0xff] }
  0xc9   : > { %v4483_v30 = vpop.eup %4482  ;;  %v981_v36 = vsel %vm978_vm5, %v980_v35, %v976_v33 }
  0xca   : > { %v984_v34 = vmul.f32 %v4483_v30, %v967_v25  ;;  %vm989_vm7 = vweird.f32 %v4483_v30  ;;  %v1020_v59 = vsub.f32 1.0, %v981_v36  ;;  %v1038_v61 = vmul.f32 %v1033_v57, %v981_v36 }
  0xcb   : > { %vm990_vm8 = vmor %vm988_vm6, %vm989_vm7 }
  0xcc   : > { %v985_v38 = vsub.f32 1.0, %v984_v34 }
  0xce   : > { %v986_v40 = vmul.f32 %v4483_v30, %v985_v38 }
  0xd0   : > { %v987_v42 = vadd.f32 %v4483_v30, %v986_v40 }
  0xd2   : > { %v991_v45 = vsel %vm990_vm8, %v4483_v30, %v987_v42  ;;  %vm2959_vm8 = vcmask 1041409  }
  0xd3   : > { %v996_v48 = vsel %vm993_vm9, %v995_v46, %v991_v45 }
  0xd4   : > { %v1021_v6 = vsub.f32 1.0, %v996_v48  ;;  %v1039_v8 = vmul.f32 %v1035_v58, %v996_v48 }
 0x11e   : > { %v1001_v37 = vpop.permute.xlu0 %1000 }
 0x11f   : > { %v1006_v39 = vmul.f32 %v1001_v37, %v981_v36 }
 0x121   : > { %1010 = vrot.lane.b32.xlu1 %v1006_v39, %s4627_s12  ;;  %v1117_v39 = vld [vmem:[%s6137_s18 + $0x10] sm:$0xff] }
 0x126   : > { %v1003_v47 = vpop.permute.xlu0 %1002 }
 0x127   : > { %v1007_v49 = vmul.f32 %v1003_v47, %v996_v48 }
 0x129   : > { %1049 = vperm.xlu1 %4467, %v915_v41   ;;  %v1121_v41 = vld [vmem:[%s6137_s18 + $0x30] sm:$0xff] }
 0x12e   : > { %v4826_v63 = vpop.permute.xlu0 %1044 }
 0x131   : > { %1012 = vrot.lane.b32.xlu1 %v1007_v49, %s4627_s12  ;;  %v1118_v49 = vld [vmem:[%s6137_s18 + $0x18] sm:$0xff] }
 0x193   : > { %v1011_v50 = vpop.permute.xlu1 %1010 }
 0x194   : > { %v1016_v51 = vadd.f32 %v1011_v50, %v956_v13 }
 0x196   : > { %4484 = vtanh.f32 %v1016_v51  ;;  %v1122_v51 = vld [vmem:[%s6137_s18 + $0x38] sm:$0xff] }
 0x19b   : > { %v4822_v52 = vpop.permute.xlu1 %1049 }
 0x19c   : > { %v4485_v53 = vpop.eup %4484 }
 0x19d   : > { %1024 = vrot.lane.b32.xlu2 %v4485_v53, %s6120_s26 }
 0x1a3   : > { %v1013_v54 = vpop.permute.xlu1 %1012 }
 0x1a4   : > { %v1017_v55 = vadd.f32 %v1013_v54, %v957_v16  ;;  %v1196_v16 = vld [vmem:[%s6104_s13 + $0x8] sm:$0xff] }
 0x1a5   : > { %1261 = vmatpush.msra.mxu0 %v1196_v16  ;;  %4432 = vmatpush.msra.mxu2 %v1196_v16 }
 0x1a6   : > { %4486 = vtanh.f32 %v1017_v55  ;;  %4433 = vmatpush.msra.mxu3 %v1196_v16 }
 0x1a7   : > { %1262 = vmatpush.msra.mxu0 %v1195_v17  ;;  %4434 = vmatpush.msra.mxu2 %v1195_v17 }
 0x1a8   : > { %4435 = vmatpush.msra.mxu3 %v1195_v17 }
 0x1ac   : > { %v4487_v56 = vpop.eup %4486 }
 0x1ad   : > { %1026 = vrot.lane.b32.xlu1 %v4487_v56, %s6120_s26 }
 0x1f7   : > { %v1025_v60 = vpop.permute.xlu2 %1024 }
 0x1f8   : > { %v1030_v62 = vmul.f32 %v1025_v60, %v1020_v59  ;;  %v1123_v60 = vld [vmem:[%s6137_s18 + $0x40] sm:$0xff] }
 0x1fa   : > { %v1040_v0 = vadd.f32 %v1038_v61, %v1030_v62 }
 0x1fc   : > { %v4829_v1 = vmul.f32 %v4826_v63, %v1040_v0 }
 0x1fe   : > { %1060 = vrot.lane.b32.xlu2 %v4829_v1, %s6120_s26 }
 0x21f   : > { %v1027_v7 = vpop.permute.xlu1 %1026 }
 0x220   : > { %v1031_v9 = vmul.f32 %v1027_v7, %v1021_v6 }
 0x222   : > { %v1041_v10 = vadd.f32 %v1039_v8, %v1031_v9  ;;  %v1124_v8 = vld [vmem:[%s6137_s18 + $0x48] sm:$0xff] }
 0x224   : > { %v4846_v11 = vmul.f32 %v4822_v52, %v1041_v10  ;;  %v1129_v10 = vld [vmem:[%s6137_s18 + $0x70] sm:$0xff] }
 0x226   : > { %1062 = vrot.lane.b32.xlu0 %v4846_v11, %s6120_s26 }
 0x258   : > { %v1061_v12 = vpop.permute.xlu2 %1060 }
 0x259   : > { %4332 = vmatmul.msk.f32.vlgmr.msrb.gmra.mxu1 %vm926_vm1, %v1061_v12 }
 0x298   : > { %v1063_v13 = vpop.permute.xlu0 %1062 }
 0x299   : > { %4333 = vmatmul.msk.f32.gmra.mxu1 %vm926_vm1, %v1063_v13 }
 0x2d6   : > { %v4864_v18 = vpop.f32.mrf.mxu1 }
 0x2d7   : > { %v1131_v20 = vperm.slane %v4864_v18, 0  ;;  %v1104_v21 = vrot.slane %v4864_v18, 4  ;;  %v1101_v22 = vrot.slane %v4864_v18, 1  ;;  %v1105_v26 = vrot.slane %v4864_v18, 5 }
 0x2d8   : > { %v1102_v33 = vrot.slane %v4864_v18, 2  ;;  %v1106_v36 = vrot.slane %v4864_v18, 6  ;;  %v1103_v43 = vrot.slane %v4864_v18, 3  ;;  %v1107_v46 = vrot.slane %v4864_v18, 7 }
 0x2d9   : > { %v1163_v24 = vadd.f32 %v1131_v20, %v1115_v19  ;;  %v1135_v25 = vperm.slane %v1104_v21, 0  ;;  %v1132_v28 = vperm.slane %v1101_v22, 0  ;;  %v1136_v30 = vperm.slane %v1105_v26, 0  ;;  %v1125_v20 = vld [vmem:[%s6137_s18 + $0x50] sm:$0xff]  ;;  %v1130_v22 = vld [vmem:[%s6137_s18 + $0x78] sm:$0xff] }
 0x2da   : > { %v1133_v38 = vperm.slane %v1102_v33, 0  ;;  %v1137_v40 = vperm.slane %v1106_v36, 0  ;;  %v1134_v48 = vperm.slane %v1103_v43, 0  ;;  %v1138_v50 = vperm.slane %v1107_v46, 0 }
 0x2db   : > { %4488 = vtanh.f32 %v1163_v24  ;;  %v1167_v27 = vadd.f32 %v1135_v25, %v1119_v23  ;;  %v1164_v32 = vadd.f32 %v1132_v28, %v1116_v29  ;;  %v1168_v35 = vadd.f32 %v1136_v30, %v1120_v31  ;;  %v1126_v29 = vld [vmem:[%s6137_s18 + $0x58] sm:$0xff] }
 0x2dc   : > { %v1165_v42 = vadd.f32 %v1133_v38, %v1117_v39  ;;  %v1169_v45 = vadd.f32 %v1137_v40, %v1121_v41  ;;  %v1166_v53 = vadd.f32 %v1134_v48, %v1118_v49  ;;  %v1170_v55 = vadd.f32 %v1138_v50, %v1122_v51 }
 0x2dd   : > { %4490 = vtanh.f32 %v1167_v27 }
 0x2de   : > { %4492 = vtanh.f32 %v1164_v32 }
 0x2df   : > { %4494 = vtanh.f32 %v1168_v35  ;;  %v1127_v35 = vld [vmem:[%s6137_s18 + $0x60] sm:$0xff] }
 0x2e0   : > { %4496 = vtanh.f32 %v1165_v42 }
 0x2e1   : > { %v4489_v34 = vpop.eup %4488  ;;  %4498 = vtanh.f32 %v1169_v45 }
 0x2e2   : > { %4334 = vmatmul.msk.f32.vlgmr.msra.gmra.mxu0 %vm926_vm1, %v4489_v34  ;;  %4500 = vtanh.f32 %v1166_v53 }
 0x2e3   : > { %v4491_v37 = vpop.eup %4490  ;;  %4502 = vtanh.f32 %v1170_v55 }
 0x2e4   : > { %4338 = vmatmul.msk.f32.vlgmr.msra.gmra.mxu2 %vm926_vm1, %v4491_v37  ;;  %v4493_v44 = vpop.eup %4492 }
 0x2e5   : > { %v4495_v47 = vpop.eup %4494 }
 0x2e6   : > { %v4497_v54 = vpop.eup %4496 }
 0x2e7   : > { %v4499_v56 = vpop.eup %4498 }
 0x2e8   : > { %v4501_v57 = vpop.eup %4500 }
 0x2e9   : > { %v4503_v58 = vpop.eup %4502 }
 0x2ea   : > { %4335 = vmatmul.msk.f32.gmra.mxu0 %vm926_vm1, %v4493_v44 }
 0x2ec   : > { %4339 = vmatmul.msk.f32.gmra.mxu2 %vm926_vm1, %v4495_v47 }
 0x2f2   : > { %4336 = vmatmul.msk.f32.gmra.mxu0 %vm926_vm1, %v4497_v54 }
 0x2f4   : > { %4340 = vmatmul.msk.f32.gmra.mxu2 %vm926_vm1, %v4499_v56 }
 0x2fa   : > { %4337 = vmatmul.msk.f32.gmra.mxu0 %vm926_vm1, %v4501_v57 }
 0x2fc   : > { %4341 = vmatmul.msk.f32.gmra.mxu2 %vm926_vm1, %v4503_v58 }
 0x316   : > { %v4906_v59 = vpop.f32.mrf.mxu1 }
 0x317   : > { %v1139_v61 = vperm.slane %v4906_v59, 0  ;;  %v1112_v62 = vrot.slane %v4906_v59, 5  ;;  %v1108_v0 = vrot.slane %v4906_v59, 1  ;;  %v1113_v5 = vrot.slane %v4906_v59, 6 }
 0x318   : > { %v1109_v13 = vrot.slane %v4906_v59, 2  ;;  %v1114_v16 = vrot.slane %v4906_v59, 7  ;;  %v1110_v24 = vrot.slane %v4906_v59, 3  ;;  %v1111_v31 = vrot.slane %v4906_v59, 4 }
 0x319   : > { %v1171_v3 = vadd.f32 %v1139_v61, %v1123_v60  ;;  %v1144_v4 = vperm.slane %v1112_v62, 0  ;;  %v1140_v7 = vperm.slane %v1108_v0, 0  ;;  %v1145_v9 = vperm.slane %v1113_v5, 0 }
 0x31a   : > { %v1141_v19 = vperm.slane %v1109_v13, 0  ;;  %v1146_v21 = vperm.slane %v1114_v16, 0  ;;  %v1142_v28 = vperm.slane %v1110_v24, 0  ;;  %v1143_v34 = vperm.slane %v1111_v31, 0 }
 0x31b   : > { %4504 = vtanh.f32 %v1171_v3  ;;  %v1176_v6 = vadd.f32 %v1144_v4, %v1128_v2  ;;  %v1172_v12 = vadd.f32 %v1140_v7, %v1124_v8  ;;  %v1177_v15 = vadd.f32 %v1145_v9, %v1129_v10 }
 0x31c   : > { %v1173_v23 = vadd.f32 %v1141_v19, %v1125_v20  ;;  %v1178_v26 = vadd.f32 %v1146_v21, %v1130_v22  ;;  %v1174_v30 = vadd.f32 %v1142_v28, %v1126_v29  ;;  %v1175_v36 = vadd.f32 %v1143_v34, %v1127_v35 }
 0x31d   : > { %4506 = vtanh.f32 %v1176_v6 }
 0x31e   : > { %4508 = vtanh.f32 %v1172_v12 }
 0x31f   : > { %4510 = vtanh.f32 %v1177_v15 }
 0x320   : > { %4512 = vtanh.f32 %v1173_v23 }
 0x321   : > { %v4505_v14 = vpop.eup %4504  ;;  %4514 = vtanh.f32 %v1178_v26 }
 0x322   : > { %4342 = vmatmul.msk.f32.gmra.mxu2 %vm926_vm1, %v4505_v14  ;;  %4516 = vtanh.f32 %v1174_v30  ;;  %v4994_v30 = vld [vmem:[%s6138_s2] sm:$0xff]  ;;  %s6159_s2 = sld [smem:[#allocation14_spill]] }
 0x323   : > { %v4507_v17 = vpop.eup %4506  ;;  %4518 = vtanh.f32 %v1175_v36  ;;  %v1923_v31 = vrot.slane %v4994_v30, 1 }
 0x324   : > { %4347 = vmatmul.msk.f32.vlgmr.msra.gmra.mxu3 %vm926_vm1, %v4507_v17  ;;  %v4509_v25 = vpop.eup %4508 }
 0x325   : > { %v4511_v27 = vpop.eup %4510 }
 0x326   : > { %v4513_v32 = vpop.eup %4512 }
 0x327   : > { %v4515_v33 = vpop.eup %4514 }
 0x328   : > { %v4517_v37 = vpop.eup %4516 }
 0x329   : > { %v4519_v38 = vpop.eup %4518 }
 0x32a   : > { %4343 = vmatmul.msk.f32.gmra.mxu2 %vm926_vm1, %v4509_v25 }
 0x32c   : > { %4348 = vmatmul.msk.f32.gmra.mxu3 %vm926_vm1, %v4511_v27 }
 0x332   : > { %4344 = vmatmul.msk.f32.gmra.mxu2 %vm926_vm1, %v4513_v32 }
 0x334   : > { %4349 = vmatmul.msk.f32.gmra.mxu3 %vm926_vm1, %v4515_v33 }
 0x33a   : > { %4345 = vmatmul.msk.f32.gmra.mxu2 %vm926_vm1, %v4517_v37  ;;  %v1938_v37 = vperm.slane %v1923_v31, 0  ;;  %v1925_v31 = vrot.slane %v4994_v30, 3 }
 0x342   : > { %4346 = vmatmul.msk.f32.gmra.mxu2 %vm926_vm1, %v4519_v38 }
 0x35f   : > { %v1264_v39 = vpop.f32.mrf.mxu0 }
 0x360   : > { %1312 = vxpose.xlu1.b32.start.end [1/1] (short) (narrow) %v1264_v39, 8 }
 0x367   : > { %v1267_v40 = vpop.f32.mrf.mxu0  ;;  %v1276_v41 = vpop.f32.mrf.mxu2 }
 0x368   : > { %1344 = vxpose.xlu2.b32.start.end [1/1] (short) (narrow) %v1267_v40, 8  ;;  %1440 = vxpose.xlu0.b32.start.end [1/1] (short) (narrow) %v1276_v41, 8 }
 0x36f   : > { %v1270_v42 = vpop.f32.mrf.mxu0  ;;  %v1279_v43 = vpop.f32.mrf.mxu2 }
 0x370   : > { %1472 = vxpose.xlu2.b32.start.end [1/1] (short) (narrow) %v1279_v43, 8  ;;  %1376 = vxpose.xlu0.b32.start.end [1/1] (short) (narrow) %v1270_v42, 8  ;;  %v1926_v42 = vrot.slane %v4994_v30, 4 }
 0x377   : > { %v1273_v44 = vpop.f32.mrf.mxu0  ;;  %v1282_v45 = vpop.f32.mrf.mxu2 }
 0x378   : > { %1408 = vxpose.xlu2.b32.start.end [1/1] (short) (narrow) %v1273_v44, 8  ;;  %1504 = vxpose.xlu0.b32.start.end [1/1] (short) (narrow) %v1282_v45, 8  ;;  %v1941_v45 = vperm.slane %v1926_v42, 0 }
 0x37f   : > { %v1285_v47 = vpop.f32.mrf.mxu2 }
 0x3a5   : > { %v1288_v49 = vpop.f32.mrf.mxu2 }
 0x3a7   : > { %v1303_v46 = vpop.f32.mrf.mxu3 }
 0x3a8   : > { %1728 = vxpose.xlu1.b32.start.end [1/1] (short) (narrow) %v1303_v46, 8 }
 0x3ad   : > { %v1291_v51 = vpop.f32.mrf.mxu2 }
 0x3af   : > { %v1306_v48 = vpop.f32.mrf.mxu3 }
 0x3b0   : > { %1536 = vxpose.xlu1.b32.start.end [1/1] (short) (narrow) %v1285_v47, 8  ;;  %1760 = vxpose.xlu2.b32.start.end [1/1] (short) (narrow) %v1306_v48, 8  ;;  %v5010_v47 = vld [vmem:[%s6139_s0 + $0x8] sm:$0xff] }
 0x3b1   : > { %v1935_v42 = vrot.slane %v5010_v47, 6 }
 0x3b5   : > { %v1294_v62 = vpop.f32.mrf.mxu2 }
 0x3b7   : > { %v1309_v50 = vpop.f32.mrf.mxu3 }
 0x3b8   : > { %1568 = vxpose.xlu2.b32.start.end [1/1] (short) (narrow) %v1288_v49, 8  ;;  %1792 = vxpose.xlu0.b32.start.end [1/1] (short) (narrow) %v1309_v50, 8  ;;  %v1937_v50 = vperm.slane %v4994_v30, 0 }
 0x3bd   : > { %v1297_v3 = vpop.f32.mrf.mxu2 }
 0x3c0   : > { %1600 = vxpose.xlu0.b32.start.end [1/1] (short) (narrow) %v1291_v51, 8 }
 0x3c5   : > { %v1300_v4 = vpop.f32.mrf.mxu2 }
 0x401   : > { %v1360_v57 = vpop.trf.xlu2 }
 0x402   : > { %v1828_v58 = vsel %vm1824_vm10, %v1360_v57, -inf }
 0x404   : > { %v4948_v53 = vpop.trf.xlu1 }
 0x405   : > { %v1825_v54 = vsel %vm1824_vm10, %v4948_v53, -inf }
 0x409   : > { %v4959_v5 = vpop.trf.xlu2 }
 0x40a   : > { %v1840_v6 = vsel %vm1824_vm10, %v4959_v5, -inf }
 0x40c   : > { %v1456_v55 = vpop.trf.xlu0 }
 0x40d   : > { %v1837_v56 = vsel %vm1824_vm10, %v1456_v55, -inf }
 0x410   : > { %1826 = vmax.xlane.f32.xlu1 %v1825_v54  ;;  %v1934_v54 = vrot.slane %v5010_v47, 5 }
 0x411   : > { %v4963_v7 = vpop.trf.xlu2 }
 0x412   : > { %v1834_v8 = vsel %vm1824_vm10, %v4963_v7, -inf }
 0x414   : > { %v4954_v60 = vpop.trf.xlu0 }
 0x415   : > { %v1831_v61 = vsel %vm1824_vm10, %v4954_v60, -inf }
 0x418   : > { %1838 = vmax.xlane.f32.xlu1 %v1837_v56 }
 0x41c   : > { %v4967_v9 = vpop.trf.xlu0 }
 0x41d   : > { %v1843_v13 = vsel %vm1824_vm10, %v4967_v9, -inf }
 0x429   : > { %1829 = vmax.xlane.f32.xlu2 %v1828_v58 }
 0x431   : > { %1832 = vmax.xlane.f32.xlu0 %v1831_v61 }
 0x449   : > { %v4969_v10 = vpop.trf.xlu2 }
 0x44a   : > { %v1867_v12 = vsel %vm1824_vm10, %v4969_v10, -inf }
 0x44c   : > { %v1744_v0 = vpop.trf.xlu1 }
 0x44d   : > { %v1864_v2 = vsel %vm1824_vm10, %v1744_v0, -inf }
 0x44e   : > { %1865 = vmax.xlane.f32.xlu0 %v1864_v2 }
 0x451   : > { %v4977_v15 = vpop.trf.xlu2 }
 0x452   : > { %1664 = vxpose.xlu2.b32.start.end [1/1] (short) (narrow) %v1297_v3, 8  ;;  %1632 = vxpose.xlu1.b32.start.end [1/1] (short) (narrow) %v1294_v62, 8  ;;  %v1849_v16 = vsel %vm1824_vm10, %v4977_v15, -inf }
 0x454   : > { %v4985_v20 = vpop.trf.xlu1 }
 0x455   : > { %v1846_v28 = vsel %vm1824_vm10, %v4985_v20, -inf }
 0x45c   : > { %v4975_v14 = vpop.trf.xlu0 }
 0x45d   : > { %v1870_v17 = vsel %vm1824_vm10, %v4975_v14, -inf }
 0x464   : > { %v4983_v19 = vpop.trf.xlu0 }
 0x465   : > { %v1852_v21 = vsel %vm1824_vm10, %v4983_v19, -inf }
 0x477   : > { %1696 = vxpose.xlu0.b32.start.end [1/1] (short) (narrow) %v1300_v4, 8  ;;  %v1924_v4 = vrot.slane %v4994_v30, 2 }
 0x483   : > { %v1827_v22 = vpop.xlane.xlu1 %1826 }
 0x484   : > { %v1873_v32 = vsub.f32 %v4948_v53, %v1827_v22 }
 0x486   : > { %v1889_v39 = vmul.f32 1.442695, %v1873_v32 }
 0x48b   : > { %v1839_v26 = vpop.xlane.xlu1 %1838 }
 0x48c   : > { %v1877_v29 = vsub.f32 %v1456_v55, %v1839_v26 }
 0x48e   : > { %v1897_v33 = vmul.f32 1.442695, %v1877_v29 }
 0x49c   : > { %v1830_v23 = vpop.xlane.xlu2 %1829 }
 0x49d   : > { %v1874_v24 = vsub.f32 %v1360_v57, %v1830_v23  ;;  %v1950_v57 = vperm.slane %v1934_v54, 0  ;;  %v1927_v23 = vrot.slane %v4994_v30, 5 }
 0x49f   : > { %v1891_v25 = vmul.f32 1.442695, %v1874_v24 }
 0x4a1   : > { %4520 = vpow2.f32 %v1891_v25  ;;  %v1942_v25 = vperm.slane %v1927_v23, 0 }
 0x4a2   : > { %4522 = vpow2.f32 %v1897_v33  ;;  %v1940_v33 = vperm.slane %v1925_v31, 0 }
 0x4a3   : > { %4524 = vpow2.f32 %v1889_v39 }
 0x4a4   : > { %v1833_v27 = vpop.xlane.xlu0 %1832 }
 0x4a5   : > { %v1875_v2 = vsub.f32 %v4954_v60, %v1833_v27 }
 0x4a7   : > { %v4521_v38 = vpop.eup %4520  ;;  %v1893_v3 = vmul.f32 1.442695, %v1875_v2 }
 0x4a8   : > { %v5002_v41 = vmul.f32 %v4521_v38, %v1938_v37  ;;  %v4523_v46 = vpop.eup %4522 }
 0x4a9   : > { %v4525_v51 = vpop.eup %4524  ;;  %v5017_v53 = vmul.f32 %v4523_v46, %v1941_v45 }
 0x4aa   : > { %v1988_v44 = vsel %vm1824_vm10, %v5002_v41, 0.0  ;;  %v5020_v55 = vmul.f32 %v4525_v51, %v1937_v50 }
 0x4ab   : > { %v1997_v56 = vsel %vm1824_vm10, %v5017_v53, 0.0 }
 0x4ac   : > { %v1985_v61 = vsel %vm1824_vm10, %v5020_v55, 0.0 }
 0x4b2   : > { %1841 = vmax.xlane.f32.xlu1 %v1840_v6 }
 0x4ba   : > { %1835 = vmax.xlane.f32.xlu1 %v1834_v8 }
 0x4c1   : > { %v1866_v35 = vpop.xlane.xlu0 %1865 }
 0x4c2   : > { %1868 = vmax.xlane.f32.xlu1 %v1867_v12  ;;  %v1886_v40 = vsub.f32 %v1744_v0, %v1866_v35  ;;  %v1939_v12 = vperm.slane %v1924_v4, 0 }
 0x4c3   : > { %1844 = vmax.xlane.f32.xlu2 %v1843_v13 }
 0x4c4   : > { %v1915_v43 = vmul.f32 1.442695, %v1886_v40 }
 0x4c6   : > { %4526 = vpow2.f32 %v1915_v43  ;;  %v1928_v43 = vrot.slane %v4994_v30, 6 }
 0x4c7   : > { %4528 = vpow2.f32 %v1893_v3 }
 0x4ca   : > { %1850 = vmax.xlane.f32.xlu1 %v1849_v16 }
 0x4cb   : > { %1871 = vmax.xlane.f32.xlu2 %v1870_v17 }
 0x4cc   : > { %v4527_v58 = vpop.eup %4526 }
 0x4cd   : > { %v5026_v62 = vmul.f32 %v4527_v58, %v1950_v57  ;;  %v4529_v13 = vpop.eup %4528 }
 0x4ce   : > { %v5036_v16 = vmul.f32 %v4529_v13, %v1939_v12 }
 0x4cf   : > { %v2024_v0 = vsel %vm1824_vm10, %v5026_v62, 0.0 }
 0x4d0   : > { %v1991_v17 = vsel %vm1824_vm10, %v5036_v16, 0.0 }
 0x4d3   : > { %1853 = vmax.xlane.f32.xlu2 %v1852_v21 }
 0x4e8   : > { %1847 = vmax.xlane.f32.xlu0 %v1846_v28 }
 0x4eb   : > { %v4998_v34 = vpop.trf.xlu2 }
 0x4ec   : > { %v1858_v36 = vsel %vm1824_vm10, %v4998_v34, -inf }
 0x4ed   : > { %1859 = vmax.xlane.f32.xlu1 %v1858_v36 }
 0x4f5   : > { %1989 = vadd.xlane.f32.xlu1 %v1988_v44 }
 0x4f6   : > { %v5012_v48 = vpop.trf.xlu1 }
 0x4f7   : > { %v1855_v49 = vsel %vm1824_vm10, %v5012_v48, -inf }
 0x4f8   : > { %1856 = vmax.xlane.f32.xlu0 %v1855_v49  ;;  %v1943_v49 = vperm.slane %v1928_v43, 0 }
 0x4fd   : > { %1998 = vadd.xlane.f32.xlu1 %v1997_v56 }
 0x500   : > { %1986 = vadd.xlane.f32.xlu0 %v1985_v61 }
 0x505   : > { %2025 = vadd.xlane.f32.xlu1 %v2024_v0  ;;  %v1936_v0 = vrot.slane %v5010_v47, 7 }
 0x507   : > { %v1952_v4 = vperm.slane %v1936_v0, 0 }
 0x51b   : > { %v5032_v6 = vpop.trf.xlu0 }
 0x51c   : > { %v1861_v8 = vsel %vm1824_vm10, %v5032_v6, -inf }
 0x51d   : > { %1862 = vmax.xlane.f32.xlu2 %v1861_v8 }
 0x525   : > { %1992 = vadd.xlane.f32.xlu2 %v1991_v17  ;;  %v1842_v21 = vpop.xlane.xlu1 %1841 }
 0x526   : > { %v1878_v60 = vsub.f32 %v4959_v5, %v1842_v21 }
 0x528   : > { %v1899_v22 = vmul.f32 1.442695, %v1878_v60 }
 0x52a   : > { %4530 = vpow2.f32 %v1899_v22  ;;  %v1930_v22 = vrot.slane %v5010_v47, 1 }
 0x52d   : > { %v1836_v24 = vpop.xlane.xlu1 %1835 }
 0x52e   : > { %v1876_v26 = vsub.f32 %v4963_v7, %v1836_v24 }
 0x530   : > { %v4531_v27 = vpop.eup %4530  ;;  %v1895_v28 = vmul.f32 1.442695, %v1876_v26 }
 0x531   : > { %v5043_v29 = vmul.f32 %v4531_v27, %v1942_v25  ;;  %v1946_v25 = vperm.slane %v1930_v22, 0 }
 0x532   : > { %4532 = vpow2.f32 %v1895_v28 }
 0x533   : > { %v2000_v32 = vsel %vm1824_vm10, %v5043_v29, 0.0 }
 0x534   : > { %2001 = vadd.xlane.f32.xlu2 %v2000_v32 }
 0x535   : > { %v1869_v5 = vpop.xlane.xlu1 %1868 }
 0x536   : > { %v1887_v35 = vsub.f32 %v4969_v10, %v1869_v5  ;;  %v1845_v36 = vpop.xlane.xlu2 %1844  ;;  %v1951_v10 = vperm.slane %v1935_v42, 0  ;;  %v1929_v5 = vrot.slane %v4994_v30, 7 }
 0x537   : > { %v1879_v37 = vsub.f32 %v4967_v9, %v1845_v36 }
 0x538   : > { %v4533_v38 = vpop.eup %4532  ;;  %v1917_v7 = vmul.f32 1.442695, %v1887_v35 }
 0x539   : > { %v1901_v39 = vmul.f32 1.442695, %v1879_v37  ;;  %v5050_v40 = vmul.f32 %v4533_v38, %v1940_v33  ;;  %v1944_v37 = vperm.slane %v1929_v5, 0  ;;  %v1932_v38 = vrot.slane %v5010_v47, 3 }
 0x53a   : > { %4534 = vpow2.f32 %v1917_v7  ;;  %v2425_v7 = vlaneseq }
 0x53b   : > { %4536 = vpow2.f32 %v1901_v39  ;;  %v1994_v44 = vsel %vm1824_vm10, %v5050_v40, 0.0 }
 0x53c   : > { %1995 = vadd.xlane.f32.xlu0 %v1994_v44  ;;  %v2426_v43 = vshrl.u32 %v2425_v7, 7 }
 0x53d   : > { %v1851_v45 = vpop.xlane.xlu1 %1850 }
 0x53e   : > { %v1881_v46 = vsub.f32 %v4977_v15, %v1851_v45  ;;  %v1872_v9 = vpop.xlane.xlu2 %1871  ;;  %v1948_v45 = vperm.slane %v1932_v38, 0  ;;  %4469 = vset.pattern.permute.xlu2 %v2426_v43  ;;  %4468 = vset.pattern.permute.xlu1 %v2426_v43 }
 0x53f   : > { %v1888_v50 = vsub.f32 %v4975_v14, %v1872_v9  ;;  %v1945_v14 = vperm.slane %v5010_v47, 0  ;;  %4470 = vset.pattern.permute.xlu0 %v2426_v43 }
 0x540   : > { %v4535_v51 = vpop.eup %4534  ;;  %v1905_v54 = vmul.f32 1.442695, %v1881_v46 }
 0x541   : > { %v4537_v56 = vpop.eup %4536  ;;  %v1919_v57 = vmul.f32 1.442695, %v1888_v50  ;;  %v5058_v58 = vmul.f32 %v4535_v51, %v1951_v10  ;;  %v1931_v51 = vrot.slane %v5010_v47, 2 }
 0x542   : > { %4538 = vpow2.f32 %v1905_v54  ;;  %v5060_v61 = vmul.f32 %v4537_v56, %v1943_v49 }
 0x543   : > { %4540 = vpow2.f32 %v1919_v57  ;;  %v2027_v2 = vsel %vm1824_vm10, %v5058_v58, 0.0  ;;  %v1947_v0 = vperm.slane %v1931_v51, 0 }
 0x544   : > { %2028 = vadd.xlane.f32.xlu2 %v2027_v2  ;;  %v2003_v15 = vsel %vm1824_vm10, %v5060_v61, 0.0  ;;  %v4630_v2 = vmov 4.0  }
 0x545   : > { %2004 = vadd.xlane.f32.xlu0 %v2003_v15 }
 0x546   : > { %v1854_v3 = vpop.xlane.xlu2 %1853 }
 0x547   : > { %v1882_v8 = vsub.f32 %v4983_v19, %v1854_v3 }
 0x548   : > { %v4539_v12 = vpop.eup %4538 }
 0x549   : > { %v4541_v13 = vpop.eup %4540  ;;  %v1907_v17 = vmul.f32 1.442695, %v1882_v8  ;;  %v5069_v21 = vmul.f32 %v4539_v12, %v1945_v14 }
 0x54a   : > { %v5071_v60 = vmul.f32 %v4541_v13, %v1952_v4 }
 0x54b   : > { %4542 = vpow2.f32 %v1907_v17  ;;  %v2009_v23 = vsel %vm1824_vm10, %v5069_v21, 0.0 }
 0x54c   : > { %2010 = vadd.xlane.f32.xlu2 %v2009_v23  ;;  %v2030_v24 = vsel %vm1824_vm10, %v5071_v60, 0.0 }
 0x54d   : > { %2031 = vadd.xlane.f32.xlu0 %v2030_v24 }
 0x551   : > { %v4543_v19 = vpop.eup %4542 }
 0x552   : > { %v5078_v26 = vmul.f32 %v4543_v19, %v1946_v25 }
 0x554   : > { %v2012_v27 = vsel %vm1824_vm10, %v5078_v26, 0.0 }
 0x555   : > { %2013 = vadd.xlane.f32.xlu0 %v2012_v27 }
 0x55b   : > { %v1848_v28 = vpop.xlane.xlu0 %1847 }
 0x55c   : > { %v1880_v31 = vsub.f32 %v4985_v20, %v1848_v28 }
 0x55e   : > { %v1903_v32 = vmul.f32 1.442695, %v1880_v31 }
 0x560   : > { %4544 = vpow2.f32 %v1903_v32  ;;  %v1860_v33 = vpop.xlane.xlu1 %1859 }
 0x561   : > { %v1884_v35 = vsub.f32 %v4998_v34, %v1860_v33 }
 0x563   : > { %v1911_v36 = vmul.f32 1.442695, %v1884_v35 }
 0x565   : > { %4546 = vpow2.f32 %v1911_v36 }
 0x566   : > { %v4545_v39 = vpop.eup %4544 }
 0x567   : > { %v5086_v42 = vmul.f32 %v4545_v39, %v1944_v37 }
 0x568   : > { %v1990_v44 = vpop.xlane.xlu1 %1989 }
 0x569   : > { %v2034_v20 = vadd.f32 1e-20, %v1990_v44  ;;  %v2006_v30 = vsel %vm1824_vm10, %v5086_v42, 0.0 }
 0x56a   : > { %2007 = vadd.xlane.f32.xlu1 %v2006_v30 }
 0x56b   : > { %v4547_v34 = vpop.eup %4546  ;;  %4548 = vrcp.f32 %v2034_v20  ;;  %v1857_v10 = vpop.xlane.xlu0 %1856  ;;  %v2075_v3 = vand.u32 2147483648, %v2034_v20  ;;  %v2073_v8 = vand.u32 2147483647, %v2034_v20  ;;  %vm2069_vm12 = vweird.f32 %v2034_v20 }
 0x56c   : > { %v1883_v46 = vsub.f32 %v5012_v48, %v1857_v10  ;;  %v5091_v9 = vmul.f32 %v4547_v34, %v1948_v45 }
 0x56d   : > { %v2076_v23 = vor.u32 1.1754944e-38, %v2075_v3  ;;  %vm2074_vm14 = vcmp.eq.f32.partialorder %v2073_v8, 8.507059e+37 }
 0x56e   : > { %v1909_v49 = vmul.f32 1.442695, %v1883_v46  ;;  %v2018_v50 = vsel %vm1824_vm10, %v5091_v9, 0.0 }
 0x56f   : > { %2019 = vadd.xlane.f32.xlu2 %v2018_v50 }
 0x570   : > { %4550 = vpow2.f32 %v1909_v49  ;;  %v1999_v12 = vpop.xlane.xlu1 %1998 }
 0x571   : > { %v4549_v54 = vpop.eup %4548  ;;  %4552 = vrcp.f32 %v4630_v2  ;;  %v5100_v19 = vadd.f32 1e-20, %v1999_v12 }
 0x572   : > { %v2065_v56 = vmul.f32 %v4549_v54, %v2034_v20  ;;  %vm2070_vm11 = vweird.f32 %v4549_v54 }
 0x573   : > { %v1987_v57 = vpop.xlane.xlu0 %1986  ;;  %vm2071_vm13 = vmor %vm2069_vm12, %vm2070_vm11  ;;  %vm2114_vm6 = vweird.f32 %v5100_v19 }
 0x574   : > { %v2066_v15 = vsub.f32 1.0, %v2065_v56  ;;  %v2033_v14 = vadd.f32 1e-20, %v1987_v57 }
 0x576   : > { %v4551_v48 = vpop.eup %4550  ;;  %v2067_v4 = vmul.f32 %v4549_v54, %v2066_v15  ;;  %4554 = vrcp.f32 %v2033_v14  ;;  %v2060_v37 = vand.u32 2147483648, %v2033_v14  ;;  %v2058_v39 = vand.u32 2147483647, %v2033_v14 }
 0x577   : > { %v5096_v13 = vmul.f32 %v4551_v48, %v1947_v0  ;;  %v4553_v22 = vpop.eup %4552  ;;  %4556 = vrcp.f32 %v5100_v19  ;;  %vm2054_vm0 = vweird.f32 %v2033_v14 }
 0x578   : > { %v2068_v17 = vadd.f32 %v4549_v54, %v2067_v4  ;;  %v2402_v31 = vmul.f32 4.0, %v4553_v22  ;;  %vm2059_vm3 = vcmp.eq.f32.partialorder %v2058_v39, 8.507059e+37  ;;  %vm2406_vm4 = vweird.f32 %v4553_v22 }
 0x579   : > { %v2015_v24 = vsel %vm1824_vm10, %v5096_v13, 0.0 }
 0x57a   : > { %v2072_v25 = vsel %vm2071_vm13, %v4549_v54, %v2068_v17  ;;  %2016 = vadd.xlane.f32.xlu1 %v2015_v24  ;;  %v2403_v38 = vsub.f32 1.0, %v2402_v31 }
 0x57b   : > { %v2077_v27 = vsel %vm2074_vm14, %v2076_v23, %v2072_v25 }
 0x57c   : > { %v4555_v28 = vpop.eup %4554  ;;  %v5103_v32 = vmul.f32 %v2077_v27, %v5002_v41  ;;  %v2061_v41 = vor.u32 1.1754944e-38, %v2060_v37  ;;  %v2404_v34 = vmul.f32 %v4553_v22, %v2403_v38  ;;  %v3924_v27 = vrot.slane %v4826_v63, 1 }
 0x57d   : > { %v2050_v5 = vmul.f32 %v4555_v28, %v2033_v14  ;;  %vm2055_vm15 = vweird.f32 %v4555_v28  ;;  %v4557_v20 = vpop.eup %4556 }
 0x57e   : > { %v2296_v33 = vsel %vm1824_vm10, %v5103_v32, 0.0  ;;  %vm2056_vm2 = vmor %vm2054_vm0, %vm2055_vm15  ;;  %v2110_v49 = vmul.f32 %v4557_v20, %v5100_v19  ;;  %v2405_v56 = vadd.f32 %v4553_v22, %v2404_v34  ;;  %vm2115_vm5 = vweird.f32 %v4557_v20 }
 0x57f   : > { %v2051_v35 = vsub.f32 1.0, %v2050_v5  ;;  %v2297_v36 = vrot.slane %v2296_v33, 4  ;;  %vm2116_vm7 = vmor %vm2114_vm6, %vm2115_vm5 }
 0x580   : > { %v2111_v2 = vsub.f32 1.0, %v2110_v49  ;;  %v5111_v3 = vsel %vm2406_vm4, %v4553_v22, %v2405_v56  ;;  %v2120_v22 = vand.u32 2147483648, %v5100_v19 }
 0x581   : > { %v2052_v7 = vmul.f32 %v4555_v28, %v2051_v35  ;;  %v2298_v43 = vadd.f32 %v2297_v36, %v2296_v33  ;;  %v1933_v35 = vrot.slane %v5010_v47, 4  ;;  %v2026_v36 = vpop.xlane.xlu1 %2025 }
 0x582   : > { %v2112_v4 = vmul.f32 %v4557_v20, %v2111_v2 }
 0x583   : > { %v2053_v44 = vadd.f32 %v4555_v28, %v2052_v7  ;;  %v2299_v45 = vrot.slane %v2298_v43, 2  ;;  %v2121_v7 = vor.u32 1.1754944e-38, %v2120_v22 }
 0x585   : > { %v2057_v30 = vsel %vm2056_vm2, %v4555_v28, %v2053_v44  ;;  %v2300_v10 = vadd.f32 %v2299_v45, %v2298_v43  ;;  %v2113_v28 = vadd.f32 %v4557_v20, %v2112_v4  ;;  %v1949_v45 = vperm.slane %v1933_v35, 0 }
 0x586   : > { %v2062_v46 = vsel %vm2059_vm3, %v2061_v41, %v2057_v30  ;;  %v5122_v41 = vadd.f32 1e-20, %v2026_v36  ;;  %v2690_v30 = vperm.slane %v5103_v32, 1 }
 0x587   : > { %v2063_v50 = vmul.f32 %v2062_v46, %v5020_v55  ;;  %v2301_v51 = vrot.slane %v2300_v10, 1  ;;  %v2117_v38 = vsel %vm2116_vm7, %v4557_v20, %v2113_v28 }
 0x588   : > { %vm2249_vm13 = vweird.f32 %v5122_v41 }
 0x589   : > { %v2289_v54 = vsel %vm1824_vm10, %v2063_v50, 0.0  ;;  %v3064_v57 = vperm.slane %v2063_v50, 2  ;;  %v2302_v14 = vadd.f32 %v2301_v51, %v2300_v10  ;;  %v2683_v23 = vperm.slane %v2063_v50, 1 }
 0x58a   : > { %v2290_v0 = vrot.slane %v2289_v54, 4  ;;  %v3383_v24 = vperm.slane %v2063_v50, 3  ;;  %v2424_v47 = vperm.slane %v2063_v50, 0 }
 0x58b   : > { %3069 = vperm.xlu2 %4469, %v3064_v57   ;;  %v2409_v17 = vmul.f32 %v5111_v3, %v2302_v14 }
 0x58c   : > { %v2291_v15 = vadd.f32 %v2290_v0, %v2289_v54 }
 0x58d   : > { %v3953_v33 = vmul.f32 %v3924_v27, %v2409_v17 }
 0x58e   : > { %v2292_v48 = vrot.slane %v2291_v15, 2 }
 0x58f   : > { %v3984_v44 = vrot.slane %v3953_v33, 7 }
 0x590   : > { %v2293_v8 = vadd.f32 %v2292_v48, %v2291_v15  ;;  %v1863_v12 = vpop.xlane.xlu2 %1862 }
 0x591   : > { %v1885_v55 = vsub.f32 %v5032_v6, %v1863_v12  ;;  %v2118_v6 = vand.u32 2147483647, %v5100_v19 }
 0x592   : > { %v2294_v25 = vrot.slane %v2293_v8, 1 }
 0x593   : > { %v1913_v31 = vmul.f32 1.442695, %v1885_v55  ;;  %2688 = vperm.xlu1 %4468, %v2683_v23   ;;  %3388 = vperm.xlu2 %4469, %v3383_v24   ;;  %vm2119_vm9 = vcmp.eq.f32.partialorder %v2118_v6, 8.507059e+37  ;;  %v3071_v24 = vperm.slane %v5103_v32, 2 }
 0x594   : > { %v2295_v5 = vadd.f32 %v2294_v25, %v2293_v8  ;;  %v2122_v19 = vsel %vm2119_vm9, %v2121_v7, %v2117_v38  ;;  %v2255_v38 = vand.u32 2147483648, %v5122_v41 }
 0x595   : > { %4558 = vpow2.f32 %v1913_v31  ;;  %v5132_v49 = vmul.f32 %v2122_v19, %v5017_v53  ;;  %v2431_v53 = vperm.slane %v5103_v32, 0 }
 0x596   : > { %v2408_v37 = vmul.f32 %v5111_v3, %v2295_v5  ;;  %4560 = vrcp.f32 %v5122_v41 }
 0x597   : > { %v2711_v51 = vperm.slane %v5132_v49, 1  ;;  %v2452_v25 = vperm.slane %v5132_v49, 0 }
 0x598   : > { %v3952_v39 = vmul.f32 %v2408_v37, %v4826_v63  ;;  %v1993_v43 = vpop.xlane.xlu2 %1992  ;;  %v2253_v37 = vand.u32 2147483647, %v5122_v41 }
 0x599   : > { %v2035_v34 = vadd.f32 1e-20, %v1993_v43  ;;  %v3092_v43 = vperm.slane %v5132_v49, 2 }
 0x59a   : > { %v5126_v10 = vsel %vm2959_vm8, %v3984_v44, %v3952_v39  ;;  %v3390_v39 = vperm.slane %v5103_v32, 3  ;;  %vm2254_vm7 = vcmp.eq.f32.partialorder %v2253_v37, 8.507059e+37 }
 0x59b   : > { %v4559_v46 = vpop.eup %4558  ;;  %2429 = vperm.xlu1 %4468, %v2424_v47   ;;  %2695 = vperm.xlu2 %4469, %v2690_v30   ;;  %4562 = vrcp.f32 %v2035_v34  ;;  %v2088_v22 = vand.u32 2147483647, %v2035_v34  ;;  %v2090_v5 = vand.u32 2147483648, %v2035_v34  ;;  %vm2084_vm15 = vweird.f32 %v2035_v34 }
 0x59c   : > { %v5128_v20 = vmul.f32 %v4559_v46, %v1949_v45  ;;  %v5137_v54 = vpop.eup %4560 }
 0x59d   : > { %v2245_v57 = vmul.f32 %v5137_v54, %v5122_v41  ;;  %vm2250_vm11 = vweird.f32 %v5137_v54  ;;  %vm2089_vm4 = vcmp.eq.f32.partialorder %v2088_v22, 8.507059e+37  ;;  %v2091_v19 = vor.u32 1.1754944e-38, %v2090_v5 }
 0x59e   : > { %v2021_v50 = vsel %vm1824_vm10, %v5128_v20, 0.0  ;;  %vm5151_vm14 = vmor %vm2249_vm13, %vm2250_vm11 }
 0x59f   : > { %2022 = vadd.xlane.f32.xlu0 %v2021_v50  ;;  %v2246_v14 = vsub.f32 1.0, %v2245_v57  ;;  %v2256_v57 = vor.u32 1.1754944e-38, %v2255_v38 }
 0x5a1   : > { %v4563_v56 = vpop.eup %4562  ;;  %v2247_v4 = vmul.f32 %v5137_v54, %v2246_v14 }
 0x5a2   : > { %v2080_v0 = vmul.f32 %v4563_v56, %v2035_v34  ;;  %vm2085_vm12 = vweird.f32 %v4563_v56 }
 0x5a3   : > { %2716 = vperm.xlu2 %4469, %v2711_v51   ;;  %v2248_v27 = vadd.f32 %v5137_v54, %v2247_v4  ;;  %vm5158_vm2 = vmor %vm2084_vm15, %vm2085_vm12 }
 0x5a4   : > { %v2081_v48 = vsub.f32 1.0, %v2080_v0 }
 0x5a5   : > { %v2252_v44 = vsel %vm5151_vm14, %v5137_v54, %v2248_v27 }
 0x5a6   : > { %v2082_v8 = vmul.f32 %v4563_v56, %v2081_v48 }
 0x5a7   : > { %v2002_v2 = vpop.xlane.xlu2 %2001 }
 0x5a8   : > { %v2038_v15 = vadd.f32 1e-20, %v2002_v2  ;;  %v2083_v28 = vadd.f32 %v4563_v56, %v2082_v8 }
 0x5aa   : > { %4564 = vrcp.f32 %v2038_v15  ;;  %v2135_v33 = vand.u32 2147483648, %v2038_v15  ;;  %v2133_v36 = vand.u32 2147483647, %v2038_v15  ;;  %v2087_v45 = vsel %vm5158_vm2, %v4563_v56, %v2083_v28 }
 0x5ab   : > { %2436 = vperm.xlu2 %4469, %v2431_v53   ;;  %vm2129_vm3 = vweird.f32 %v2038_v15  ;;  %v2092_v0 = vsel %vm2089_vm4, %v2091_v19, %v2087_v45 }
 0x5ac   : > { %v2136_v34 = vor.u32 1.1754944e-38, %v2135_v33  ;;  %vm2134_vm6 = vcmp.eq.f32.partialorder %v2133_v36, 8.507059e+37  ;;  %v5179_v4 = vmul.f32 %v2092_v0, %v5036_v16 }
 0x5af   : > { %v1996_v12 = vpop.xlane.xlu0 %1995 }
 0x5b0   : > { %v4565_v17 = vpop.eup %4564  ;;  %v5143_v55 = vadd.f32 1e-20, %v1996_v12 }
 0x5b1   : > { %v2125_v23 = vmul.f32 %v4565_v17, %v2038_v15  ;;  %vm2130_vm0 = vweird.f32 %v4565_v17  ;;  %v2257_v15 = vsel %vm2254_vm7, %v2256_v57, %v2252_v44  ;;  %vm2961_vm7 = vcmask 1042434  }
 0x5b2   : > { %4566 = vrcp.f32 %v5143_v55  ;;  %vm2131_vm5 = vmor %vm2129_vm3, %vm2130_vm0  ;;  %v2105_v48 = vand.u32 2147483648, %v5143_v55  ;;  %v2103_v8 = vand.u32 2147483647, %v5143_v55  ;;  %vm2099_vm11 = vweird.f32 %v5143_v55 }
 0x5b3   : > { %v2126_v31 = vsub.f32 1.0, %v2125_v23  ;;  %3076 = vperm.xlu0 %4470, %v3071_v24   ;;  %2457 = vperm.xlu2 %4469, %v2452_v25   ;;  %v5188_v24 = vmul.f32 %v2257_v15, %v5026_v62  ;;  %v2303_v62 = vsel %vm1824_vm10, %v5179_v4, 0.0 }
 0x5b4   : > { %v2106_v16 = vor.u32 1.1754944e-38, %v2105_v48  ;;  %vm2104_vm13 = vcmp.eq.f32.partialorder %v2103_v8, 8.507059e+37 }
 0x5b5   : > { %v2127_v6 = vmul.f32 %v4565_v17, %v2126_v31  ;;  %v3078_v31 = vperm.slane %v5179_v4, 2  ;;  %v2774_v37 = vperm.slane %v5188_v24, 1 }
 0x5b7   : > { %v2128_v47 = vadd.f32 %v4565_v17, %v2127_v6  ;;  %v2029_v30 = vpop.xlane.xlu2 %2028 }
 0x5b8   : > { %v4567_v41 = vpop.eup %4566  ;;  %v5170_v46 = vadd.f32 1e-20, %v2029_v30  ;;  %v2005_v32 = vpop.xlane.xlu0 %2004 }
 0x5b9   : > { %v2132_v50 = vsel %vm2131_vm5, %v4565_v17, %v2128_v47  ;;  %v2095_v51 = vmul.f32 %v4567_v41, %v5143_v55  ;;  %v2039_v54 = vadd.f32 1e-20, %v2005_v32  ;;  %vm2100_vm9 = vweird.f32 %v4567_v41 }
 0x5ba   : > { %v2137_v56 = vsel %vm2134_vm6, %v2136_v34, %v2132_v50  ;;  %4568 = vrcp.f32 %v5170_v46  ;;  %vm2101_vm12 = vmor %vm2099_vm11, %vm2100_vm9  ;;  %v2317_v55 = vsel %vm1824_vm10, %v5132_v49, 0.0  ;;  %v2697_v47 = vperm.slane %v5179_v4, 1 }
 0x5bb   : > { %v2096_v2 = vsub.f32 1.0, %v2095_v51  ;;  %4570 = vrcp.f32 %v2039_v54  ;;  %3395 = vperm.xlu0 %4470, %v3390_v39   ;;  %3097 = vperm.xlu2 %4469, %v3092_v43   ;;  %v5175_v53 = vmul.f32 %v2137_v56, %v5043_v29  ;;  %v3411_v29 = vperm.slane %v5132_v49, 3 }
 0x5bc   : > { %v2318_v6 = vrot.slane %v2317_v55, 4  ;;  %v2150_v36 = vand.u32 2147483648, %v2039_v54  ;;  %v2148_v7 = vand.u32 2147483647, %v2039_v54  ;;  %v2304_v43 = vrot.slane %v2303_v62, 4 }
 0x5bd   : > { %v2097_v14 = vmul.f32 %v4567_v41, %v2096_v2  ;;  %v2718_v12 = vperm.slane %v5175_v53, 1  ;;  %vm2144_vm15 = vweird.f32 %v2039_v54  ;;  %v3099_v30 = vperm.slane %v5175_v53, 2 }
 0x5be   : > { %v2151_v45 = vor.u32 1.1754944e-38, %v2150_v36  ;;  %vm2149_vm2 = vcmp.eq.f32.partialorder %v2148_v7, 8.507059e+37  ;;  %v2305_v50 = vadd.f32 %v2304_v43, %v2303_v62  ;;  %v2270_v51 = vand.u32 2147483648, %v5170_v46 }
 0x5bf   : > { %v2098_v17 = vadd.f32 %v4567_v41, %v2097_v14  ;;  %2723 = vperm.xlu1 %4468, %v2718_v12   ;;  %vm2264_vm4 = vweird.f32 %v5170_v46  ;;  %v2515_v2 = vperm.slane %v5188_v24, 0  ;;  %v2438_v12 = vperm.slane %v5179_v4, 0 }
 0x5c0   : > { %v5184_v23 = vpop.eup %4568  ;;  %v2032_v56 = vpop.xlane.xlu0 %2031  ;;  %v2306_v48 = vrot.slane %v2305_v50, 2  ;;  %v2271_v8 = vor.u32 1.1754944e-38, %v2270_v51  ;;  %v2459_v62 = vperm.slane %v5175_v53, 0 }
 0x5c1   : > { %v4571_v25 = vpop.eup %4570  ;;  %v2102_v27 = vsel %vm2101_vm12, %v4567_v41, %v2098_v17  ;;  %v2260_v28 = vmul.f32 %v5184_v23, %v5170_v46  ;;  %v2319_v41 = vadd.f32 %v2318_v6, %v2317_v55  ;;  %vm2265_vm3 = vweird.f32 %v5184_v23 }
 0x5c2   : > { %v2140_v22 = vmul.f32 %v4571_v25, %v2039_v54  ;;  %v2107_v5 = vsel %vm2104_vm13, %v2106_v16, %v2102_v27  ;;  %vm2145_vm14 = vweird.f32 %v4571_v25  ;;  %v2268_v54 = vand.u32 2147483647, %v5170_v46  ;;  %vm2266_vm5 = vmor %vm2264_vm4, %vm2265_vm3 }
 0x5c3   : > { %v2261_v33 = vsub.f32 1.0, %v2260_v28  ;;  %3416 = vperm.xlu0 %4470, %v3411_v29   ;;  %3083 = vperm.xlu2 %4469, %v3078_v31   ;;  %v5199_v39 = vmul.f32 %v2107_v5, %v5050_v40  ;;  %vm2146_vm0 = vmor %vm2144_vm15, %vm2145_vm14  ;;  %v2320_v15 = vrot.slane %v2319_v41, 2  ;;  %v5217_v17 = vadd.f32 1e-20, %v2032_v56  ;;  %v2011_v28 = vpop.xlane.xlu2 %2010 }
 0x5c4   : > { %v2141_v35 = vsub.f32 1.0, %v2140_v22  ;;  %vm2269_vm6 = vcmp.eq.f32.partialorder %v2268_v54, 8.507059e+37  ;;  %v2307_v27 = vadd.f32 %v2306_v48, %v2305_v50  ;;  %v5225_v5 = vadd.f32 1e-20, %v2011_v28 }
 0x5c5   : > { %v2262_v49 = vmul.f32 %v5184_v23, %v2261_v33  ;;  %v2310_v34 = vsel %vm1824_vm10, %v5199_v39, 0.0  ;;  %4572 = vrcp.f32 %v5217_v17  ;;  %v2704_v55 = vperm.slane %v5199_v39, 1 }
 0x5c6   : > { %v2142_v38 = vmul.f32 %v4571_v25, %v2141_v35  ;;  %v2311_v0 = vrot.slane %v2310_v34, 4  ;;  %v2308_v33 = vrot.slane %v2307_v27, 1  ;;  %4574 = vrcp.f32 %v5225_v5 }
 0x5c7   : > { %2779 = vperm.xlu1 %4468, %v2774_v37   ;;  %v2263_v40 = vadd.f32 %v5184_v23, %v2262_v49  ;;  %v2324_v49 = vsel %vm1824_vm10, %v5175_v53, 0.0  ;;  %v3397_v54 = vperm.slane %v5179_v4, 3  ;;  %vm2279_vm9 = vweird.f32 %v5217_v17 }
 0x5c8   : > { %v2143_v44 = vadd.f32 %v4571_v25, %v2142_v38  ;;  %v2309_v38 = vadd.f32 %v2308_v33, %v2307_v27  ;;  %v2325_v50 = vrot.slane %v2324_v49, 4  ;;  %vm2963_vm12 = vcmask 1043459  }
 0x5c9   : > { %v2267_v14 = vsel %vm2266_vm5, %v5184_v23, %v2263_v40 }
 0x5ca   : > { %v2147_v19 = vsel %vm2146_vm0, %v4571_v25, %v2143_v44  ;;  %v2272_v29 = vsel %vm2269_vm6, %v2271_v8, %v2267_v14  ;;  %v2321_v25 = vadd.f32 %v2320_v15, %v2319_v41  ;;  %v2014_v44 = vpop.xlane.xlu0 %2013  ;;  %v2410_v41 = vmul.f32 %v5111_v3, %v2309_v38 }
 0x5cb   : > { %v2152_v32 = vsel %vm2149_vm2, %v2151_v45, %v2147_v19  ;;  %2702 = vperm.xlu0 %4470, %v2697_v47   ;;  %3104 = vperm.xlu2 %4469, %v3099_v30   ;;  %v5222_v31 = vmul.f32 %v2272_v29, %v5058_v58  ;;  %v5229_v36 = vpop.eup %4572  ;;  %v2445_v47 = vperm.slane %v5199_v39, 0  ;;  %v3927_v19 = vrot.slane %v4826_v63, 4 }
 0x5cc   : > { %v5212_v57 = vmul.f32 %v2152_v32, %v5060_v61  ;;  %v2312_v61 = vadd.f32 %v2311_v0, %v2310_v34  ;;  %v2322_v22 = vrot.slane %v2321_v25, 1  ;;  %v2275_v43 = vmul.f32 %v5229_v36, %v5217_v17  ;;  %v5245_v32 = vpop.eup %4574 }
 0x5cd   : > { %v2781_v6 = vperm.slane %v5222_v31, 1  ;;  %v3925_v34 = vrot.slane %v4826_v63, 2  ;;  %v5247_v51 = vadd.f32 1e-20, %v2014_v44  ;;  %v2170_v8 = vmul.f32 %v5245_v32, %v5225_v5 }
 0x5ce   : > { %v2725_v46 = vperm.slane %v5212_v57, 1  ;;  %v2313_v16 = vrot.slane %v2312_v61, 2  ;;  %v2323_v37 = vadd.f32 %v2322_v22, %v2321_v25  ;;  %v3106_v0 = vperm.slane %v5212_v57, 2 }
 0x5cf   : > { %2520 = vperm.xlu1 %4468, %v2515_v2   ;;  %v2276_v56 = vsub.f32 1.0, %v2275_v43  ;;  %v3926_v2 = vrot.slane %v4826_v63, 3  ;;  %v3954_v48 = vmul.f32 %v3925_v34, %v2410_v41  ;;  %v2331_v29 = vsel %vm1824_vm10, %v5212_v57, 0.0 }
 0x5d0   : > { %v2314_v23 = vadd.f32 %v2313_v16, %v2312_v61  ;;  %v2412_v30 = vmul.f32 %v5111_v3, %v2323_v37  ;;  %v2466_v25 = vperm.slane %v5212_v57, 0  ;;  %v3418_v22 = vperm.slane %v5175_v53, 3 }
 0x5d1   : > { %v2277_v4 = vmul.f32 %v5229_v36, %v2276_v56  ;;  %v3986_v16 = vrot.slane %v3954_v48, 6  ;;  %vm2280_vm11 = vweird.f32 %v5229_v36  ;;  %v2283_v44 = vand.u32 2147483647, %v5217_v17 }
 0x5d2   : > { %v2315_v35 = vrot.slane %v2314_v23, 1  ;;  %v3956_v14 = vmul.f32 %v3927_v19, %v2412_v30  ;;  %vm5278_vm14 = vmor %vm2279_vm9, %vm2280_vm11  ;;  %vm2965_vm0 = vcmask 1044484   ;;  %vm2175_vm5 = vweird.f32 %v5245_v32 }
 0x5d3   : > { %2443 = vperm.xlu0 %4470, %v2438_v12   ;;  %2730 = vperm.xlu2 %4469, %v2725_v46   ;;  %v2326_v46 = vadd.f32 %v2325_v50, %v2324_v49  ;;  %v3987_v49 = vsel %vm2961_vm7, %v3986_v16, %v5126_v10  ;;  %vm2284_vm4 = vcmp.eq.f32.partialorder %v2283_v44, 8.507059e+37  ;;  %v2180_v16 = vand.u32 2147483648, %v5225_v5 }
 0x5d4   : > { %v2316_v58 = vadd.f32 %v2315_v35, %v2314_v23  ;;  %v3990_v27 = vrot.slane %v3956_v14, 4  ;;  %v2171_v23 = vsub.f32 1.0, %v2170_v8  ;;  %v2332_v35 = vrot.slane %v2331_v29, 4 }
 0x5d5   : > { %v2327_v33 = vrot.slane %v2326_v46, 2  ;;  %vm2174_vm6 = vweird.f32 %v5225_v5 }
 0x5d6   : > { %v2411_v40 = vmul.f32 %v5111_v3, %v2316_v58  ;;  %v2172_v43 = vmul.f32 %v5245_v32, %v2171_v23  ;;  %v2333_v19 = vadd.f32 %v2332_v35, %v2331_v29  ;;  %vm5318_vm9 = vmor %vm2174_vm6, %vm2175_vm5 }
 0x5d7   : > { %2709 = vperm.xlu1 %4468, %v2704_v55   ;;  %v2328_v8 = vadd.f32 %v2327_v33, %v2326_v46  ;;  %v2178_v46 = vand.u32 2147483647, %v5225_v5 }
 0x5d8   : > { %v3955_v12 = vmul.f32 %v3926_v2, %v2411_v40  ;;  %v2334_v29 = vrot.slane %v2333_v19, 2 }
 0x5d9   : > { %vm2179_vm11 = vcmp.eq.f32.partialorder %v2178_v46, 8.507059e+37 }
 0x5da   : > { %v3988_v55 = vrot.slane %v3955_v12, 5  ;;  %v3404_v12 = vperm.slane %v5199_v39, 3  ;;  %v2335_v35 = vadd.f32 %v2334_v29, %v2333_v19 }
 0x5db   : > { %2464 = vperm.xlu0 %4470, %v2459_v62   ;;  %2786 = vperm.xlu2 %4469, %v2781_v6   ;;  %v2278_v6 = vadd.f32 %v5229_v36, %v2277_v4 }
 0x5dc   : > { %v3989_v30 = vsel %vm2963_vm12, %v3988_v55, %v3987_v49  ;;  %v2195_v49 = vand.u32 2147483648, %v5247_v51  ;;  %v2336_v41 = vrot.slane %v2335_v35, 1 }
 0x5dd   : > { %v2008_v7 = vpop.xlane.xlu1 %2007 }
 0x5de   : > { %v5236_v45 = vadd.f32 1e-20, %v2008_v7  ;;  %v2196_v29 = vor.u32 1.1754944e-38, %v2195_v49  ;;  %v3930_v49 = vrot.slane %v4826_v63, 7 }
 0x5df   : > { %2450 = vperm.xlu1 %4468, %v2445_v47   ;;  %v2285_v47 = vand.u32 2147483648, %v5217_v17  ;;  %v3085_v17 = vperm.slane %v5199_v39, 2  ;;  %v2329_v39 = vrot.slane %v2328_v8, 1 }
 0x5e0   : > { %4576 = vrcp.f32 %v5236_v45  ;;  %v2165_v37 = vand.u32 2147483648, %v5236_v45  ;;  %v2163_v53 = vand.u32 2147483647, %v5236_v45  ;;  %vm2159_vm15 = vweird.f32 %v5236_v45 }
 0x5e1   : > { %4578 = vrcp.f32 %v5247_v51  ;;  %v2286_v2 = vor.u32 1.1754944e-38, %v2285_v47 }
 0x5e2   : > { %v2020_v15 = vpop.xlane.xlu2 %2019  ;;  %v2166_v50 = vor.u32 1.1754944e-38, %v2165_v37  ;;  %vm2164_vm3 = vcmp.eq.f32.partialorder %v2163_v53, 8.507059e+37  ;;  %v2181_v37 = vor.u32 1.1754944e-38, %v2180_v16  ;;  %v2330_v53 = vadd.f32 %v2329_v39, %v2328_v8 }
 0x5e3   : > { %3402 = vperm.xlu0 %4470, %v3397_v54   ;;  %3111 = vperm.xlu2 %4469, %v3106_v0   ;;  %v2282_v0 = vsel %vm5278_vm14, %v5229_v36, %v2278_v6  ;;  %v5295_v48 = vadd.f32 1e-20, %v2020_v15  ;;  %vm2189_vm14 = vweird.f32 %v5247_v51  ;;  %v3928_v16 = vrot.slane %v4826_v63, 5 }
 0x5e4   : > { %v2287_v36 = vsel %vm2284_vm4, %v2286_v2, %v2282_v0 }
 0x5e5   : > { %v5314_v23 = vmul.f32 %v2287_v36, %v5071_v60  ;;  %v2337_v36 = vadd.f32 %v2336_v41, %v2335_v35 }
 0x5e6   : > { %v4577_v61 = vpop.eup %4576 }
 0x5e7   : > { %v2155_v28 = vmul.f32 %v4577_v61, %v5236_v45  ;;  %2471 = vperm.xlu1 %4468, %v2466_v25   ;;  %v5267_v58 = vpop.eup %4578  ;;  %vm2160_vm13 = vweird.f32 %v4577_v61  ;;  %v5293_v45 = vsel %vm2965_vm0, %v3990_v27, %v3989_v30  ;;  %v2173_v27 = vadd.f32 %v5245_v32, %v2172_v43 }
 0x5e8   : > { %v2185_v10 = vmul.f32 %v5267_v58, %v5247_v51  ;;  %vm2161_vm2 = vmor %vm2159_vm15, %vm2160_vm13  ;;  %v2788_v44 = vperm.slane %v5314_v23, 1  ;;  %vm2190_vm13 = vweird.f32 %v5267_v58  ;;  %vm2568_vm15 = vcmask 130048  }
 0x5e9   : > { %v2156_v62 = vsub.f32 1.0, %v2155_v28  ;;  %v2177_v5 = vsel %vm5318_vm9, %v5245_v32, %v2173_v27 }
 0x5ea   : > { %v5265_v38 = vpop.permute.xlu2 %3069  ;;  %v2182_v32 = vsel %vm2179_vm11, %v2181_v37, %v2177_v5  ;;  %v4350_v5 = vld [vmem:[%s6148_s24 + $0x80] sm:$0xff] }
 0x5eb   : > { %v2157_v7 = vmul.f32 %v4577_v61, %v2156_v62  ;;  %3423 = vperm.xlu0 %4470, %v3418_v22   ;;  %v2522_v62 = vperm.slane %v5222_v31, 0  ;;  %v5349_v8 = vmul.f32 %v2182_v32, %v5069_v21  ;;  %v2414_v22 = vmul.f32 %v5111_v3, %v2337_v36 }
 0x5ed   : > { %v2158_v34 = vadd.f32 %v4577_v61, %v2157_v7  ;;  %v2017_v40 = vpop.xlane.xlu1 %2016  ;;  %v4351_v7 = vld [vmem:[%s6148_s24 + $0x88] sm:$0xff]  ;;  %v2480_v39 = vperm.slane %v5349_v8, 0 }
 0x5ee   : > { %v5286_v54 = vadd.f32 1e-20, %v2017_v40 }
 0x5ef   : > { %v2162_v56 = vsel %vm2161_vm2, %v4577_v61, %v2158_v34  ;;  %3090 = vperm.xlu1 %4468, %v3085_v17   ;;  %v2186_v61 = vsub.f32 1.0, %v2185_v10  ;;  %v2193_v17 = vand.u32 2147483647, %v5247_v51  ;;  %vm5341_vm2 = vmor %vm2189_vm14, %vm2190_vm13  ;;  %vm2967_vm13 = vcmask 1045509  }
 0x5f0   : > { %v2167_v14 = vsel %vm2164_vm3, %v2166_v50, %v2162_v56  ;;  %4580 = vrcp.f32 %v5286_v54  ;;  %vm2204_vm5 = vweird.f32 %v5286_v54  ;;  %vm2219_vm14 = vweird.f32 %v5295_v48 }
 0x5f1   : > { %v5300_v4 = vmul.f32 %v2167_v14, %v5086_v42  ;;  %4582 = vrcp.f32 %v5295_v48  ;;  %v2187_v33 = vmul.f32 %v5267_v58, %v2186_v61  ;;  %v3425_v61 = vperm.slane %v5212_v57, 3 }
 0x5f2   : > { %v5302_v25 = vpop.permute.xlu2 %3388  ;;  %vm2194_vm3 = vcmp.eq.f32.partialorder %v2193_v17, 8.507059e+37  ;;  %v2739_v57 = vperm.slane %v5349_v8, 1  ;;  %v2537_v17 = vld [vmem:[%s6148_s24 + $0x8] sm:$0xff] }
 0x5f3   : > { %3409 = vperm.xlu0 %4470, %v3404_v12   ;;  %v2473_v15 = vperm.slane %v5300_v4, 0  ;;  %v2338_v42 = vsel %vm1824_vm10, %v5300_v4, 0.0  ;;  %v2188_v30 = vadd.f32 %v5267_v58, %v2187_v33  ;;  %v3113_v50 = vperm.slane %v5300_v4, 2 }
 0x5f4   : > { %v2339_v28 = vrot.slane %v2338_v42, 4  ;;  %v2413_v12 = vmul.f32 %v5111_v3, %v2330_v53  ;;  %v2208_v53 = vand.u32 2147483647, %v5286_v54  ;;  %v2732_v41 = vperm.slane %v5300_v4, 1 }
 0x5f5   : > { %2478 = vperm.xlu2 %4469, %v2473_v15   ;;  %v2192_v51 = vsel %vm5341_vm2, %v5267_v58, %v2188_v30  ;;  %vm2969_vm2 = vcmask 1046534  }
 0x5f6   : > { %v5316_v55 = vpop.eup %4580  ;;  %v2340_v60 = vadd.f32 %v2339_v28, %v2338_v42  ;;  %v2197_v21 = vsel %vm2194_vm3, %v2196_v29, %v2192_v51  ;;  %v3957_v28 = vmul.f32 %v3928_v16, %v2413_v12  ;;  %vm2209_vm11 = vcmp.eq.f32.partialorder %v2208_v53, 8.507059e+37 }
 0x5f7   : > { %v2200_v6 = vmul.f32 %v5316_v55, %v5286_v54  ;;  %2527 = vperm.xlu1 %4468, %v2522_v62   ;;  %v5334_v47 = vpop.eup %4582  ;;  %vm2205_vm4 = vweird.f32 %v5316_v55  ;;  %v5372_v37 = vmul.f32 %v2197_v21, %v5078_v26  ;;  %v2225_v16 = vand.u32 2147483648, %v5295_v48 }
 0x5f8   : > { %v2341_v43 = vrot.slane %v2340_v60, 2  ;;  %v2215_v56 = vmul.f32 %v5334_v47, %v5295_v48  ;;  %vm5380_vm6 = vmor %vm2204_vm5, %vm2205_vm4  ;;  %vm2220_vm9 = vweird.f32 %v5334_v47  ;;  %v2529_v21 = vperm.slane %v5314_v23, 0 }
 0x5f9   : > { %v2201_v34 = vsub.f32 1.0, %v2200_v6  ;;  %v3929_v6 = vrot.slane %v4826_v63, 6  ;;  %v2746_v0 = vperm.slane %v5372_v37, 1  ;;  %vm5402_vm3 = vmor %vm2219_vm14, %vm2220_vm9  ;;  %vm2971_vm4 = vcmask 1047559  }
 0x5fa   : > { %v2696_v19 = vpop.permute.xlu2 %2695  ;;  %v2342_v40 = vadd.f32 %v2341_v43, %v2340_v60  ;;  %v2216_v42 = vsub.f32 1.0, %v2215_v56  ;;  %v2210_v60 = vand.u32 2147483648, %v5286_v54  ;;  %vm4014_vm5 = vcmask 64512  }
 0x5fb   : > { %v2813_v10 = vmul.f32 %v4351_v7, %v2696_v19  ;;  %2793 = vperm.xlu0 %4470, %v2788_v44   ;;  %v2202_v27 = vmul.f32 %v5316_v55, %v2201_v34  ;;  %v3992_v44 = vrot.slane %v3957_v28, 3  ;;  %v3958_v32 = vmul.f32 %v3929_v6, %v2414_v22 }
 0x5fc   : > { %v2343_v2 = vrot.slane %v2342_v40, 1  ;;  %v2217_v7 = vmul.f32 %v5334_v47, %v2216_v42 }
 0x5fd   : > { %v2835_v14 = vsel %vm2568_vm15, %v2813_v10, 0.0  ;;  %3118 = vperm.xlu2 %4469, %v3113_v50   ;;  %v2203_v33 = vadd.f32 %v5316_v55, %v2202_v27  ;;  %v2211_v10 = vor.u32 1.1754944e-38, %v2210_v60  ;;  %v2536_v27 = vld [vmem:[%s6148_s24] sm:$0xff]  ;;  %v3993_v42 = vsel %vm2967_vm13, %v3992_v44, %v5293_v45 }
 0x5fe   : > { %v2344_v15 = vadd.f32 %v2343_v2, %v2342_v40  ;;  %v2836_v46 = vrot.slane %v2835_v14, 4  ;;  %v3120_v40 = vperm.slane %v5349_v8, 2  ;;  %v2218_v56 = vadd.f32 %v5334_v47, %v2217_v7 }
 0x5ff   : > { %3430 = vperm.xlu1 %4468, %v3425_v61   ;;  %v2207_v19 = vsel %vm5380_vm6, %v5316_v55, %v2203_v33  ;;  %v3994_v2 = vrot.slane %v3958_v32, 2 }
 0x600   : > { %v2415_v35 = vmul.f32 %v5111_v3, %v2344_v15  ;;  %v2837_v62 = vadd.f32 %v2836_v46, %v2835_v14  ;;  %v2212_v14 = vsel %vm2209_vm11, %v2211_v10, %v2207_v19  ;;  %v2223_v46 = vand.u32 2147483647, %v5295_v48  ;;  %v4392_v15 = vld [vmem:[%s6148_s24 + $0x180] sm:$0xff] }
 0x601   : > { %v5416_v48 = vmul.f32 %v2212_v14, %v5096_v13  ;;  %v3127_v13 = vperm.slane %v5372_v37, 2 }
 0x602   : > { %v5360_v58 = vpop.permute.xlu2 %2716  ;;  %v3959_v54 = vmul.f32 %v3930_v49, %v2415_v35  ;;  %v2838_v34 = vrot.slane %v2837_v62, 2  ;;  %vm2224_vm6 = vcmp.eq.f32.partialorder %v2223_v46, 8.507059e+37  ;;  %v2345_v46 = vsel %vm1824_vm10, %v5349_v8, 0.0 }
 0x603   : > { %2485 = vperm.xlu0 %4470, %v2480_v39   ;;  %v2222_v39 = vsel %vm5402_vm3, %v5334_v47, %v2218_v56  ;;  %v2226_v47 = vor.u32 1.1754944e-38, %v2225_v16 }
 0x604   : > { %v3996_v51 = vrot.slane %v3959_v54, 1  ;;  %v2839_v36 = vadd.f32 %v2838_v34, %v2837_v62  ;;  %v3995_v62 = vsel %vm2969_vm2, %v3994_v2, %v3993_v42  ;;  %v2352_v2 = vsel %vm1824_vm10, %v5372_v37, 0.0 }
 0x605   : > { %2744 = vperm.xlu2 %4469, %v2739_v57   ;;  %v2689_v43 = vpop.permute.xlu1 %2688  ;;  %v2380_v42 = vsel %vm1824_vm10, %v5188_v24, 0.0 }
 0x606   : > { %v2812_v26 = vmul.f32 %v4350_v5, %v2689_v43  ;;  %v2840_v5 = vrot.slane %v2839_v36, 1  ;;  %v3997_v6 = vsel %vm2971_vm4, %v3996_v51, %v3995_v62  ;;  %v2227_v43 = vsel %vm2224_vm6, %v2226_v47, %v2222_v39 }
 0x607   : > { %2737 = vperm.xlu1 %4468, %v2732_v41   ;;  %4015 = vst.msk [vmem:[%s4782_s29] sm:$0xff] %vm4014_vm5, %v3997_v6  ;;  %v2387_v39 = vsel %vm1824_vm10, %v5222_v31, 0.0  ;;  %v3512_v62 = vmul.f32 %v4392_v15, %v5302_v25 }
 0x608   : > { %v2828_v50 = vsel %vm2568_vm15, %v2812_v26, 0.0  ;;  %v3134_v26 = vperm.slane %v5416_v48, 2  ;;  %v2841_v41 = vadd.f32 %v2840_v5, %v2839_v36  ;;  %v2346_v5 = vrot.slane %v2345_v46, 4 }
 0x609   : > { %v2829_v55 = vrot.slane %v2828_v50, 4 }
 0x60a   : > { %v2437_v12 = vpop.permute.xlu2 %2436 }
 0x60b   : > { %v2830_v61 = vadd.f32 %v2829_v55, %v2828_v50  ;;  %v2553_v29 = vmul.f32 %v2537_v17, %v2437_v12  ;;  %2751 = vperm.xlu0 %4470, %v2746_v0   ;;  %v5431_v17 = vmul.f32 %v2227_v43, %v5091_v9  ;;  %v3432_v0 = vperm.slane %v5300_v4, 3 }
 0x60c   : > { %v2359_v12 = vsel %vm1824_vm10, %v5416_v48, 0.0  ;;  %v2353_v9 = vrot.slane %v2352_v2, 4  ;;  %v2388_v43 = vrot.slane %v2387_v39, 4 }
 0x60d   : > { %v2831_v28 = vrot.slane %v2830_v61, 2  ;;  %v2576_v22 = vsel %vm2568_vm15, %v2553_v29, 0.0  ;;  %3125 = vperm.xlu2 %4469, %v3120_v40   ;;  %v2430_v57 = vpop.permute.xlu1 %2429  ;;  %v2501_v51 = vperm.slane %v5431_v17, 0  ;;  %v2760_v4 = vperm.slane %v5431_v17, 1 }
 0x60e   : > { %v2577_v33 = vrot.slane %v2576_v22, 4  ;;  %v2552_v35 = vmul.f32 %v2536_v27, %v2430_v57 }
 0x60f   : > { %v2832_v45 = vadd.f32 %v2831_v28, %v2830_v61  ;;  %2534 = vperm.xlu1 %4468, %v2529_v21   ;;  %v2360_v21 = vrot.slane %v2359_v12, 4 }
 0x610   : > { %v2578_v60 = vadd.f32 %v2577_v33, %v2576_v22  ;;  %v2569_v7 = vsel %vm2568_vm15, %v2552_v35, 0.0  ;;  %v2394_v22 = vsel %vm1824_vm10, %v5314_v23, 0.0  ;;  %v2366_v33 = vsel %vm1824_vm10, %v5431_v17, 0.0 }
 0x611   : > { %v2833_v53 = vrot.slane %v2832_v45, 1  ;;  %v2570_v49 = vrot.slane %v2569_v7, 4  ;;  %v3439_v35 = vperm.slane %v5349_v8, 3  ;;  %v2347_v8 = vadd.f32 %v2346_v5, %v2345_v46 }
 0x612   : > { %v2579_v44 = vrot.slane %v2578_v60, 2  ;;  %v2023_v32 = vpop.xlane.xlu0 %2022  ;;  %v5424_v30 = vpop.permute.xlu2 %2457 }
 0x613   : > { %v2834_v19 = vadd.f32 %v2833_v53, %v2832_v45  ;;  %v2571_v54 = vadd.f32 %v2570_v49, %v2569_v7  ;;  %v2045_v34 = vadd.f32 1e-20, %v2023_v32  ;;  %3132 = vperm.xlu0 %4470, %v3127_v13   ;;  %v2354_v45 = vadd.f32 %v2353_v9, %v2352_v2 }
 0x614   : > { %v2580_v40 = vadd.f32 %v2579_v44, %v2578_v60  ;;  %v2361_v7 = vadd.f32 %v2360_v21, %v2359_v12  ;;  %v2381_v53 = vrot.slane %v2380_v42, 4  ;;  %v2367_v49 = vrot.slane %v2366_v33, 4 }
 0x615   : > { %v5428_v10 = vsel %vm2959_vm8, %v2841_v41, %v2834_v19  ;;  %v2572_v50 = vrot.slane %v2571_v54, 2  ;;  %4584 = vrcp.f32 %v2045_v34  ;;  %3139 = vperm.xlu2 %4469, %v3134_v26   ;;  %v2240_v6 = vand.u32 2147483648, %v2045_v34 }
 0x616   : > { %v2581_v56 = vrot.slane %v2580_v40, 1  ;;  %v2238_v60 = vand.u32 2147483647, %v2045_v34  ;;  %v3141_v13 = vperm.slane %v5431_v17, 2  ;;  %v2395_v44 = vrot.slane %v2394_v22, 4 }
 0x617   : > { %v2573_v55 = vadd.f32 %v2572_v50, %v2571_v54  ;;  %3437 = vperm.xlu1 %4468, %v3432_v0   ;;  %vm2234_vm11 = vweird.f32 %v2045_v34  ;;  %v2355_v25 = vrot.slane %v2354_v45, 2  ;;  %v2241_v41 = vor.u32 1.1754944e-38, %v2240_v6 }
 0x618   : > { %v2582_v29 = vadd.f32 %v2581_v56, %v2580_v40  ;;  %v3446_v19 = vperm.slane %v5372_v37, 3  ;;  %v3528_v54 = vsel %vm2568_vm15, %v3512_v62, 0.0  ;;  %vm2239_vm3 = vcmp.eq.f32.partialorder %v2238_v60, 8.507059e+37 }
 0x619   : > { %v2574_v14 = vrot.slane %v2573_v55, 1  ;;  %v2362_v50 = vrot.slane %v2361_v7, 2  ;;  %v2368_v56 = vadd.f32 %v2367_v49, %v2366_v33  ;;  %v2389_v2 = vadd.f32 %v2388_v43, %v2387_v39 }
 0x61a   : > { %v5439_v36 = vpop.permute.xlu2 %3097  ;;  %v2396_v9 = vadd.f32 %v2395_v44, %v2394_v22  ;;  %v4393_v22 = vld [vmem:[%s6148_s24 + $0x188] sm:$0xff]  ;;  %v3155_v33 = vperm.slane %v5188_v24, 2  ;;  %v2753_v49 = vperm.slane %v5416_v48, 1 }
 0x61b   : > { %v4585_v61 = vpop.eup %4584  ;;  %v2575_v27 = vadd.f32 %v2574_v14, %v2573_v55  ;;  %2506 = vperm.xlu0 %4470, %v2501_v51   ;;  %v2487_v14 = vperm.slane %v5372_v37, 0  ;;  %v3529_v51 = vrot.slane %v3528_v54, 4  ;;  %v2369_v15 = vrot.slane %v2368_v56, 2 }
 0x61c   : > { %v2230_v16 = vmul.f32 %v4585_v61, %v2045_v34  ;;  %vm2235_vm9 = vweird.f32 %v4585_v61  ;;  %v2382_v34 = vadd.f32 %v2381_v53, %v2380_v42  ;;  %v2390_v42 = vrot.slane %v2389_v2, 2 }
 0x61d   : > { %v5452_v28 = vsel %vm2959_vm8, %v2582_v29, %v2575_v27  ;;  %2765 = vperm.xlu2 %4469, %v2760_v4   ;;  %vm2236_vm14 = vmor %vm2234_vm11, %vm2235_vm9  ;;  %v2356_v29 = vadd.f32 %v2355_v25, %v2354_v45  ;;  %v2348_v27 = vrot.slane %v2347_v8, 2  ;;  %v2363_v4 = vadd.f32 %v2362_v50, %v2361_v7 }
 0x61e   : > { %v2231_v57 = vsub.f32 1.0, %v2230_v16  ;;  %v2383_v21 = vrot.slane %v2382_v34, 2  ;;  %v3530_v37 = vadd.f32 %v3529_v51, %v3528_v54  ;;  %v2370_v45 = vadd.f32 %v2369_v15, %v2368_v56 }
 0x61f   : > { %3444 = vperm.xlu1 %4468, %v3439_v35   ;;  %v2397_v35 = vrot.slane %v2396_v9, 2  ;;  %v2349_v62 = vadd.f32 %v2348_v27, %v2347_v8  ;;  %v2364_v5 = vrot.slane %v2363_v4, 1  ;;  %v2391_v7 = vadd.f32 %v2390_v42, %v2389_v2 }
 0x620   : > { %v2232_v47 = vmul.f32 %v4585_v61, %v2231_v57  ;;  %v2384_v60 = vadd.f32 %v2383_v21, %v2382_v34  ;;  %v2371_v8 = vrot.slane %v2370_v45, 1  ;;  %v3460_v50 = vperm.slane %v5431_v17, 3 }
 0x621   : > { %v2350_v25 = vrot.slane %v2349_v62, 1  ;;  %v2392_v56 = vrot.slane %v2391_v7, 1  ;;  %v3931_v17 = vrot.slane %v4822_v52, 1 }
 0x622   : > { %v2233_v32 = vadd.f32 %v4585_v61, %v2232_v47  ;;  %v5461_v26 = vpop.permute.xlu2 %3083 }
 0x623   : > { %3146 = vperm.xlu0 %4470, %v3141_v13   ;;  %v3531_v13 = vrot.slane %v3530_v37, 2 }
 0x624   : > { %v2237_v40 = vsel %vm2236_vm14, %v4585_v61, %v2233_v32  ;;  %v2398_v32 = vadd.f32 %v2397_v35, %v2396_v9 }
 0x625   : > { %v2242_v0 = vsel %vm2239_vm3, %v2241_v41, %v2237_v40  ;;  %v5465_v55 = vpop.permute.xlu0 %3076  ;;  %3451 = vperm.xlu2 %4469, %v3446_v19   ;;  %v2365_v41 = vadd.f32 %v2364_v5, %v2363_v4  ;;  %v3532_v2 = vadd.f32 %v3531_v13, %v3530_v37  ;;  %v2351_v4 = vadd.f32 %v2350_v25, %v2349_v62 }
 0x626   : > { %v5469_v12 = vmul.f32 %v2242_v0, %v5128_v20  ;;  %v2357_v20 = vrot.slane %v2356_v29, 1  ;;  %v2385_v0 = vrot.slane %v2384_v60, 1  ;;  %v2399_v27 = vrot.slane %v2398_v32, 1 }
 0x627   : > { %2492 = vperm.xlu1 %4468, %v2487_v14   ;;  %v2393_v37 = vadd.f32 %v2392_v56, %v2391_v7  ;;  %v2416_v5 = vmul.f32 %v5111_v3, %v2351_v4  ;;  %v3169_v7 = vperm.slane %v5314_v23, 2  ;;  %v3934_v25 = vrot.slane %v4822_v52, 4 }
 0x628   : > { %v2373_v61 = vsel %vm1824_vm10, %v5469_v12, 0.0  ;;  %v2767_v16 = vperm.slane %v5469_v12, 1  ;;  %v2358_v43 = vadd.f32 %v2357_v20, %v2356_v29  ;;  %v3467_v9 = vperm.slane %v5469_v12, 3 }
 0x629   : > { %v2374_v46 = vrot.slane %v2373_v61, 4  ;;  %v2386_v42 = vadd.f32 %v2385_v0, %v2384_v60  ;;  %v3932_v20 = vrot.slane %v4822_v52, 2  ;;  %v2400_v62 = vadd.f32 %v2399_v27, %v2398_v32 }
 0x62a   : > { %v5474_v39 = vpop.permute.xlu2 %3104  ;;  %v2417_v14 = vmul.f32 %v5111_v3, %v2358_v43  ;;  %v2422_v13 = vmul.f32 %v5111_v3, %v2393_v37  ;;  %v4372_v43 = vld [vmem:[%s6148_s24 + $0x100] sm:$0xff]  ;;  %v3933_v32 = vrot.slane %v4822_v52, 3  ;;  %v3960_v56 = vmul.f32 %v2416_v5, %v4822_v52 }
 0x62b   : > { %v2375_v57 = vadd.f32 %v2374_v46, %v2373_v61  ;;  %2772 = vperm.xlu0 %4470, %v2767_v16   ;;  %v2418_v61 = vmul.f32 %v5111_v3, %v2365_v41  ;;  %v2372_v46 = vadd.f32 %v2371_v8, %v2370_v45  ;;  %v3935_v45 = vrot.slane %v4822_v52, 5 }
 0x62c   : > { %v2423_v0 = vmul.f32 %v5111_v3, %v2400_v62  ;;  %vm3722_vm10 = vcmask 523264  }
 0x62d   : > { %v2376_v6 = vrot.slane %v2375_v57, 2  ;;  %v3396_v47 = vpop.permute.xlu0 %3395  ;;  %3160 = vperm.xlu2 %4469, %v3155_v33   ;;  %v3961_v33 = vmul.f32 %v3931_v17, %v2417_v14 }
 0x62e   : > { %v3513_v53 = vmul.f32 %v4393_v22, %v3396_v47  ;;  %v3533_v22 = vrot.slane %v3532_v2, 1 }
 0x62f   : > { %v2377_v44 = vadd.f32 %v2376_v6, %v2375_v57  ;;  %2758 = vperm.xlu1 %4468, %v2753_v49   ;;  %v2494_v57 = vperm.slane %v5416_v48, 0  ;;  %v3962_v6 = vmul.f32 %v3932_v20, %v2418_v61  ;;  %v2421_v49 = vmul.f32 %v5111_v3, %v2386_v42 }
 0x630   : > { %v3535_v19 = vsel %vm2568_vm15, %v3513_v53, 0.0  ;;  %v2419_v53 = vmul.f32 %v5111_v3, %v2372_v46  ;;  %v3998_v8 = vrot.slane %v3961_v33, 7  ;;  %v3937_v46 = vrot.slane %v4822_v52, 7 }
 0x631   : > { %v2378_v54 = vrot.slane %v2377_v44, 1  ;;  %v3536_v40 = vrot.slane %v3535_v19, 4  ;;  %v5483_v34 = vpop.permute.xlu1 %2723  ;;  %v4000_v14 = vrot.slane %v3962_v6, 6  ;;  %v3453_v42 = vperm.slane %v5416_v48, 3 }
 0x632   : > { %v5486_v29 = vpop.permute.xlu2 %2730  ;;  %v3963_v4 = vmul.f32 %v3933_v32, %v2419_v53  ;;  %v3965_v37 = vmul.f32 %v3935_v45, %v2421_v49  ;;  %v3148_v6 = vperm.slane %v5469_v12, 2  ;;  %v4355_v45 = vld [vmem:[%s6148_s24 + $0xa8] sm:$0xff] }
 0x633   : > { %v3537_v51 = vadd.f32 %v3536_v40, %v3535_v19  ;;  %3465 = vperm.xlu0 %4470, %v3460_v50   ;;  %v2379_v15 = vadd.f32 %v2378_v54, %v2377_v44  ;;  %v4354_v44 = vld [vmem:[%s6148_s24 + $0xa0] sm:$0xff]  ;;  %v3534_v19 = vadd.f32 %v3533_v22, %v3532_v2  ;;  %v3481_v50 = vperm.slane %v5222_v31, 3 }
 0x634   : > { %v2540_v54 = vld [vmem:[%s6148_s24 + $0x20] sm:$0xff]  ;;  %v3193_v2 = vmul.f32 %v4372_v43, %v5265_v38  ;;  %v2816_v27 = vmul.f32 %v4354_v44, %v5360_v58  ;;  %v3999_v38 = vsel %vm2959_vm8, %v3998_v8, %v3960_v56  ;;  %v4002_v5 = vrot.slane %v3963_v4, 5 }
 0x635   : > { %v3538_v16 = vrot.slane %v3537_v51, 2  ;;  %v5491_v21 = vpop.permute.xlu0 %3416  ;;  %3472 = vperm.xlu2 %4469, %v3467_v9   ;;  %v2420_v47 = vmul.f32 %v5111_v3, %v2379_v15  ;;  %v4352_v9 = vld [vmem:[%s6148_s24 + $0x90] sm:$0xff]  ;;  %v3936_v3 = vrot.slane %v4822_v52, 6  ;;  %v4001_v33 = vsel %vm2961_vm7, %v4000_v14, %v3999_v38 }
 0x636   : > { %v2856_v62 = vsel %vm2568_vm15, %v2816_v27, 0.0  ;;  %v4353_v27 = vld [vmem:[%s6148_s24 + $0x98] sm:$0xff] }
 0x637   : > { %v3539_v35 = vadd.f32 %v3538_v16, %v3537_v51  ;;  %2499 = vperm.xlu1 %4468, %v2494_v57   ;;  %v3964_v51 = vmul.f32 %v3934_v25, %v2420_v47  ;;  %v2556_v16 = vmul.f32 %v2540_v54, %v5424_v30  ;;  %v3966_v20 = vmul.f32 %v3936_v3, %v2422_v13 }
 0x638   : > { %v3967_v57 = vmul.f32 %v3937_v46, %v2423_v0  ;;  %v4006_v47 = vrot.slane %v3965_v37, 3  ;;  %v2857_v13 = vrot.slane %v2856_v62, 4  ;;  %v2817_v54 = vmul.f32 %v4355_v45, %v5483_v34 }
 0x639   : > { %v3540_v60 = vrot.slane %v3539_v35, 1  ;;  %v5510_v41 = vpop.permute.xlu1 %2779  ;;  %v4004_v22 = vrot.slane %v3964_v51, 4  ;;  %v2597_v30 = vsel %vm2568_vm15, %v2556_v16, 0.0  ;;  %v4008_v44 = vrot.slane %v3966_v20, 2 }
 0x63a   : > { %v5526_v15 = vpop.permute.xlu2 %2786  ;;  %v4010_v32 = vrot.slane %v3967_v57, 1  ;;  %v2598_v25 = vrot.slane %v2597_v30, 4  ;;  %v2508_v0 = vperm.slane %v5469_v12, 0  ;;  %v4373_v12 = vld [vmem:[%s6148_s24 + $0x108] sm:$0xff]  ;;  %v3488_v3 = vperm.slane %v5314_v23, 3 }
 0x63b   : > { %v3541_v40 = vadd.f32 %v3540_v60, %v3539_v35  ;;  %3174 = vperm.xlu0 %4470, %v3169_v7   ;;  %v3209_v35 = vsel %vm2568_vm15, %v3193_v2, 0.0  ;;  %v2538_v60 = vld [vmem:[%s6148_s24 + $0x10] sm:$0xff]  ;;  %v4003_v7 = vsel %vm2963_vm12, %v4002_v5, %v4001_v33  ;;  %v2863_v46 = vsel %vm2568_vm15, %v2817_v54, 0.0 }
 0x63c   : > { %v3210_v49 = vrot.slane %v3209_v35, 4  ;;  %v4005_v43 = vsel %vm2965_vm0, %v4004_v22, %v4003_v7  ;;  %v2599_v4 = vadd.f32 %v2598_v25, %v2597_v30  ;;  %v4376_v22 = vld [vmem:[%s6148_s24 + $0x120] sm:$0xff]  ;;  %v3194_v23 = vmul.f32 %v4373_v12, %v5465_v55  ;;  %v4374_v7 = vld [vmem:[%s6148_s24 + $0x110] sm:$0xff]  ;;  %v2539_v25 = vld [vmem:[%s6148_s24 + $0x18] sm:$0xff] }
 0x63d   : > { %v5524_v61 = vsel %vm2959_vm8, %v3541_v40, %v3534_v19  ;;  %v2703_v17 = vpop.permute.xlu0 %2702  ;;  %3486 = vperm.xlu2 %4469, %v3481_v50   ;;  %v4007_v8 = vsel %vm2967_vm13, %v4006_v47, %v4005_v43 }
 0x63e   : > { %v2814_v58 = vmul.f32 %v4352_v9, %v2703_v17  ;;  %v4009_v14 = vsel %vm2969_vm2, %v4008_v44, %v4007_v8  ;;  %v3211_v51 = vadd.f32 %v3210_v49, %v3209_v35  ;;  %v2858_v9 = vadd.f32 %v2857_v13, %v2856_v62 }
 0x63f   : > { %3458 = vperm.xlu1 %4468, %v3453_v42   ;;  %v4011_v34 = vsel %vm2971_vm4, %v4010_v32, %v4009_v14  ;;  %v2600_v33 = vrot.slane %v2599_v4, 2  ;;  %v2864_v35 = vrot.slane %v2863_v46, 4  ;;  %v3216_v44 = vsel %vm2568_vm15, %v3194_v23, 0.0 }
 0x640   : > { %v2842_v53 = vsel %vm2568_vm15, %v2814_v58, 0.0  ;;  %4016 = vst.msk [vmem:[%s4782_s29 + $0x8] sm:$0xff] %vm4014_vm5, %v4011_v34  ;;  %v2541_v58 = vld [vmem:[%s6148_s24 + $0x28] sm:$0xff]  ;;  %v3212_v20 = vrot.slane %v3211_v51, 2  ;;  %v2859_v57 = vrot.slane %v2858_v9, 2  ;;  %s6155_s29 = sld [smem:[#allocation12_spill]] }
 0x641   : > { %v5538_v48 = vpop.permute.xlu1 %2520  ;;  %v2843_v40 = vrot.slane %v2842_v53, 4 }
 0x642   : > { %v5552_v56 = vpop.permute.xlu2 %3111  ;;  %v3213_v55 = vadd.f32 %v3212_v20, %v3211_v51  ;;  %v2860_v43 = vadd.f32 %v2859_v57, %v2858_v9  ;;  %v3217_v51 = vrot.slane %v3216_v44, 4 }
 0x643   : > { %3153 = vperm.xlu0 %4470, %v3148_v6   ;;  %v2844_v16 = vadd.f32 %v2843_v40, %v2842_v53  ;;  %v3162_v53 = vperm.slane %v5222_v31, 2  ;;  %v2865_v31 = vadd.f32 %v2864_v35, %v2863_v46 }
 0x644   : > { %v2861_v34 = vrot.slane %v2860_v43, 1 }
 0x645   : > { %v2444_v19 = vpop.permute.xlu0 %2443  ;;  %v2845_v30 = vrot.slane %v2844_v16, 2 }
 0x646   : > { %v2554_v50 = vmul.f32 %v2538_v60, %v2444_v19  ;;  %v3197_v60 = vmul.f32 %v4376_v22, %v5439_v36  ;;  %v2601_v19 = vadd.f32 %v2600_v33, %v2599_v4  ;;  %v3195_v36 = vmul.f32 %v4374_v7, %v5461_v26  ;;  %v4377_v4 = vld [vmem:[%s6148_s24 + $0x128] sm:$0xff]  ;;  %v4394_v7 = vld [vmem:[%s6148_s24 + $0x190] sm:$0xff] }
 0x647   : > { %2513 = vperm.xlu1 %4468, %v2508_v0   ;;  %v2846_v54 = vadd.f32 %v2845_v30, %v2844_v16  ;;  %v2866_v26 = vrot.slane %v2865_v31, 2  ;;  %v3218_v22 = vadd.f32 %v3217_v51, %v3216_v44  ;;  %v2862_v35 = vadd.f32 %v2861_v34, %v2860_v43  ;;  %v4472_v51 = vld [vmem:[%s6101_s10] ss:$0 sm:$0xff] }
 0x648   : > { %v2583_v2 = vsel %vm2568_vm15, %v2554_v50, 0.0  ;;  %v3237_v14 = vsel %vm2568_vm15, %v3197_v60, 0.0  ;;  %v2602_v57 = vrot.slane %v2601_v19, 1 }
 0x649   : > { %v2584_v17 = vrot.slane %v2583_v2, 4  ;;  %v2710_v42 = vpop.permute.xlu1 %2709 }
 0x64a   : > { %v2815_v38 = vmul.f32 %v4353_v27, %v2710_v42  ;;  %v3214_v27 = vrot.slane %v3213_v55, 1 }
 0x64b   : > { %v2585_v37 = vadd.f32 %v2584_v17, %v2583_v2  ;;  %3493 = vperm.xlu0 %4470, %v3488_v3   ;;  %v3474_v17 = vperm.slane %v5188_v24, 3  ;;  %v4378_v24 = vld [vmem:[%s6148_s24 + $0x130] sm:$0xff] }
 0x64c   : > { %v2849_v5 = vsel %vm2568_vm15, %v2815_v38, 0.0  ;;  %v3223_v38 = vsel %vm2568_vm15, %v3195_v36, 0.0  ;;  %v5603_v33 = vadd.f32 %v3214_v27, %v3213_v55 }
 0x64d   : > { %v2586_v62 = vrot.slane %v2585_v37, 2  ;;  %v2465_v6 = vpop.permute.xlu0 %2464  ;;  %v2850_v47 = vrot.slane %v2849_v5, 4 }
 0x64e   : > { %v2557_v45 = vmul.f32 %v2541_v58, %v2465_v6  ;;  %v2847_v58 = vrot.slane %v2846_v54, 1  ;;  %v4379_v6 = vld [vmem:[%s6148_s24 + $0x138] sm:$0xff] }
 0x64f   : > { %v2587_v49 = vadd.f32 %v2586_v62, %v2585_v37  ;;  %v2479_v13 = vpop.permute.xlu2 %2478  ;;  %v2851_v32 = vadd.f32 %v2850_v47, %v2849_v5  ;;  %3167 = vperm.xlu1 %4468, %v3162_v53   ;;  %v3238_v37 = vrot.slane %v3237_v14, 4  ;;  %v3198_v62 = vmul.f32 %v4377_v4, %v5474_v39  ;;  %v2542_v39 = vld [vmem:[%s6148_s24 + $0x30] sm:$0xff] }
 0x650   : > { %v2604_v50 = vsel %vm2568_vm15, %v2557_v45, 0.0  ;;  %v3224_v47 = vrot.slane %v3223_v38, 4  ;;  %v2867_v45 = vadd.f32 %v2866_v26, %v2865_v31  ;;  %v3199_v53 = vmul.f32 %v4378_v24, %v5552_v56 }
 0x651   : > { %v2588_v8 = vrot.slane %v2587_v49, 1  ;;  %v2852_v40 = vrot.slane %v2851_v32, 2  ;;  %v2451_v0 = vpop.permute.xlu1 %2450  ;;  %v2605_v46 = vrot.slane %v2604_v50, 4  ;;  %v2848_v55 = vadd.f32 %v2847_v58, %v2846_v54 }
 0x652   : > { %v2555_v2 = vmul.f32 %v2539_v25, %v2451_v0  ;;  %v5618_v25 = vadd.f32 %v2602_v57, %v2601_v19  ;;  %v3219_v31 = vrot.slane %v3218_v22, 2  ;;  %v3244_v36 = vsel %vm2568_vm15, %v3198_v62, 0.0 }
 0x653   : > { %v2589_v9 = vadd.f32 %v2588_v8, %v2587_v49  ;;  %v2853_v12 = vadd.f32 %v2852_v40, %v2851_v32  ;;  %v2606_v60 = vadd.f32 %v2605_v46, %v2604_v50  ;;  %v5616_v49 = vadd.f32 %v3238_v37, %v3237_v14 }
 0x654   : > { %v2590_v16 = vsel %vm2568_vm15, %v2555_v2, 0.0  ;;  %v3225_v14 = vadd.f32 %v3224_v47, %v3223_v38  ;;  %v3251_v19 = vsel %vm2568_vm15, %v3199_v53, 0.0  ;;  %v2962_v27 = vsel %vm2961_vm7, %v2848_v55, %v5428_v10 }
 0x655   : > { %v5593_v3 = vsel %vm2961_vm7, %v2589_v9, %v5452_v28  ;;  %v3403_v42 = vpop.permute.xlu0 %3402  ;;  %v2591_v20 = vrot.slane %v2590_v16, 4  ;;  %v2854_v23 = vrot.slane %v2853_v12, 1  ;;  %v2543_v28 = vld [vmem:[%s6148_s24 + $0x38] sm:$0xff]  ;;  %v2868_v9 = vrot.slane %v2867_v45, 1 }
 0x656   : > { %v2559_v43 = vmul.f32 %v2543_v28, %v2479_v13  ;;  %v3514_v50 = vmul.f32 %v4394_v7, %v3403_v42  ;;  %v4396_v13 = vld [vmem:[%s6148_s24 + $0x1a0] sm:$0xff]  ;;  %v2607_v54 = vrot.slane %v2606_v60, 2  ;;  %v3245_v4 = vrot.slane %v3244_v36, 4  ;;  %v4389_v28 = vld [vmem:[%s6105_s14 + $0x28] sm:$0xff] }
 0x657   : > { %v2592_v5 = vadd.f32 %v2591_v20, %v2590_v16  ;;  %v3119_v30 = vpop.permute.xlu2 %3118  ;;  %3479 = vperm.xlu1 %4468, %v3474_v17   ;;  %v2855_v8 = vadd.f32 %v2854_v23, %v2853_v12  ;;  %v3220_v42 = vadd.f32 %v3219_v31, %v3218_v22  ;;  %v3516_v37 = vmul.f32 %v4396_v13, %v5491_v21  ;;  %v4375_v23 = vld [vmem:[%s6148_s24 + $0x118] sm:$0xff]  ;;  %v4388_v21 = vld [vmem:[%s6105_s14 + $0x20] sm:$0xff] }
 0x658   : > { %v3200_v56 = vmul.f32 %v4379_v6, %v3119_v30  ;;  %v2618_v34 = vsel %vm2568_vm15, %v2559_v43, 0.0  ;;  %v3542_v58 = vsel %vm2568_vm15, %v3514_v50, 0.0  ;;  %v3252_v10 = vrot.slane %v3251_v19, 4  ;;  %3372 = vmatpush.msrb.mxu0 %v4389_v28 }
 0x659   : > { %v2593_v44 = vrot.slane %v2592_v5, 2  ;;  %v2472_v32 = vpop.permute.xlu1 %2471  ;;  %v2964_v26 = vsel %vm2963_vm12, %v2855_v8, %v2962_v27  ;;  %v2608_v24 = vadd.f32 %v2607_v54, %v2606_v60  ;;  %v2619_v20 = vrot.slane %v2618_v34, 4 }
 0x65a   : > { %v2558_v0 = vmul.f32 %v2542_v39, %v2472_v32  ;;  %v3258_v46 = vsel %vm2568_vm15, %v3200_v56, 0.0  ;;  %v2869_v22 = vadd.f32 %v2868_v9, %v2867_v45  ;;  %v2966_v30 = vsel %vm2965_vm0, %v2862_v35, %v2964_v26  ;;  %v4395_v39 = vld [vmem:[%s6148_s24 + $0x198] sm:$0xff]  ;;  %3373 = vmatpush.msrb.mxu0 %v4388_v21 }
 0x65b   : > { %v2594_v40 = vadd.f32 %v2593_v44, %v2592_v5  ;;  %v3259_v5 = vrot.slane %v3258_v46, 4  ;;  %v3240_v47 = vrot.slane %v5616_v49, 2  ;;  %v3246_v53 = vadd.f32 %v3245_v4, %v3244_v36 }
 0x65c   : > { %v2611_v17 = vsel %vm2568_vm15, %v2558_v0, 0.0  ;;  %v3543_v60 = vrot.slane %v3542_v58, 4  ;;  %v3226_v55 = vrot.slane %v3225_v14, 2  ;;  %v3221_v43 = vrot.slane %v3220_v42, 1 }
 0x65d   : > { %v5628_v2 = vpop.permute.xlu0 %3423  ;;  %v2595_v12 = vrot.slane %v2594_v40, 1  ;;  %v2612_v16 = vrot.slane %v2611_v17, 4  ;;  %v3556_v44 = vsel %vm2568_vm15, %v3516_v37, 0.0  ;;  %v3253_v32 = vadd.f32 %v3252_v10, %v3251_v19  ;;  %v4356_v19 = vld [vmem:[%s6148_s24 + $0xb0] sm:$0xff] }
 0x65e   : > { %v2609_v35 = vrot.slane %v2608_v24, 1  ;;  %v2620_v31 = vadd.f32 %v2619_v20, %v2618_v34  ;;  %v3260_v56 = vadd.f32 %v3259_v5, %v3258_v46  ;;  %v3241_v0 = vadd.f32 %v3240_v47, %v5616_v49 }
 0x65f   : > { %v2596_v38 = vadd.f32 %v2595_v12, %v2594_v40  ;;  %1094 = vrot.lane.b32.xlu1 %v4472_v51, %s4626_s4  ;;  %v2613_v57 = vadd.f32 %v2612_v16, %v2611_v17  ;;  %v3247_v51 = vrot.slane %v3246_v53, 2  ;;  %v3544_v9 = vadd.f32 %v3543_v60, %v3542_v58 }
 0x660   : > { %v3227_v54 = vadd.f32 %v3226_v55, %v3225_v14  ;;  %v3222_v27 = vadd.f32 %v3221_v43, %v3220_v42  ;;  %v3557_v12 = vrot.slane %v3556_v44, 4  ;;  %v3254_v34 = vrot.slane %v3253_v32, 2 }
 0x661   : > { %v3025_v62 = vsel %vm2963_vm12, %v2596_v38, %v5593_v3  ;;  %v3091_v6 = vpop.permute.xlu1 %3090  ;;  %v2614_v7 = vrot.slane %v2613_v57, 2  ;;  %v5656_v3 = vsel %vm2967_vm13, %v2869_v22, %v2966_v30  ;;  %v2621_v4 = vrot.slane %v2620_v31, 2 }
 0x662   : > { %v3196_v45 = vmul.f32 %v4375_v23, %v3091_v6  ;;  %v2610_v16 = vadd.f32 %v2609_v35, %v2608_v24  ;;  %v3261_v37 = vrot.slane %v3260_v56, 2  ;;  %v3026_v14 = vsel %vm2965_vm0, %v5618_v25, %v3025_v62  ;;  %v5671_v24 = vpop.permute.xlu2 %2744 }
 0x663   : > { %v2615_v36 = vadd.f32 %v2614_v7, %v2613_v57  ;;  %v3248_v42 = vadd.f32 %v3247_v51, %v3246_v53  ;;  %v3545_v58 = vrot.slane %v3544_v9, 2  ;;  %v3228_v57 = vrot.slane %v3227_v54, 1 }
 0x664   : > { %v3230_v40 = vsel %vm2568_vm15, %v3196_v45, 0.0  ;;  %v2818_v23 = vmul.f32 %v4356_v19, %v5486_v29  ;;  %v3558_v28 = vadd.f32 %v3557_v12, %v3556_v44  ;;  %v3027_v21 = vsel %vm2967_vm13, %v2610_v16, %v3026_v14 }
 0x665   : > { %v3410_v8 = vpop.permute.xlu0 %3409  ;;  %v3231_v13 = vrot.slane %v3230_v40, 4  ;;  %v2616_v38 = vrot.slane %v2615_v36, 1  ;;  %v3255_v22 = vadd.f32 %v3254_v34, %v3253_v32  ;;  %v2622_v5 = vadd.f32 %v2621_v4, %v2620_v31  ;;  %v4367_v4 = vld [vmem:[%s6105_s14 + $0x18] sm:$0xff] }
 0x666   : > { %v3515_v50 = vmul.f32 %v4395_v39, %v3410_v8  ;;  %v3242_v60 = vrot.slane %v3241_v0, 1  ;;  %v3262_v25 = vadd.f32 %v3261_v37, %v3260_v56  ;;  %v3340_v53 = vsel %vm2959_vm8, %v3222_v27, %v5603_v33  ;;  %2998 = vmatpush.msrb.mxu3 %v4367_v4 }
 0x667   : > { %v3232_v26 = vadd.f32 %v3231_v13, %v3230_v40  ;;  %v2617_v62 = vadd.f32 %v2616_v38, %v2615_v36  ;;  %v3249_v7 = vrot.slane %v3248_v42, 1  ;;  %v3546_v39 = vadd.f32 %v3545_v58, %v3544_v9 }
 0x668   : > { %v3549_v17 = vsel %vm2568_vm15, %v3515_v50, 0.0  ;;  %v3229_v55 = vadd.f32 %v3228_v57, %v3227_v54  ;;  %v2870_v43 = vsel %vm2568_vm15, %v2818_v23, 0.0  ;;  %v3559_v44 = vrot.slane %v3558_v28, 2  ;;  %v4398_v23 = vld [vmem:[%s6148_s24 + $0x1b0] sm:$0xff] }
 0x669   : > { %v3550_v46 = vrot.slane %v3549_v17, 4  ;;  %v5665_v49 = vpop.permute.xlu1 %2527  ;;  %v3233_v10 = vrot.slane %v3232_v26, 2  ;;  %v3256_v32 = vrot.slane %v3255_v22, 1  ;;  %v2623_v35 = vrot.slane %v2622_v5, 1 }
 0x66a   : > { %v3243_v8 = vadd.f32 %v3242_v60, %v3241_v0  ;;  %v3263_v40 = vrot.slane %v3262_v25, 1  ;;  %v3341_v50 = vsel %vm2961_vm7, %v3229_v55, %v3340_v53  ;;  %v3028_v36 = vsel %vm2969_vm2, %v2617_v62, %v3027_v21  ;;  %v5691_v38 = vpop.permute.xlu2 %3125 }
 0x66b   : > { %v3551_v20 = vadd.f32 %v3550_v46, %v3549_v17  ;;  %v3234_v6 = vadd.f32 %v3233_v10, %v3232_v26  ;;  %v3250_v51 = vadd.f32 %v3249_v7, %v3248_v42  ;;  %v2871_v33 = vrot.slane %v2870_v43, 4  ;;  %v4366_v26 = vld [vmem:[%s6105_s14 + $0x10] sm:$0xff] }
 0x66c   : > { %v3547_v13 = vrot.slane %v3546_v39, 1  ;;  %v3560_v12 = vadd.f32 %v3559_v44, %v3558_v28  ;;  %v3257_v17 = vadd.f32 %v3256_v32, %v3255_v22  ;;  %v2624_v19 = vadd.f32 %v2623_v35, %v2622_v5  ;;  %2999 = vmatpush.msrb.mxu3 %v4366_v26  ;;  %v4397_v28 = vld [vmem:[%s6148_s24 + $0x1a8] sm:$0xff] }
 0x66d   : > { %v3552_v30 = vrot.slane %v3551_v20, 2  ;;  %v5673_v47 = vpop.permute.xlu0 %2793  ;;  %v3235_v29 = vrot.slane %v3234_v6, 1  ;;  %v3264_v46 = vadd.f32 %v3263_v40, %v3262_v25  ;;  %v2872_v16 = vadd.f32 %v2871_v33, %v2870_v43 }
 0x66e   : > { %v3548_v37 = vadd.f32 %v3547_v13, %v3546_v39  ;;  %v5695_v42 = vsel %vm2971_vm4, %v2624_v19, %v3028_v36  ;;  %v3561_v57 = vrot.slane %v3560_v12, 1  ;;  %v3517_v53 = vmul.f32 %v4397_v28, %v5628_v2 }
 0x66f   : > { %v3553_v45 = vadd.f32 %v3552_v30, %v3551_v20  ;;  %v3236_v31 = vadd.f32 %v3235_v29, %v3234_v6  ;;  %v4357_v20 = vld [vmem:[%s6148_s24 + $0xb8] sm:$0xff]  ;;  %v2873_v22 = vrot.slane %v2872_v16, 2  ;;  %v4363_v30 = vld [vmem:[%s6148_s24 + $0xe8] sm:$0xff] }
 0x670   : > { %v3660_v5 = vsel %vm2961_vm7, %v3548_v37, %v5524_v61  ;;  %v3562_v62 = vadd.f32 %v3561_v57, %v3560_v12  ;;  %v2825_v43 = vmul.f32 %v4363_v30, %v5510_v41  ;;  %v3563_v2 = vsel %vm2568_vm15, %v3517_v53, 0.0 }
 0x671   : > { %v3431_v56 = vpop.permute.xlu1 %3430  ;;  %v3342_v9 = vsel %vm2963_vm12, %v3236_v31, %v3341_v50  ;;  %v3554_v54 = vrot.slane %v3553_v45, 1  ;;  %v2874_v55 = vadd.f32 %v2873_v22, %v2872_v16  ;;  %v2549_v31 = vld [vmem:[%s6148_s24 + $0x68] sm:$0xff]  ;;  %v3564_v33 = vrot.slane %v3563_v2, 4 }
 0x672   : > { %v3343_v27 = vsel %vm2965_vm0, %v3243_v8, %v3342_v9  ;;  %v3518_v25 = vmul.f32 %v4398_v23, %v3431_v56  ;;  %v3140_v35 = vpop.permute.xlu2 %3139  ;;  %v2919_v50 = vsel %vm2568_vm15, %v2825_v43, 0.0  ;;  %v2565_v9 = vmul.f32 %v2549_v31, %v5538_v48  ;;  %v4380_v48 = vld [vmem:[%s6148_s24 + $0x140] sm:$0xff] }
 0x673   : > { %v3344_v0 = vsel %vm2967_vm13, %v3250_v51, %v3343_v27  ;;  %v3555_v58 = vadd.f32 %v3554_v54, %v3553_v45  ;;  %v4364_v45 = vld [vmem:[%s6148_s24 + $0xf0] sm:$0xff]  ;;  %v2875_v41 = vrot.slane %v2874_v55, 1  ;;  %v4409_v51 = vld [vmem:[%s6105_s14 + $0x38] sm:$0xff]  ;;  %v2920_v12 = vrot.slane %v2919_v50, 4 }
 0x674   : > { %v3345_v14 = vsel %vm2969_vm2, %v3257_v17, %v3344_v0  ;;  %v3570_v44 = vsel %vm2568_vm15, %v3518_v25, 0.0  ;;  %v2826_v56 = vmul.f32 %v4364_v45, %v5526_v15  ;;  %3691 = vmatpush.msra.mxu1 %v4409_v51  ;;  %v4408_v27 = vld [vmem:[%s6105_s14 + $0x30] sm:$0xff]  ;;  %v4358_v15 = vld [vmem:[%s6148_s24 + $0xc0] sm:$0xff]  ;;  %v3565_v26 = vadd.f32 %v3564_v33, %v3563_v2 }
 0x675   : > { %v5682_v34 = vpop.permute.xlu0 %2485  ;;  %v3346_v10 = vsel %vm2971_vm4, %v3264_v46, %v3345_v14  ;;  %v3661_v60 = vsel %vm2963_vm12, %v3555_v58, %v3660_v5  ;;  %v3571_v36 = vrot.slane %v3570_v44, 4  ;;  %v2876_v19 = vadd.f32 %v2875_v41, %v2874_v55  ;;  %v2550_v46 = vld [vmem:[%s6148_s24 + $0x70] sm:$0xff]  ;;  %v4399_v58 = vld [vmem:[%s6148_s24 + $0x1b8] sm:$0xff] }
 0x676   : > { %4390 = vmatmul.msk.f32.vlgmr.msrb.gmra.mxu0 %vm2568_vm15, %v3346_v10  ;;  %v5720_v61 = vsel %vm2965_vm0, %v3562_v62, %v3661_v60  ;;  %3692 = vmatpush.msra.mxu1 %v4408_v27  ;;  %v2926_v0 = vsel %vm2568_vm15, %v2826_v56, 0.0  ;;  %v2660_v37 = vsel %vm2568_vm15, %v2565_v9, 0.0  ;;  %v2820_v14 = vmul.f32 %v4358_v15, %v5671_v24  ;;  %v4382_v24 = vld [vmem:[%s6148_s24 + $0x150] sm:$0xff]  ;;  %v4365_v62 = vld [vmem:[%s6148_s24 + $0xf8] sm:$0xff] }
 0x677   : > { %v3572_v4 = vadd.f32 %v3571_v36, %v3570_v44  ;;  %v2970_v10 = vsel %vm2969_vm2, %v2876_v19, %v5656_v3  ;;  %v2927_v57 = vrot.slane %v2926_v0, 4  ;;  %v2566_v22 = vmul.f32 %v2550_v46, %v5665_v49  ;;  %v4361_v9 = vld [vmem:[%s6148_s24 + $0xd8] sm:$0xff] }
 0x678   : > { %v2661_v30 = vrot.slane %v2660_v37, 4  ;;  %v3566_v60 = vrot.slane %v3565_v26, 2  ;;  %v2884_v25 = vsel %vm2568_vm15, %v2820_v14, 0.0  ;;  %v2827_v41 = vmul.f32 %v4365_v62, %v5673_v47 }
 0x679   : > { %v2738_v21 = vpop.permute.xlu1 %2737  ;;  %v3573_v5 = vrot.slane %v3572_v4, 2  ;;  %v2928_v53 = vadd.f32 %v2927_v57, %v2926_v0  ;;  %v2667_v45 = vsel %vm2568_vm15, %v2566_v22, 0.0 }
 0x67a   : > { %v2819_v6 = vmul.f32 %v4357_v20, %v2738_v21  ;;  %v2921_v20 = vadd.f32 %v2920_v12, %v2919_v50  ;;  %v3201_v21 = vmul.f32 %v4380_v48, %v5691_v38  ;;  %v2662_v2 = vadd.f32 %v2661_v30, %v2660_v37 }
 0x67b   : > { %v3574_v44 = vadd.f32 %v3573_v5, %v3572_v4  ;;  %v3567_v31 = vadd.f32 %v3566_v60, %v3565_v26  ;;  %v2929_v36 = vrot.slane %v2928_v53, 2  ;;  %v2668_v33 = vrot.slane %v2667_v45, 4 }
 0x67c   : > { %v2877_v7 = vsel %vm2568_vm15, %v2819_v6, 0.0  ;;  %v2766_v6 = vpop.permute.xlu2 %2765  ;;  %v2922_v49 = vrot.slane %v2921_v20, 2  ;;  %v3265_v43 = vsel %vm2568_vm15, %v3201_v21, 0.0  ;;  %v2663_v19 = vrot.slane %v2662_v2, 2 }
 0x67d   : > { %v5716_v39 = vpop.permute.xlu0 %2751  ;;  %v2878_v29 = vrot.slane %v2877_v7, 4  ;;  %v3266_v51 = vrot.slane %v3265_v43, 4  ;;  %v3575_v47 = vrot.slane %v3574_v44, 1  ;;  %v3568_v0 = vrot.slane %v3567_v31, 1 }
 0x67e   : > { %v2923_v12 = vadd.f32 %v2922_v49, %v2921_v20  ;;  %v2933_v4 = vsel %vm2568_vm15, %v2827_v41, 0.0  ;;  %v2823_v46 = vmul.f32 %v4361_v9, %v2766_v6  ;;  %v2669_v20 = vadd.f32 %v2668_v33, %v2667_v45  ;;  %v4381_v45 = vld [vmem:[%s6148_s24 + $0x148] sm:$0xff] }
 0x67f   : > { %v2879_v32 = vadd.f32 %v2878_v29, %v2877_v7  ;;  %v3203_v7 = vmul.f32 %v4382_v24, %v3140_v35  ;;  %v2544_v29 = vld [vmem:[%s6148_s24 + $0x40] sm:$0xff]  ;;  %v4359_v35 = vld [vmem:[%s6148_s24 + $0xc8] sm:$0xff]  ;;  %v2934_v57 = vrot.slane %v2933_v4, 4  ;;  %v2664_v24 = vadd.f32 %v2663_v19, %v2662_v2 }
 0x680   : > { %v2560_v50 = vmul.f32 %v2544_v29, %v5682_v34  ;;  %v2821_v15 = vmul.f32 %v4359_v35, %v5716_v39  ;;  %v2924_v22 = vrot.slane %v2923_v12, 1  ;;  %v3569_v5 = vadd.f32 %v3568_v0, %v3567_v31 }
 0x681   : > { %v2880_v8 = vrot.slane %v2879_v32, 2  ;;  %v5730_v40 = vpop.permute.xlu1 %2534 }
 0x682   : > { %v2625_v48 = vsel %vm2568_vm15, %v2560_v50, 0.0  ;;  %v2891_v39 = vsel %vm2568_vm15, %v2821_v15, 0.0  ;;  %v5813_v35 = vadd.f32 %v2924_v22, %v2923_v12  ;;  %v2665_v50 = vrot.slane %v2664_v24, 1  ;;  %v4385_v12 = vld [vmem:[%s6148_s24 + $0x168] sm:$0xff] }
 0x683   : > { %v2881_v13 = vadd.f32 %v2880_v8, %v2879_v32  ;;  %v2885_v8 = vrot.slane %v2884_v25, 4  ;;  %v2626_v6 = vrot.slane %v2625_v48, 4  ;;  %v2892_v62 = vrot.slane %v2891_v39, 4 }
 0x685   : > { %v5738_v54 = vpop.permute.xlu0 %3132  ;;  %v2882_v17 = vrot.slane %v2881_v13, 1  ;;  %v2886_v34 = vadd.f32 %v2885_v8, %v2884_v25  ;;  %v2627_v31 = vadd.f32 %v2626_v6, %v2625_v48  ;;  %v2893_v33 = vadd.f32 %v2892_v62, %v2891_v39 }
 0x686   : > { %v3202_v9 = vmul.f32 %v4381_v45, %v5738_v54 }
 0x687   : > { %v2883_v16 = vadd.f32 %v2882_v17, %v2881_v13  ;;  %v3279_v13 = vsel %vm2568_vm15, %v3203_v7, 0.0  ;;  %v2887_v30 = vrot.slane %v2886_v34, 2  ;;  %v3663_v7 = vsel %vm2967_vm13, %v3569_v5, %v5720_v61  ;;  %v2551_v61 = vld [vmem:[%s6148_s24 + $0x78] sm:$0xff] }
 0x688   : > { %v3280_v26 = vrot.slane %v3279_v13, 4  ;;  %v2567_v0 = vmul.f32 %v2551_v61, %v5730_v40  ;;  %v4360_v40 = vld [vmem:[%s6148_s24 + $0xd0] sm:$0xff] }
 0x689   : > { %v3438_v23 = vpop.permute.xlu1 %3437  ;;  %v2972_v28 = vsel %vm2971_vm4, %v2883_v16, %v2970_v10  ;;  %v3452_v16 = vpop.permute.xlu2 %3451  ;;  %v3267_v10 = vadd.f32 %v3266_v51, %v3265_v43  ;;  %v2935_v43 = vadd.f32 %v2934_v57, %v2933_v4  ;;  %v3272_v57 = vsel %vm2568_vm15, %v3202_v9, 0.0  ;;  %v4383_v9 = vld [vmem:[%s6148_s24 + $0x158] sm:$0xff] }
 0x68a   : > { %4368 = vmatmul.msk.f32.vlgmr.msrb.gmra.mxu3 %vm2568_vm15, %v2972_v28  ;;  %v3519_v3 = vmul.f32 %v4399_v58, %v3438_v23  ;;  %v2930_v58 = vadd.f32 %v2929_v36, %v2928_v53  ;;  %v3576_v23 = vadd.f32 %v3575_v47, %v3574_v44  ;;  %v4401_v28 = vld [vmem:[%s6148_s24 + $0x1c8] sm:$0xff]  ;;  %v3281_v60 = vadd.f32 %v3280_v26, %v3279_v13 }
 0x68b   : > { %v3521_v49 = vmul.f32 %v4401_v28, %v3452_v16  ;;  %v3268_v29 = vrot.slane %v3267_v10, 2  ;;  %v2936_v19 = vrot.slane %v2935_v43, 2  ;;  %v2628_v26 = vrot.slane %v2627_v31, 2 }
 0x68c   : > { %v3577_v55 = vsel %vm2568_vm15, %v3519_v3, 0.0  ;;  %v2905_v3 = vsel %vm2568_vm15, %v2823_v46, 0.0  ;;  %v3664_v44 = vsel %vm2969_vm2, %v3576_v23, %v3663_v7  ;;  %v2931_v2 = vrot.slane %v2930_v58, 1 }
 0x68d   : > { %v5771_v38 = vpop.permute.xlu0 %2506  ;;  %v3578_v32 = vrot.slane %v3577_v55, 4  ;;  %v2906_v8 = vrot.slane %v2905_v3, 4  ;;  %v3282_v36 = vrot.slane %v3281_v60, 2  ;;  %v3591_v13 = vsel %vm2568_vm15, %v3521_v49, 0.0 }
 0x68e   : > { %v3269_v15 = vadd.f32 %v3268_v29, %v3267_v10  ;;  %v5822_v4 = vadd.f32 %v2931_v2, %v2930_v58  ;;  %v5825_v16 = vadd.f32 %v2665_v50, %v2664_v24  ;;  %v3592_v10 = vrot.slane %v3591_v13, 4  ;;  %v2545_v58 = vld [vmem:[%s6148_s24 + $0x48] sm:$0xff] }
 0x68f   : > { %v3579_v56 = vadd.f32 %v3578_v32, %v3577_v55  ;;  %v2670_v55 = vrot.slane %v2669_v20, 2  ;;  %v4362_v32 = vld [vmem:[%s6148_s24 + $0xe0] sm:$0xff]  ;;  %v2907_v48 = vadd.f32 %v2906_v8, %v2905_v3  ;;  %v2937_v24 = vadd.f32 %v2936_v19, %v2935_v43 }
 0x690   : > { %v2674_v5 = vsel %vm2568_vm15, %v2567_v0, 0.0  ;;  %v2629_v6 = vadd.f32 %v2628_v26, %v2627_v31  ;;  %v3593_v62 = vadd.f32 %v3592_v10, %v3591_v13  ;;  %v3273_v49 = vrot.slane %v3272_v57, 4 }
 0x691   : > { %v5788_v27 = vpop.permute.xlu1 %3444  ;;  %v3580_v17 = vrot.slane %v3579_v56, 2  ;;  %v2675_v45 = vrot.slane %v2674_v5, 4 }
 0x692   : > { %v2630_v50 = vrot.slane %v2629_v6, 1 }
 0x693   : > { %v3581_v37 = vadd.f32 %v3580_v17, %v3579_v56  ;;  %v2888_v56 = vadd.f32 %v2887_v30, %v2886_v34  ;;  %v2671_v17 = vadd.f32 %v2670_v55, %v2669_v20  ;;  %v3161_v34 = vpop.permute.xlu2 %3160  ;;  %v2894_v20 = vrot.slane %v2893_v33, 2 }
 0x694   : > { %v3206_v23 = vmul.f32 %v4385_v12, %v3161_v34  ;;  %v2908_v30 = vrot.slane %v2907_v48, 2  ;;  %v3594_v12 = vrot.slane %v3593_v62, 2  ;;  %v2676_v34 = vadd.f32 %v2675_v45, %v2674_v5  ;;  %v4404_v45 = vld [vmem:[%s6148_s24 + $0x1e0] sm:$0xff] }
 0x695   : > { %v5793_v14 = vpop.permute.xlu0 %3146  ;;  %v3582_v21 = vrot.slane %v3581_v37, 1  ;;  %v2889_v54 = vrot.slane %v2888_v56, 1  ;;  %v2672_v22 = vrot.slane %v2671_v17, 1  ;;  %v2895_v55 = vadd.f32 %v2894_v20, %v2893_v33 }
 0x696   : > { %v3274_v33 = vadd.f32 %v3273_v49, %v3272_v57  ;;  %v3204_v57 = vmul.f32 %v4383_v9, %v5793_v14  ;;  %v5869_v5 = vadd.f32 %v3594_v12, %v3593_v62 }
 0x697   : > { %v3583_v25 = vadd.f32 %v3582_v21, %v3581_v37  ;;  %v3283_v37 = vadd.f32 %v3282_v36, %v3281_v60  ;;  %v3270_v21 = vrot.slane %v3269_v15, 1  ;;  %v2890_v2 = vadd.f32 %v2889_v54, %v2888_v56  ;;  %v2682_v56 = vld [vmem:[%s6105_s14 + $0x8] sm:$0xff] }
 0x698   : > { %v5841_v61 = vadd.f32 %v2672_v22, %v2671_v17  ;;  %v2909_v36 = vadd.f32 %v2908_v30, %v2907_v48  ;;  %3055 = vmatpush.msra.mxu3 %v2682_v56  ;;  %v2681_v17 = vld [vmem:[%s6105_s14] sm:$0xff]  ;;  %v2896_v0 = vrot.slane %v2895_v55, 1  ;;  %v2677_v30 = vrot.slane %v2676_v34, 2 }
 0x699   : > { %v2493_v53 = vpop.permute.xlu1 %2492  ;;  %v3665_v41 = vsel %vm2971_vm4, %v3583_v25, %v3664_v44  ;;  %v3284_v25 = vrot.slane %v3283_v37, 1  ;;  %v3300_v44 = vsel %vm2568_vm15, %v3206_v23, 0.0  ;;  %v5839_v43 = vadd.f32 %v3270_v21, %v3269_v15 }
 0x69a   : > { %4410 = vmatmul.msk.f32.vlgmr.msra.gmra.mxu1 %vm2568_vm15, %v3665_v41  ;;  %v2561_v7 = vmul.f32 %v2545_v58, %v2493_v53  ;;  %v2938_v41 = vrot.slane %v2937_v24, 1  ;;  %v2547_v53 = vld [vmem:[%s6148_s24 + $0x58] sm:$0xff]  ;;  %v3301_v13 = vrot.slane %v3300_v44, 4  ;;  %3056 = vmatpush.msra.mxu3 %v2681_v17  ;;  %v2910_v20 = vrot.slane %v2909_v36, 1 }
 0x69b   : > { %v5859_v19 = vadd.f32 %v3284_v25, %v3283_v37  ;;  %v2563_v48 = vmul.f32 %v2547_v53, %v5771_v38  ;;  %v3275_v58 = vrot.slane %v3274_v33, 2  ;;  %v4400_v37 = vld [vmem:[%s6148_s24 + $0x1c0] sm:$0xff]  ;;  %v2897_v22 = vadd.f32 %v2896_v0, %v2895_v55  ;;  %v4402_v53 = vld [vmem:[%s6148_s24 + $0x1d0] sm:$0xff] }
 0x69c   : > { %v2939_v49 = vadd.f32 %v2938_v41, %v2937_v24  ;;  %v3596_v41 = vrot.slane %v5869_v5, 1 }
 0x69d   : > { %v2773_v51 = vpop.permute.xlu0 %2772  ;;  %v3276_v62 = vadd.f32 %v3275_v58, %v3274_v33  ;;  %v2973_v24 = vsel %vm2959_vm8, %v2897_v22, %v2890_v2  ;;  %v4406_v22 = vld [vmem:[%s6148_s24 + $0x1f0] sm:$0xff] }
 0x69e   : > { %v2824_v47 = vmul.f32 %v4362_v32, %v2773_v51  ;;  %v2546_v51 = vld [vmem:[%s6148_s24 + $0x50] sm:$0xff] }
 0x6a0   : > { %v2912_v46 = vsel %vm2568_vm15, %v2824_v47, 0.0  ;;  %v2632_v47 = vsel %vm2568_vm15, %v2561_v7, 0.0  ;;  %v2911_v7 = vadd.f32 %v2910_v20, %v2909_v36  ;;  %v5882_v36 = vadd.f32 %v2677_v30, %v2676_v34  ;;  %v4403_v20 = vld [vmem:[%s6148_s24 + $0x1d8] sm:$0xff] }
 0x6a1   : > { %v2913_v39 = vrot.slane %v2912_v46, 4  ;;  %v2759_v28 = vpop.permute.xlu1 %2758  ;;  %v2633_v23 = vrot.slane %v2632_v47, 4  ;;  %v3277_v34 = vrot.slane %v3276_v62, 1 }
 0x6a2   : > { %v2822_v3 = vmul.f32 %v4360_v40, %v2759_v28  ;;  %v5862_v40 = vadd.f32 %v2630_v50, %v2629_v6  ;;  %v3473_v6 = vpop.permute.xlu2 %3472 }
 0x6a3   : > { %v2914_v60 = vadd.f32 %v2913_v39, %v2912_v46  ;;  %v3302_v39 = vadd.f32 %v3301_v13, %v3300_v44  ;;  %v3520_v44 = vmul.f32 %v4400_v37, %v5788_v27  ;;  %v2634_v55 = vadd.f32 %v2633_v23, %v2632_v47  ;;  %v4387_v47 = vld [vmem:[%s6148_s24 + $0x178] sm:$0xff] }
 0x6a4   : > { %v2898_v32 = vsel %vm2568_vm15, %v2822_v3, 0.0  ;;  %v2646_v3 = vsel %vm2568_vm15, %v2563_v48, 0.0  ;;  %v3524_v27 = vmul.f32 %v4404_v45, %v3473_v6  ;;  %v3278_v45 = vadd.f32 %v3277_v34, %v3276_v62 }
 0x6a5   : > { %v5835_v29 = vpop.permute.xlu0 %3465  ;;  %v2915_v8 = vrot.slane %v2914_v60, 2  ;;  %v2899_v31 = vrot.slane %v2898_v32, 4  ;;  %v3584_v2 = vsel %vm2568_vm15, %v3520_v44, 0.0  ;;  %v2635_v17 = vrot.slane %v2634_v55, 2 }
 0x6a6   : > { %v3612_v37 = vsel %vm2568_vm15, %v3524_v27, 0.0 }
 0x6a7   : > { %v2900_v15 = vadd.f32 %v2899_v31, %v2898_v32  ;;  %v2916_v46 = vadd.f32 %v2915_v8, %v2914_v60  ;;  %v3286_v32 = vsel %vm2568_vm15, %v3204_v57, 0.0  ;;  %v3303_v8 = vrot.slane %v3302_v39, 2 }
 0x6a8   : > { %v3287_v13 = vrot.slane %v3286_v32, 4  ;;  %v2636_v6 = vadd.f32 %v2635_v17, %v2634_v55 }
 0x6a9   : > { %v2500_v26 = vpop.permute.xlu1 %2499  ;;  %v2901_v54 = vrot.slane %v2900_v15, 2  ;;  %v2917_v14 = vrot.slane %v2916_v46, 1 }
 0x6aa   : > { %v2562_v10 = vmul.f32 %v2546_v51, %v2500_v26  ;;  %v2647_v51 = vrot.slane %v2646_v3, 4  ;;  %v5893_v26 = vadd.f32 %v3303_v8, %v3302_v39  ;;  %v3487_v30 = vpop.permute.xlu2 %3486 }
 0x6ab   : > { %v2902_v28 = vadd.f32 %v2901_v54, %v2900_v15  ;;  %v2918_v9 = vadd.f32 %v2917_v14, %v2916_v46  ;;  %v4384_v15 = vld [vmem:[%s6148_s24 + $0x160] sm:$0xff]  ;;  %v2679_v14 = vrot.slane %v5882_v36, 1 }
 0x6ac   : > { %v2639_v21 = vsel %vm2568_vm15, %v2562_v10, 0.0  ;;  %v2648_v10 = vadd.f32 %v2647_v51, %v2646_v3  ;;  %v3305_v51 = vrot.slane %v5893_v26, 1 }
 0x6ad   : > { %v3175_v38 = vpop.permute.xlu0 %3174  ;;  %v2640_v60 = vrot.slane %v2639_v21, 4  ;;  %v2903_v25 = vrot.slane %v2902_v28, 1 }
 0x6ae   : > { %v3208_v57 = vmul.f32 %v4387_v47, %v3175_v38  ;;  %v2649_v44 = vrot.slane %v2648_v10, 2 }
 0x6af   : > { %v2904_v31 = vadd.f32 %v2903_v25, %v2902_v28  ;;  %v2641_v50 = vadd.f32 %v2640_v60, %v2639_v21  ;;  %v3585_v28 = vrot.slane %v3584_v2, 4  ;;  %v3288_v21 = vadd.f32 %v3287_v13, %v3286_v32 }
 0x6b0   : > { %v3613_v32 = vrot.slane %v3612_v37, 4  ;;  %v3314_v55 = vsel %vm2568_vm15, %v3208_v57, 0.0  ;;  %v2637_v13 = vrot.slane %v2636_v6, 1 }
 0x6b1   : > { %v3459_v56 = vpop.permute.xlu1 %3458  ;;  %v2974_v33 = vsel %vm2961_vm7, %v2904_v31, %v2973_v24  ;;  %v2642_v48 = vrot.slane %v2641_v50, 2  ;;  %v3526_v31 = vmul.f32 %v4406_v22, %v3487_v30  ;;  %v3289_v27 = vrot.slane %v3288_v21, 2 }
 0x6b2   : > { %v3522_v0 = vmul.f32 %v4402_v53, %v3459_v56  ;;  %v2975_v12 = vsel %vm2963_vm12, %v2911_v7, %v2974_v33  ;;  %v3586_v56 = vadd.f32 %v3585_v28, %v3584_v2  ;;  %v3614_v17 = vadd.f32 %v3613_v32, %v3612_v37 }
 0x6b3   : > { %v2976_v54 = vsel %vm2965_vm0, %v2918_v9, %v2975_v12  ;;  %v2643_v25 = vadd.f32 %v2642_v48, %v2641_v50  ;;  %v3315_v9 = vrot.slane %v3314_v55, 4  ;;  %v3347_v2 = vsel %vm2959_vm8, %v3278_v45, %v5839_v43 }
 0x6b4   : > { %v2977_v58 = vsel %vm2967_vm13, %v5813_v35, %v2976_v54  ;;  %v3598_v60 = vsel %vm2568_vm15, %v3522_v0, 0.0  ;;  %v2548_v35 = vld [vmem:[%s6148_s24 + $0x60] sm:$0xff]  ;;  %v3626_v34 = vsel %vm2568_vm15, %v3526_v31, 0.0  ;;  %v3587_v54 = vrot.slane %v3586_v56, 2 }
 0x6b5   : > { %v3154_v46 = vpop.permute.xlu0 %3153  ;;  %v2978_v39 = vsel %vm2969_vm2, %v5822_v4, %v2977_v58  ;;  %v3523_v4 = vmul.f32 %v4403_v20, %v5835_v29  ;;  %v4407_v29 = vld [vmem:[%s6148_s24 + $0x1f8] sm:$0xff]  ;;  %v2644_v50 = vrot.slane %v2643_v25, 1  ;;  %v2638_v20 = vadd.f32 %v2637_v13, %v2636_v6  ;;  %v4386_v58 = vld [vmem:[%s6148_s24 + $0x170] sm:$0xff] }
 0x6b6   : > { %v3205_v23 = vmul.f32 %v4384_v15, %v3154_v46  ;;  %v2979_v3 = vsel %vm2971_vm4, %v2939_v49, %v2978_v39  ;;  %v3599_v49 = vrot.slane %v3598_v60, 4  ;;  %v2650_v15 = vadd.f32 %v2649_v44, %v2648_v10 }
 0x6b7   : > { %4369 = vmatmul.msk.f32.gmra.mxu3 %vm2568_vm15, %v2979_v3  ;;  %v3605_v62 = vsel %vm2568_vm15, %v3523_v4, 0.0  ;;  %v3290_v28 = vadd.f32 %v3289_v27, %v3288_v21  ;;  %v2645_v10 = vadd.f32 %v2644_v50, %v2643_v25  ;;  %v3316_v37 = vadd.f32 %v3315_v9, %v3314_v55 }
 0x6b8   : > { %v3293_v38 = vsel %vm2568_vm15, %v3205_v23, 0.0  ;;  %v3600_v48 = vadd.f32 %v3599_v49, %v3598_v60  ;;  %v3606_v57 = vrot.slane %v3605_v62, 4  ;;  %v2680_v43 = vadd.f32 %v2679_v14, %v5882_v36 }
 0x6b9   : > { %v3294_v7 = vrot.slane %v3293_v38, 4  ;;  %v2514_v8 = vpop.permute.xlu1 %2513  ;;  %v2651_v39 = vrot.slane %v2650_v15, 1  ;;  %v3615_v22 = vrot.slane %v3614_v17, 2  ;;  %v3627_v6 = vrot.slane %v3626_v34, 4 }
 0x6ba   : > { %v2564_v24 = vmul.f32 %v2548_v35, %v2514_v8  ;;  %v3601_v3 = vrot.slane %v3600_v48, 2  ;;  %v3030_v21 = vsel %vm2959_vm8, %v2638_v20, %v5862_v40  ;;  %v3607_v25 = vadd.f32 %v3606_v57, %v3605_v62  ;;  %v4405_v62 = vld [vmem:[%s6148_s24 + $0x1e8] sm:$0xff] }
 0x6bb   : > { %v3295_v53 = vadd.f32 %v3294_v7, %v3293_v38  ;;  %v3588_v7 = vadd.f32 %v3587_v54, %v3586_v56  ;;  %v3291_v44 = vrot.slane %v3290_v28, 1  ;;  %v3317_v36 = vrot.slane %v3316_v37, 2 }
 0x6bc   : > { %v2653_v33 = vsel %vm2568_vm15, %v2564_v24, 0.0  ;;  %v2652_v49 = vadd.f32 %v2651_v39, %v2650_v15  ;;  %v3628_v24 = vadd.f32 %v3627_v6, %v3626_v34  ;;  %v3602_v56 = vadd.f32 %v3601_v3, %v3600_v48 }
 0x6bd   : > { %v3494_v47 = vpop.permute.xlu0 %3493  ;;  %v3296_v0 = vrot.slane %v3295_v53, 2  ;;  %v2654_v12 = vrot.slane %v2653_v33, 4  ;;  %v3589_v27 = vrot.slane %v3588_v7, 1  ;;  %v3608_v13 = vrot.slane %v3607_v25, 2 }
 0x6be   : > { %v3527_v46 = vmul.f32 %v4407_v29, %v3494_v47  ;;  %v3292_v50 = vadd.f32 %v3291_v44, %v3290_v28  ;;  %v3318_v9 = vadd.f32 %v3317_v36, %v3316_v37  ;;  %v3348_v47 = vsel %vm2961_vm7, %v5859_v19, %v3347_v2 }
 0x6bf   : > { %v2655_v23 = vadd.f32 %v2654_v12, %v2653_v33  ;;  %4370 = vmatmul.msk.f32.vlgmr.msra.gmra.mxu3 %vm2568_vm15, %v5695_v42  ;;  %v3297_v30 = vadd.f32 %v3296_v0, %v3295_v53  ;;  %v3031_v42 = vsel %vm2961_vm7, %v2645_v10, %v3030_v21  ;;  %v5937_v53 = vadd.f32 %v3615_v22, %v3614_v17 }
 0x6c0   : > { %v3633_v35 = vsel %vm2568_vm15, %v3527_v46, 0.0  ;;  %v3032_v33 = vsel %vm2963_vm12, %v2652_v49, %v3031_v42  ;;  %v3629_v48 = vrot.slane %v3628_v24, 2  ;;  %v3603_v46 = vrot.slane %v3602_v56, 1 }
 0x6c1   : > { %v2656_v60 = vrot.slane %v2655_v23, 2  ;;  %v3168_v38 = vpop.permute.xlu1 %3167  ;;  %v3298_v32 = vrot.slane %v3297_v30, 1  ;;  %v3634_v8 = vrot.slane %v3633_v35, 4  ;;  %v3590_v57 = vadd.f32 %v3589_v27, %v3588_v7 }
 0x6c2   : > { %v3207_v4 = vmul.f32 %v4386_v58, %v3168_v38  ;;  %v3319_v10 = vrot.slane %v3318_v9, 1  ;;  %v3349_v37 = vsel %vm2963_vm12, %v3292_v50, %v3348_v47  ;;  %v3604_v38 = vadd.f32 %v3603_v46, %v3602_v56  ;;  %v3716_v50 = vld [vmem:[%s6102_s11 + $0x30] sm:$0xff]  ;;  %v3845_v47 = vld [vmem:[%s6107_s16 + $0x28] sm:$0xff] }
 0x6c3   : > { %v2657_v45 = vadd.f32 %v2656_v60, %v2655_v23  ;;  %v3299_v15 = vadd.f32 %v3298_v32, %v3297_v30  ;;  %v3635_v17 = vadd.f32 %v3634_v8, %v3633_v35  ;;  %v3609_v23 = vadd.f32 %v3608_v13, %v3607_v25 }
 0x6c4   : > { %v3307_v14 = vsel %vm2568_vm15, %v3207_v4, 0.0  ;;  %v3306_v60 = vadd.f32 %v3305_v51, %v5893_v26  ;;  %v3617_v35 = vrot.slane %v5937_v53, 1  ;;  %v3630_v4 = vadd.f32 %v3629_v48, %v3628_v24  ;;  %v3842_v48 = vld [vmem:[%s6107_s16 + $0x10] sm:$0xff] }
 0x6c5   : > { %v2658_v55 = vrot.slane %v2657_v45, 1  ;;  %v3308_v31 = vrot.slane %v3307_v14, 4  ;;  %v3636_v39 = vrot.slane %v3635_v17, 2  ;;  %v3610_v6 = vrot.slane %v3609_v23, 1 }
 0x6c6   : > { %v3320_v7 = vadd.f32 %v3319_v10, %v3318_v9  ;;  %v3846_v9 = vld [vmem:[%s6107_s16 + $0x30] sm:$0xff] }
 0x6c7   : > { %v2659_v40 = vadd.f32 %v2658_v55, %v2657_v45  ;;  %v3309_v29 = vadd.f32 %v3308_v31, %v3307_v14  ;;  %v3637_v45 = vadd.f32 %v3636_v39, %v3635_v17  ;;  %v3611_v14 = vadd.f32 %v3610_v6, %v3609_v23  ;;  %v3844_v17 = vld [vmem:[%s6107_s16 + $0x20] sm:$0xff] }
 0x6c8   : > { %v3631_v55 = vrot.slane %v3630_v4, 1  ;;  %v3840_v23 = vld [vmem:[%s6107_s16] sm:$0xff] }
 0x6c9   : > { %v3310_v0 = vrot.slane %v3309_v29, 2  ;;  %v3480_v12 = vpop.permute.xlu1 %3479  ;;  %v3033_v34 = vsel %vm2965_vm0, %v2659_v40, %v3032_v33  ;;  %v3638_v8 = vrot.slane %v3637_v45, 1  ;;  %v3715_v33 = vld [vmem:[%s6102_s11 + $0x28] sm:$0xff] }
 0x6ca   : > { %v3525_v54 = vmul.f32 %v4405_v62, %v3480_v12  ;;  %v3034_v20 = vsel %vm2967_vm13, %v5825_v16, %v3033_v34  ;;  %v3350_v16 = vsel %vm2965_vm0, %v3299_v15, %v3349_v37  ;;  %v3632_v24 = vadd.f32 %v3631_v55, %v3630_v4  ;;  %v3717_v62 = vld [vmem:[%s6102_s11 + $0x38] sm:$0xff]  ;;  %v3714_v15 = vld [vmem:[%s6102_s11 + $0x20] sm:$0xff]  ;;  %v3712_v34 = vld [vmem:[%s6102_s11 + $0x10] sm:$0xff] }
 0x6cb   : > { %v3311_v58 = vadd.f32 %v3310_v0, %v3309_v29  ;;  %v3035_v28 = vsel %vm2969_vm2, %v5841_v61, %v3034_v20  ;;  %v3597_v61 = vadd.f32 %v3596_v41, %v5869_v5  ;;  %v3351_v21 = vsel %vm2967_vm13, %v3306_v60, %v3350_v16  ;;  %3737 = vmatpush.msrb.mxu3 %v3717_v62  ;;  %v3713_v0 = vld [vmem:[%s6102_s11 + $0x18] sm:$0xff]  ;;  %v3841_v20 = vld [vmem:[%s6107_s16 + $0x8] sm:$0xff]  ;;  %v4473_v37 = vld [vmem:[%s6106_s15] ss:$0 sm:$0xff] }
 0x6cc   : > { %v3619_v19 = vsel %vm2568_vm15, %v3525_v54, 0.0  ;;  %v3036_v2 = vsel %vm2971_vm4, %v2680_v43, %v3035_v28  ;;  %v3639_v27 = vadd.f32 %v3638_v8, %v3637_v45  ;;  %v3843_v12 = vld [vmem:[%s6107_s16 + $0x18] sm:$0xff]  ;;  %v3711_v54 = vld [vmem:[%s6102_s11 + $0x8] sm:$0xff] }
 0x6cd   : > { %v3312_v22 = vrot.slane %v3311_v58, 1  ;;  %v3620_v30 = vrot.slane %v3619_v19, 4  ;;  %4371 = vmatmul.msk.f32.gmra.mxu3 %vm2568_vm15, %v3036_v2  ;;  %v3666_v25 = vsel %vm2959_vm8, %v3597_v61, %v3590_v57  ;;  %v3710_v57 = vld [vmem:[%s6102_s11] sm:$0xff] }
 0x6ce   : > { %v3667_v51 = vsel %vm2961_vm7, %v3604_v38, %v3666_v25  ;;  %3738 = vmatpush.msrb.mxu3 %v3716_v50 }
 0x6cf   : > { %v3313_v43 = vadd.f32 %v3312_v22, %v3311_v58  ;;  %v3621_v3 = vadd.f32 %v3620_v30, %v3619_v19  ;;  %v3668_v49 = vsel %vm2963_vm12, %v3611_v14, %v3667_v51 }
 0x6d0   : > { %3739 = vmatpush.msrb.mxu3 %v3715_v33 }
 0x6d1   : > { %v3622_v44 = vrot.slane %v3621_v3, 2  ;;  %v1095_v42 = vpop.permute.xlu1 %1094  ;;  %v3352_v26 = vsel %vm2969_vm2, %v3313_v43, %v3351_v21 }
 0x6d2   : > { %v1097_v5 = vadd.f32 %v1095_v42, %v4864_v18  ;;  %v1098_v41 = vadd.f32 %v1095_v42, %v4906_v59  ;;  %v3353_v36 = vsel %vm2971_vm4, %v3320_v7, %v3352_v26  ;;  %v3618_v18 = vadd.f32 %v3617_v35, %v5937_v53  ;;  %v3847_v53 = vld [vmem:[%s6107_s16 + $0x38] sm:$0xff]  ;;  %3740 = vmatpush.msrb.mxu3 %v3714_v15  ;;  %v4474_v7 = vld [vmem:[%s6155_s29] ss:$0 sm:$0xff] }
 0x6d3   : > { %v3623_v32 = vadd.f32 %v3622_v44, %v3621_v3  ;;  %4391 = vmatmul.msk.f32.gmra.mxu0 %vm2568_vm15, %v3353_v36 }
 0x6d4   : > { %3756 = vrot.lane.b32.xlu0 %v1098_v41, %s6120_s26  ;;  %3800 = vrot.lane.b32.xlu1 %v1097_v5, %s4626_s4  ;;  %v3669_v56 = vsel %vm2965_vm0, %v3618_v18, %v3668_v49 }
 0x6d5   : > { %v3624_v31 = vrot.slane %v3623_v32, 1  ;;  %3754 = vrot.lane.b32.xlu2 %v1097_v5, %s6120_s26  ;;  %3856 = vmatpush.msra.mxu0 %v3847_v53  ;;  %s6157_s26 = sld [smem:[#allocation13_spill]] }
 0x6d6   : > { %3741 = vmatpush.msrb.mxu3 %v3713_v0 }
 0x6d7   : > { %v3625_v59 = vadd.f32 %v3624_v31, %v3623_v32  ;;  %3857 = vmatpush.msra.mxu0 %v3846_v9 }
 0x6d8   : > { %3742 = vmatpush.msrb.mxu3 %v3712_v34 }
 0x6d9   : > { %v3670_v13 = vsel %vm2967_vm13, %v3625_v59, %v3669_v56  ;;  %3858 = vmatpush.msra.mxu0 %v3845_v47 }
 0x6da   : > { %v3671_v40 = vsel %vm2969_vm2, %v3632_v24, %v3670_v13  ;;  %3743 = vmatpush.msrb.mxu3 %v3711_v54 }
 0x6db   : > { %v3672_v29 = vsel %vm2971_vm4, %v3639_v27, %v3671_v40  ;;  %3859 = vmatpush.msra.mxu0 %v3844_v17 }
 0x6dc   : > { %4411 = vmatmul.msk.f32.gmra.mxu1 %vm2568_vm15, %v3672_v29  ;;  %3744 = vmatpush.msrb.mxu3 %v3710_v57 }
 0x6dd   : > { %3802 = vrot.lane.b32.xlu2 %v1098_v41, %s4626_s4  ;;  %3860 = vmatpush.msra.mxu0 %v3843_v12  ;;  %s6158_s4 = smov %s6157_s26 }
 0x6df   : > { %3861 = vmatpush.msra.mxu0 %v3842_v48 }
 0x6e1   : > { %3862 = vmatpush.msra.mxu0 %v3841_v20 }
 0x6e3   : > { %3863 = vmatpush.msra.mxu0 %v3840_v23 }
 0x6f3   : > { %v3375_v19 = vpop.f32.mrf.mxu0 }
 0x70d   : > { %v3001_v46 = vpop.f32.mrf.mxu3 }
 0x717   : > { %v3694_v39 = vpop.f32.mrf.mxu1 }
 0x72f   : > { %v3755_v45 = vpop.permute.xlu2 %3754 }
 0x737   : > { %v3803_v48 = vpop.permute.xlu2 %3802 }
 0x73a   : > { %v3004_v58 = vpop.f32.mrf.mxu3 }
 0x742   : > { %v3058_v28 = vpop.f32.mrf.mxu3 }
 0x743   : > { %v3059_v10 = vadd.f32 %v3058_v28, %v3001_v46 }
 0x745   : > { %v3381_v2 = vadd.f32 %v3375_v19, %v3059_v10 }
 0x746   : > { %v3757_v36 = vpop.permute.xlu0 %3756  ;;  %v3801_v40 = vpop.permute.xlu1 %3800 }
 0x747   : > { %v3700_v22 = vadd.f32 %v3694_v39, %v3381_v2 }
 0x749   : > { %v3706_v30 = vadd.f32 %v4473_v37, %v3700_v22 }
 0x74b   : > { %v3708_v16 = vmul.f32 %v3706_v30, %v4826_v63 }
 0x74d   : > { %4017 = vst.msk [vmem:[%s4787_s5] sm:$0xff] %vm3722_vm10, %v3708_v16  ;;  %4412 = vmatmul.msk.f32.vlgmr.msrb.gmra.mxu3 %vm3722_vm10, %v3708_v16  ;;  %4416 = vmatmul.msk.f32.vlgmr.msra.gmra.mxu0 %vm3722_vm10, %v3708_v16  ;;  %v3876_v16 = vld [vmem:[%s6157_s26 + $0x18] sm:$0xff] }
 0x74e   : > { %3899 = vmatpush.msrb.mxu1 %v3876_v16 }
 0x750   : > { %v3061_v60 = vpop.f32.mrf.mxu3  ;;  %v3378_v61 = vpop.f32.mrf.mxu0 }
 0x751   : > { %v3062_v38 = vadd.f32 %v3061_v60, %v3004_v58  ;;  %v3875_v60 = vld [vmem:[%s6158_s4 + $0x10] sm:$0xff] }
 0x752   : > { %3900 = vmatpush.msrb.mxu1 %v3875_v60 }
 0x753   : > { %v3382_v6 = vadd.f32 %v3378_v61, %v3062_v38  ;;  %v3874_v38 = vld [vmem:[%s6158_s4 + $0x8] sm:$0xff] }
 0x754   : > { %3901 = vmatpush.msrb.mxu1 %v3874_v38 }
 0x759   : > { %v3697_v43 = vpop.f32.mrf.mxu1 }
 0x75a   : > { %v3701_v3 = vadd.f32 %v3697_v43, %v3382_v6 }
 0x75c   : > { %v3707_v35 = vadd.f32 %v4473_v37, %v3701_v3 }
 0x75e   : > { %v3709_v4 = vmul.f32 %v3707_v35, %v4822_v52 }
 0x760   : > { %4413 = vmatmul.msk.f32.gmra.mxu3 %vm3722_vm10, %v3709_v4  ;;  %4018 = vst.msk [vmem:[%s4787_s5 + $0x8] sm:$0xff] %vm3722_vm10, %v3709_v4  ;;  %4417 = vmatmul.msk.f32.gmra.mxu0 %vm3722_vm10, %v3709_v4  ;;  %s6156_s5 = smov 96  }
 0x7d0   : > { %v3746_v21 = vpop.f32.mrf.mxu3 }
 0x7d1   : > { %v3747_v25 = vadd.f32 %v4474_v7, %v3746_v21 }
 0x7d3   : > { %v3760_v44 = vadd.f32 %v3755_v45, %v3747_v25 }
 0x7d5   : > { %v4414_v42 = vmul.f32 -1.442695, %v3760_v44  ;;  %v4475_v44 = vld [vmem:[%s6159_s2] ss:$0 sm:$0xff] }
 0x7d7   : > { %4586 = vpow2.f32 %v4414_v42 }
 0x7dd   : > { %v4587_v26 = vpop.eup %4586 }
 0x7de   : > { %v3768_v51 = vadd.f32 1.0, %v4587_v26 }
 0x7e0   : > { %4588 = vrcp.f32 %v3768_v51  ;;  %v3781_v49 = vand.u32 2147483648, %v3768_v51  ;;  %v3779_v59 = vand.u32 2147483647, %v3768_v51  ;;  %vm3775_vm7 = vweird.f32 %v3768_v51 }
 0x7e2   : > { %v3782_v56 = vor.u32 1.1754944e-38, %v3781_v49  ;;  %vm3780_vm0 = vcmp.eq.f32.partialorder %v3779_v59, 8.507059e+37 }
 0x7e3   : > { %v3749_v5 = vpop.f32.mrf.mxu3 }
 0x7e4   : > { %v3750_v41 = vadd.f32 %v4474_v7, %v3749_v5 }
 0x7e6   : > { %v3761_v14 = vadd.f32 %v3757_v36, %v3750_v41  ;;  %v4589_v32 = vpop.eup %4588  ;;  %v3839_v36 = vld [vmem:[%s4767_s1 + $0x8] sm:$0xff] }
 0x7e7   : > { %v3771_v8 = vmul.f32 %v4589_v32, %v3768_v51  ;;  %vm3776_vm8 = vweird.f32 %v4589_v32 }
 0x7e8   : > { %v4415_v55 = vmul.f32 -1.442695, %v3761_v14  ;;  %vm3777_vm12 = vmor %vm3775_vm7, %vm3776_vm8 }
 0x7e9   : > { %v3772_v31 = vsub.f32 1.0, %v3771_v8 }
 0x7ea   : > { %4590 = vpow2.f32 %v4415_v55 }
 0x7eb   : > { %v3773_v18 = vmul.f32 %v4589_v32, %v3772_v31 }
 0x7ed   : > { %v3774_v24 = vadd.f32 %v4589_v32, %v3773_v18 }
 0x7ef   : > { %v3778_v13 = vsel %vm3777_vm12, %v4589_v32, %v3774_v24 }
 0x7f0   : > { %v4591_v27 = vpop.eup %4590  ;;  %v3783_v62 = vsel %vm3780_vm0, %v3782_v56, %v3778_v13 }
 0x7f1   : > { %v3769_v29 = vadd.f32 1.0, %v4591_v27  ;;  %v3806_v53 = vmul.f32 %v3801_v40, %v3783_v62  ;;  %v3820_v19 = vsub.f32 1.0, %v3783_v62  ;;  %v3832_v37 = vmul.f32 %v3783_v62, %v4829_v1  ;;  %v3873_v1 = vld [vmem:[%s6158_s4] sm:$0xff] }
 0x7f2   : > { %3902 = vmatpush.msrb.mxu1 %v3873_v1 }
 0x7f3   : > { %4592 = vrcp.f32 %v3769_v29  ;;  %3810 = vrot.lane.b32.xlu0 %v3806_v53, %s4627_s12  ;;  %v3796_v47 = vand.u32 2147483648, %v3769_v29  ;;  %v3794_v17 = vand.u32 2147483647, %v3769_v29  ;;  %vm3790_vm13 = vweird.f32 %v3769_v29 }
 0x7f5   : > { %v3797_v12 = vor.u32 1.1754944e-38, %v3796_v47  ;;  %vm3795_vm4 = vcmp.eq.f32.partialorder %v3794_v17, 8.507059e+37 }
 0x7f9   : > { %v4593_v50 = vpop.eup %4592 }
 0x7fa   : > { %v3786_v9 = vmul.f32 %v4593_v50, %v3769_v29  ;;  %vm3791_vm15 = vweird.f32 %v4593_v50 }
 0x7fb   : > { %vm3792_vm2 = vmor %vm3790_vm13, %vm3791_vm15 }
 0x7fc   : > { %v3787_v33 = vsub.f32 1.0, %v3786_v9 }
 0x7fe   : > { %v3788_v15 = vmul.f32 %v4593_v50, %v3787_v33 }
 0x800   : > { %v3789_v0 = vadd.f32 %v4593_v50, %v3788_v15 }
 0x802   : > { %v3793_v34 = vsel %vm3792_vm2, %v4593_v50, %v3789_v0 }
 0x803   : > { %v3798_v46 = vsel %vm3795_vm4, %v3797_v12, %v3793_v34 }
 0x804   : > { %v3807_v54 = vmul.f32 %v3803_v48, %v3798_v46  ;;  %v3821_v61 = vsub.f32 1.0, %v3798_v46  ;;  %v3833_v43 = vmul.f32 %v3798_v46, %v4846_v11  ;;  %v3865_v11 = vpop.f32.mrf.mxu0 }
 0x806   : > { %3812 = vrot.lane.b32.xlu1 %v3807_v54, %s4627_s12 }
 0x80c   : > { %v3868_v14 = vpop.f32.mrf.mxu0 }
 0x80d   : > { %v3872_v32 = vadd.f32 %v3868_v14, %v3839_v36 }
 0x865   : > { %v3811_v20 = vpop.permute.xlu0 %3810 }
 0x866   : > { %v3816_v57 = vadd.f32 %v3811_v20, %v3747_v25  ;;  %v3838_v25 = vld [vmem:[%s4767_s1] sm:$0xff] }
 0x867   : > { %v3871_v45 = vadd.f32 %v3865_v11, %v3838_v25 }
 0x868   : > { %4594 = vtanh.f32 %v3816_v57 }
 0x86e   : > { %v4595_v23 = vpop.eup %4594 }
 0x86f   : > { %3824 = vrot.lane.b32.xlu2 %v4595_v23, %s6156_s5 }
 0x878   : > { %v3813_v58 = vpop.permute.xlu1 %3812 }
 0x879   : > { %v3817_v28 = vadd.f32 %v3813_v58, %v3750_v41 }
 0x87b   : > { %4596 = vtanh.f32 %v3817_v28 }
 0x881   : > { %v4597_v10 = vpop.eup %4596 }
 0x882   : > { %3826 = vrot.lane.b32.xlu0 %v4597_v10, %s6156_s5 }
 0x8c9   : > { %v3825_v2 = vpop.permute.xlu2 %3824 }
 0x8ca   : > { %v3830_v39 = vmul.f32 %v3825_v2, %v3820_v19 }
 0x8cc   : > { %v3834_v22 = vadd.f32 %v3832_v37, %v3830_v39 }
 0x8ce   : > { %v3836_v30 = vmul.f32 %v3834_v22, %v4826_v63 }
 0x8d0   : > { %3879 = vrot.lane.b32.xlu1 %v3836_v30, %s6156_s5 }
 0x8f4   : > { %v3827_v6 = vpop.permute.xlu0 %3826 }
 0x8f5   : > { %v3831_v3 = vmul.f32 %v3827_v6, %v3821_v61 }
 0x8f7   : > { %v3835_v35 = vadd.f32 %v3833_v43, %v3831_v3 }
 0x8f9   : > { %v3837_v4 = vmul.f32 %v3835_v35, %v4822_v52 }
 0x8fb   : > { %3881 = vrot.lane.b32.xlu2 %v3837_v4, %s6156_s5 }
 0x942   : > { %v3880_v7 = vpop.permute.xlu1 %3879 }
 0x943   : > { %4021 = vst.msk [vmem:[#allocation2] sm:$0xff] %vm926_vm1, %v3880_v7  ;;  %4418 = vmatmul.msk.f32.vlgmr.msrb.gmra.mxu1 %vm926_vm1, %v3880_v7 }
 0x955   : > { %v3882_v21 = vpop.permute.xlu2 %3881 }
 0x956   : > { %4022 = vst.msk [vmem:[#allocation2 + $0x8] sm:$0xff] %vm926_vm1, %v3882_v21  ;;  %4419 = vmatmul.msk.f32.gmra.mxu1 %vm926_vm1, %v3882_v21 }
 0x9c0   : > { %v3904_v42 = vpop.f32.mrf.mxu1 }
 0x9c1   : > { %v3910_v26 = vadd.f32 %v3904_v42, %v3871_v45 }
 0x9c3   : > { %v3916_v51 = vadd.f32 %v4475_v44, %v3910_v26 }
 0x9c5   : > { %4598 = vtanh.f32 %v3916_v51 }
 0x9cb   : > { %v4599_v5 = vpop.eup %4598 }
 0x9cc   : > { %v3920_v41 = vmul.f32 %v4599_v5, %v4826_v63 }
 0x9ce   : > { %3922 = vst.msk [vmem:[%s4777_s17] sm:$0xff] %vm3722_vm10, %v3920_v41 }
 0x9d3   : > { %v3907_v55 = vpop.f32.mrf.mxu1 }
 0x9d4   : > { %v3911_v8 = vadd.f32 %v3907_v55, %v3872_v32 }
 0x9d6   : > { %v3917_v31 = vadd.f32 %v4475_v44, %v3911_v8 }
 0x9d8   : > { %4600 = vtanh.f32 %v3917_v31 }
 0x9de   : > { %v4601_v49 = vpop.eup %4600 }
 0x9df   : > { %v3921_v18 = vmul.f32 %v4601_v49, %v4822_v52 }
 0x9e1   : > { %3923 = vst.msk [vmem:[%s4777_s17 + $0x8] sm:$0xff] %vm3722_vm10, %v3921_v18 }
 0x9e2 PF: > { %s6160_s5 = sld [smem:[#allocation4_spill]] }
 0x9e3   : > { %s6161_s2 = sld [smem:[#allocation3_spill]] }
 0x9e4   : > { %s6162_s25 = sld [smem:[#allocation5_spill]] }
 0x9e8   : > { %s32_s26 = sadd.s32 1, %s6160_s5  }
 0x9e9   : > { %p29_p6 = scmp.ge.s32.totalorder %s32_s26, 10  }
 0x9eb   :  { %31 = sbr.rel (!%p29_p6) target bundleno = 10 (0xa), region = 178 }

// kernel: _decoder_impl.1
= control target key start
LH: loop header
LB: loop body
LE: loop exit
PB: predicated region body
PF: predicated region fallthrough
CT: control target
= control target key end

     0   :  { %s4303_s25 = smov 0   ;;  %s4305_s26 = smov 0   ;;  %s5790_s0 = inlined_call_operand.vmem [shape: f32[4,16,8,16], index: 0, kind: input, shape index: {}]   ;;  %s5791_s1 = inlined_call_operand.vmem [shape: f32[16,8], index: 1, kind: input, shape index: {}]   ;;  %s5792_s2 = inlined_call_operand.vmem [shape: f32[16,8,32], index: 2, kind: input, shape index: {}]   ;;  %s5793_s3 = inlined_call_operand.vmem [shape: f32[16,32], index: 3, kind: input, shape index: {}]   ;;  %s5794_s4 = inlined_call_operand.vmem [shape: f32[8,16,96], index: 4, kind: input, shape index: {}]   ;;  %s5795_s5 = inlined_call_operand.vmem [shape: f32[8,16,64], index: 5, kind: input, shape index: {}]   ;;  %s5796_s6 = inlined_call_operand.vmem [shape: f32[8,16,1], index: 6, kind: input, shape index: {}]   ;;  %s5797_s7 = inlined_call_operand.vmem [shape: f32[32,96], index: 7, kind: input, shape index: {}]   ;;  %s5798_s8 = inlined_call_operand.vmem [shape: f32[1,96], index: 8, kind: input, shape index: {}]   ;;  %s5799_s9 = inlined_call_operand.vmem [shape: f32[32,128], index: 9, kind: input, shape index: {}]   ;;  %s5800_s10 = inlined_call_operand.vmem [shape: f32[1,96], index: 10, kind: input, shape index: {}]   ;;  %s5801_s11 = inlined_call_operand.vmem [shape: f32[64,96], index: 11, kind: input, shape index: {}]   ;;  %s5802_s12 = inlined_call_operand.vmem [shape: f32[1,96], index: 12, kind: input, shape index: {}]   ;;  %s5803_s13 = inlined_call_operand.vmem [shape: f32[32,4], index: 13, kind: input, shape index: {}]   ;;  %s5804_s14 = inlined_call_operand.vmem [shape: f32[4,16,64], index: 14, kind: input, shape index: {}]   ;;  %s5805_s15 = inlined_call_operand.vmem [shape: f32[1,64], index: 15, kind: input, shape index: {}]   ;;  %s5806_s16 = inlined_call_operand.vmem [shape: f32[64,64], index: 16, kind: input, shape index: {}]   ;;  %s5807_s17 = inlined_call_operand.vmem [shape: f32[32,64], index: 17, kind: input, shape index: {}]   ;;  %s5808_s18 = inlined_call_operand.vmem [shape: f32[1,64], index: 18, kind: input, shape index: {}]   ;;  %s5809_s19 = inlined_call_operand.vmem [shape: f32[8,16,64], index: 19, kind: output, shape index: {0}]   ;;  %s5810_s20 = inlined_call_operand.vmem [shape: f32[8,16,8], index: 20, kind: output, shape index: {1}]   ;;  %s5811_s21 = inlined_call_operand.vmem [shape: f32[8,16,64], index: 21, kind: output, shape index: {2}]  }
   0x1   :  { %5837 = sst [smem:[#allocation14_spill]] %s5790_s0 }
   0x2   :  { %5838 = sst [smem:[#allocation15_spill]] %s5791_s1 }
   0x3   :  { %5839 = sst [smem:[#allocation16_spill]] %s5792_s2  ;;  %s4301_s2 = smov 0  }
   0x4   :  { %5840 = sst [smem:[#allocation17_spill]] %s5793_s3 }
   0x5   :  { %5841 = sst [smem:[#allocation18_spill]] %s5794_s4 }
   0x6   :  { %5842 = sst [smem:[#allocation19_spill]] %s5795_s5 }
   0x7   :  { %5843 = sst [smem:[#allocation20_spill]] %s5802_s12 }
   0x8   :  { %5844 = sst [smem:[#allocation21_spill]] %s5807_s17 }
   0x9   :  { %5845 = sst [smem:[#allocation22_spill]] %s5808_s18 }
   0xa LB: > { %5846 = sst [smem:[#allocation3_spill]] %s4177_s25  ;;  %s41_s27 = sadd.s32 1, %s4177_s25  ;;  %s4181_s26 = sphi %s4305_s26, %s32_s26   ;;  %s4177_s25 = sphi %s4303_s25, %s5900_s25   ;;  %s4173_s2 = sphi %s4301_s2, %s5899_s2  }
   0xb   : > { %5847 = sst [smem:[#allocation4_spill]] %s4181_s26  ;;  %p3810_p0 = scmp.ge.s32.totalorder %s4181_s26, 1 }
   0xc   : > { %p42_p1 = scmp.ge.s32.totalorder %s41_s27, 8  ;;  %p695_p2 = scmp.lt.s32.totalorder %s4181_s26, 9 }
   0xe   : > { %s5902_s27 = smov (%p42_p1, %s41_s27), 0  ;;  %p696_p3 = pnand %p3810_p0, %p695_p2 }
   0xf   : > { %5848 = sst [smem:[#allocation5_spill]] %s5902_s27 }
  0x10   : > { %699 = sbr.rel (%p696_p3) target bundleno = 2116 (0x844), region = 96 }
  0x15   : > { %p844_p4 = scmp.lt.s32.totalorder %s4173_s2, 7  ;;  %s5849_s4 = sld [smem:[#allocation18_spill]] }
  0x16   : > { %s5850_s23 = sld [smem:[#allocation19_spill]]  ;;  %p3823_p5 = scmp.ne.s32.totalorder %s4173_s2, 0 }
  0x17   : > { %s845_s3 = scalar_select %p844_p4, %s4173_s2, 7 }
  0x18   : > { %906 = sbr.rel (%p3823_p5) target bundleno = 38 (0x26), region = 100 }
  0x19   : > { %s3918_s28 = sshll.u32 %s845_s3, 4 }
  0x1a   : > { %s4332_s26 = scalar_lea.vmem %s5796_s6, %s3918_s28  ;;  %s4337_s17 = scalar_lea.vmem %s5809_s19, %s3918_s28 }
  0x1b   : > { %s4322_s30 = scalar_lea.vmem %s5849_s4, %s3918_s28  ;;  %s4342_s29 = scalar_lea.vmem %s5810_s20, %s3918_s28 }
  0x1c   : > { %s4327_s1 = scalar_lea.vmem %s5850_s23, %s3918_s28  ;;  %s4347_s5 = scalar_lea.vmem %s5811_s21, %s3918_s28 }
  0x1d   : > { %s5851_s23 = sld [smem:[#allocation17_spill]]  ;;  %vm909_vm0 = vcmask 261120  }
  0x23   : > { %v907_v0 = vld [vmem:[%s5851_s23] sm:$0xff]  ;;  %v908_v1 = vld [vmem:[%s5851_s23 + $0x8] sm:$0xff] }
  0x24   : > { %910 = vst.msk [vmem:[#allocation2] sm:$0xff] %vm909_vm0, %v907_v0 }
  0x25   : > { %911 = vst.msk [vmem:[#allocation2 + $0x8] sm:$0xff] %vm909_vm0, %v908_v1 }
  0x26 PF: > { %v921_v2 = vld [vmem:[%s5797_s7 + $0x18] sm:$0xff]  ;;  %v920_v3 = vld [vmem:[%s5797_s7 + $0x10] sm:$0xff]  ;;  %v919_v4 = vld [vmem:[%s5797_s7 + $0x8] sm:$0xff]  ;;  %vm926_vm1 = vcmask 261120   ;;  %s5819_s27 = smov 64   ;;  %v5824_v25 = vmov 0  }
  0x27   : > { %945 = vmatpush.msra.mxu1 %v921_v2  ;;  %v918_v5 = vld [vmem:[%s5797_s7] sm:$0xff]  ;;  %v957_v16 = vld [vmem:[%s4322_s30 + $0x8] sm:$0xff]  ;;  %3964 = vset.pattern.permute.xlu0 %v5824_v25  ;;  %s4186_s12 = smov 32   ;;  %v1057_v63 = vld [vmem:[%s5799_s9 + $0x18] sm:$0xff]  ;;  %vm1312_vm10 = vcmask 31744   ;;  %s5863_s25 = sld [smem:[#allocation14_spill]] }
  0x28   : > { %v4028_v8 = vld [vmem:[%s5798_s8] ss:$0 sm:$0xff]  ;;  %3965 = vset.pattern.permute.xlu1 %v5824_v25  ;;  %v915_v55 = vld [vmem:[%s4332_s26 + $0x8] sm:$0xff]  ;;  %v1056_v0 = vld [vmem:[%s5799_s9 + $0x10] sm:$0xff]  ;;  %s5882_s2 = sld [smem:[#allocation20_spill]] }
  0x29   : > { %946 = vmatpush.msra.mxu1 %v920_v3  ;;  %v956_v13 = vld [vmem:[%s4322_s30] sm:$0xff]  ;;  %s5834_s30 = smov 96   ;;  %v1055_v2 = vld [vmem:[%s5799_s9 + $0x8] sm:$0xff] }
  0x2a   : > { %v914_v24 = vld [vmem:[%s4332_s26] sm:$0xff]  ;;  %s5852_s26 = sld [smem:[#allocation15_spill]] }
  0x2b   : > { %947 = vmatpush.msra.mxu1 %v919_v4  ;;  %v4367_v6 = vld [vmem:[#allocation2] sm:$0xff] }
  0x2c   : > { %v4371_v7 = vld [vmem:[#allocation2 + $0x8] sm:$0xff]  ;;  %v1054_v3 = vld [vmem:[%s5799_s9] sm:$0xff] }
  0x2d   : > { %948 = vmatpush.msra.mxu1 %v918_v5  ;;  %s5864_s22 = smov %s5863_s25 }
  0x2e   : > { %3824 = vmatmul.msk.f32.vlgmr.msra.gmra.mxu1 %vm926_vm1, %v4367_v6 }
  0x2f   : > { %1080 = vmatpush.msrb.mxu1 %v1057_v63 }
  0x30   : > { %s5853_s0 = smov %s5852_s26 }
  0x31   : > { %1081 = vmatpush.msrb.mxu1 %v1056_v0 }
  0x33   : > { %1082 = vmatpush.msrb.mxu1 %v1055_v2 }
  0x35   : > { %1083 = vmatpush.msrb.mxu1 %v1054_v3 }
  0x36   : > { %3825 = vmatmul.msk.f32.gmra.mxu1 %vm926_vm1, %v4371_v7 }
  0xab   : > { %v950_v9 = vpop.f32.mrf.mxu1 }
  0xac   : > { %v951_v10 = vadd.f32 %v4028_v8, %v950_v9 }
  0xae   : > { %1000 = vrot.lane.b32.xlu0 %v951_v10, %s5819_s27  ;;  %v958_v14 = vadd.f32 %v956_v13, %v951_v10 }
  0xb0   : > { %v3826_v15 = vmul.f32 -1.442695, %v958_v14 }
  0xb2   : > { %4033 = vpow2.f32 %v3826_v15 }
  0xb3   : > { %v953_v11 = vpop.f32.mrf.mxu1 }
  0xb4   : > { %v954_v12 = vadd.f32 %v4028_v8, %v953_v11 }
  0xb6   : > { %1002 = vrot.lane.b32.xlu0 %v954_v12, %s5819_s27  ;;  %v959_v17 = vadd.f32 %v957_v16, %v954_v12 }
  0xb8   : > { %v3827_v18 = vmul.f32 -1.442695, %v959_v17  ;;  %v4034_v19 = vpop.eup %4033  ;;  %v1197_v17 = vld [vmem:[%s5803_s13 + $0x10] sm:$0xff] }
  0xb9   : > { %v966_v20 = vadd.f32 1.0, %v4034_v19 }
  0xba   : > { %4035 = vpow2.f32 %v3827_v18  ;;  %v4432_v18 = vld [vmem:[%s5852_s26] sm:$0xff]  ;;  %s5854_s26 = sld [smem:[#allocation16_spill]] }
  0xbb   : > { %4037 = vrcp.f32 %v966_v20  ;;  %v979_v33 = vand.u32 2147483648, %v966_v20  ;;  %vm973_vm3 = vweird.f32 %v966_v20  ;;  %v977_v34 = vand.u32 2147483647, %v966_v20 }
  0xbc   : > { %v1473_v19 = vperm.slane %v4432_v18, 0 }
  0xbd   : > { %v980_v37 = vor.u32 1.1754944e-38, %v979_v33  ;;  %vm978_vm5 = vcmp.eq.f32.partialorder %v977_v34, 8.507059e+37 }
  0xbe   : > { %1044 = vperm.xlu0 %3964, %v914_v24   ;;  %v4446_v24 = vld [vmem:[%s5853_s0 + $0x8] sm:$0xff] }
  0xc0   : > { %v4036_v21 = vpop.eup %4035  ;;  %s5855_s4 = smov %s5854_s26 }
  0xc1   : > { %v967_v22 = vadd.f32 1.0, %v4036_v21  ;;  %v4038_v23 = vpop.eup %4037  ;;  %v1195_v21 = vld [vmem:[%s5803_s13] sm:$0xff]  ;;  %v1118_v0 = vld [vmem:[%s5855_s4 + $0x18] sm:$0xff] }
  0xc2   : > { %v969_v26 = vmul.f32 %v4038_v23, %v966_v20  ;;  %vm974_vm2 = vweird.f32 %v4038_v23  ;;  %v1196_v20 = vld [vmem:[%s5803_s13 + $0x8] sm:$0xff]  ;;  %v1122_v3 = vld [vmem:[%s5855_s4 + $0x38] sm:$0xff] }
  0xc3   : > { %4039 = vrcp.f32 %v967_v22  ;;  %vm975_vm4 = vmor %vm973_vm3, %vm974_vm2  ;;  %v994_v42 = vand.u32 2147483648, %v967_v22  ;;  %vm988_vm7 = vweird.f32 %v967_v22  ;;  %v992_v43 = vand.u32 2147483647, %v967_v22 }
  0xc4   : > { %v970_v27 = vsub.f32 1.0, %v969_v26  ;;  %v1529_v26 = vperm.slane %v4446_v24, 0 }
  0xc5   : > { %v995_v45 = vor.u32 1.1754944e-38, %v994_v42  ;;  %vm993_vm9 = vcmp.eq.f32.partialorder %v992_v43, 8.507059e+37  ;;  %v1120_v42 = vld [vmem:[%s5855_s4 + $0x28] sm:$0xff] }
  0xc6   : > { %v971_v29 = vmul.f32 %v4038_v23, %v970_v27 }
  0xc8   : > { %v972_v31 = vadd.f32 %v4038_v23, %v971_v29 }
  0xc9   : > { %v4040_v28 = vpop.eup %4039 }
  0xca   : > { %v984_v30 = vmul.f32 %v4040_v28, %v967_v22  ;;  %v976_v35 = vsel %vm975_vm4, %v4038_v23, %v972_v31  ;;  %vm989_vm6 = vweird.f32 %v4040_v28  ;;  %v1494_v22 = vperm.slane %v4432_v18, 3 }
  0xcb   : > { %v981_v39 = vsel %vm978_vm5, %v980_v37, %v976_v35  ;;  %vm990_vm8 = vmor %vm988_vm7, %vm989_vm6  ;;  %v1508_v23 = vperm.slane %v4432_v18, 5 }
  0xcc   : > { %v985_v32 = vsub.f32 1.0, %v984_v30  ;;  %v1020_v57 = vsub.f32 1.0, %v981_v39 }
  0xce   : > { %v986_v36 = vmul.f32 %v4040_v28, %v985_v32  ;;  %v1119_v32 = vld [vmem:[%s5855_s4 + $0x20] sm:$0xff] }
  0xd0   : > { %v987_v41 = vadd.f32 %v4040_v28, %v986_v36 }
  0xd2   : > { %v991_v44 = vsel %vm990_vm8, %v4040_v28, %v987_v41  ;;  %v1115_v28 = vld [vmem:[%s5854_s26] sm:$0xff]  ;;  %v1480_v41 = vperm.slane %v4432_v18, 1  ;;  %s5884_s26 = smov 96  }
  0xd3   : > { %v996_v46 = vsel %vm993_vm9, %v995_v45, %v991_v44 }
  0xd4   : > { %v1021_v5 = vsub.f32 1.0, %v996_v46 }
 0x120   : > { %v1001_v38 = vpop.permute.xlu0 %1000 }
 0x121   : > { %v1006_v40 = vmul.f32 %v1001_v38, %v981_v39  ;;  %v1116_v38 = vld [vmem:[%s5855_s4 + $0x8] sm:$0xff] }
 0x123   : > { %1010 = vrot.lane.b32.xlu1 %v1006_v40, %s5819_s27  ;;  %v1550_v40 = vperm.slane %v4446_v24, 3 }
 0x128   : > { %v1003_v47 = vpop.permute.xlu0 %1002 }
 0x129   : > { %v1007_v48 = vmul.f32 %v1003_v47, %v996_v46 }
 0x12b   : > { %1012 = vrot.lane.b32.xlu1 %v1007_v48, %s5819_s27  ;;  %s5891_s27 = sld [smem:[#allocation21_spill]] }
 0x130   : > { %v4394_v61 = vpop.permute.xlu0 %1044 }
 0x195   : > { %v1011_v49 = vpop.permute.xlu1 %1010 }
 0x196   : > { %v1016_v50 = vadd.f32 %v1011_v49, %v956_v13  ;;  %v5821_v13 = vlaneseq }
 0x198   : > { %4041 = vtanh.f32 %v1016_v50  ;;  %v1475_v14 = vshrl.u32 %v5821_v13, 7  ;;  %v1571_v50 = vperm.slane %v4446_v24, 6 }
 0x19a   : > { %3967 = vset.pattern.permute.xlu2 %v1475_v14  ;;  %3968 = vset.pattern.permute.xlu0 %v1475_v14 }
 0x19d   : > { %v1013_v51 = vpop.permute.xlu1 %1012 }
 0x19e   : > { %v4042_v52 = vpop.eup %4041  ;;  %v1017_v53 = vadd.f32 %v1013_v51, %v957_v16  ;;  %v1198_v16 = vld [vmem:[%s5803_s13 + $0x18] sm:$0xff]  ;;  %v1117_v51 = vld [vmem:[%s5855_s4 + $0x10] sm:$0xff] }
 0x19f   : > { %1024 = vrot.lane.b32.xlu2 %v4042_v52, %s5834_s30  ;;  %1259 = vmatpush.msra.mxu0 %v1198_v16 }
 0x1a0   : > { %4043 = vtanh.f32 %v1017_v53  ;;  %3924 = vmatpush.msra.mxu2 %v1198_v16  ;;  %3925 = vmatpush.msra.mxu3 %v1198_v16  ;;  %v1121_v53 = vld [vmem:[%s5855_s4 + $0x30] sm:$0xff]  ;;  %v1543_v16 = vperm.slane %v4446_v24, 2 }
 0x1a1   : > { %1260 = vmatpush.msra.mxu0 %v1197_v17 }
 0x1a2   : > { %3926 = vmatpush.msra.mxu2 %v1197_v17  ;;  %3927 = vmatpush.msra.mxu3 %v1197_v17  ;;  %v1557_v17 = vperm.slane %v4446_v24, 4 }
 0x1a3   : > { %1261 = vmatpush.msra.mxu0 %v1196_v20 }
 0x1a4   : > { %3928 = vmatpush.msra.mxu2 %v1196_v20  ;;  %3929 = vmatpush.msra.mxu3 %v1196_v20 }
 0x1a5   : > { %1262 = vmatpush.msra.mxu0 %v1195_v21 }
 0x1a6   : > { %v4044_v54 = vpop.eup %4043  ;;  %3930 = vmatpush.msra.mxu2 %v1195_v21  ;;  %3931 = vmatpush.msra.mxu3 %v1195_v21 }
 0x1a7   : > { %1032 = vrot.lane.b32.xlu2 %v4367_v6, %s4186_s12  ;;  %1026 = vrot.lane.b32.xlu1 %v4044_v54, %s5834_s30 }
 0x1af   : > { %1034 = vrot.lane.b32.xlu2 %v4371_v7, %s4186_s12  ;;  %1049 = vperm.xlu1 %3965, %v915_v55  }
 0x1b7   : > { %3966 = vset.pattern.permute.xlu1 %v1475_v14 }
 0x1bf   : > { %1478 = vperm.xlu1 %3966, %v1473_v19   ;;  %v1564_v19 = vperm.slane %v4446_v24, 5 }
 0x1c7   : > { %1499 = vperm.xlu1 %3966, %v1494_v22  }
 0x1cf   : > { %1513 = vperm.xlu1 %3966, %v1508_v23  }
 0x1d7   : > { %1534 = vperm.xlu1 %3966, %v1529_v26   ;;  %v1128_v26 = vld [vmem:[%s5855_s4 + $0x68] sm:$0xff] }
 0x1df   : > { %1555 = vperm.xlu1 %3966, %v1550_v40  }
 0x1e7   : > { %1576 = vperm.xlu1 %3966, %v1571_v50  }
 0x1f9   : > { %v1025_v56 = vpop.permute.xlu2 %1024 }
 0x1fa   : > { %v1030_v59 = vmul.f32 %v1025_v56, %v1020_v57 }
 0x201   : > { %v1033_v58 = vpop.permute.xlu2 %1032 }
 0x202   : > { %v1038_v60 = vmul.f32 %v1033_v58, %v981_v39 }
 0x204   : > { %v1040_v62 = vadd.f32 %v1038_v60, %v1030_v59  ;;  %v1501_v59 = vperm.slane %v4432_v18, 4  ;;  %v1487_v60 = vperm.slane %v4432_v18, 2 }
 0x206   : > { %v4403_v1 = vmul.f32 %v4394_v61, %v1040_v62 }
 0x208   : > { %1060 = vrot.lane.b32.xlu2 %v4403_v1, %s5834_s30 }
 0x209   : > { %v1035_v6 = vpop.permute.xlu2 %1034 }
 0x20a   : > { %v1039_v8 = vmul.f32 %v1035_v6, %v996_v46 }
 0x210   : > { %1485 = vperm.xlu2 %3967, %v1480_v41  }
 0x218   : > { %1506 = vperm.xlu2 %3967, %v1501_v59  }
 0x219   : > { %v1027_v4 = vpop.permute.xlu1 %1026 }
 0x21a   : > { %v1031_v7 = vmul.f32 %v1027_v4, %v1021_v5 }
 0x21c   : > { %v1041_v9 = vadd.f32 %v1039_v8, %v1031_v7  ;;  %v1515_v8 = vperm.slane %v4432_v18, 6 }
 0x220   : > { %1520 = vperm.xlu2 %3967, %v1515_v8  }
 0x221   : > { %v4413_v10 = vpop.permute.xlu1 %1049 }
 0x222   : > { %v4416_v11 = vmul.f32 %v4413_v10, %v1041_v9  ;;  %v1522_v9 = vperm.slane %v4432_v18, 7  ;;  %v1123_v18 = vld [vmem:[%s5855_s4 + $0x40] sm:$0xff] }
 0x224   : > { %1062 = vrot.lane.b32.xlu0 %v4416_v11, %s5834_s30 }
 0x22c   : > { %1492 = vperm.xlu0 %3968, %v1487_v60  }
 0x234   : > { %1527 = vperm.xlu0 %3968, %v1522_v9  }
 0x23c   : > { %1548 = vperm.xlu0 %3968, %v1543_v16  }
 0x244   : > { %1569 = vperm.xlu0 %3968, %v1564_v19  }
 0x262   : > { %v1061_v12 = vpop.permute.xlu2 %1060 }
 0x263   : > { %3828 = vmatmul.msk.f32.vlgmr.msrb.gmra.mxu1 %vm926_vm1, %v1061_v12 }
 0x296   : > { %v1063_v15 = vpop.permute.xlu0 %1062 }
 0x297   : > { %3829 = vmatmul.msk.f32.gmra.mxu1 %vm926_vm1, %v1063_v15  ;;  %v1536_v15 = vperm.slane %v4446_v24, 1 }
 0x299   : > { %1541 = vperm.xlu2 %3967, %v1536_v15  }
 0x2a1   : > { %1562 = vperm.xlu2 %3967, %v1557_v17  }
 0x2e0   : > { %v4449_v27 = vpop.f32.mrf.mxu1 }
 0x2e1   : > { %v1131_v29 = vperm.slane %v4449_v27, 0  ;;  %v1104_v30 = vrot.slane %v4449_v27, 4  ;;  %v1101_v31 = vrot.slane %v4449_v27, 1  ;;  %v1105_v35 = vrot.slane %v4449_v27, 5 }
 0x2e2   : > { %v1102_v44 = vrot.slane %v4449_v27, 2  ;;  %v1106_v47 = vrot.slane %v4449_v27, 6  ;;  %v1103_v55 = vrot.slane %v4449_v27, 3  ;;  %v1107_v58 = vrot.slane %v4449_v27, 7 }
 0x2e3   : > { %v1163_v33 = vadd.f32 %v1131_v29, %v1115_v28  ;;  %v1135_v34 = vperm.slane %v1104_v30, 0  ;;  %v1132_v37 = vperm.slane %v1101_v31, 0  ;;  %v1136_v39 = vperm.slane %v1105_v35, 0 }
 0x2e4   : > { %v1133_v49 = vperm.slane %v1102_v44, 0  ;;  %v1137_v52 = vperm.slane %v1106_v47, 0  ;;  %v1134_v63 = vperm.slane %v1103_v55, 0  ;;  %v1138_v2 = vperm.slane %v1107_v58, 0  ;;  %v1127_v58 = vld [vmem:[%s5855_s4 + $0x60] sm:$0xff] }
 0x2e5   : > { %4045 = vtanh.f32 %v1163_v33  ;;  %v1167_v36 = vadd.f32 %v1135_v34, %v1119_v32  ;;  %v1164_v43 = vadd.f32 %v1132_v37, %v1116_v38  ;;  %v1168_v46 = vadd.f32 %v1136_v39, %v1120_v42  ;;  %v1124_v34 = vld [vmem:[%s5855_s4 + $0x48] sm:$0xff] }
 0x2e6   : > { %v1165_v54 = vadd.f32 %v1133_v49, %v1117_v51  ;;  %v1169_v57 = vadd.f32 %v1137_v52, %v1121_v53  ;;  %v1166_v4 = vadd.f32 %v1134_v63, %v1118_v0  ;;  %v1170_v6 = vadd.f32 %v1138_v2, %v1122_v3  ;;  %v1126_v52 = vld [vmem:[%s5855_s4 + $0x58] sm:$0xff] }
 0x2e7   : > { %4047 = vtanh.f32 %v1167_v36  ;;  %v1578_v31 = vperm.slane %v4446_v24, 7  ;;  %v1129_v36 = vld [vmem:[%s5855_s4 + $0x70] sm:$0xff] }
 0x2e8   : > { %4049 = vtanh.f32 %v1164_v43  ;;  %v1125_v43 = vld [vmem:[%s5855_s4 + $0x50] sm:$0xff] }
 0x2e9   : > { %4051 = vtanh.f32 %v1168_v46  ;;  %1583 = vperm.xlu2 %3967, %v1578_v31  }
 0x2ea   : > { %4053 = vtanh.f32 %v1165_v54 }
 0x2eb   : > { %v4046_v45 = vpop.eup %4045  ;;  %4055 = vtanh.f32 %v1169_v57 }
 0x2ec   : > { %3830 = vmatmul.msk.f32.vlgmr.msra.gmra.mxu0 %vm926_vm1, %v4046_v45  ;;  %4057 = vtanh.f32 %v1166_v4  ;;  %v1130_v45 = vld [vmem:[%s5855_s4 + $0x78] sm:$0xff] }
 0x2ed   : > { %v4048_v48 = vpop.eup %4047  ;;  %4059 = vtanh.f32 %v1170_v6 }
 0x2ee   : > { %3834 = vmatmul.msk.f32.vlgmr.msra.gmra.mxu2 %vm926_vm1, %v4048_v48  ;;  %v4050_v56 = vpop.eup %4049 }
 0x2ef   : > { %v4052_v62 = vpop.eup %4051 }
 0x2f0   : > { %v4054_v5 = vpop.eup %4053 }
 0x2f1   : > { %v4056_v7 = vpop.eup %4055  ;;  %3970 = vset.pattern.permute.xlu2 %v5824_v25 }
 0x2f2   : > { %v4058_v12 = vpop.eup %4057 }
 0x2f3   : > { %v4060_v14 = vpop.eup %4059 }
 0x2f4   : > { %3831 = vmatmul.msk.f32.gmra.mxu0 %vm926_vm1, %v4050_v56 }
 0x2f6   : > { %3835 = vmatmul.msk.f32.gmra.mxu2 %vm926_vm1, %v4052_v62 }
 0x2fc   : > { %3832 = vmatmul.msk.f32.gmra.mxu0 %vm926_vm1, %v4054_v5 }
 0x2fe   : > { %3836 = vmatmul.msk.f32.gmra.mxu2 %vm926_vm1, %v4056_v7 }
 0x304   : > { %3833 = vmatmul.msk.f32.gmra.mxu0 %vm926_vm1, %v4058_v12 }
 0x306   : > { %3837 = vmatmul.msk.f32.gmra.mxu2 %vm926_vm1, %v4060_v14 }
 0x314   : > { %v4502_v20 = vpop.f32.mrf.mxu1 }
 0x315   : > { %v1139_v21 = vperm.slane %v4502_v20, 0  ;;  %v1112_v22 = vrot.slane %v4502_v20, 5  ;;  %v1108_v23 = vrot.slane %v4502_v20, 1  ;;  %v1113_v30 = vrot.slane %v4502_v20, 6 }
 0x316   : > { %v1109_v38 = vrot.slane %v4502_v20, 2  ;;  %v1114_v24 = vrot.slane %v4502_v20, 7  ;;  %v1110_v47 = vrot.slane %v4502_v20, 3  ;;  %v1111_v54 = vrot.slane %v4502_v20, 4 }
 0x317   : > { %v1171_v28 = vadd.f32 %v1139_v21, %v1123_v18  ;;  %v1144_v29 = vperm.slane %v1112_v22, 0  ;;  %v1140_v33 = vperm.slane %v1108_v23, 0  ;;  %v1145_v35 = vperm.slane %v1113_v30, 0 }
 0x318   : > { %v1141_v42 = vperm.slane %v1109_v38, 0  ;;  %v1146_v44 = vperm.slane %v1114_v24, 0  ;;  %v1142_v51 = vperm.slane %v1110_v47, 0  ;;  %v1143_v57 = vperm.slane %v1111_v54, 0  ;;  %v1479_v24 = vpop.permute.xlu1 %1478 }
 0x319   : > { %4061 = vtanh.f32 %v1171_v28  ;;  %v1176_v32 = vadd.f32 %v1144_v29, %v1128_v26  ;;  %v1172_v37 = vadd.f32 %v1140_v33, %v1124_v34  ;;  %v1177_v40 = vadd.f32 %v1145_v35, %v1129_v36 }
 0x31a   : > { %v1173_v46 = vadd.f32 %v1141_v42, %v1125_v43  ;;  %v1178_v49 = vadd.f32 %v1146_v44, %v1130_v45  ;;  %v1174_v53 = vadd.f32 %v1142_v51, %v1126_v52  ;;  %v1175_v59 = vadd.f32 %v1143_v57, %v1127_v58  ;;  %v1486_v44 = vpop.permute.xlu2 %1485 }
 0x31b   : > { %4063 = vtanh.f32 %v1176_v32 }
 0x31c   : > { %4065 = vtanh.f32 %v1172_v37 }
 0x31d   : > { %4067 = vtanh.f32 %v1177_v40 }
 0x31e   : > { %4069 = vtanh.f32 %v1173_v46 }
 0x31f   : > { %v4062_v39 = vpop.eup %4061  ;;  %4071 = vtanh.f32 %v1178_v49 }
 0x320   : > { %3838 = vmatmul.msk.f32.gmra.mxu2 %vm926_vm1, %v4062_v39  ;;  %4073 = vtanh.f32 %v1174_v53 }
 0x321   : > { %v4064_v41 = vpop.eup %4063  ;;  %4075 = vtanh.f32 %v1175_v59 }
 0x322   : > { %3843 = vmatmul.msk.f32.vlgmr.msra.gmra.mxu3 %vm926_vm1, %v4064_v41  ;;  %v4066_v48 = vpop.eup %4065 }
 0x323   : > { %v4068_v50 = vpop.eup %4067 }
 0x324   : > { %v4070_v55 = vpop.eup %4069 }
 0x325   : > { %v4072_v56 = vpop.eup %4071 }
 0x326   : > { %v4074_v60 = vpop.eup %4073 }
 0x327   : > { %v4076_v62 = vpop.eup %4075 }
 0x328   : > { %3839 = vmatmul.msk.f32.gmra.mxu2 %vm926_vm1, %v4066_v48 }
 0x32a   : > { %3844 = vmatmul.msk.f32.gmra.mxu3 %vm926_vm1, %v4068_v50 }
 0x330   : > { %3840 = vmatmul.msk.f32.gmra.mxu2 %vm926_vm1, %v4070_v55 }
 0x332   : > { %3845 = vmatmul.msk.f32.gmra.mxu3 %vm926_vm1, %v4072_v56 }
 0x338   : > { %3841 = vmatmul.msk.f32.gmra.mxu2 %vm926_vm1, %v4074_v60 }
 0x340   : > { %3842 = vmatmul.msk.f32.gmra.mxu2 %vm926_vm1, %v4076_v62 }
 0x369   : > { %v1264_v63 = vpop.f32.mrf.mxu0 }
 0x36a   : > { %v1313_v0 = vsel %vm1312_vm10, %v1264_v63, -inf }
 0x36b   : > { %v1314_v2 = vrot.slane %v1313_v0, 4 }
 0x36d   : > { %v1315_v3 = vmax.f32 %v1313_v0, %v1314_v2  ;;  %v4559_v2 = vpop.permute.xlu1 %1499 }
 0x36f   : > { %v1316_v4 = vrot.slane %v1315_v3, 2 }
 0x371   : > { %v1317_v5 = vmax.f32 %v1315_v3, %v1316_v4  ;;  %v1267_v6 = vpop.f32.mrf.mxu0  ;;  %v1276_v7 = vpop.f32.mrf.mxu2 }
 0x372   : > { %v1320_v8 = vsel %vm1312_vm10, %v1267_v6, -inf  ;;  %v1341_v9 = vsel %vm1312_vm10, %v1276_v7, -inf }
 0x373   : > { %v1318_v12 = vrot.slane %v1317_v5, 1  ;;  %v1321_v14 = vrot.slane %v1320_v8, 4  ;;  %v1342_v15 = vrot.slane %v1341_v9, 4 }
 0x375   : > { %v1319_v16 = vmax.f32 %v1317_v5, %v1318_v12  ;;  %v1322_v17 = vmax.f32 %v1320_v8, %v1321_v14  ;;  %v1343_v19 = vmax.f32 %v1341_v9, %v1342_v15  ;;  %v1507_v8 = vpop.permute.xlu2 %1506 }
 0x377   : > { %v1425_v18 = vsub.f32 %v1264_v63, %v1319_v16  ;;  %v1323_v21 = vrot.slane %v1322_v17, 2  ;;  %v1344_v22 = vrot.slane %v1343_v19, 2 }
 0x379   : > { %v1441_v23 = vmul.f32 1.442695, %v1425_v18  ;;  %v1324_v26 = vmax.f32 %v1322_v17, %v1323_v21  ;;  %v1345_v28 = vmax.f32 %v1343_v19, %v1344_v22  ;;  %v1270_v29 = vpop.f32.mrf.mxu0  ;;  %v1279_v30 = vpop.f32.mrf.mxu2 }
 0x37a   : > { %v1327_v31 = vsel %vm1312_vm10, %v1270_v29, -inf  ;;  %v1348_v32 = vsel %vm1312_vm10, %v1279_v30, -inf }
 0x37b   : > { %4077 = vpow2.f32 %v1441_v23  ;;  %v1325_v33 = vrot.slane %v1324_v26, 1  ;;  %v1346_v34 = vrot.slane %v1345_v28, 1  ;;  %v1328_v35 = vrot.slane %v1327_v31, 4 }
 0x37c   : > { %v1349_v36 = vrot.slane %v1348_v32, 4 }
 0x37d   : > { %v1326_v37 = vmax.f32 %v1324_v26, %v1325_v33  ;;  %v1347_v38 = vmax.f32 %v1345_v28, %v1346_v34  ;;  %v1329_v39 = vmax.f32 %v1327_v31, %v1328_v35  ;;  %v1493_v28 = vpop.permute.xlu0 %1492 }
 0x37e   : > { %v1350_v40 = vmax.f32 %v1348_v32, %v1349_v36 }
 0x37f   : > { %v1426_v41 = vsub.f32 %v1267_v6, %v1326_v37  ;;  %v1429_v42 = vsub.f32 %v1276_v7, %v1347_v38  ;;  %v1330_v43 = vrot.slane %v1329_v39, 2  ;;  %v1514_v38 = vpop.permute.xlu1 %1513 }
 0x380   : > { %v1351_v45 = vrot.slane %v1350_v40, 2 }
 0x381   : > { %v4078_v46 = vpop.eup %4077  ;;  %v1443_v47 = vmul.f32 1.442695, %v1426_v41  ;;  %v1449_v48 = vmul.f32 1.442695, %v1429_v42  ;;  %v1331_v49 = vmax.f32 %v1329_v39, %v1330_v43  ;;  %v4553_v53 = vpop.f32.mrf.mxu0 }
 0x382   : > { %v4551_v50 = vmul.f32 %v4078_v46, %v1479_v24  ;;  %v1352_v51 = vmax.f32 %v1350_v40, %v1351_v45  ;;  %v1334_v59 = vsel %vm1312_vm10, %v4553_v53, -inf  ;;  %v4569_v22 = vpop.f32.mrf.mxu2 }
 0x383   : > { %4079 = vpow2.f32 %v1443_v47  ;;  %v1332_v52 = vrot.slane %v1331_v49, 1  ;;  %v1335_v5 = vrot.slane %v1334_v59, 4  ;;  %v1355_v34 = vsel %vm1312_vm10, %v4569_v22, -inf }
 0x384   : > { %v1601_v54 = vsel %vm1312_vm10, %v4551_v50, 0.0  ;;  %4081 = vpow2.f32 %v1449_v48  ;;  %v1353_v55 = vrot.slane %v1352_v51, 1  ;;  %v1356_v41 = vrot.slane %v1355_v34, 4 }
 0x385   : > { %v1602_v56 = vrot.slane %v1601_v54, 4  ;;  %v1333_v57 = vmax.f32 %v1331_v49, %v1332_v52  ;;  %v1336_v18 = vmax.f32 %v1334_v59, %v1335_v5  ;;  %v4188_v59 = vmov 1  }
 0x386   : > { %v1354_v58 = vmax.f32 %v1352_v51, %v1353_v55  ;;  %v1357_v52 = vmax.f32 %v1355_v34, %v1356_v41  ;;  %3969 = vset.pattern.permute.xlu0 %v4188_v59 }
 0x387   : > { %v1603_v60 = vadd.f32 %v1602_v56, %v1601_v54  ;;  %v1427_v62 = vsub.f32 %v1270_v29, %v1333_v57  ;;  %v1337_v33 = vrot.slane %v1336_v18, 2  ;;  %v4187_v54 = vmov 2  }
 0x388   : > { %v1430_v63 = vsub.f32 %v1279_v30, %v1354_v58  ;;  %3971 = vset.pattern.permute.xlu1 %v4187_v54 }
 0x389   : > { %v4080_v0 = vpop.eup %4079  ;;  %v1604_v3 = vrot.slane %v1603_v60, 2  ;;  %v1445_v4 = vmul.f32 1.442695, %v1427_v62  ;;  %v1338_v42 = vmax.f32 %v1336_v18, %v1337_v33 }
 0x38a   : > { %v4082_v6 = vpop.eup %4081  ;;  %v4561_v7 = vmul.f32 %v4080_v0, %v1486_v44  ;;  %v1451_v9 = vmul.f32 1.442695, %v1430_v63  ;;  %v4591_v34 = vpop.f32.mrf.mxu2 }
 0x38b   : > { %v1605_v12 = vadd.f32 %v1604_v3, %v1603_v60  ;;  %v4563_v14 = vmul.f32 %v4082_v6, %v1507_v8  ;;  %4083 = vpow2.f32 %v1445_v4  ;;  %v1339_v57 = vrot.slane %v1338_v42, 1 }
 0x38c   : > { %v1608_v15 = vsel %vm1312_vm10, %v4561_v7, 0.0  ;;  %4085 = vpow2.f32 %v1451_v9  ;;  %v1358_v4 = vrot.slane %v1357_v52, 2 }
 0x38d   : > { %v1606_v16 = vrot.slane %v1605_v12, 1  ;;  %v1609_v17 = vrot.slane %v1608_v15, 4  ;;  %v1629_v19 = vsel %vm1312_vm10, %v4563_v14, 0.0  ;;  %v1340_v6 = vmax.f32 %v1338_v42, %v1339_v57 }
 0x38e   : > { %v1630_v21 = vrot.slane %v1629_v19, 4 }
 0x38f   : > { %v1607_v23 = vadd.f32 %v1606_v16, %v1605_v12  ;;  %v1610_v26 = vadd.f32 %v1609_v17, %v1608_v15  ;;  %v1428_v18 = vsub.f32 %v4553_v53, %v1340_v6 }
 0x390   : > { %v1631_v29 = vadd.f32 %v1630_v21, %v1629_v19  ;;  %v1359_v21 = vmax.f32 %v1357_v52, %v1358_v4 }
 0x391   : > { %v4084_v30 = vpop.eup %4083  ;;  %v1713_v31 = vadd.f32 1e-20, %v1607_v23  ;;  %v1611_v32 = vrot.slane %v1610_v26, 2 }
 0x392   : > { %v4086_v35 = vpop.eup %4085  ;;  %v1632_v36 = vrot.slane %v1631_v29, 2  ;;  %v4573_v37 = vmul.f32 %v4084_v30, %v1493_v28 }
 0x393   : > { %4087 = vrcp.f32 %v1713_v31  ;;  %v1612_v39 = vadd.f32 %v1611_v32, %v1610_v26  ;;  %v4575_v24 = vmul.f32 %v4086_v35, %v1514_v38  ;;  %v1740_v5 = vand.u32 2147483648, %v1713_v31 }
 0x394   : > { %v1633_v40 = vadd.f32 %v1632_v36, %v1631_v29  ;;  %v1615_v46 = vsel %vm1312_vm10, %v4573_v37, 0.0  ;;  %v1738_v12 = vand.u32 2147483647, %v1713_v31  ;;  %vm1734_vm12 = vweird.f32 %v1713_v31 }
 0x395   : > { %v1613_v43 = vrot.slane %v1612_v39, 1  ;;  %v1636_v45 = vsel %vm1312_vm10, %v4575_v24, 0.0  ;;  %v1616_v48 = vrot.slane %v1615_v46, 4  ;;  %v1741_v19 = vor.u32 1.1754944e-38, %v1740_v5 }
 0x396   : > { %v1634_v44 = vrot.slane %v1633_v40, 1  ;;  %v1637_v47 = vrot.slane %v1636_v45, 4  ;;  %vm1739_vm14 = vcmp.eq.f32.partialorder %v1738_v12, 8.507059e+37 }
 0x397   : > { %v1614_v49 = vadd.f32 %v1613_v43, %v1612_v39  ;;  %v1617_v58 = vadd.f32 %v1616_v48, %v1615_v46  ;;  %v1447_v39 = vmul.f32 1.442695, %v1428_v18 }
 0x398   : > { %v1635_v51 = vadd.f32 %v1634_v44, %v1633_v40  ;;  %v1638_v56 = vadd.f32 %v1637_v47, %v1636_v45  ;;  %v1360_v40 = vrot.slane %v1359_v21, 1  ;;  %v1362_v44 = vsel %vm1312_vm10, %v4591_v34, -inf }
 0x399   : > { %v4088_v55 = vpop.eup %4087  ;;  %v4583_v62 = vadd.f32 1e-20, %v1614_v49  ;;  %v1618_v8 = vrot.slane %v1617_v58, 2 }
 0x39a   : > { %v1730_v60 = vmul.f32 %v4088_v55, %v1713_v31  ;;  %v4585_v63 = vadd.f32 1e-20, %v1635_v51  ;;  %v1639_v0 = vrot.slane %v1638_v56, 2  ;;  %vm1735_vm11 = vweird.f32 %v4088_v55 }
 0x39b   : > { %4089 = vrcp.f32 %v4583_v62  ;;  %vm1736_vm13 = vmor %vm1734_vm12, %vm1735_vm11  ;;  %v1619_v23 = vadd.f32 %v1618_v8, %v1617_v58  ;;  %v1755_v42 = vand.u32 2147483648, %v4583_v62  ;;  %v1753_v45 = vand.u32 2147483647, %v4583_v62 }
 0x39c   : > { %v1731_v3 = vsub.f32 1.0, %v1730_v60  ;;  %4091 = vrcp.f32 %v4585_v63  ;;  %v1640_v15 = vadd.f32 %v1639_v0, %v1638_v56  ;;  %v1800_v46 = vand.u32 2147483648, %v4585_v63 }
 0x39d   : > { %v1620_v35 = vrot.slane %v1619_v23, 1  ;;  %v1798_v48 = vand.u32 2147483647, %v4585_v63  ;;  %vm1749_vm2 = vweird.f32 %v4583_v62  ;;  %v1361_v52 = vmax.f32 %v1359_v21, %v1360_v40 }
 0x39e   : > { %v1732_v9 = vmul.f32 %v4088_v55, %v1731_v3  ;;  %v1641_v17 = vrot.slane %v1640_v15, 1  ;;  %vm1794_vm4 = vweird.f32 %v4585_v63  ;;  %vm1754_vm5 = vcmp.eq.f32.partialorder %v1753_v45, 8.507059e+37 }
 0x39f   : > { %v1621_v41 = vadd.f32 %v1620_v35, %v1619_v23  ;;  %v1801_v58 = vor.u32 1.1754944e-38, %v1800_v46  ;;  %vm1799_vm7 = vcmp.eq.f32.partialorder %v1798_v48, 8.507059e+37  ;;  %v1363_v8 = vrot.slane %v1362_v44, 4  ;;  %v4656_v46 = vpop.permute.xlu0 %1527 }
 0x3a0   : > { %v1733_v16 = vadd.f32 %v4088_v55, %v1732_v9  ;;  %v1642_v29 = vadd.f32 %v1641_v17, %v1640_v15  ;;  %v5822_v9 = vmov 3  }
 0x3a1   : > { %v4090_v26 = vpop.eup %4089  ;;  %v4609_v49 = vadd.f32 1e-20, %v1621_v41  ;;  %v1364_v21 = vmax.f32 %v1362_v44, %v1363_v8 }
 0x3a2   : > { %v1737_v28 = vsel %vm1736_vm13, %v4088_v55, %v1733_v16  ;;  %v4092_v30 = vpop.eup %4091  ;;  %v1745_v33 = vmul.f32 %v4090_v26, %v4583_v62  ;;  %v4597_v38 = vadd.f32 1e-20, %v1642_v29  ;;  %vm1750_vm15 = vweird.f32 %v4090_v26 }
 0x3a3   : > { %v1742_v32 = vsel %vm1739_vm14, %v1741_v19, %v1737_v28  ;;  %v1790_v36 = vmul.f32 %v4092_v30, %v4585_v63  ;;  %vm1795_vm0 = vweird.f32 %v4092_v30  ;;  %vm1751_vm3 = vmor %vm1749_vm2, %vm1750_vm15  ;;  %v1756_v55 = vor.u32 1.1754944e-38, %v1755_v42  ;;  %v4633_v23 = vpop.f32.mrf.mxu2 }
 0x3a4   : > { %v4594_v31 = vmul.f32 %v1742_v32, %v4551_v50  ;;  %v1746_v53 = vsub.f32 1.0, %v1745_v33  ;;  %4093 = vrcp.f32 %v4597_v38  ;;  %vm1796_vm6 = vmor %vm1794_vm4, %vm1795_vm0  ;;  %v1431_v16 = vsub.f32 %v4569_v22, %v1361_v52 }
 0x3a5   : > { %v1791_v43 = vsub.f32 1.0, %v1790_v36  ;;  %4095 = vpow2.f32 %v1447_v39  ;;  %v4614_v4 = vpop.f32.mrf.mxu3  ;;  %v1815_v17 = vand.u32 2147483648, %v4597_v38  ;;  %v1813_v19 = vand.u32 2147483647, %v4597_v38 }
 0x3a6   : > { %2618 = vperm.xlu1 %3971, %v4594_v31   ;;  %2058 = vperm.xlu2 %3970, %v4594_v31   ;;  %v1747_v50 = vmul.f32 %v4090_v26, %v1746_v53  ;;  %4097 = vrcp.f32 %v4609_v49  ;;  %v1404_v22 = vsel %vm1312_vm10, %v4614_v4, -inf  ;;  %vm1809_vm9 = vweird.f32 %v4597_v38 }
 0x3a7   : > { %2285 = vperm.xlu0 %3969, %v4594_v31   ;;  %v1792_v47 = vmul.f32 %v4092_v30, %v1791_v43  ;;  %v1453_v29 = vmul.f32 1.442695, %v1431_v16  ;;  %vm1814_vm12 = vcmp.eq.f32.partialorder %v1813_v19, 8.507059e+37  ;;  %v1369_v35 = vsel %vm1312_vm10, %v4633_v23, -inf  ;;  %v4677_v19 = vpop.permute.xlu1 %1534 }
 0x3a8   : > { %v1748_v51 = vadd.f32 %v4090_v26, %v1747_v50  ;;  %v1405_v36 = vrot.slane %v1404_v22, 4  ;;  %v1365_v39 = vrot.slane %v1364_v21, 2  ;;  %v1370_v44 = vrot.slane %v1369_v35, 4 }
 0x3a9   : > { %v1793_v56 = vadd.f32 %v4092_v30, %v1792_v47  ;;  %4099 = vpow2.f32 %v1453_v29  ;;  %vm1764_vm14 = vweird.f32 %v4609_v49  ;;  %v1768_v45 = vand.u32 2147483647, %v4609_v49  ;;  %v4681_v29 = vpop.permute.xlu0 %1548 }
 0x3aa   : > { %v1752_v57 = vsel %vm1751_vm3, %v4090_v26, %v1748_v51  ;;  %v4094_v60 = vpop.eup %4093  ;;  %v1406_v50 = vmax.f32 %v1404_v22, %v1405_v36  ;;  %v1366_v47 = vmax.f32 %v1364_v21, %v1365_v39 }
 0x3ab   : > { %v1757_v0 = vsel %vm1754_vm5, %v1756_v55, %v1752_v57  ;;  %v1797_v3 = vsel %vm1796_vm6, %v4092_v30, %v1793_v56  ;;  %v1805_v6 = vmul.f32 %v4094_v60, %v4597_v38  ;;  %v4096_v12 = vpop.eup %4095  ;;  %vm1810_vm8 = vweird.f32 %v4094_v60 }
 0x3ac   : > { %v4617_v62 = vmul.f32 %v1757_v0, %v4561_v7  ;;  %v1802_v5 = vsel %vm1799_vm7, %v1801_v58, %v1797_v3  ;;  %v4098_v7 = vpop.eup %4097  ;;  %v4639_v28 = vmul.f32 %v4096_v12, %v4559_v2  ;;  %vm1811_vm11 = vmor %vm1809_vm9, %vm1810_vm8  ;;  %v1816_v30 = vor.u32 1.1754944e-38, %v1815_v17 }
 0x3ad   : > { %v4621_v63 = vmul.f32 %v1802_v5, %v4563_v14  ;;  %v1806_v15 = vsub.f32 1.0, %v1805_v6  ;;  %v1760_v18 = vmul.f32 %v4098_v7, %v4609_v49  ;;  %v4643_v41 = vpop.f32.mrf.mxu3  ;;  %vm1765_vm13 = vweird.f32 %v4098_v7 }
 0x3ae   : > { %3972 = vset.pattern.permute.xlu1 %v5822_v9  ;;  %3974 = vset.pattern.permute.xlu2 %v4188_v59  ;;  %v1622_v38 = vsel %vm1312_vm10, %v4639_v28, 0.0  ;;  %v1770_v2 = vand.u32 2147483648, %v4609_v49  ;;  %vm1766_vm15 = vmor %vm1764_vm14, %vm1765_vm13  ;;  %v1407_v51 = vrot.slane %v1406_v50, 2  ;;  %v1411_v52 = vsel %vm1312_vm10, %v4643_v41, -inf  ;;  %v4664_v49 = vpop.f32.mrf.mxu2 }
 0x3af   : > { %3975 = vset.pattern.permute.xlu0 %v5824_v25  ;;  %2889 = vperm.xlu1 %3972, %v4594_v31   ;;  %v1807_v14 = vmul.f32 %v4094_v60, %v1806_v15  ;;  %v1761_v32 = vsub.f32 1.0, %v1760_v18  ;;  %v1371_v56 = vmax.f32 %v1369_v35, %v1370_v44  ;;  %v4100_v57 = vpop.eup %4099  ;;  %vm1769_vm0 = vcmp.eq.f32.partialorder %v1768_v45, 8.507059e+37 }
 0x3b0   : > { %2301 = vperm.xlu2 %3974, %v4621_v63   ;;  %2063 = vperm.xlu0 %3975, %v4617_v62   ;;  %v1771_v55 = vor.u32 1.1754944e-38, %v1770_v2  ;;  %v1408_v58 = vmax.f32 %v1406_v50, %v1407_v51  ;;  %v1367_v0 = vrot.slane %v1366_v47, 1  ;;  %v1412_v5 = vrot.slane %v1411_v52, 4 }
 0x3b1   : > { %v1808_v26 = vadd.f32 %v4094_v60, %v1807_v14  ;;  %v1762_v40 = vmul.f32 %v4098_v7, %v1761_v32  ;;  %v1376_v12 = vsel %vm1312_vm10, %v4664_v49, -inf  ;;  %v1372_v16 = vrot.slane %v1371_v56, 2 }
 0x3b2   : > { %v1409_v8 = vrot.slane %v1408_v58, 1  ;;  %v1368_v18 = vmax.f32 %v1366_v47, %v1367_v0  ;;  %v1377_v21 = vrot.slane %v1376_v12, 4  ;;  %v1413_v22 = vmax.f32 %v1411_v52, %v1412_v5 }
 0x3b3   : > { %v1812_v33 = vsel %vm1811_vm11, %v4094_v60, %v1808_v26  ;;  %v1763_v43 = vadd.f32 %v4098_v7, %v1762_v40  ;;  %v1521_v60 = vpop.permute.xlu2 %1520 }
 0x3b4   : > { %v1817_v53 = vsel %vm1814_vm12, %v1816_v30, %v1812_v33  ;;  %v4668_v15 = vmul.f32 %v4100_v57, %v1521_v60  ;;  %v1410_v14 = vmax.f32 %v1408_v58, %v1409_v8  ;;  %v1373_v33 = vmax.f32 %v1371_v56, %v1372_v16  ;;  %v4700_v58 = vpop.permute.xlu1 %1555 }
 0x3b5   : > { %v4650_v42 = vmul.f32 %v1817_v53, %v4575_v24  ;;  %v1623_v24 = vrot.slane %v1622_v38, 4  ;;  %v1767_v48 = vsel %vm1766_vm15, %v4098_v7, %v1763_v43  ;;  %v4670_v7 = vpop.f32.mrf.mxu3  ;;  %v1414_v35 = vrot.slane %v1413_v22, 2 }
 0x3b6   : > { %v1772_v3 = vsel %vm1769_vm0, %v1771_v55, %v1767_v48  ;;  %v1418_v30 = vsel %vm1312_vm10, %v4670_v7, -inf  ;;  %v1643_v32 = vsel %vm1312_vm10, %v4668_v15, 0.0  ;;  %v1432_v39 = vsub.f32 %v4591_v34, %v1368_v18  ;;  %v4691_v2 = vpop.f32.mrf.mxu2 }
 0x3b7   : > { %3973 = vset.pattern.permute.xlu1 %v4188_v59  ;;  %v1624_v6 = vadd.f32 %v1623_v24, %v1622_v38  ;;  %v4673_v17 = vmul.f32 %v1772_v3, %v4573_v37  ;;  %v1438_v37 = vsub.f32 %v4614_v4, %v1410_v14  ;;  %v1419_v53 = vrot.slane %v1418_v30, 4 }
 0x3b8   : > { %3977 = vset.pattern.permute.xlu2 %v4187_v54  ;;  %3982 = vset.pattern.permute.xlu0 %v4188_v59  ;;  %v1378_v40 = vmax.f32 %v1376_v12, %v1377_v21  ;;  %v1415_v38 = vmax.f32 %v1413_v22, %v1414_v35  ;;  %v1644_v43 = vrot.slane %v1643_v32, 4  ;;  %v1374_v45 = vrot.slane %v1373_v33, 1 }
 0x3b9   : > { %2289 = vperm.xlu1 %3973, %v4617_v62   ;;  %2622 = vperm.xlu2 %3977, %v4617_v62   ;;  %5856 = vst [vmem:[#allocation6_spill] sm:$0xff] %v4673_v17  ;;  %v1625_v26 = vrot.slane %v1624_v6, 2  ;;  %v1467_v36 = vmul.f32 1.442695, %v1438_v37  ;;  %v1420_v44 = vmax.f32 %v1418_v30, %v1419_v53  ;;  %v1383_v24 = vsel %vm1312_vm10, %v4691_v2, -inf }
 0x3ba   : > { %2305 = vperm.xlu0 %3982, %v4650_v42   ;;  %v1416_v47 = vrot.slane %v1415_v38, 1  ;;  %v1379_v51 = vrot.slane %v1378_v40, 2  ;;  %v1645_v55 = vadd.f32 %v1644_v43, %v1643_v32  ;;  %v1455_v56 = vmul.f32 1.442695, %v1432_v39 }
 0x3bb   : > { %v1626_v4 = vadd.f32 %v1625_v26, %v1624_v6  ;;  %4101 = vpow2.f32 %v1467_v36  ;;  %v4693_v50 = vpop.permute.xlu2 %1541  ;;  %v1421_v48 = vrot.slane %v1420_v44, 2  ;;  %v1375_v60 = vmax.f32 %v1373_v33, %v1374_v45  ;;  %v1570_v6 = vpop.permute.xlu0 %1569 }
 0x3bc   : > { %v1417_v52 = vmax.f32 %v1415_v38, %v1416_v47  ;;  %v1384_v3 = vrot.slane %v1383_v24, 4  ;;  %v1380_v16 = vmax.f32 %v1378_v40, %v1379_v51  ;;  %v1646_v21 = vrot.slane %v1645_v55, 2  ;;  %v1577_v47 = vpop.permute.xlu1 %1576 }
 0x3bd   : > { %v1627_v34 = vrot.slane %v1626_v4, 1  ;;  %v1422_v57 = vmax.f32 %v1420_v44, %v1421_v48  ;;  %4103 = vpow2.f32 %v1455_v56  ;;  %v1433_v26 = vsub.f32 %v4633_v23, %v1375_v60 }
 0x3be   : > { %v1439_v0 = vsub.f32 %v4643_v41, %v1417_v52  ;;  %v1385_v37 = vmax.f32 %v1383_v24, %v1384_v3  ;;  %v4710_v30 = vpop.f32.mrf.mxu2  ;;  %v1381_v36 = vrot.slane %v1380_v16, 1  ;;  %v1647_v38 = vadd.f32 %v1646_v21, %v1645_v55 }
 0x3bf   : > { %v1423_v8 = vrot.slane %v1422_v57, 1  ;;  %v1628_v18 = vadd.f32 %v1627_v34, %v1626_v4  ;;  %v1390_v23 = vsel %vm1312_vm10, %v4710_v30, -inf  ;;  %v1457_v4 = vmul.f32 1.442695, %v1433_v26 }
 0x3c0   : > { %v1469_v14 = vmul.f32 1.442695, %v1439_v0  ;;  %v1386_v43 = vrot.slane %v1385_v37, 2  ;;  %v1382_v24 = vmax.f32 %v1380_v16, %v1381_v36  ;;  %v1391_v48 = vrot.slane %v1390_v23, 4 }
 0x3c1   : > { %3976 = vset.pattern.permute.xlu1 %v5824_v25  ;;  %3978 = vset.pattern.permute.xlu2 %v5822_v9  ;;  %v4102_v5 = vpop.eup %4101  ;;  %v1424_v22 = vmax.f32 %v1422_v57, %v1423_v8  ;;  %v4715_v53 = vadd.f32 1e-20, %v1628_v18  ;;  %v1648_v34 = vrot.slane %v1647_v38, 1 }
 0x3c2   : > { %3986 = vset.pattern.permute.xlu0 %v5822_v9  ;;  %2078 = vperm.xlu1 %3976, %v4621_v63   ;;  %v4705_v12 = vmul.f32 %v4102_v5, %v1570_v6  ;;  %4105 = vpow2.f32 %v1469_v14  ;;  %v1387_v55 = vmax.f32 %v1385_v37, %v1386_v43  ;;  %v1434_v0 = vsub.f32 %v4664_v49, %v1382_v24 }
 0x3c3   : > { %2893 = vperm.xlu2 %3978, %v4617_v62   ;;  %2897 = vperm.xlu0 %3986, %v4673_v17   ;;  %v1440_v33 = vsub.f32 %v4670_v7, %v1424_v22  ;;  %v4713_v35 = vpop.permute.xlu2 %1562  ;;  %v4104_v7 = vpop.eup %4103  ;;  %v1392_v5 = vmax.f32 %v1390_v23, %v1391_v48  ;;  %v1649_v8 = vadd.f32 %v1648_v34, %v1647_v38  ;;  %vm1779_vm7 = vweird.f32 %v4715_v53 }
 0x3c4   : > { %v1692_v41 = vsel %vm1312_vm10, %v4705_v12, 0.0  ;;  %v4727_v56 = vmul.f32 %v4104_v7, %v4656_v46  ;;  %v1388_v21 = vrot.slane %v1387_v55, 1  ;;  %v1459_v37 = vmul.f32 1.442695, %v1434_v0 }
 0x3c5   : > { %v1693_v32 = vrot.slane %v1692_v41, 4  ;;  %v1471_v40 = vmul.f32 1.442695, %v1440_v33  ;;  %v1393_v33 = vrot.slane %v1392_v5, 2 }
 0x3c6   : > { %v1650_v46 = vsel %vm1312_vm10, %v4727_v56, 0.0  ;;  %v1389_v23 = vmax.f32 %v1387_v55, %v1388_v21 }
 0x3c7   : > { %v1694_v39 = vadd.f32 %v1693_v32, %v1692_v41  ;;  %4107 = vpow2.f32 %v1471_v40  ;;  %v1651_v40 = vrot.slane %v1650_v46, 4 }
 0x3c8   : > { %v4106_v45 = vpop.eup %4105  ;;  %4109 = vrcp.f32 %v4715_v53 }
 0x3c9   : > { %v1695_v44 = vrot.slane %v1694_v39, 2  ;;  %v4724_v52 = vmul.f32 %v4106_v45, %v1577_v47  ;;  %4111 = vpow2.f32 %v1457_v4  ;;  %v4752_v45 = vpop.f32.mrf.mxu2  ;;  %v1652_v48 = vadd.f32 %v1651_v40, %v1650_v46 }
 0x3ca   : > { %3980 = vset.pattern.permute.xlu1 %v5822_v9 }
 0x3cb   : > { %3979 = vset.pattern.permute.xlu2 %v4187_v54  ;;  %2905 = vperm.xlu1 %3980, %v4621_v63   ;;  %v1696_v51 = vadd.f32 %v1695_v44, %v1694_v39  ;;  %v1699_v60 = vsel %vm1312_vm10, %v4724_v52, 0.0  ;;  %v1584_v16 = vpop.permute.xlu2 %1583  ;;  %v4744_v39 = vadd.f32 1e-20, %v1649_v8  ;;  %v1394_v44 = vmax.f32 %v1392_v5, %v1393_v33 }
 0x3cc   : > { %2634 = vperm.xlu2 %3979, %v4621_v63   ;;  %3990 = vset.pattern.permute.xlu0 %v4187_v54  ;;  %v1700_v3 = vrot.slane %v1699_v60, 4  ;;  %v1653_v21 = vrot.slane %v1652_v48, 2 }
 0x3cd   : > { %v1697_v57 = vrot.slane %v1696_v51, 1  ;;  %v4108_v6 = vpop.eup %4107  ;;  %vm1824_vm14 = vweird.f32 %v4744_v39 }
 0x3ce   : > { %v1701_v18 = vadd.f32 %v1700_v3, %v1699_v60  ;;  %v4733_v22 = vpop.eup %4109  ;;  %v4737_v26 = vmul.f32 %v4108_v6, %v1584_v16  ;;  %v1395_v3 = vrot.slane %v1394_v44, 1 }
 0x3cf   : > { %v1698_v14 = vadd.f32 %v1697_v57, %v1696_v51  ;;  %v4112_v49 = vpop.eup %4111  ;;  %v1775_v38 = vmul.f32 %v4733_v22, %v4715_v53  ;;  %v1435_v51 = vsub.f32 %v4691_v2, %v1389_v23  ;;  %vm1780_vm3 = vweird.f32 %v4733_v22 }
 0x3d0   : > { %v1702_v32 = vrot.slane %v1701_v18, 2  ;;  %v1706_v36 = vsel %vm1312_vm10, %v4737_v26, 0.0  ;;  %v4750_v4 = vmul.f32 %v4112_v49, %v4677_v19  ;;  %v1397_v19 = vsel %vm1312_vm10, %v4752_v45, -inf  ;;  %vm4789_vm8 = vmor %vm1779_vm7, %vm1780_vm3 }
 0x3d1   : > { %v4740_v41 = vadd.f32 1e-20, %v1698_v14  ;;  %v1707_v7 = vrot.slane %v1706_v36, 4  ;;  %v1776_v34 = vsub.f32 1.0, %v1775_v38  ;;  %v1461_v16 = vmul.f32 1.442695, %v1435_v51 }
 0x3d2   : > { %v1703_v43 = vadd.f32 %v1702_v32, %v1701_v18  ;;  %v1657_v55 = vsel %vm1312_vm10, %v4750_v4, 0.0  ;;  %v1398_v14 = vrot.slane %v1397_v19, 4  ;;  %v1396_v32 = vmax.f32 %v1394_v44, %v1395_v3 }
 0x3d3   : > { %3983 = vset.pattern.permute.xlu1 %v5824_v25  ;;  %4113 = vrcp.f32 %v4740_v41  ;;  %v1708_v24 = vadd.f32 %v1707_v7, %v1706_v36  ;;  %v1658_v8 = vrot.slane %v1657_v55, 4  ;;  %v1777_v18 = vmul.f32 %v4733_v22, %v1776_v34 }
 0x3d4   : > { %3981 = vset.pattern.permute.xlu2 %v4188_v59  ;;  %2068 = vperm.xlu1 %3983, %v4673_v17   ;;  %4115 = vpow2.f32 %v1459_v37  ;;  %v1704_v47 = vrot.slane %v1703_v43, 1  ;;  %v1935_v49 = vand.u32 2147483648, %v4740_v41  ;;  %v1933_v40 = vand.u32 2147483647, %v4740_v41 }
 0x3d5   : > { %2293 = vperm.xlu2 %3981, %v4673_v17   ;;  %4117 = vrcp.f32 %v4744_v39  ;;  %v1709_v0 = vrot.slane %v1708_v24, 2  ;;  %v1785_v38 = vand.u32 2147483648, %v4715_v53  ;;  %v1399_v7 = vmax.f32 %v1397_v19, %v1398_v14 }
 0x3d6   : > { %v1705_v60 = vadd.f32 %v1704_v47, %v1703_v43  ;;  %v1659_v43 = vadd.f32 %v1658_v8, %v1657_v55  ;;  %v1654_v47 = vadd.f32 %v1653_v21, %v1652_v48  ;;  %vm1929_vm4 = vweird.f32 %v4740_v41 }
 0x3d7   : > { %v1710_v37 = vadd.f32 %v1709_v0, %v1708_v24  ;;  %v1936_v24 = vor.u32 1.1754944e-38, %v1935_v49  ;;  %vm1934_vm6 = vcmp.eq.f32.partialorder %v1933_v40, 8.507059e+37 }
 0x3d8   : > { %v4762_v2 = vadd.f32 1e-20, %v1705_v60  ;;  %v1778_v60 = vadd.f32 %v4733_v22, %v1777_v18  ;;  %v1660_v48 = vrot.slane %v1659_v43, 2  ;;  %v1655_v49 = vrot.slane %v1654_v47, 1 }
 0x3d9   : > { %v4114_v57 = vpop.eup %4113  ;;  %v1711_v34 = vrot.slane %v1710_v37, 1 }
 0x3da   : > { %v1925_v5 = vmul.f32 %v4114_v57, %v4740_v41  ;;  %v4116_v6 = vpop.eup %4115  ;;  %4119 = vrcp.f32 %v4762_v2  ;;  %vm1930_vm2 = vweird.f32 %v4114_v57  ;;  %vm1944_vm12 = vweird.f32 %v4762_v2 }
 0x3db   : > { %v4767_v33 = vpop.eup %4117  ;;  %v4771_v23 = vmul.f32 %v4116_v6, %v4693_v50  ;;  %4121 = vpow2.f32 %v1461_v16  ;;  %vm1931_vm5 = vmor %vm1929_vm4, %vm1930_vm2  ;;  %v1436_v50 = vsub.f32 %v4710_v30, %v1396_v32  ;;  %v1712_v8 = vadd.f32 %v1711_v34, %v1710_v37 }
 0x3dc   : > { %3985 = vset.pattern.permute.xlu1 %v4187_v54  ;;  %v1926_v46 = vsub.f32 1.0, %v1925_v5  ;;  %v1820_v44 = vmul.f32 %v4767_v33, %v4744_v39  ;;  %v1400_v5 = vrot.slane %v1399_v7, 2  ;;  %v1783_v16 = vand.u32 2147483647, %v4715_v53 }
 0x3dd   : > { %2626 = vperm.xlu1 %3985, %v4673_v17   ;;  %v1664_v55 = vsel %vm1312_vm10, %v4771_v23, 0.0  ;;  %v1463_v21 = vmul.f32 1.442695, %v1436_v50  ;;  %v1661_v37 = vadd.f32 %v1660_v48, %v1659_v43  ;;  %v4800_v40 = vadd.f32 1e-20, %v1712_v8 }
 0x3de   : > { %v1927_v36 = vmul.f32 %v4114_v57, %v1926_v46  ;;  %v1821_v14 = vsub.f32 1.0, %v1820_v44  ;;  %v1665_v18 = vrot.slane %v1664_v55, 4  ;;  %v1786_v46 = vor.u32 1.1754944e-38, %v1785_v38 }
 0x3df   : > { %v1401_v53 = vmax.f32 %v1399_v7, %v1400_v5  ;;  %v1948_v44 = vand.u32 2147483647, %v4762_v2  ;;  %vm1784_vm11 = vcmp.eq.f32.partialorder %v1783_v16, 8.507059e+37  ;;  %4123 = vpow2.f32 %v1463_v21 }
 0x3e0   : > { %v1928_v51 = vadd.f32 %v4114_v57, %v1927_v36  ;;  %v4120_v19 = vpop.eup %4119  ;;  %v1950_v36 = vand.u32 2147483648, %v4762_v2  ;;  %v1822_v38 = vmul.f32 %v4767_v33, %v1821_v14  ;;  %v1656_v34 = vadd.f32 %v1655_v49, %v1654_v47 }
 0x3e1   : > { %v1940_v6 = vmul.f32 %v4120_v19, %v4762_v2  ;;  %v4122_v30 = vpop.eup %4121  ;;  %vm1945_vm9 = vweird.f32 %v4120_v19  ;;  %v1662_v7 = vrot.slane %v1661_v37, 1  ;;  %4125 = vrcp.f32 %v4800_v40 }
 0x3e2   : > { %v1932_v0 = vsel %vm1931_vm5, %v4114_v57, %v1928_v51  ;;  %vm1946_vm13 = vmor %vm1944_vm12, %vm1945_vm9  ;;  %vm1949_vm15 = vcmp.eq.f32.partialorder %v1948_v44, 8.507059e+37  ;;  %vm1825_vm0 = vweird.f32 %v4767_v33  ;;  %v1830_v5 = vand.u32 2147483648, %v4744_v39 }
 0x3e3   : > { %v1937_v3 = vsel %vm1934_vm6, %v1936_v24, %v1932_v0  ;;  %v1941_v32 = vsub.f32 1.0, %v1940_v6  ;;  %v1666_v24 = vadd.f32 %v1665_v18, %v1664_v55  ;;  %v1402_v0 = vrot.slane %v1401_v53, 1  ;;  %vm1826_vm2 = vmor %vm1824_vm14, %vm1825_vm0 }
 0x3e4   : > { %v4784_v41 = vmul.f32 %v1937_v3, %v4705_v12  ;;  %v1782_v12 = vsel %vm4789_vm8, %v4733_v22, %v1778_v60  ;;  %v4805_v22 = vmul.f32 %v4122_v30, %v4681_v29  ;;  %v1951_v60 = vor.u32 1.1754944e-38, %v1950_v36 }
 0x3e5   : > { %3987 = vset.pattern.permute.xlu1 %v5824_v25  ;;  %v1942_v51 = vmul.f32 %v4120_v19, %v1941_v32  ;;  %v1787_v43 = vsel %vm1784_vm11, %v1786_v46, %v1782_v12  ;;  %v1823_v55 = vadd.f32 %v4767_v33, %v1822_v38  ;;  %v1667_v47 = vrot.slane %v1666_v24, 2 }
 0x3e6   : > { %2337 = vperm.xlu2 %3981, %v4784_v41   ;;  %2670 = vperm.xlu0 %3990, %v4784_v41   ;;  %v1671_v48 = vsel %vm1312_vm10, %v4805_v22, 0.0  ;;  %v4816_v2 = vmul.f32 %v1787_v43, %v4639_v28  ;;  %v4819_v6 = vadd.f32 1e-20, %v1656_v34  ;;  %v1828_v30 = vand.u32 2147483647, %v4744_v39 }
 0x3e7   : > { %2123 = vperm.xlu1 %3987, %v4784_v41   ;;  %v1943_v50 = vadd.f32 %v4120_v19, %v1942_v51  ;;  %v1663_v57 = vadd.f32 %v1662_v7, %v1661_v37  ;;  %v1672_v16 = vrot.slane %v1671_v48, 4  ;;  %v1403_v14 = vmax.f32 %v1401_v53, %v1402_v0 }
 0x3e8   : > { %v1668_v18 = vadd.f32 %v1667_v47, %v1666_v24  ;;  %v1831_v21 = vor.u32 1.1754944e-38, %v1830_v5  ;;  %4127 = vrcp.f32 %v4819_v6  ;;  %vm1829_vm3 = vcmp.eq.f32.partialorder %v1828_v30, 8.507059e+37 }
 0x3e9   : > { %v1947_v29 = vsel %vm1946_vm13, %v4120_v19, %v1943_v50  ;;  %v4124_v19 = vpop.eup %4123  ;;  %v4842_v46 = vadd.f32 1e-20, %v1663_v57  ;;  %v1673_v39 = vadd.f32 %v1672_v16, %v1671_v48  ;;  %v1437_v49 = vsub.f32 %v4752_v45, %v1403_v14 }
 0x3ea   : > { %v1952_v3 = vsel %vm1949_vm15, %v1951_v60, %v1947_v29  ;;  %v4835_v28 = vpop.eup %4125  ;;  %v4840_v12 = vmul.f32 %v4124_v19, %v4700_v58  ;;  %v1965_v19 = vand.u32 2147483648, %v4800_v40  ;;  %vm1959_vm5 = vweird.f32 %v4800_v40 }
 0x3eb   : > { %v4822_v8 = vmul.f32 %v1952_v3, %v4724_v52  ;;  %v1827_v52 = vsel %vm1826_vm2, %v4767_v33, %v1823_v55  ;;  %v1955_v36 = vmul.f32 %v4835_v28, %v4800_v40  ;;  %v1669_v33 = vrot.slane %v1668_v18, 1 }
 0x3ec   : > { %v1832_v37 = vsel %vm1829_vm3, %v1831_v21, %v1827_v52  ;;  %v1678_v53 = vsel %vm1312_vm10, %v4840_v12, 0.0  ;;  %4129 = vrcp.f32 %v4842_v46  ;;  %v1674_v58 = vrot.slane %v1673_v39, 2 }
 0x3ed   : > { %5859 = vst [vmem:[#allocation7_spill] sm:$0xff] %v4822_v8  ;;  %v4852_v51 = vmul.f32 %v1832_v37, %v4668_v15  ;;  %v1465_v44 = vmul.f32 1.442695, %v1437_v49  ;;  %v1956_v38 = vsub.f32 1.0, %v1955_v36  ;;  %v1670_v24 = vadd.f32 %v1669_v33, %v1668_v18  ;;  %v2040_v36 = vld [vmem:[%s5864_s22] sm:$0xff] }
 0x3ee   : > { %3984 = vset.pattern.permute.xlu2 %v5824_v25  ;;  %3992 = vset.pattern.permute.xlu0 %v4188_v59  ;;  %v4856_v45 = vpop.eup %4127  ;;  %v1679_v43 = vrot.slane %v1678_v53, 4  ;;  %v1675_v34 = vadd.f32 %v1674_v58, %v1673_v39  ;;  %vm1960_vm4 = vweird.f32 %v4835_v28  ;;  %v1963_v57 = vand.u32 2147483647, %v4800_v40  ;;  %v3869_v39 = vld [vmem:[%s5863_s25 + $0x108] sm:$0xff] }
 0x3ef   : > { %2083 = vperm.xlu2 %3984, %v4650_v42   ;;  %3991 = vset.pattern.permute.xlu1 %v4188_v59  ;;  %5860 = vst [vmem:[#allocation8_spill] sm:$0xff] %v4852_v51  ;;  %v1835_v15 = vmul.f32 %v4856_v45, %v4819_v6  ;;  %4131 = vpow2.f32 %v1465_v44  ;;  %v1957_v50 = vmul.f32 %v4835_v28, %v1956_v38  ;;  %v4867_v60 = vadd.f32 1e-20, %v1670_v24  ;;  %vm4885_vm6 = vmor %vm1959_vm5, %vm1960_vm4 }
 0x3f0   : > { %2341 = vperm.xlu0 %3992, %v4822_v8   ;;  %2297 = vperm.xlu1 %3991, %v4816_v2   ;;  %v1680_v0 = vadd.f32 %v1679_v43, %v1678_v53  ;;  %v1676_v55 = vrot.slane %v1675_v34, 1  ;;  %v1966_v49 = vor.u32 1.1754944e-38, %v1965_v19  ;;  %vm1840_vm7 = vweird.f32 %v4856_v45 }
 0x3f1   : > { %v1836_v48 = vsub.f32 1.0, %v1835_v15  ;;  %v1958_v3 = vadd.f32 %v4835_v28, %v1957_v50  ;;  %4133 = vrcp.f32 %v4867_v60  ;;  %v1843_v33 = vand.u32 2147483647, %v4819_v6 }
 0x3f2   : > { %v4865_v7 = vpop.eup %4129  ;;  %v1681_v30 = vrot.slane %v1680_v0, 2  ;;  %v1677_v14 = vadd.f32 %v1676_v55, %v1675_v34  ;;  %vm1964_vm8 = vcmp.eq.f32.partialorder %v1963_v57, 8.507059e+37  ;;  %vm2152_vm9 = vcmask 130048  }
 0x3f3   : > { %v1850_v47 = vmul.f32 %v4865_v7, %v4842_v46  ;;  %v1837_v16 = vmul.f32 %v4856_v45, %v1836_v48  ;;  %v1962_v21 = vsel %vm4885_vm6, %v4835_v28, %v1958_v3  ;;  %vm1839_vm11 = vweird.f32 %v4819_v6  ;;  %v3868_v48 = vld [vmem:[%s5864_s22 + $0x100] sm:$0xff] }
 0x3f4   : > { %v1682_v37 = vadd.f32 %v1681_v30, %v1680_v0  ;;  %v4907_v58 = vadd.f32 1e-20, %v1677_v14  ;;  %v1967_v44 = vsel %vm1964_vm8, %v1966_v49, %v1962_v21  ;;  %v1845_v34 = vand.u32 2147483648, %v4819_v6  ;;  %vm4922_vm12 = vmor %vm1839_vm11, %vm1840_vm7 }
 0x3f5   : > { %v4132_v5 = vpop.eup %4131  ;;  %v1851_v18 = vsub.f32 1.0, %v1850_v47  ;;  %vm4926_vm13 = vcmp.eq.f32.partialorder %v1843_v33, 8.507059e+37  ;;  %v4933_v47 = vmul.f32 %v1967_v44, %v4737_v26  ;;  %vm1855_vm14 = vweird.f32 %v4865_v7 }
 0x3f6   : > { %v4894_v40 = vmul.f32 %v4132_v5, %v4713_v35  ;;  %v1838_v35 = vadd.f32 %v4856_v45, %v1837_v16  ;;  %v1683_v50 = vrot.slane %v1682_v37, 1  ;;  %4135 = vrcp.f32 %v4907_v58 }
 0x3f7   : > { %3988 = vset.pattern.permute.xlu2 %v4187_v54  ;;  %v4904_v28 = vpop.eup %4133  ;;  %v1852_v24 = vmul.f32 %v4865_v7, %v1851_v18  ;;  %5869 = vst [vmem:[#allocation9_spill] sm:$0xff] %v4933_v47  ;;  %v1846_v18 = vor.u32 1.1754944e-38, %v1845_v34  ;;  %vm1854_vm15 = vweird.f32 %v4842_v46  ;;  %vm1869_vm3 = vweird.f32 %v4867_v60 }
 0x3f8   : > { %3994 = vset.pattern.permute.xlu0 %v5824_v25  ;;  %2638 = vperm.xlu2 %3988, %v4650_v42   ;;  %v1685_v43 = vsel %vm1312_vm10, %v4894_v40, 0.0  ;;  %v1865_v6 = vmul.f32 %v4904_v28, %v4867_v60  ;;  %v1842_v5 = vsel %vm4922_vm12, %v4856_v45, %v1838_v35  ;;  %v1858_v45 = vand.u32 2147483647, %v4842_v46  ;;  %vm4959_vm0 = vmor %vm1854_vm15, %vm1855_vm14 }
 0x3f9   : > { %2088 = vperm.xlu0 %3994, %v4852_v51   ;;  %2309 = vperm.xlu1 %3991, %v4852_v51   ;;  %v1686_v19 = vrot.slane %v1685_v43, 4  ;;  %v1853_v26 = vadd.f32 %v4865_v7, %v1852_v24  ;;  %v1684_v21 = vadd.f32 %v1683_v50, %v1682_v37  ;;  %v1847_v35 = vsel %vm4926_vm13, %v1846_v18, %v1842_v5 }
 0x3fa   : > { %v1866_v49 = vsub.f32 1.0, %v1865_v6  ;;  %vm1859_vm2 = vcmp.eq.f32.partialorder %v1858_v45, 8.507059e+37  ;;  %vm1870_vm4 = vweird.f32 %v4904_v28  ;;  %vm2495_vm5 = vcmask 1041409  }
 0x3fb   : > { %v1687_v37 = vadd.f32 %v1686_v19, %v1685_v43  ;;  %v1857_v24 = vsel %vm4959_vm0, %v4865_v7, %v1853_v26  ;;  %v4968_v50 = vadd.f32 1e-20, %v1684_v21  ;;  %v3888_v7 = vld [vmem:[%s5864_s22 + $0x180] sm:$0xff]  ;;  %vm5011_vm6 = vmor %vm1869_vm3, %vm1870_vm4  ;;  %vm1884_vm8 = vweird.f32 %v4907_v58 }
 0x3fc   : > { %v4966_v34 = vpop.eup %4135  ;;  %v1867_v43 = vmul.f32 %v4904_v28, %v1866_v49 }
 0x3fd   : > { %4137 = vrcp.f32 %v4968_v50  ;;  %vm1885_vm11 = vweird.f32 %v4966_v34  ;;  %vm1899_vm15 = vweird.f32 %v4968_v50 }
 0x3fe   : > { %vm1886_vm12 = vmor %vm1884_vm8, %vm1885_vm11  ;;  %vm2497_vm8 = vcmask 1042434   ;;  %vm2499_vm11 = vcmask 1043459  }
 0x400   : > { %v4845_v32 = vpop.permute.xlu2 %2058  ;;  %3989 = vset.pattern.permute.xlu2 %v5822_v9 }
 0x401   : > { %3995 = vset.pattern.permute.xlu0 %v4187_v54  ;;  %2909 = vperm.xlu2 %3989, %v4650_v42   ;;  %v2136_v15 = vmul.f32 %v4845_v32, %v2040_v36  ;;  %v4971_v32 = vmul.f32 %v1847_v35, %v4727_v56 }
 0x402   : > { %2630 = vperm.xlu0 %3995, %v4816_v2   ;;  %3996 = vset.pattern.permute.xlu1 %v5822_v9 }
 0x403   : > { %2901 = vperm.xlu1 %3996, %v4816_v2   ;;  %v2153_v57 = vsel %vm2152_vm9, %v2136_v15, 0.0 }
 0x409   : > { %3993 = vset.pattern.permute.xlu2 %v5824_v25 }
 0x40a   : > { %v4869_v29 = vpop.permute.xlu2 %2301  ;;  %2642 = vperm.xlu0 %3995, %v4852_v51   ;;  %2073 = vperm.xlu2 %3993, %v4816_v2  }
 0x40b   : > { %4000 = vset.pattern.permute.xlu1 %v4188_v59 }
 0x40c   : > { %2345 = vperm.xlu1 %4000, %v4933_v47  }
 0x412   : > { %3997 = vset.pattern.permute.xlu0 %v5822_v9  ;;  %2128 = vperm.xlu2 %3993, %v4822_v8  }
 0x413   : > { %v2623_v53 = vpop.permute.xlu2 %2622  ;;  %2913 = vperm.xlu0 %3997, %v4852_v51  }
 0x414   : > { %v2682_v38 = vmul.f32 %v3869_v39, %v2623_v53  ;;  %v1860_v39 = vand.u32 2147483648, %v4842_v46  ;;  %v3889_v53 = vld [vmem:[%s5864_s22 + $0x188] sm:$0xff]  ;;  %4001 = vset.pattern.permute.xlu1 %v5824_v25 }
 0x415   : > { %2093 = vperm.xlu1 %4001, %v4971_v32  }
 0x416   : > { %v2704_v0 = vsel %vm2152_vm9, %v2682_v38, 0.0  ;;  %v2154_v38 = vrot.slane %v2153_v57, 4  ;;  %v1861_v6 = vor.u32 1.1754944e-38, %v1860_v39 }
 0x417   : > { %v2705_v3 = vrot.slane %v2704_v0, 4 }
 0x418   : > { %v2619_v30 = vpop.permute.xlu1 %2618  ;;  %v2155_v5 = vadd.f32 %v2154_v38, %v2153_v57  ;;  %v1862_v26 = vsel %vm1859_vm2, %v1861_v6, %v1857_v24 }
 0x419   : > { %v2706_v16 = vadd.f32 %v2705_v3, %v2704_v0  ;;  %v4946_v14 = vpop.permute.xlu0 %2285  ;;  %v2681_v52 = vmul.f32 %v3868_v48, %v2619_v30  ;;  %v1688_v3 = vrot.slane %v1687_v37, 2  ;;  %v2041_v30 = vld [vmem:[%s5864_s22 + $0x8] sm:$0xff] }
 0x41a   : > { %v2156_v44 = vrot.slane %v2155_v5, 2  ;;  %3998 = vset.pattern.permute.xlu2 %v4187_v54 }
 0x41b   : > { %v2707_v36 = vrot.slane %v2706_v16, 2  ;;  %v2697_v33 = vsel %vm2152_vm9, %v2681_v52, 0.0  ;;  %v1880_v52 = vmul.f32 %v4966_v34, %v4907_v58  ;;  %v1689_v35 = vadd.f32 %v1688_v3, %v1687_v37  ;;  %4005 = vset.pattern.permute.xlu0 %v4188_v59  ;;  %2674 = vperm.xlu2 %3998, %v4822_v8  }
 0x41c   : > { %v2698_v46 = vrot.slane %v2697_v33, 4 }
 0x41d   : > { %v2894_v15 = vpop.permute.xlu2 %2893  ;;  %v2708_v0 = vadd.f32 %v2707_v36, %v2706_v16  ;;  %v1873_v16 = vand.u32 2147483647, %v4867_v60  ;;  %v1868_v36 = vadd.f32 %v4904_v28, %v1867_v43  ;;  %v1881_v6 = vsub.f32 1.0, %v1880_v52  ;;  %4003 = vset.pattern.permute.xlu1 %v4187_v54 }
 0x41e   : > { %v2699_v48 = vadd.f32 %v2698_v46, %v2697_v33  ;;  %v2953_v55 = vmul.f32 %v3889_v53, %v2894_v15  ;;  %v4996_v43 = vmul.f32 %v1862_v26, %v4750_v4  ;;  %2646 = vperm.xlu1 %4003, %v4971_v32  }
 0x41f   : > { %v2709_v57 = vrot.slane %v2708_v0, 1  ;;  %vm1874_vm7 = vcmp.eq.f32.partialorder %v1873_v16, 8.507059e+37 }
 0x420   : > { %v2700_v56 = vrot.slane %v2699_v48, 2  ;;  %v2975_v19 = vsel %vm2152_vm9, %v2953_v55, 0.0  ;;  %5872 = vst [vmem:[#allocation10_spill] sm:$0xff] %v4996_v43  ;;  %2317 = vperm.xlu0 %4005, %v4996_v43  }
 0x421   : > { %v2976_v18 = vrot.slane %v2975_v19, 4  ;;  %v2890_v45 = vpop.permute.xlu1 %2889 }
 0x422   : > { %v2701_v21 = vadd.f32 %v2700_v56, %v2699_v48  ;;  %v2064_v39 = vpop.permute.xlu0 %2063  ;;  %v2952_v49 = vmul.f32 %v3888_v7, %v2890_v45  ;;  %v2710_v48 = vadd.f32 %v2709_v57, %v2708_v0  ;;  %v2157_v45 = vadd.f32 %v2156_v44, %v2155_v5 }
 0x423   : > { %v2977_v33 = vadd.f32 %v2976_v18, %v2975_v19  ;;  %v2137_v53 = vmul.f32 %v2064_v39, %v2041_v30  ;;  %v1875_v19 = vand.u32 2147483648, %v4867_v60  ;;  %v5000_v30 = vpop.eup %4137  ;;  %v1690_v18 = vrot.slane %v1689_v35, 1  ;;  %3999 = vset.pattern.permute.xlu2 %v4188_v59 }
 0x424   : > { %v2702_v38 = vrot.slane %v2701_v21, 1  ;;  %v2968_v46 = vsel %vm2152_vm9, %v2952_v49, 0.0  ;;  %v1872_v5 = vsel %vm5011_vm6, %v4904_v28, %v1868_v36  ;;  %v1882_v57 = vmul.f32 %v4966_v34, %v1881_v6  ;;  %2313 = vperm.xlu2 %3999, %v4971_v32  }
 0x425   : > { %v2978_v24 = vrot.slane %v2977_v33, 2  ;;  %v2160_v15 = vsel %vm2152_vm9, %v2137_v53, 0.0  ;;  %v2969_v55 = vrot.slane %v2968_v46, 4  ;;  %v1876_v39 = vor.u32 1.1754944e-38, %v1875_v19 }
 0x426   : > { %v2703_v56 = vadd.f32 %v2702_v38, %v2701_v21  ;;  %v2161_v7 = vrot.slane %v2160_v15, 4  ;;  %v1895_v60 = vmul.f32 %v5000_v30, %v4968_v50  ;;  %v1691_v44 = vadd.f32 %v1690_v18, %v1689_v35  ;;  %4004 = vset.pattern.permute.xlu1 %v5822_v9 }
 0x427   : > { %v2979_v37 = vadd.f32 %v2978_v24, %v2977_v33  ;;  %v2970_v3 = vadd.f32 %v2969_v55, %v2968_v46  ;;  %v2158_v38 = vrot.slane %v2157_v45, 1  ;;  %v1877_v28 = vsel %vm1874_vm7, %v1876_v39, %v1872_v5  ;;  %2917 = vperm.xlu1 %4004, %v4971_v32  }
 0x428   : > { %v5005_v0 = vsel %vm2495_vm5, %v2710_v48, %v2703_v56  ;;  %v2162_v52 = vadd.f32 %v2161_v7, %v2160_v15  ;;  %v1883_v24 = vadd.f32 %v4966_v34, %v1882_v57  ;;  %v1888_v15 = vand.u32 2147483647, %v4907_v58  ;;  %4009 = vset.pattern.permute.xlu0 %v5824_v25 }
 0x429   : > { %v2971_v26 = vrot.slane %v2970_v3, 2  ;;  %v2980_v49 = vrot.slane %v2979_v37, 1  ;;  %v1890_v6 = vand.u32 2147483648, %v4907_v58  ;;  %v1896_v48 = vsub.f32 1.0, %v1895_v60  ;;  %v5067_v60 = vpop.permute.xlu2 %2634 }
 0x42a   : > { %v2163_v21 = vrot.slane %v2162_v52, 2  ;;  %v5032_v16 = vmul.f32 %v1877_v28, %v4771_v23  ;;  %v5034_v35 = vadd.f32 1e-20, %v1691_v44  ;;  %v2159_v19 = vadd.f32 %v2158_v38, %v2157_v45 }
 0x42b   : > { %v2972_v33 = vadd.f32 %v2971_v26, %v2970_v3  ;;  %v5024_v53 = vpop.permute.xlu1 %2289  ;;  %v2981_v56 = vadd.f32 %v2980_v49, %v2979_v37  ;;  %v1887_v37 = vsel %vm1886_vm12, %v4966_v34, %v1883_v24  ;;  %v1891_v45 = vor.u32 1.1754944e-38, %v1890_v6 }
 0x42c   : > { %v2164_v46 = vadd.f32 %v2163_v21, %v2162_v52  ;;  %5875 = vst [vmem:[#allocation11_spill] sm:$0xff] %v5032_v16  ;;  %2103 = vperm.xlu0 %4009, %v5032_v16   ;;  %v1897_v52 = vmul.f32 %v5000_v30, %v1896_v48  ;;  %vm1889_vm13 = vcmp.eq.f32.partialorder %v1888_v15, 8.507059e+37  ;;  %4139 = vrcp.f32 %v5034_v35  ;;  %4002 = vset.pattern.permute.xlu2 %v5824_v25 }
 0x42d   : > { %v2973_v36 = vrot.slane %v2972_v33, 1  ;;  %v1892_v4 = vsel %vm1889_vm13, %v1891_v45, %v1887_v37  ;;  %vm1900_vm14 = vweird.f32 %v5000_v30  ;;  %v1905_v5 = vand.u32 2147483648, %v4968_v50  ;;  %2133 = vperm.xlu2 %4002, %v4933_v47  }
 0x42e   : > { %v2165_v55 = vrot.slane %v2164_v46, 1  ;;  %v1898_v34 = vadd.f32 %v5000_v30, %v1897_v52  ;;  %v5058_v26 = vmul.f32 %v1892_v4, %v4805_v22  ;;  %v1903_v57 = vand.u32 2147483647, %v4968_v50  ;;  %vm1901_vm0 = vmor %vm1899_vm15, %vm1900_vm14 }
 0x42f   : > { %v2974_v7 = vadd.f32 %v2973_v36, %v2972_v33  ;;  %v1906_v22 = vor.u32 1.1754944e-38, %v1905_v5  ;;  %4006 = vset.pattern.permute.xlu1 %v4187_v54  ;;  %vm1914_vm4 = vweird.f32 %v5034_v35  ;;  %v1918_v48 = vand.u32 2147483647, %v5034_v35 }
 0x430   : > { %v2166_v3 = vadd.f32 %v2165_v55, %v2164_v46  ;;  %v1902_v39 = vsel %vm1901_vm0, %v5000_v30, %v1898_v34  ;;  %vm1904_vm2 = vcmp.eq.f32.partialorder %v1903_v57, 8.507059e+37  ;;  %2650 = vperm.xlu1 %4006, %v4996_v43   ;;  %v2042_v30 = vld [vmem:[%s5864_s22 + $0x10] sm:$0xff]  ;;  %v1920_v55 = vand.u32 2147483648, %v5034_v35  ;;  %v5100_v34 = vpop.permute.xlu0 %2305 }
 0x431   : > { %v5042_v18 = vsel %vm2495_vm5, %v2981_v56, %v2974_v7  ;;  %v1907_v33 = vsel %vm1904_vm2, %v1906_v22, %v1902_v39  ;;  %v2294_v28 = vpop.permute.xlu2 %2293  ;;  %vm1919_vm7 = vcmp.eq.f32.partialorder %v1918_v48, 8.507059e+37  ;;  %v3846_v39 = vld [vmem:[%s5864_s22 + $0x80] sm:$0xff]  ;;  %v3847_v22 = vld [vmem:[%s5864_s22 + $0x88] sm:$0xff]  ;;  %vm2501_vm12 = vcmask 1044484  }
 0x432   : > { %v5047_v23 = vsel %vm2495_vm5, %v2166_v3, %v2159_v19  ;;  %v4140_v21 = vpop.eup %4139  ;;  %v5075_v44 = vmul.f32 %v1907_v33, %v4840_v12  ;;  %v1921_v3 = vor.u32 1.1754944e-38, %v1920_v55  ;;  %v2348_v33 = vmul.f32 %v3846_v39, %v4946_v14 }
 0x433   : > { %v1910_v49 = vmul.f32 %v4140_v21, %v5034_v35  ;;  %vm1915_vm3 = vweird.f32 %v4140_v21  ;;  %vm2503_vm13 = vcmask 1045509   ;;  %vm2505_vm14 = vcmask 1046534  }
 0x434   : > { %v5053_v58 = vpop.permute.xlu1 %2078  ;;  %2108 = vperm.xlu0 %4009, %v5058_v26   ;;  %5876 = vst [vmem:[#allocation12_spill] sm:$0xff] %v5075_v44  ;;  %vm1916_vm6 = vmor %vm1914_vm4, %vm1915_vm3  ;;  %v2364_v14 = vsel %vm2152_vm9, %v2348_v33, 0.0  ;;  %vm5836_vm15 = vcmask 1047559  }
 0x435   : > { %v1911_v38 = vsub.f32 1.0, %v1910_v49  ;;  %2098 = vperm.xlu2 %4002, %v4996_v43   ;;  %v2365_v55 = vrot.slane %v2364_v14, 4 }
 0x437   : > { %v1912_v46 = vmul.f32 %v4140_v21, %v1911_v38  ;;  %v3848_v38 = vld [vmem:[%s5864_s22 + $0x90] sm:$0xff] }
 0x438   : > { %4007 = vset.pattern.permute.xlu1 %v5822_v9 }
 0x439   : > { %2921 = vperm.xlu1 %4007, %v4996_v43   ;;  %v1913_v24 = vadd.f32 %v4140_v21, %v1912_v46 }
 0x43b   : > { %v1917_v7 = vsel %vm1916_vm6, %v4140_v21, %v1913_v24 }
 0x43c   : > { %4015 = vset.pattern.permute.xlu0 %v4188_v59  ;;  %v1922_v45 = vsel %vm1919_vm7, %v1921_v3, %v1917_v7 }
 0x43d   : > { %v5072_v50 = vpop.permute.xlu1 %2905  ;;  %2329 = vperm.xlu0 %4015, %v5075_v44   ;;  %4010 = vset.pattern.permute.xlu2 %v4187_v54  ;;  %v5098_v4 = vmul.f32 %v1922_v45, %v4894_v40  ;;  %v3850_v40 = vld [vmem:[%s5864_s22 + $0xa0] sm:$0xff] }
 0x43e   : > { %2654 = vperm.xlu2 %4010, %v5032_v16   ;;  %v2352_v49 = vmul.f32 %v3850_v40, %v4869_v29  ;;  %v3872_v40 = vld [vmem:[%s5864_s22 + $0x120] sm:$0xff] }
 0x43f   : > { %5877 = vst [vmem:[#allocation13_spill] sm:$0xff] %v5098_v4 }
 0x440   : > { %v5093_v19 = vpop.permute.xlu2 %2337  ;;  %v2392_v29 = vsel %vm2152_vm9, %v2352_v49, 0.0  ;;  %v3890_v49 = vld [vmem:[%s5864_s22 + $0x190] sm:$0xff] }
 0x441   : > { %4008 = vset.pattern.permute.xlu1 %v4188_v59 }
 0x442   : > { %2321 = vperm.xlu1 %4008, %v5032_v16  }
 0x445   : > { %4017 = vset.pattern.permute.xlu0 %v4187_v54 }
 0x446   : > { %v2069_v36 = vpop.permute.xlu1 %2068  ;;  %2662 = vperm.xlu0 %4017, %v5075_v44   ;;  %4011 = vset.pattern.permute.xlu2 %v5822_v9 }
 0x447   : > { %v2138_v12 = vmul.f32 %v2069_v36, %v2042_v30  ;;  %2925 = vperm.xlu2 %4011, %v5032_v16   ;;  %v2349_v30 = vmul.f32 %v3847_v22, %v5024_v53  ;;  %v2898_v36 = vpop.permute.xlu0 %2897  ;;  %v2393_v53 = vrot.slane %v2392_v29, 4  ;;  %v5878_v16 = vmov 0  }
 0x449   : > { %v2167_v15 = vsel %vm2152_vm9, %v2138_v12, 0.0  ;;  %v2084_v57 = vpop.permute.xlu2 %2083  ;;  %v2350_v12 = vmul.f32 %v3848_v38, %v2294_v28  ;;  %v2044_v28 = vld [vmem:[%s5864_s22 + $0x20] sm:$0xff]  ;;  %v2394_v3 = vadd.f32 %v2393_v53, %v2392_v29  ;;  %v2954_v29 = vmul.f32 %v3890_v49, %v2898_v36 }
 0x44a   : > { %v2168_v6 = vrot.slane %v2167_v15, 4  ;;  %4018 = vset.pattern.permute.xlu1 %v5822_v9 }
 0x44b   : > { %2933 = vperm.xlu1 %4018, %v5075_v44   ;;  %v2395_v22 = vrot.slane %v2394_v3, 2 }
 0x44c   : > { %v2169_v56 = vadd.f32 %v2168_v6, %v2167_v15  ;;  %v2371_v15 = vsel %vm2152_vm9, %v2349_v30, 0.0  ;;  %v2378_v6 = vsel %vm2152_vm9, %v2350_v12, 0.0  ;;  %v2685_v30 = vmul.f32 %v3872_v40, %v5067_v60  ;;  %v2043_v60 = vld [vmem:[%s5864_s22 + $0x18] sm:$0xff] }
 0x44d   : > { %v2372_v48 = vrot.slane %v2371_v15, 4  ;;  %v2396_v53 = vadd.f32 %v2395_v22, %v2394_v3  ;;  %v3892_v3 = vld [vmem:[%s5864_s22 + $0x1a0] sm:$0xff] }
 0x44e   : > { %v2170_v37 = vrot.slane %v2169_v56, 2  ;;  %4022 = vset.pattern.permute.xlu0 %v5822_v9 }
 0x44f   : > { %2937 = vperm.xlu0 %4022, %v5098_v4   ;;  %4012 = vset.pattern.permute.xlu2 %v4188_v59  ;;  %v2627_v46 = vpop.permute.xlu1 %2626  ;;  %v2373_v45 = vadd.f32 %v2372_v48, %v2371_v15  ;;  %v3849_v15 = vld [vmem:[%s5864_s22 + $0x98] sm:$0xff] }
 0x450   : > { %v2171_v35 = vadd.f32 %v2170_v37, %v2169_v56  ;;  %2325 = vperm.xlu2 %4012, %v5058_v26   ;;  %v2379_v56 = vrot.slane %v2378_v6, 4  ;;  %v2366_v37 = vadd.f32 %v2365_v55, %v2364_v14  ;;  %v3870_v14 = vld [vmem:[%s5864_s22 + $0x110] sm:$0xff] }
 0x451   : > { %v2374_v33 = vrot.slane %v2373_v45, 2 }
 0x452   : > { %v2172_v52 = vrot.slane %v2171_v35, 1  ;;  %v5136_v24 = vpop.permute.xlu2 %2638  ;;  %v2380_v39 = vadd.f32 %v2379_v56, %v2378_v6  ;;  %v2725_v56 = vsel %vm2152_vm9, %v2685_v30, 0.0  ;;  %v3851_v30 = vld [vmem:[%s5864_s22 + $0xa8] sm:$0xff] }
 0x453   : > { %4019 = vset.pattern.permute.xlu1 %v4188_v59  ;;  %v2375_v48 = vadd.f32 %v2374_v33, %v2373_v45  ;;  %v2982_v45 = vsel %vm2152_vm9, %v2954_v29, 0.0  ;;  %v2726_v13 = vrot.slane %v2725_v56, 4 }
 0x454   : > { %v2173_v5 = vadd.f32 %v2172_v52, %v2171_v35  ;;  %2333 = vperm.xlu1 %4019, %v5098_v4   ;;  %v2140_v35 = vmul.f32 %v5053_v58, %v2044_v28  ;;  %v2045_v52 = vld [vmem:[%s5864_s22 + $0x28] sm:$0xff]  ;;  %v2381_v12 = vrot.slane %v2380_v39, 2 }
 0x455   : > { %v2141_v58 = vmul.f32 %v2084_v57, %v2045_v52 }
 0x456   : > { %v5108_v21 = vsel %vm2497_vm8, %v2173_v5, %v5047_v23  ;;  %v4029_v23 = vld [vmem:[%s5800_s10] ss:$0 sm:$0xff]  ;;  %v2181_v38 = vsel %vm2152_vm9, %v2140_v35, 0.0  ;;  %v2382_v52 = vadd.f32 %v2381_v12, %v2380_v39  ;;  %v2983_v12 = vrot.slane %v2982_v45, 4 }
 0x457   : > { %1094 = vrot.lane.b32.xlu0 %v4029_v23, %s4186_s12  ;;  %v2367_v23 = vrot.slane %v2366_v37, 2  ;;  %v2182_v57 = vrot.slane %v2181_v38, 4  ;;  %v2188_v6 = vsel %vm2152_vm9, %v2141_v58, 0.0 }
 0x458   : > { %4026 = vset.pattern.permute.xlu0 %v5824_v25  ;;  %v5145_v7 = vpop.permute.xlu0 %2670  ;;  %4013 = vset.pattern.permute.xlu2 %v4187_v54  ;;  %v2189_v40 = vrot.slane %v2188_v6, 4 }
 0x459   : > { %2658 = vperm.xlu2 %4013, %v5058_v26   ;;  %v5149_v59 = vpop.permute.xlu1 %2123  ;;  %v2368_v55 = vadd.f32 %v2367_v23, %v2366_v37  ;;  %v2683_v37 = vmul.f32 %v3870_v14, %v2627_v46  ;;  %v2397_v23 = vrot.slane %v2396_v53, 1  ;;  %v2183_v58 = vadd.f32 %v2182_v57, %v2181_v38 }
 0x45a   : > { %v2956_v46 = vmul.f32 %v3892_v3, %v5072_v50  ;;  %v2046_v50 = vld [vmem:[%s5864_s22 + $0x30] sm:$0xff] }
 0x45b   : > { %v5155_v5 = vpop.permute.xlu2 %2909  ;;  %v2369_v49 = vrot.slane %v2368_v55, 1  ;;  %v2711_v29 = vsel %vm2152_vm9, %v2683_v37, 0.0 }
 0x45c   : > { %4020 = vset.pattern.permute.xlu1 %v5824_v25 }
 0x45d   : > { %2118 = vperm.xlu1 %4020, %v5098_v4   ;;  %v2370_v3 = vadd.f32 %v2369_v49, %v2368_v55 }
 0x461   : > { %4014 = vset.pattern.permute.xlu2 %v5822_v9  ;;  %v2376_v9 = vrot.slane %v2375_v48, 1 }
 0x462   : > { %v5175_v28 = vpop.permute.xlu0 %2341  ;;  %2929 = vperm.xlu2 %4014, %v5058_v26   ;;  %v2298_v36 = vpop.permute.xlu1 %2297 }
 0x463   : > { %v2351_v35 = vmul.f32 %v3849_v15, %v2298_v36  ;;  %v2383_v15 = vrot.slane %v2382_v52, 1  ;;  %v2353_v36 = vmul.f32 %v3851_v30, %v5100_v34  ;;  %v3852_v34 = vld [vmem:[%s5864_s22 + $0xb0] sm:$0xff] }
 0x464   : > { %v2074_v22 = vpop.permute.xlu2 %2073 }
 0x465   : > { %v2139_v33 = vmul.f32 %v2074_v22, %v2043_v60  ;;  %4021 = vset.pattern.permute.xlu1 %v4187_v54  ;;  %v2385_v39 = vsel %vm2152_vm9, %v2351_v35, 0.0  ;;  %v2190_v54 = vadd.f32 %v2189_v40, %v2188_v6  ;;  %v2398_v60 = vadd.f32 %v2397_v23, %v2396_v53 }
 0x466   : > { %2666 = vperm.xlu1 %4021, %v5098_v4   ;;  %v2386_v14 = vrot.slane %v2385_v39, 4  ;;  %v2184_v22 = vrot.slane %v2183_v58, 2  ;;  %v2996_v35 = vsel %vm2152_vm9, %v2956_v46, 0.0  ;;  %v2712_v4 = vrot.slane %v2711_v29, 4 }
 0x467   : > { %v2174_v38 = vsel %vm2152_vm9, %v2139_v33, 0.0  ;;  %v5201_v33 = vadd.f32 %v2726_v13, %v2725_v56  ;;  %v2377_v6 = vadd.f32 %v2376_v9, %v2375_v48  ;;  %v2984_v40 = vadd.f32 %v2983_v12, %v2982_v45 }
 0x468   : > { %v2175_v57 = vrot.slane %v2174_v38, 4  ;;  %v2387_v25 = vadd.f32 %v2386_v14, %v2385_v39  ;;  %v2384_v55 = vadd.f32 %v2383_v15, %v2382_v52  ;;  %v2191_v49 = vrot.slane %v2190_v54, 2 }
 0x469   : > { %v5210_v13 = vsel %vm2152_vm9, %v2353_v36, 0.0  ;;  %v2185_v9 = vadd.f32 %v2184_v22, %v2183_v58  ;;  %v2997_v48 = vrot.slane %v2996_v35, 4  ;;  %v2713_v45 = vadd.f32 %v2712_v4, %v2711_v29 }
 0x46a   : > { %v2176_v37 = vadd.f32 %v2175_v57, %v2174_v38  ;;  %4016 = vset.pattern.permute.xlu2 %v5878_v16  ;;  %v2388_v53 = vrot.slane %v2387_v25, 2  ;;  %v2496_v52 = vsel %vm2495_vm5, %v2377_v6, %v2370_v3  ;;  %v2985_v15 = vrot.slane %v2984_v40, 2  ;;  %v3871_v3 = vld [vmem:[%s5864_s22 + $0x118] sm:$0xff] }
 0x46b   : > { %v2089_v23 = vpop.permute.xlu0 %2088  ;;  %2113 = vperm.xlu2 %4016, %v5075_v44   ;;  %v2310_v30 = vpop.permute.xlu1 %2309  ;;  %v2192_v51 = vadd.f32 %v2191_v49, %v2190_v54  ;;  %v2186_v58 = vrot.slane %v2185_v9, 1  ;;  %v2998_v4 = vadd.f32 %v2997_v48, %v2996_v35  ;;  %v2714_v29 = vrot.slane %v2713_v45, 2  ;;  %v3863_v35 = vld [vmem:[%s5804_s14 + $0x18] sm:$0xff] }
 0x46c   : > { %v2177_v46 = vrot.slane %v2176_v37, 2  ;;  %v2142_v39 = vmul.f32 %v2089_v23, %v2046_v50  ;;  %v5207_v38 = vpop.permute.xlu2 %2128  ;;  %v2389_v56 = vadd.f32 %v2388_v53, %v2387_v25  ;;  %v2354_v57 = vmul.f32 %v3852_v34, %v2310_v30  ;;  %2534 = vmatpush.msrb.mxu3 %v3863_v35 }
 0x46d   : > { %v2498_v23 = vsel %vm2497_vm8, %v2384_v55, %v2496_v52  ;;  %v2728_v6 = vrot.slane %v5201_v33, 2  ;;  %v5879_v30 = vmov 3   ;;  %v2400_v55 = vrot.slane %v5210_v13, 4 }
 0x46e   : > { %v2178_v12 = vadd.f32 %v2177_v46, %v2176_v37  ;;  %v2195_v14 = vsel %vm2152_vm9, %v2142_v39, 0.0  ;;  %2678 = vperm.xlu1 %4021, %v4933_v47   ;;  %v2390_v44 = vrot.slane %v2389_v56, 1  ;;  %v2406_v53 = vsel %vm2152_vm9, %v2354_v57, 0.0 }
 0x46f   : > { %v2196_v50 = vrot.slane %v2195_v14, 4  ;;  %v2193_v49 = vrot.slane %v2192_v51, 1 }
 0x470   : > { %v2179_v36 = vrot.slane %v2178_v12, 1  ;;  %v2391_v22 = vadd.f32 %v2390_v44, %v2389_v56  ;;  %v3891_v44 = vld [vmem:[%s5864_s22 + $0x198] sm:$0xff]  ;;  %v2187_v56 = vadd.f32 %v2186_v58, %v2185_v9 }
 0x471   : > { %v2197_v25 = vadd.f32 %v2196_v50, %v2195_v14  ;;  %v2407_v14 = vrot.slane %v2406_v53, 4 }
 0x472   : > { %v2180_v37 = vadd.f32 %v2179_v36, %v2178_v12  ;;  %v2500_v34 = vsel %vm2499_vm11, %v2391_v22, %v2498_v23  ;;  %v3862_v23 = vld [vmem:[%s5804_s14 + $0x10] sm:$0xff]  ;;  %v2986_v36 = vadd.f32 %v2985_v15, %v2984_v40  ;;  %v2715_v22 = vadd.f32 %v2714_v29, %v2713_v45 }
 0x473   : > { %v2198_v54 = vrot.slane %v2197_v25, 2  ;;  %4023 = vset.pattern.permute.xlu2 %v5879_v30  ;;  %v5234_v48 = vsel %vm2501_vm12, %v2398_v60, %v2500_v34  ;;  %2535 = vmatpush.msrb.mxu3 %v3862_v23  ;;  %v2408_v15 = vadd.f32 %v2407_v14, %v2406_v53  ;;  %v2729_v29 = vadd.f32 %v2728_v6, %v5201_v33  ;;  %v3853_v33 = vld [vmem:[%s5864_s22 + $0xb8] sm:$0xff]  ;;  %v3874_v6 = vld [vmem:[%s5864_s22 + $0x130] sm:$0xff] }
 0x474   : > { %v2561_v46 = vsel %vm2499_vm11, %v2180_v37, %v5108_v21  ;;  %v2631_v39 = vpop.permute.xlu0 %2630  ;;  %2941 = vperm.xlu2 %4023, %v4784_v41   ;;  %v2999_v21 = vrot.slane %v2998_v4, 2  ;;  %v2987_v35 = vrot.slane %v2986_v36, 1 }
 0x475   : > { %v2199_v12 = vadd.f32 %v2198_v54, %v2197_v25  ;;  %v2684_v57 = vmul.f32 %v3871_v3, %v2631_v39  ;;  %v5236_v52 = vpop.permute.xlu2 %2674  ;;  %v2902_v50 = vpop.permute.xlu1 %2901  ;;  %v2562_v58 = vsel %vm2501_vm12, %v2187_v56, %v2561_v46  ;;  %v2194_v25 = vadd.f32 %v2193_v49, %v2192_v51 }
 0x476   : > { %v2955_v37 = vmul.f32 %v3891_v44, %v2902_v50  ;;  %4024 = vset.pattern.permute.xlu1 %v5879_v30  ;;  %v2401_v54 = vadd.f32 %v2400_v55, %v5210_v13  ;;  %v2716_v39 = vrot.slane %v2715_v22, 1  ;;  %v3000_v51 = vadd.f32 %v2999_v21, %v2998_v4  ;;  %v3873_v4 = vld [vmem:[%s5864_s22 + $0x128] sm:$0xff] }
 0x477   : > { %v2200_v60 = vrot.slane %v2199_v12, 1  ;;  %v2718_v9 = vsel %vm2152_vm9, %v2684_v57, 0.0  ;;  %2945 = vperm.xlu1 %4024, %v4822_v8   ;;  %v2563_v44 = vsel %vm2503_vm13, %v2194_v25, %v2562_v58  ;;  %v2409_v53 = vrot.slane %v2408_v15, 2 }
 0x478   : > { %v2719_v3 = vrot.slane %v2718_v9, 4  ;;  %v2989_v34 = vsel %vm2152_vm9, %v2955_v37, 0.0  ;;  %v2730_v55 = vrot.slane %v2729_v29, 1  ;;  %v2988_v21 = vadd.f32 %v2987_v35, %v2986_v36 }
 0x479   : > { %v2201_v40 = vadd.f32 %v2200_v60, %v2199_v12  ;;  %v2990_v45 = vrot.slane %v2989_v34, 4  ;;  %v2402_v12 = vrot.slane %v2401_v54, 2  ;;  %v2717_v37 = vadd.f32 %v2716_v39, %v2715_v22 }
 0x47a   : > { %v2720_v30 = vadd.f32 %v2719_v3, %v2718_v9  ;;  %v3001_v58 = vrot.slane %v3000_v51, 1  ;;  %v2731_v8 = vadd.f32 %v2730_v55, %v2729_v29  ;;  %v3100_v36 = vsel %vm2497_vm8, %v2988_v21, %v5042_v18  ;;  %v3885_v18 = vld [vmem:[%s5804_s14 + $0x28] sm:$0xff] }
 0x47b   : > { %v2991_v57 = vadd.f32 %v2990_v45, %v2989_v34  ;;  %v5250_v46 = vsel %vm2505_vm14, %v2201_v40, %v2563_v44  ;;  %v2686_v34 = vmul.f32 %v3873_v4, %v5136_v24  ;;  %v2410_v40 = vadd.f32 %v2409_v53, %v2408_v15  ;;  %2860 = vmatpush.msrb.mxu0 %v3885_v18  ;;  %v3884_v4 = vld [vmem:[%s5804_s14 + $0x20] sm:$0xff]  ;;  %v3904_v18 = vld [vmem:[%s5804_s14 + $0x30] sm:$0xff] }
 0x47c   : > { %v2721_v49 = vrot.slane %v2720_v30, 2  ;;  %v2643_v56 = vpop.permute.xlu0 %2642  ;;  %2949 = vperm.xlu2 %4023, %v4933_v47   ;;  %v2403_v47 = vadd.f32 %v2402_v12, %v2401_v54  ;;  %v2829_v22 = vsel %vm2497_vm8, %v2717_v37, %v5005_v0  ;;  %v3002_v39 = vadd.f32 %v3001_v58, %v3000_v51 }
 0x47d   : > { %v2992_v13 = vrot.slane %v2991_v57, 2  ;;  %v2687_v3 = vmul.f32 %v3874_v6, %v2643_v56  ;;  %v2732_v54 = vsel %vm2152_vm9, %v2686_v34, 0.0  ;;  %v2411_v56 = vrot.slane %v2410_v40, 1  ;;  %v3893_v6 = vld [vmem:[%s5864_s22 + $0x1a8] sm:$0xff]  ;;  %2861 = vmatpush.msrb.mxu0 %v3884_v4 }
 0x47e   : > { %v2722_v14 = vadd.f32 %v2721_v49, %v2720_v30  ;;  %v2314_v50 = vpop.permute.xlu2 %2313  ;;  %v5262_v23 = vpop.permute.xlu1 %2345  ;;  %v2404_v51 = vrot.slane %v2403_v47, 1 }
 0x47f   : > { %v2993_v60 = vadd.f32 %v2992_v13, %v2991_v57  ;;  %v2355_v9 = vmul.f32 %v3853_v33, %v2314_v50  ;;  %4027 = vset.pattern.permute.xlu1 %v5878_v16  ;;  %v2739_v24 = vsel %vm2152_vm9, %v2687_v3, 0.0  ;;  %v3894_v13 = vld [vmem:[%s5864_s22 + $0x1b0] sm:$0xff]  ;;  %v2733_v50 = vrot.slane %v2732_v54, 4 }
 0x480   : > { %v2723_v25 = vrot.slane %v2722_v14, 1  ;;  %v2740_v55 = vrot.slane %v2739_v24, 4  ;;  %v2412_v37 = vadd.f32 %v2411_v56, %v2410_v40  ;;  %v2405_v58 = vadd.f32 %v2404_v51, %v2403_v47 }
 0x481   : > { %v2994_v45 = vrot.slane %v2993_v60, 1  ;;  %v2413_v44 = vsel %vm2152_vm9, %v2355_v9, 0.0 }
 0x482   : > { %v2724_v30 = vadd.f32 %v2723_v25, %v2722_v14  ;;  %v2414_v49 = vrot.slane %v2413_v44, 4  ;;  %v2957_v25 = vmul.f32 %v3893_v6, %v5155_v5  ;;  %v2741_v34 = vadd.f32 %v2740_v55, %v2739_v24  ;;  %v3905_v24 = vld [vmem:[%s5804_s14 + $0x38] sm:$0xff] }
 0x483   : > { %v2995_v35 = vadd.f32 %v2994_v45, %v2993_v60  ;;  %3131 = vmatpush.msra.mxu1 %v3905_v24 }
 0x484   : > { %v2830_v57 = vsel %vm2499_vm11, %v2724_v30, %v2829_v22  ;;  %v2415_v15 = vadd.f32 %v2414_v49, %v2413_v44  ;;  %4025 = vset.pattern.permute.xlu2 %v5878_v16  ;;  %v2047_v16 = vld [vmem:[%s5864_s22 + $0x38] sm:$0xff]  ;;  %v2734_v44 = vadd.f32 %v2733_v50, %v2732_v54 }
 0x485   : > { %v3101_v29 = vsel %vm2499_vm11, %v2995_v35, %v3100_v36  ;;  %v2914_v33 = vpop.permute.xlu0 %2913  ;;  %v5280_v0 = vsel %vm2501_vm12, %v2731_v8, %v2830_v57  ;;  %v2504_v36 = vsel %vm2503_vm13, %v2405_v58, %v5234_v48  ;;  %v3003_v35 = vsel %vm2152_vm9, %v2957_v25, 0.0  ;;  %v3875_v57 = vld [vmem:[%s5864_s22 + $0x138] sm:$0xff]  ;;  %3132 = vmatpush.msra.mxu1 %v3904_v18 }
 0x486   : > { %v2416_v53 = vrot.slane %v2415_v15, 2  ;;  %v5297_v14 = vsel %vm2501_vm12, %v3002_v39, %v3101_v29  ;;  %v2958_v60 = vmul.f32 %v3894_v13, %v2914_v33  ;;  %v2506_v40 = vsel %vm2505_vm14, %v2412_v37, %v2504_v36  ;;  %v3895_v25 = vld [vmem:[%s5864_s22 + $0x1b8] sm:$0xff] }
 0x487   : > { %v5291_v12 = vpop.permute.xlu2 %2133  ;;  %v2094_v8 = vpop.permute.xlu1 %2093  ;;  %v2742_v48 = vrot.slane %v2741_v34, 2  ;;  %v2735_v54 = vrot.slane %v2734_v44, 2  ;;  %v3004_v51 = vrot.slane %v3003_v35, 4 }
 0x488   : > { %v2417_v21 = vadd.f32 %v2416_v53, %v2415_v15  ;;  %v2143_v9 = vmul.f32 %v2094_v8, %v2047_v16  ;;  %v3010_v22 = vsel %vm2152_vm9, %v2958_v60, 0.0 }
 0x489   : > { %v3011_v56 = vrot.slane %v3010_v22, 4  ;;  %v2743_v16 = vadd.f32 %v2742_v48, %v2741_v34  ;;  %v2736_v55 = vadd.f32 %v2735_v54, %v2734_v44 }
 0x48a   : > { %v2418_v3 = vrot.slane %v2417_v21, 1  ;;  %v2202_v45 = vsel %vm2152_vm9, %v2143_v9, 0.0 }
 0x48b   : > { %v2203_v49 = vrot.slane %v2202_v45, 4  ;;  %v3012_v8 = vadd.f32 %v3011_v56, %v3010_v22  ;;  %v2744_v9 = vrot.slane %v2743_v16, 1  ;;  %v3859_v22 = vld [vmem:[%s5864_s22 + $0xe8] sm:$0xff] }
 0x48c   : > { %v2419_v30 = vadd.f32 %v2418_v3, %v2417_v21  ;;  %v3005_v21 = vadd.f32 %v3004_v51, %v3003_v35  ;;  %v2737_v3 = vrot.slane %v2736_v55, 1  ;;  %v2361_v54 = vmul.f32 %v3859_v22, %v5093_v19  ;;  %v2053_v19 = vld [vmem:[%s5864_s22 + $0x68] sm:$0xff]  ;;  %v3861_v22 = vld [vmem:[%s5864_s22 + $0xf8] sm:$0xff] }
 0x48d   : > { %v2204_v47 = vadd.f32 %v2203_v49, %v2202_v45  ;;  %v3013_v45 = vrot.slane %v3012_v8, 2 }
 0x48e   : > { %v2508_v5 = vsel %vm5836_vm15, %v2419_v30, %v2506_v40  ;;  %v3006_v49 = vrot.slane %v3005_v21, 2 }
 0x48f   : > { %v5315_v15 = vpop.permute.xlu2 %2098  ;;  %3864 = vmatmul.msk.f32.vlgmr.msrb.gmra.mxu3 %vm2152_vm9, %v2508_v5  ;;  %v2205_v29 = vrot.slane %v2204_v47, 2  ;;  %v2738_v5 = vadd.f32 %v2737_v3, %v2736_v55  ;;  %v2054_v3 = vld [vmem:[%s5864_s22 + $0x70] sm:$0xff] }
 0x490   : > { %v2647_v33 = vpop.permute.xlu1 %2646  ;;  %v3007_v56 = vadd.f32 %v3006_v49, %v3005_v21  ;;  %v3881_v21 = vld [vmem:[%s5864_s22 + $0x168] sm:$0xff] }
 0x491   : > { %v2688_v53 = vmul.f32 %v3875_v57, %v2647_v33  ;;  %v2206_v13 = vadd.f32 %v2205_v29, %v2204_v47  ;;  %v2745_v47 = vadd.f32 %v2744_v9, %v2743_v16  ;;  %v3014_v57 = vadd.f32 %v3013_v45, %v3012_v8  ;;  %v3860_v8 = vld [vmem:[%s5864_s22 + $0xf0] sm:$0xff] }
 0x492   : > { %v5306_v39 = vpop.permute.xlu0 %2317  ;;  %v2832_v33 = vsel %vm2503_vm13, %v2738_v5, %v5280_v0  ;;  %v3008_v55 = vrot.slane %v3007_v56, 1  ;;  %v2149_v9 = vmul.f32 %v5149_v59, %v2053_v19 }
 0x493   : > { %v2746_v6 = vsel %vm2152_vm9, %v2688_v53, 0.0  ;;  %v2207_v4 = vrot.slane %v2206_v13, 1  ;;  %v2833_v53 = vsel %vm2505_vm14, %v2745_v47, %v2832_v33 }
 0x494   : > { %v2747_v50 = vrot.slane %v2746_v6, 4  ;;  %v2244_v47 = vsel %vm2152_vm9, %v2149_v9, 0.0 }
 0x495   : > { %v2208_v37 = vadd.f32 %v2207_v4, %v2206_v13  ;;  %v3015_v13 = vrot.slane %v3014_v57, 1 }
 0x496   : > { %v2748_v60 = vadd.f32 %v2747_v50, %v2746_v6  ;;  %v2455_v6 = vsel %vm2152_vm9, %v2361_v54, 0.0 }
 0x497   : > { %v5331_v44 = vsel %vm5836_vm15, %v2208_v37, %v5250_v46  ;;  %v3016_v45 = vadd.f32 %v3015_v13, %v3014_v57  ;;  %v3882_v57 = vld [vmem:[%s5864_s22 + $0x170] sm:$0xff]  ;;  %v2048_v13 = vld [vmem:[%s5864_s22 + $0x40] sm:$0xff] }
 0x498   : > { %v2749_v30 = vrot.slane %v2748_v60, 2  ;;  %v5327_v34 = vpop.permute.xlu2 %2654  ;;  %v2695_v33 = vmul.f32 %v3882_v57, %v5236_v52 }
 0x499   : > { %v2918_v36 = vpop.permute.xlu1 %2917 }
 0x49a   : > { %v2750_v40 = vadd.f32 %v2749_v30, %v2748_v60  ;;  %v2959_v35 = vmul.f32 %v3895_v25, %v2918_v36  ;;  %v2456_v60 = vrot.slane %v2455_v6, 4  ;;  %v2362_v25 = vmul.f32 %v3860_v8, %v5175_v28 }
 0x49b   : > { %v3009_v30 = vadd.f32 %v3008_v55, %v3007_v56  ;;  %v2694_v36 = vmul.f32 %v3881_v21, %v5145_v7  ;;  %v2795_v21 = vsel %vm2152_vm9, %v2695_v33, 0.0 }
 0x49c   : > { %v2751_v24 = vrot.slane %v2750_v40, 1  ;;  %v3017_v48 = vsel %vm2152_vm9, %v2959_v35, 0.0  ;;  %v2457_v28 = vadd.f32 %v2456_v60, %v2455_v6  ;;  %v2462_v5 = vsel %vm2152_vm9, %v2362_v25, 0.0  ;;  %v2055_v6 = vld [vmem:[%s5864_s22 + $0x78] sm:$0xff]  ;;  %v2049_v60 = vld [vmem:[%s5864_s22 + $0x48] sm:$0xff] }
 0x49d   : > { %v3018_v29 = vrot.slane %v3017_v48, 4  ;;  %v3103_v59 = vsel %vm2503_vm13, %v3009_v30, %v5297_v14  ;;  %v2788_v54 = vsel %vm2152_vm9, %v2694_v36, 0.0  ;;  %v2245_v14 = vrot.slane %v2244_v47, 4 }
 0x49e   : > { %v5322_v58 = vpop.permute.xlu0 %2103  ;;  %v2752_v46 = vadd.f32 %v2751_v24, %v2750_v40  ;;  %v2150_v40 = vmul.f32 %v5207_v38, %v2054_v3  ;;  %v3104_v24 = vsel %vm2505_vm14, %v3016_v45, %v3103_v59  ;;  %v2789_v55 = vrot.slane %v2788_v54, 4 }
 0x49f   : > { %v3019_v18 = vadd.f32 %v3018_v29, %v3017_v48  ;;  %v2363_v48 = vmul.f32 %v3861_v22, %v5262_v23  ;;  %v2463_v29 = vrot.slane %v2462_v5, 4  ;;  %v2458_v23 = vrot.slane %v2457_v28, 2  ;;  %v3856_v22 = vld [vmem:[%s5864_s22 + $0xd0] sm:$0xff] }
 0x4a0   : > { %v2834_v16 = vsel %vm5836_vm15, %v2752_v46, %v2833_v53  ;;  %v2251_v46 = vsel %vm2152_vm9, %v2150_v40, 0.0  ;;  %v2246_v8 = vadd.f32 %v2245_v14, %v2244_v47  ;;  %v2151_v3 = vmul.f32 %v5291_v12, %v2055_v6  ;;  %v3855_v12 = vld [vmem:[%s5864_s22 + $0xc8] sm:$0xff]  ;;  %v3857_v14 = vld [vmem:[%s5864_s22 + $0xd8] sm:$0xff] }
 0x4a1   : > { %v3020_v0 = vrot.slane %v3019_v18, 2  ;;  %v5351_v4 = vpop.permute.xlu2 %2925  ;;  %3886 = vmatmul.msk.f32.vlgmr.msrb.gmra.mxu0 %vm2152_vm9, %v2834_v16  ;;  %v2469_v16 = vsel %vm2152_vm9, %v2363_v48, 0.0  ;;  %v2252_v19 = vrot.slane %v2251_v46, 4  ;;  %v2459_v9 = vadd.f32 %v2458_v23, %v2457_v28 }
 0x4a2   : > { %v5354_v50 = vpop.permute.xlu1 %2650  ;;  %v2470_v25 = vrot.slane %v2469_v16, 4  ;;  %v2145_v36 = vmul.f32 %v5322_v58, %v2049_v60  ;;  %v2790_v40 = vadd.f32 %v2789_v55, %v2788_v54  ;;  %v2258_v57 = vsel %vm2152_vm9, %v2151_v3, 0.0  ;;  %v2050_v55 = vld [vmem:[%s5864_s22 + $0x50] sm:$0xff] }
 0x4a3   : > { %v3021_v37 = vadd.f32 %v3020_v0, %v3019_v18  ;;  %v3854_v18 = vld [vmem:[%s5864_s22 + $0xc0] sm:$0xff]  ;;  %v2464_v0 = vadd.f32 %v2463_v29, %v2462_v5  ;;  %v2253_v30 = vadd.f32 %v2252_v19, %v2251_v46  ;;  %v2460_v58 = vrot.slane %v2459_v9, 1 }
 0x4a4   : > { %v2356_v52 = vmul.f32 %v3854_v18, %v5306_v39  ;;  %v2471_v5 = vadd.f32 %v2470_v25, %v2469_v16  ;;  %v2216_v23 = vsel %vm2152_vm9, %v2145_v36, 0.0 }
 0x4a5   : > { %v3022_v49 = vrot.slane %v3021_v37, 1  ;;  %v2465_v59 = vrot.slane %v2464_v0, 2  ;;  %v2254_v46 = vrot.slane %v2253_v30, 2  ;;  %v2217_v25 = vrot.slane %v2216_v23, 4 }
 0x4a6   : > { %v5340_v51 = vpop.permute.xlu0 %2108  ;;  %v2420_v39 = vsel %vm2152_vm9, %v2356_v52, 0.0  ;;  %v2472_v19 = vrot.slane %v2471_v5, 2  ;;  %v2259_v52 = vrot.slane %v2258_v57, 4 }
 0x4a7   : > { %v3023_v35 = vadd.f32 %v3022_v49, %v3021_v37  ;;  %v2144_v37 = vmul.f32 %v5315_v15, %v2048_v13  ;;  %v2796_v49 = vrot.slane %v2795_v21, 4  ;;  %v3877_v15 = vld [vmem:[%s5864_s22 + $0x148] sm:$0xff]  ;;  %v2421_v48 = vrot.slane %v2420_v39, 4 }
 0x4a8   : > { %v2791_v13 = vrot.slane %v2790_v40, 2  ;;  %v2466_v16 = vadd.f32 %v2465_v59, %v2464_v0  ;;  %v2146_v0 = vmul.f32 %v5340_v51, %v2050_v55 }
 0x4a9   : > { %v3105_v38 = vsel %vm5836_vm15, %v3023_v35, %v3104_v24  ;;  %v2247_v35 = vrot.slane %v2246_v8, 2  ;;  %v2209_v28 = vsel %vm2152_vm9, %v2144_v37, 0.0  ;;  %v2797_v33 = vadd.f32 %v2796_v49, %v2795_v21 }
 0x4aa   : > { %v2326_v56 = vpop.permute.xlu2 %2325  ;;  %3906 = vmatmul.msk.f32.vlgmr.msra.gmra.mxu1 %vm2152_vm9, %v3105_v38  ;;  %v2690_v38 = vmul.f32 %v3877_v15, %v5327_v34  ;;  %v2210_v18 = vrot.slane %v2209_v28, 4  ;;  %v2255_v49 = vadd.f32 %v2254_v46, %v2253_v30  ;;  %v2260_v30 = vadd.f32 %v2259_v52, %v2258_v57 }
 0x4ab   : > { %v5386_v53 = vpop.permute.xlu1 %2921  ;;  %v2358_v29 = vmul.f32 %v3856_v22, %v2326_v56  ;;  %v2248_v6 = vadd.f32 %v2247_v35, %v2246_v8  ;;  %v2422_v56 = vadd.f32 %v2421_v48, %v2420_v39  ;;  %v2798_v36 = vrot.slane %v2797_v33, 2 }
 0x4ac   : > { %v2760_v21 = vsel %vm2152_vm9, %v2690_v38, 0.0  ;;  %v2211_v8 = vadd.f32 %v2210_v18, %v2209_v28  ;;  %v5433_v22 = vadd.f32 %v2791_v13, %v2790_v40  ;;  %v2467_v35 = vrot.slane %v2466_v16, 1 }
 0x4ad   : > { %v2434_v3 = vsel %vm2152_vm9, %v2358_v29, 0.0  ;;  %v2423_v28 = vrot.slane %v2422_v56, 2  ;;  %v2218_v29 = vadd.f32 %v2217_v25, %v2216_v23  ;;  %v5442_v40 = vadd.f32 %v2798_v36, %v2797_v33  ;;  %v3896_v36 = vld [vmem:[%s5864_s22 + $0x1c0] sm:$0xff] }
 0x4ae   : > { %v2435_v48 = vrot.slane %v2434_v3, 4  ;;  %v2212_v46 = vrot.slane %v2211_v8, 2  ;;  %v2223_v18 = vsel %vm2152_vm9, %v2146_v0, 0.0  ;;  %v5451_v55 = vadd.f32 %v2467_v35, %v2466_v16 }
 0x4af   : > { %v2330_v7 = vpop.permute.xlu0 %2329  ;;  %v2261_v33 = vrot.slane %v2260_v30, 2  ;;  %v2424_v52 = vadd.f32 %v2423_v28, %v2422_v56  ;;  %v3879_v56 = vld [vmem:[%s5864_s22 + $0x158] sm:$0xff] }
 0x4b0   : > { %v2359_v37 = vmul.f32 %v3857_v14, %v2330_v7  ;;  %v2473_v7 = vadd.f32 %v2472_v19, %v2471_v5  ;;  %v5438_v14 = vadd.f32 %v2460_v58, %v2459_v9  ;;  %v3876_v9 = vld [vmem:[%s5864_s22 + $0x140] sm:$0xff]  ;;  %v2436_v19 = vadd.f32 %v2435_v48, %v2434_v3 }
 0x4b1   : > { %v2213_v0 = vadd.f32 %v2212_v46, %v2211_v8  ;;  %v2051_v8 = vld [vmem:[%s5864_s22 + $0x58] sm:$0xff]  ;;  %v5477_v46 = vadd.f32 %v2261_v33, %v2260_v30  ;;  %v2266_v30 = vld [vmem:[%s5804_s14 + $0x8] sm:$0xff] }
 0x4b2   : > { %v2441_v39 = vsel %vm2152_vm9, %v2359_v37, 0.0  ;;  %v2474_v23 = vrot.slane %v2473_v7, 1  ;;  %v2219_v37 = vrot.slane %v2218_v29, 2  ;;  %v2437_v48 = vrot.slane %v2436_v19, 2  ;;  %2591 = vmatpush.msra.mxu3 %v2266_v30 }
 0x4b3   : > { %v5416_v47 = vpop.permute.xlu2 %2658  ;;  %v2442_v58 = vrot.slane %v2441_v39, 4 }
 0x4b4   : > { %v2322_v24 = vpop.permute.xlu1 %2321 }
 0x4b5   : > { %v2357_v54 = vmul.f32 %v3855_v12, %v2322_v24  ;;  %v2249_v12 = vrot.slane %v2248_v6, 1  ;;  %v2761_v24 = vrot.slane %v2760_v21, 4  ;;  %v2443_v3 = vadd.f32 %v2442_v58, %v2441_v39  ;;  %v3858_v39 = vld [vmem:[%s5864_s22 + $0xe0] sm:$0xff] }
 0x4b7   : > { %v2427_v34 = vsel %vm2152_vm9, %v2357_v54, 0.0  ;;  %v2256_v54 = vrot.slane %v2255_v49, 1  ;;  %v5446_v13 = vadd.f32 %v2249_v12, %v2248_v6  ;;  %v3878_v6 = vld [vmem:[%s5864_s22 + $0x150] sm:$0xff]  ;;  %v2689_v12 = vmul.f32 %v3876_v9, %v5354_v50 }
 0x4b8   : > { %v5402_v45 = vpop.permute.xlu0 %2662  ;;  %v2428_v60 = vrot.slane %v2427_v34, 4  ;;  %v2691_v28 = vmul.f32 %v3878_v6, %v5416_v47  ;;  %v2438_v6 = vadd.f32 %v2437_v48, %v2436_v19 }
 0x4b9   : > { %v5456_v25 = vadd.f32 %v2256_v54, %v2255_v49  ;;  %v5475_v54 = vadd.f32 %v2474_v23, %v2473_v7  ;;  %v2753_v47 = vsel %vm2152_vm9, %v2689_v12, 0.0 }
 0x4ba   : > { %v2429_v59 = vadd.f32 %v2428_v60, %v2427_v34  ;;  %v2762_v34 = vadd.f32 %v2761_v24, %v2760_v21  ;;  %v2224_v60 = vrot.slane %v2223_v18, 4  ;;  %v3897_v21 = vld [vmem:[%s5864_s22 + $0x1c8] sm:$0xff]  ;;  %v2439_v30 = vrot.slane %v2438_v6, 1 }
 0x4bb   : > { %v2961_v58 = vmul.f32 %v3897_v21, %v5351_v4  ;;  %v2767_v4 = vsel %vm2152_vm9, %v2691_v28, 0.0  ;;  %v2754_v21 = vrot.slane %v2753_v47, 4 }
 0x4bc   : > { %v5436_v38 = vpop.permute.xlu2 %2929  ;;  %v2430_v57 = vrot.slane %v2429_v59, 2  ;;  %v2763_v50 = vrot.slane %v2762_v34, 2  ;;  %v2225_v9 = vadd.f32 %v2224_v60, %v2223_v18  ;;  %v2444_v18 = vrot.slane %v2443_v3, 2 }
 0x4bd   : > { %v5440_v51 = vpop.permute.xlu1 %2933  ;;  %v2768_v48 = vrot.slane %v2767_v4, 4  ;;  %v2755_v43 = vadd.f32 %v2754_v21, %v2753_v47 }
 0x4be   : > { %v2431_v35 = vadd.f32 %v2430_v57, %v2429_v59  ;;  %v2425_v59 = vrot.slane %v2424_v52, 1  ;;  %v2692_v57 = vmul.f32 %v3879_v56, %v5402_v45  ;;  %v2764_v60 = vadd.f32 %v2763_v50, %v2762_v34  ;;  %v2265_v45 = vld [vmem:[%s5804_s14] sm:$0xff] }
 0x4bf   : > { %2592 = vmatpush.msra.mxu3 %v2265_v45  ;;  %v2445_v50 = vadd.f32 %v2444_v18, %v2443_v3 }
 0x4c0   : > { %v2432_v33 = vrot.slane %v2431_v35, 1  ;;  %v2774_v34 = vsel %vm2152_vm9, %v2692_v57, 0.0 }
 0x4c1   : > { %v5431_v15 = vpop.permute.xlu0 %2937  ;;  %v2775_v17 = vrot.slane %v2774_v34, 4  ;;  %v2446_v18 = vrot.slane %v2445_v50, 1 }
 0x4c2   : > { %v2433_v28 = vadd.f32 %v2432_v33, %v2431_v35 }
 0x4c6   : > { %v2334_v23 = vpop.permute.xlu1 %2333 }
 0x4c9   : > { %v1095_v16 = vpop.permute.xlu0 %1094 }
 0x4ca   : > { %v1097_v24 = vadd.f32 %v1095_v16, %v4449_v27  ;;  %v1098_v49 = vadd.f32 %v1095_v16, %v4502_v20  ;;  %v2220_v27 = vadd.f32 %v2219_v37, %v2218_v29  ;;  %v2114_v20 = vpop.permute.xlu2 %2113  ;;  %v2214_v29 = vrot.slane %v2213_v0, 1 }
 0x4cb   : > { %v2147_v7 = vmul.f32 %v2114_v20, %v2051_v8  ;;  %v2360_v37 = vmul.f32 %v3858_v39, %v2334_v23  ;;  %v2226_v16 = vrot.slane %v2225_v9, 2  ;;  %v3031_v39 = vsel %vm2152_vm9, %v2961_v58, 0.0  ;;  %v2052_v58 = vld [vmem:[%s5864_s22 + $0x60] sm:$0xff] }
 0x4cc   : > { %3196 = vrot.lane.b32.xlu2 %v1098_v49, %s5834_s30  ;;  %3240 = vrot.lane.b32.xlu0 %v1097_v24, %s4186_s12  ;;  %v2221_v8 = vrot.slane %v2220_v27, 1  ;;  %v2765_v23 = vrot.slane %v2764_v60, 1  ;;  %v3032_v57 = vrot.slane %v3031_v39, 4 }
 0x4cd   : > { %3194 = vrot.lane.b32.xlu1 %v1097_v24, %s5834_s30  ;;  %v2230_v12 = vsel %vm2152_vm9, %v2147_v7, 0.0  ;;  %v2448_v24 = vsel %vm2152_vm9, %v2360_v37, 0.0  ;;  %v2426_v7 = vadd.f32 %v2425_v59, %v2424_v52  ;;  %v2215_v37 = vadd.f32 %v2214_v29, %v2213_v0  ;;  %v3898_v52 = vld [vmem:[%s5864_s22 + $0x1d0] sm:$0xff]  ;;  %s5894_s30 = sld [smem:[#allocation22_spill]] }
 0x4ce   : > { %v2231_v56 = vrot.slane %v2230_v12, 4  ;;  %v2449_v19 = vrot.slane %v2448_v24, 4  ;;  %v2227_v45 = vadd.f32 %v2226_v16, %v2225_v9  ;;  %v2222_v3 = vadd.f32 %v2221_v8, %v2220_v27 }
 0x4cf   : > { %v2960_v0 = vmul.f32 %v3896_v36, %v5386_v53  ;;  %v2769_v9 = vadd.f32 %v2768_v48, %v2767_v4  ;;  %v2509_v47 = vsel %vm2495_vm5, %v2433_v28, %v2426_v7  ;;  %v2119_v29 = vpop.permute.xlu1 %2118  ;;  %v5508_v33 = vadd.f32 %v2765_v23, %v2764_v60 }
 0x4d0   : > { %v2232_v20 = vadd.f32 %v2231_v56, %v2230_v12  ;;  %v2450_v5 = vadd.f32 %v2449_v19, %v2448_v24  ;;  %v2440_v12 = vadd.f32 %v2439_v30, %v2438_v6  ;;  %v2148_v21 = vmul.f32 %v2119_v29, %v2052_v58 }
 0x4d1   : > { %v2228_v56 = vrot.slane %v2227_v45, 1  ;;  %v2756_v24 = vrot.slane %v2755_v43, 2  ;;  %v2776_v8 = vadd.f32 %v2775_v17, %v2774_v34  ;;  %v2962_v19 = vmul.f32 %v3898_v52, %v5436_v38 }
 0x4d2   : > { %v2233_v35 = vrot.slane %v2232_v20, 2  ;;  %v2451_v59 = vrot.slane %v2450_v5, 2  ;;  %v2942_v16 = vpop.permute.xlu2 %2941  ;;  %v2237_v4 = vsel %vm2152_vm9, %v2148_v21, 0.0  ;;  %v2510_v60 = vsel %vm2497_vm8, %v2440_v12, %v2509_v47 }
 0x4d3   : > { %v2447_v48 = vadd.f32 %v2446_v18, %v2445_v50  ;;  %v2770_v6 = vrot.slane %v2769_v9, 2  ;;  %v2238_v28 = vrot.slane %v2237_v4, 4  ;;  %v2566_v7 = vsel %vm2495_vm5, %v2222_v3, %v2215_v37 }
 0x4d4   : > { %v2452_v27 = vadd.f32 %v2451_v59, %v2450_v5  ;;  %v2234_v53 = vadd.f32 %v2233_v35, %v2232_v20  ;;  %v3024_v5 = vsel %vm2152_vm9, %v2960_v0, 0.0  ;;  %v5518_v17 = vadd.f32 %v3032_v57, %v3031_v39  ;;  %v3900_v20 = vld [vmem:[%s5864_s22 + $0x1e0] sm:$0xff]  ;;  %v3901_v39 = vld [vmem:[%s5864_s22 + $0x1e8] sm:$0xff] }
 0x4d5   : > { %3242 = vrot.lane.b32.xlu1 %v1098_v49, %s4186_s12  ;;  %v3899_v49 = vld [vmem:[%s5864_s22 + $0x1d8] sm:$0xff]  ;;  %v2757_v23 = vadd.f32 %v2756_v24, %v2755_v43  ;;  %v3038_v30 = vsel %vm2152_vm9, %v2962_v19, 0.0  ;;  %v2239_v58 = vadd.f32 %v2238_v28, %v2237_v4  ;;  %v2511_v50 = vsel %vm2499_vm11, %v2447_v48, %v2510_v60  ;;  %v3880_v43 = vld [vmem:[%s5864_s22 + $0x160] sm:$0xff] }
 0x4d6   : > { %v2453_v36 = vrot.slane %v2452_v27, 1  ;;  %v2963_v38 = vmul.f32 %v3899_v49, %v5440_v51  ;;  %v3025_v52 = vrot.slane %v3024_v5, 4  ;;  %v2777_v35 = vrot.slane %v2776_v8, 2 }
 0x4d7   : > { %v2235_v59 = vrot.slane %v2234_v53, 1  ;;  %v2229_v37 = vadd.f32 %v2228_v56, %v2227_v45  ;;  %v2771_v3 = vadd.f32 %v2770_v6, %v2769_v9  ;;  %v2240_v57 = vrot.slane %v2239_v58, 2 }
 0x4d8   : > { %v2454_v34 = vadd.f32 %v2453_v36, %v2452_v27  ;;  %v2964_v0 = vmul.f32 %v3900_v20, %v5431_v15  ;;  %v3039_v47 = vrot.slane %v3038_v30, 4  ;;  %v3045_v29 = vsel %vm2152_vm9, %v2963_v38, 0.0  ;;  %v2667_v12 = vpop.permute.xlu1 %2666  ;;  %v3903_v15 = vld [vmem:[%s5864_s22 + $0x1f8] sm:$0xff] }
 0x4d9   : > { %v2965_v21 = vmul.f32 %v3901_v39, %v2942_v16  ;;  %v2241_v24 = vadd.f32 %v2240_v57, %v2239_v58  ;;  %v2693_v19 = vmul.f32 %v3880_v43, %v2667_v12  ;;  %v2758_v9 = vrot.slane %v2757_v23, 1 }
 0x4da   : > { %v2512_v51 = vsel %vm2501_vm12, %v2454_v34, %v2511_v50  ;;  %v3026_v56 = vadd.f32 %v3025_v52, %v3024_v5  ;;  %v2778_v49 = vadd.f32 %v2777_v35, %v2776_v8  ;;  %v2236_v36 = vadd.f32 %v2235_v59, %v2234_v53  ;;  %v3883_v50 = vld [vmem:[%s5864_s22 + $0x178] sm:$0xff] }
 0x4db   : > { %v2513_v18 = vsel %vm2503_vm13, %v5438_v14, %v2512_v51  ;;  %v2950_v14 = vpop.permute.xlu2 %2949  ;;  %v2772_v4 = vrot.slane %v2771_v3, 1  ;;  %v3046_v60 = vrot.slane %v3045_v29, 4  ;;  %v2781_v16 = vsel %vm2152_vm9, %v2693_v19, 0.0 }
 0x4dc   : > { %v2514_v27 = vsel %vm2505_vm14, %v5451_v55, %v2513_v18  ;;  %v2242_v55 = vrot.slane %v2241_v24, 1  ;;  %v2567_v48 = vsel %vm2497_vm8, %v2229_v37, %v2566_v7  ;;  %v3052_v5 = vsel %vm2152_vm9, %v2964_v0, 0.0 }
 0x4dd   : > { %v2515_v45 = vsel %vm5836_vm15, %v5475_v54, %v2514_v27  ;;  %v3034_v54 = vrot.slane %v5518_v17, 2  ;;  %v2782_v8 = vrot.slane %v2781_v16, 4  ;;  %v3040_v53 = vadd.f32 %v3039_v47, %v3038_v30 }
 0x4de   : > { %3865 = vmatmul.msk.f32.gmra.mxu3 %vm2152_vm9, %v2515_v45  ;;  %v3059_v6 = vsel %vm2152_vm9, %v2965_v21, 0.0  ;;  %v2243_v28 = vadd.f32 %v2242_v55, %v2241_v24  ;;  %v2967_v38 = vmul.f32 %v3903_v15, %v2950_v14  ;;  %v2759_v34 = vadd.f32 %v2758_v9, %v2757_v23 }
 0x4df   : > { %v3027_v20 = vrot.slane %v3026_v56, 2  ;;  %v2783_v58 = vadd.f32 %v2782_v8, %v2781_v16  ;;  %v2568_v52 = vsel %vm2499_vm11, %v2236_v36, %v2567_v48  ;;  %v2779_v7 = vrot.slane %v2778_v49, 1 }
 0x4e0   : > { %v2773_v35 = vadd.f32 %v2772_v4, %v2771_v3  ;;  %v3047_v59 = vadd.f32 %v3046_v60, %v3045_v29  ;;  %v2569_v39 = vsel %vm2501_vm12, %v2243_v28, %v2568_v52  ;;  %v3053_v43 = vrot.slane %v3052_v5, 4  ;;  %v2679_v37 = vpop.permute.xlu1 %2678 }
 0x4e1   : > { %v3060_v30 = vrot.slane %v3059_v6, 4  ;;  %v2784_v51 = vrot.slane %v2783_v58, 2  ;;  %v2570_v23 = vsel %vm2503_vm13, %v5446_v13, %v2569_v39  ;;  %v3041_v57 = vrot.slane %v3040_v53, 2 }
 0x4e2   : > { %v3073_v18 = vsel %vm2152_vm9, %v2967_v38, 0.0  ;;  %v2696_v0 = vmul.f32 %v3883_v50, %v2679_v37  ;;  %v2571_v47 = vsel %vm2505_vm14, %v5456_v25, %v2570_v23  ;;  %v2263_v12 = vrot.slane %v5477_v46, 1 }
 0x4e3   : > { %v3035_v3 = vadd.f32 %v3034_v54, %v5518_v17  ;;  %v2835_v29 = vsel %vm2495_vm5, %v5508_v33, %v2759_v34  ;;  %v2785_v27 = vadd.f32 %v2784_v51, %v2783_v58  ;;  %v3028_v21 = vadd.f32 %v3027_v20, %v3026_v56 }
 0x4e4   : > { %v2836_v13 = vsel %vm2497_vm8, %v2773_v35, %v2835_v29  ;;  %v3048_v24 = vrot.slane %v3047_v59, 2  ;;  %v2802_v19 = vsel %vm2152_vm9, %v2696_v0, 0.0  ;;  %v3061_v45 = vadd.f32 %v3060_v30, %v3059_v6  ;;  %v3902_v6 = vld [vmem:[%s5864_s22 + $0x1f0] sm:$0xff] }
 0x4e5   : > { %v3074_v9 = vrot.slane %v3073_v18, 4  ;;  %v2786_v25 = vrot.slane %v2785_v27, 1  ;;  %v2803_v36 = vrot.slane %v2802_v19, 4  ;;  %v5880_v17 = vrot.slane %v5433_v22, 1 }
 0x4e6   : > { %3866 = vmatmul.msk.f32.vlgmr.msra.gmra.mxu3 %vm2152_vm9, %v5331_v44  ;;  %v2780_v14 = vadd.f32 %v2779_v7, %v2778_v49  ;;  %v3054_v33 = vadd.f32 %v3053_v43, %v3052_v5  ;;  %v3042_v4 = vadd.f32 %v3041_v57, %v3040_v53  ;;  %v5881_v44 = vrot.slane %v5442_v40, 1 }
 0x4e7   : > { %v2794_v15 = vadd.f32 %v5880_v17, %v5433_v22  ;;  %v2787_v60 = vadd.f32 %v2786_v25, %v2785_v27  ;;  %v2804_v55 = vadd.f32 %v2803_v36, %v2802_v19  ;;  %v2264_v16 = vadd.f32 %v2263_v12, %v5477_v46 }
 0x4e8   : > { %v2801_v56 = vadd.f32 %v5881_v44, %v5442_v40  ;;  %v3036_v48 = vrot.slane %v3035_v3, 1  ;;  %v3029_v54 = vrot.slane %v3028_v21, 1  ;;  %v3049_v8 = vadd.f32 %v3048_v24, %v3047_v59 }
 0x4e9   : > { %v2837_v22 = vsel %vm2499_vm11, %v2780_v14, %v2836_v13  ;;  %v3062_v49 = vrot.slane %v3061_v45, 2  ;;  %v3075_v5 = vadd.f32 %v3074_v9, %v3073_v18  ;;  %v2805_v53 = vrot.slane %v2804_v55, 2  ;;  %v2946_v34 = vpop.permute.xlu1 %2945 }
 0x4ea   : > { %v2838_v28 = vsel %vm2501_vm12, %v2787_v60, %v2837_v22  ;;  %v3055_v38 = vrot.slane %v3054_v33, 2  ;;  %v3043_v40 = vrot.slane %v3042_v4, 1  ;;  %v2572_v20 = vsel %vm5836_vm15, %v2264_v16, %v2571_v47  ;;  %v3157_v60 = vld [vmem:[%s5801_s11 + $0x38] sm:$0xff]  ;;  %v3156_v16 = vld [vmem:[%s5801_s11 + $0x30] sm:$0xff]  ;;  %v3284_v22 = vld [vmem:[%s5806_s16 + $0x20] sm:$0xff] }
 0x4eb   : > { %v2839_v46 = vsel %vm2503_vm13, %v2794_v15, %v2838_v28  ;;  %v2806_v58 = vadd.f32 %v2805_v53, %v2804_v55  ;;  %v2966_v50 = vmul.f32 %v3902_v6, %v2946_v34  ;;  %v3030_v7 = vadd.f32 %v3029_v54, %v3028_v21  ;;  %v3287_v55 = vld [vmem:[%s5806_s16 + $0x38] sm:$0xff]  ;;  %3177 = vmatpush.msrb.mxu3 %v3157_v60  ;;  %v3155_v54 = vld [vmem:[%s5801_s11 + $0x28] sm:$0xff]  ;;  %v3154_v6 = vld [vmem:[%s5801_s11 + $0x20] sm:$0xff] }
 0x4ec   : > { %v2840_v52 = vsel %vm2505_vm14, %v2801_v56, %v2839_v46  ;;  %v3050_v35 = vrot.slane %v3049_v8, 1  ;;  %v3063_v59 = vadd.f32 %v3062_v49, %v3061_v45  ;;  %v3076_v39 = vrot.slane %v3075_v5, 2  ;;  %3296 = vmatpush.msra.mxu0 %v3287_v55  ;;  %v3153_v49 = vld [vmem:[%s5801_s11 + $0x18] sm:$0xff]  ;;  %v3152_v53 = vld [vmem:[%s5801_s11 + $0x10] sm:$0xff]  ;;  %v3150_v34 = vld [vmem:[%s5801_s11] sm:$0xff] }
 0x4ed   : > { %v2807_v43 = vrot.slane %v2806_v58, 1  ;;  %v3066_v30 = vsel %vm2152_vm9, %v2966_v50, 0.0  ;;  %v3037_v51 = vadd.f32 %v3036_v48, %v3035_v3  ;;  %v3056_v37 = vadd.f32 %v3055_v38, %v3054_v33  ;;  %v3286_v48 = vld [vmem:[%s5806_s16 + $0x30] sm:$0xff]  ;;  %3178 = vmatpush.msrb.mxu3 %v3156_v16  ;;  %v3151_v38 = vld [vmem:[%s5801_s11 + $0x8] sm:$0xff] }
 0x4ee   : > { %3867 = vmatmul.msk.f32.gmra.mxu3 %vm2152_vm9, %v2572_v20  ;;  %v3044_v23 = vadd.f32 %v3043_v40, %v3042_v4  ;;  %v3067_v57 = vrot.slane %v3066_v30, 4  ;;  %v3051_v12 = vadd.f32 %v3050_v35, %v3049_v8  ;;  %v3064_v29 = vrot.slane %v3063_v59, 1  ;;  %3297 = vmatpush.msra.mxu0 %v3286_v48  ;;  %v3285_v8 = vld [vmem:[%s5806_s16 + $0x28] sm:$0xff]  ;;  %v3282_v28 = vld [vmem:[%s5806_s16 + $0x10] sm:$0xff]  ;;  %v3280_v20 = vld [vmem:[%s5806_s16] sm:$0xff] }
 0x4ef   : > { %v2808_v18 = vadd.f32 %v2807_v43, %v2806_v58  ;;  %v3106_v0 = vsel %vm2495_vm5, %v3037_v51, %v3030_v7  ;;  %v3077_v27 = vadd.f32 %v3076_v39, %v3075_v5  ;;  %v3057_v21 = vrot.slane %v3056_v37, 1  ;;  %3179 = vmatpush.msrb.mxu3 %v3155_v54  ;;  %v3283_v5 = vld [vmem:[%s5806_s16 + $0x18] sm:$0xff]  ;;  %v3281_v40 = vld [vmem:[%s5806_s16 + $0x8] sm:$0xff] }
 0x4f0   : > { %v3068_v47 = vadd.f32 %v3067_v57, %v3066_v30  ;;  %v3107_v24 = vsel %vm2497_vm8, %v3044_v23, %v3106_v0  ;;  %v3065_v3 = vadd.f32 %v3064_v29, %v3063_v59  ;;  %3298 = vmatpush.msra.mxu0 %v3285_v8  ;;  %v4030_v59 = vld [vmem:[%s5805_s15] ss:$0 sm:$0xff] }
 0x4f1   : > { %v2841_v13 = vsel %vm5836_vm15, %v2808_v18, %v2840_v52  ;;  %v3078_v9 = vrot.slane %v3077_v27, 1  ;;  %v3108_v25 = vsel %vm2499_vm11, %v3051_v12, %v3107_v24  ;;  %v3058_v36 = vadd.f32 %v3057_v21, %v3056_v37  ;;  %3180 = vmatpush.msrb.mxu3 %v3154_v6 }
 0x4f2   : > { %v3069_v19 = vrot.slane %v3068_v47, 2  ;;  %3887 = vmatmul.msk.f32.gmra.mxu0 %vm2152_vm9, %v2841_v13 }
 0x4f3   : > { %v3109_v14 = vsel %vm2501_vm12, %v3058_v36, %v3108_v25  ;;  %v3079_v33 = vadd.f32 %v3078_v9, %v3077_v27  ;;  %3299 = vmatpush.msra.mxu0 %v3284_v22  ;;  %3181 = vmatpush.msrb.mxu3 %v3153_v49  ;;  %v4031_v27 = vld [vmem:[%s5882_s2] ss:$0 sm:$0xff] }
 0x4f4   : > { %v3070_v45 = vadd.f32 %v3069_v19, %v3068_v47  ;;  %v3110_v4 = vsel %vm2503_vm13, %v3065_v3, %v3109_v14 }
 0x4f5   : > { %3300 = vmatpush.msra.mxu0 %v3283_v5  ;;  %3182 = vmatpush.msrb.mxu3 %v3152_v53 }
 0x4f6   : > { %v3071_v17 = vrot.slane %v3070_v45, 1 }
 0x4f7   : > { %3301 = vmatpush.msra.mxu0 %v3282_v28  ;;  %3183 = vmatpush.msrb.mxu3 %v3151_v38 }
 0x4f8   : > { %v3072_v15 = vadd.f32 %v3071_v17, %v3070_v45 }
 0x4f9   : > { %3302 = vmatpush.msra.mxu0 %v3281_v40  ;;  %3184 = vmatpush.msrb.mxu3 %v3150_v34 }
 0x4fa   : > { %v3111_v44 = vsel %vm2505_vm14, %v3072_v15, %v3110_v4 }
 0x4fb   : > { %v3112_v56 = vsel %vm5836_vm15, %v3079_v33, %v3111_v44  ;;  %3303 = vmatpush.msra.mxu0 %v3280_v20 }
 0x4fc   : > { %3907 = vmatmul.msk.f32.gmra.mxu1 %vm2152_vm9, %v3112_v56  ;;  %vm3162_vm9 = vcmask 523264  }
 0x512   : > { %v2537_v46 = vpop.f32.mrf.mxu3 }
 0x51e   : > { %v2863_v7 = vpop.f32.mrf.mxu0 }
 0x526   : > { %v3197_v17 = vpop.permute.xlu2 %3196 }
 0x527   : > { %v3134_v39 = vpop.f32.mrf.mxu1 }
 0x53e   : > { %v3241_v22 = vpop.permute.xlu0 %3240 }
 0x53f   : > { %v3195_v24 = vpop.permute.xlu1 %3194 }
 0x561   : > { %v2540_v58 = vpop.f32.mrf.mxu3 }
 0x569   : > { %v2594_v50 = vpop.f32.mrf.mxu3 }
 0x56a   : > { %v2595_v52 = vadd.f32 %v2594_v50, %v2537_v46 }
 0x56c   : > { %v2869_v35 = vadd.f32 %v2863_v7, %v2595_v52  ;;  %v3243_v52 = vpop.permute.xlu1 %3242 }
 0x56e   : > { %v3140_v43 = vadd.f32 %v3134_v39, %v2869_v35 }
 0x56f   : > { %v2866_v57 = vpop.f32.mrf.mxu0 }
 0x570   : > { %v3146_v30 = vadd.f32 %v4030_v59, %v3140_v43 }
 0x571   : > { %v2597_v37 = vpop.f32.mrf.mxu3 }
 0x572   : > { %v3148_v51 = vmul.f32 %v3146_v30, %v4394_v61  ;;  %v2598_v23 = vadd.f32 %v2597_v37, %v2540_v58 }
 0x574   : > { %3513 = vst.msk [vmem:[%s4347_s5] sm:$0xff] %vm3162_vm9, %v3148_v51  ;;  %3908 = vmatmul.msk.f32.vlgmr.msrb.gmra.mxu3 %vm3162_vm9, %v3148_v51  ;;  %3912 = vmatmul.msk.f32.vlgmr.msra.gmra.mxu0 %vm3162_vm9, %v3148_v51  ;;  %v2870_v18 = vadd.f32 %v2866_v57, %v2598_v23  ;;  %v1969_v23 = vsel %vm1312_vm10, %v4594_v31, 0.0  ;;  %v1978_v57 = vsel %vm1312_vm10, %v4816_v2, 0.0  ;;  %v2008_v2 = vsel %vm1312_vm10, %v4784_v41, 0.0 }
 0x575   : > { %v4190_v41 = vmov 4.0  }
 0x579   : > { %v3137_v0 = vpop.f32.mrf.mxu1 }
 0x57a   : > { %v3141_v47 = vadd.f32 %v3137_v0, %v2870_v18  ;;  %v1981_v18 = vsel %vm1312_vm10, %v4621_v63, 0.0  ;;  %v1990_v0 = vsel %vm1312_vm10, %v4971_v32, 0.0 }
 0x57c   : > { %v3147_v12 = vadd.f32 %v4030_v59, %v3141_v47  ;;  %v1999_v47 = vsel %vm1312_vm10, %v5058_v26, 0.0 }
 0x57e   : > { %v3149_v29 = vmul.f32 %v3147_v12, %v4413_v10 }
 0x580   : > { %3909 = vmatmul.msk.f32.gmra.mxu3 %vm3162_vm9, %v3149_v29  ;;  %3514 = vst.msk [vmem:[%s4347_s5 + $0x8] sm:$0xff] %vm3162_vm9, %v3149_v29  ;;  %3913 = vmatmul.msk.f32.gmra.mxu0 %vm3162_vm9, %v3149_v29  ;;  %s5883_s5 = smov 64  }
 0x5f7   : > { %v3186_v13 = vpop.f32.mrf.mxu3 }
 0x5f8   : > { %v3187_v21 = vadd.f32 %v4031_v27, %v3186_v13 }
 0x5fa   : > { %v3200_v19 = vadd.f32 %v3195_v24, %v3187_v21 }
 0x5fc   : > { %v3910_v45 = vmul.f32 -1.442695, %v3200_v19 }
 0x5fe   : > { %4141 = vpow2.f32 %v3910_v45 }
 0x603   : > { %v3189_v25 = vpop.f32.mrf.mxu3 }
 0x604   : > { %v4142_v3 = vpop.eup %4141  ;;  %v3190_v36 = vadd.f32 %v4031_v27, %v3189_v25  ;;  %v5885_v25 = vld [vmem:[#allocation6_spill] sm:$0xff] }
 0x605   : > { %v3208_v9 = vadd.f32 1.0, %v4142_v3  ;;  %v1984_v3 = vsel %vm1312_vm10, %v4650_v42, 0.0 }
 0x606   : > { %v3201_v15 = vadd.f32 %v3197_v17, %v3190_v36  ;;  %v5886_v17 = vld [vmem:[#allocation10_spill] sm:$0xff] }
 0x607   : > { %4143 = vrcp.f32 %v3208_v9  ;;  %v3221_v56 = vand.u32 2147483648, %v3208_v9  ;;  %v3219_v55 = vand.u32 2147483647, %v3208_v9  ;;  %vm3215_vm2 = vweird.f32 %v3208_v9 }
 0x608   : > { %v3911_v14 = vmul.f32 -1.442695, %v3201_v15  ;;  %v1993_v15 = vsel %vm1312_vm10, %v5886_v17, 0.0 }
 0x609   : > { %v3222_v8 = vor.u32 1.1754944e-38, %v3221_v56  ;;  %vm3220_vm4 = vcmp.eq.f32.partialorder %v3219_v55, 8.507059e+37 }
 0x60a   : > { %4145 = vpow2.f32 %v3911_v14 }
 0x60d   : > { %v4144_v33 = vpop.eup %4143 }
 0x60e   : > { %v3211_v4 = vmul.f32 %v4144_v33, %v3208_v9  ;;  %vm3216_vm0 = vweird.f32 %v4144_v33 }
 0x60f   : > { %vm3217_vm3 = vmor %vm3215_vm2, %vm3216_vm0 }
 0x610   : > { %v3212_v44 = vsub.f32 1.0, %v3211_v4  ;;  %v4146_v16 = vpop.eup %4145 }
 0x611   : > { %v3209_v48 = vadd.f32 1.0, %v4146_v16 }
 0x612   : > { %v3213_v60 = vmul.f32 %v4144_v33, %v3212_v44  ;;  %v5888_v44 = vld [vmem:[#allocation12_spill] sm:$0xff] }
 0x613   : > { %4147 = vrcp.f32 %v3209_v48  ;;  %v3236_v40 = vand.u32 2147483648, %v3209_v48  ;;  %v3234_v20 = vand.u32 2147483647, %v3209_v48  ;;  %vm3230_vm7 = vweird.f32 %v3209_v48 }
 0x614   : > { %v3214_v54 = vadd.f32 %v4144_v33, %v3213_v60  ;;  %v2002_v42 = vsel %vm1312_vm10, %v5888_v44, 0.0  ;;  %v5889_v60 = vld [vmem:[#allocation11_spill] sm:$0xff] }
 0x615   : > { %v3237_v58 = vor.u32 1.1754944e-38, %v3236_v40  ;;  %vm3235_vm0 = vcmp.eq.f32.partialorder %v3234_v20, 8.507059e+37  ;;  %v1996_v55 = vsel %vm1312_vm10, %v5889_v60, 0.0  ;;  %v3377_v60 = vperm.slane %v4413_v10, 5 }
 0x616   : > { %v3218_v6 = vsel %vm3217_vm3, %v4144_v33, %v3214_v54  ;;  %v5887_v33 = vld [vmem:[#allocation8_spill] sm:$0xff] }
 0x617   : > { %v3223_v49 = vsel %vm3220_vm4, %v3222_v8, %v3218_v6  ;;  %v3364_v6 = vperm.slane %v4394_v61, 0 }
 0x618   : > { %v3246_v5 = vmul.f32 %v3241_v22, %v3223_v49  ;;  %v3260_v12 = vsub.f32 1.0, %v3223_v49  ;;  %v3272_v31 = vmul.f32 %v3223_v49, %v4403_v1  ;;  %v1972_v1 = vsel %vm1312_vm10, %v4617_v62, 0.0 }
 0x619   : > { %v4148_v53 = vpop.eup %4147  ;;  %v1987_v62 = vsel %vm1312_vm10, %v5887_v33, 0.0 }
 0x61a   : > { %3250 = vrot.lane.b32.xlu2 %v3246_v5, %s5883_s5  ;;  %v3226_v28 = vmul.f32 %v4148_v53, %v3209_v48  ;;  %vm3231_vm6 = vweird.f32 %v4148_v53  ;;  %v5890_v48 = vld [vmem:[#allocation7_spill] sm:$0xff] }
 0x61b   : > { %vm3232_vm15 = vmor %vm3230_vm7, %vm3231_vm6  ;;  %v2011_v54 = vsel %vm1312_vm10, %v5890_v48, 0.0  ;;  %v3316_v5 = vld [vmem:[%s5891_s27 + $0x18] sm:$0xff] }
 0x61c   : > { %v3227_v38 = vsub.f32 1.0, %v3226_v28  ;;  %3339 = vmatpush.msrb.mxu1 %v3316_v5  ;;  %v3314_v28 = vld [vmem:[%s5891_s27 + $0x8] sm:$0xff] }
 0x61e   : > { %v3228_v34 = vmul.f32 %v4148_v53, %v3227_v38  ;;  %v5892_v38 = vld [vmem:[#allocation13_spill] sm:$0xff] }
 0x61f   : > { %v2005_v40 = vsel %vm1312_vm10, %v5892_v38, 0.0  ;;  %v3376_v38 = vperm.slane %v4413_v10, 4 }
 0x620   : > { %v3229_v46 = vadd.f32 %v4148_v53, %v3228_v34  ;;  %v3313_v34 = vld [vmem:[%s5891_s27] sm:$0xff] }
 0x622   : > { %v3233_v50 = vsel %vm3232_vm15, %v4148_v53, %v3229_v46  ;;  %v3315_v53 = vld [vmem:[%s5891_s27 + $0x10] sm:$0xff]  ;;  %v3367_v46 = vperm.slane %v4394_v61, 3 }
 0x623   : > { %v3238_v7 = vsel %vm3235_vm0, %v3237_v58, %v3233_v50  ;;  %3340 = vmatpush.msrb.mxu1 %v3315_v53 }
 0x624   : > { %v3247_v35 = vmul.f32 %v3243_v52, %v3238_v7  ;;  %v3261_v32 = vsub.f32 1.0, %v3238_v7  ;;  %v3273_v24 = vmul.f32 %v3238_v7, %v4416_v11  ;;  %v1975_v11 = vsel %vm1312_vm10, %v5885_v25, 0.0  ;;  %v5893_v52 = vld [vmem:[#allocation9_spill] sm:$0xff] }
 0x625   : > { %3341 = vmatpush.msrb.mxu1 %v3314_v28  ;;  %v2014_v7 = vsel %vm1312_vm10, %v5893_v52, 0.0  ;;  %v3374_v25 = vperm.slane %v4413_v10, 2  ;;  %v3305_v52 = vpop.f32.mrf.mxu0  ;;  %vm5896_vm10 = vcmask 1047559  }
 0x626   : > { %3252 = vrot.lane.b32.xlu0 %v3247_v35, %s5883_s5 }
 0x627   : > { %3342 = vmatpush.msrb.mxu1 %v3313_v34 }
 0x674   : > { %v3251_v59 = vpop.permute.xlu2 %3250 }
 0x675   : > { %v3256_v39 = vadd.f32 %v3251_v59, %v3187_v21 }
 0x677   : > { %4149 = vtanh.f32 %v3256_v39 }
 0x67d   : > { %v4150_v43 = vpop.eup %4149 }
 0x67e   : > { %3264 = vrot.lane.b32.xlu1 %v4150_v43, %s5884_s26 }
 0x698   : > { %v3253_v30 = vpop.permute.xlu0 %3252 }
 0x699   : > { %v3257_v51 = vadd.f32 %v3253_v30, %v3190_v36  ;;  %v3365_v30 = vperm.slane %v4394_v61, 1 }
 0x69b   : > { %4151 = vtanh.f32 %v3257_v51 }
 0x69c   : > { %4153 = vrcp.f32 %v4190_v41 }
 0x6a1   : > { %v4152_v37 = vpop.eup %4151 }
 0x6a2   : > { %3266 = vrot.lane.b32.xlu2 %v4152_v37, %s5884_s26  ;;  %v4154_v9 = vpop.eup %4153 }
 0x6a3   : > { %v2018_v36 = vmul.f32 4.0, %v4154_v9  ;;  %vm2022_vm15 = vweird.f32 %v4154_v9 }
 0x6a5   : > { %v2019_v14 = vsub.f32 1.0, %v2018_v36 }
 0x6a7   : > { %v2020_v4 = vmul.f32 %v4154_v9, %v2019_v14 }
 0x6a9   : > { %v2021_v56 = vadd.f32 %v4154_v9, %v2020_v4 }
 0x6ab   : > { %v5695_v16 = vsel %vm2022_vm15, %v4154_v9, %v2021_v56 }
 0x6cb   : > { %1970 = vadd.xlane.f32.xlu2 %v1969_v23 }
 0x6d3   : > { %1979 = vadd.xlane.f32.xlu2 %v1978_v57 }
 0x6db   : > { %1982 = vadd.xlane.f32.xlu2 %v1981_v18  ;;  %v3369_v18 = vperm.slane %v4394_v61, 5 }
 0x6e3   : > { %1991 = vadd.xlane.f32.xlu2 %v1990_v0 }
 0x6eb   : > { %2000 = vadd.xlane.f32.xlu2 %v1999_v47 }
 0x6f0   : > { %v3265_v29 = vpop.permute.xlu1 %3264 }
 0x6f1   : > { %v3270_v27 = vmul.f32 %v3265_v29, %v3260_v12 }
 0x6f3   : > { %v3274_v13 = vadd.f32 %v3272_v31, %v3270_v27  ;;  %2009 = vadd.xlane.f32.xlu2 %v2008_v2  ;;  %v3366_v31 = vperm.slane %v4394_v61, 2  ;;  %v3371_v2 = vperm.slane %v4394_v61, 7 }
 0x6f5   : > { %v3276_v63 = vmul.f32 %v3274_v13, %v4394_v61 }
 0x6f7   : > { %3319 = vrot.lane.b32.xlu0 %v3276_v63, %s5884_s26  ;;  %v3372_v63 = vperm.slane %v4413_v10, 0 }
 0x6fc   : > { %v3267_v21 = vpop.permute.xlu2 %3266 }
 0x6fd   : > { %v3271_v26 = vmul.f32 %v3267_v21, %v3261_v32 }
 0x6ff   : > { %v3275_v19 = vadd.f32 %v3273_v24, %v3271_v26 }
 0x701   : > { %v3277_v45 = vmul.f32 %v3275_v19, %v4413_v10 }
 0x703   : > { %3321 = vrot.lane.b32.xlu1 %v3277_v45, %s5884_s26 }
 0x721   : > { %1973 = vadd.xlane.f32.xlu0 %v1972_v1 }
 0x729   : > { %1985 = vadd.xlane.f32.xlu0 %v1984_v3  ;;  %v3368_v3 = vperm.slane %v4394_v61, 4 }
 0x72d   : > { %1976 = vadd.xlane.f32.xlu1 %v1975_v11  ;;  %v3375_v11 = vperm.slane %v4413_v10, 3 }
 0x731   : > { %1994 = vadd.xlane.f32.xlu0 %v1993_v15 }
 0x735   : > { %1988 = vadd.xlane.f32.xlu1 %v1987_v62 }
 0x739   : > { %2003 = vadd.xlane.f32.xlu0 %v2002_v42  ;;  %v3370_v42 = vperm.slane %v4394_v61, 6 }
 0x73d   : > { %1997 = vadd.xlane.f32.xlu1 %v1996_v55  ;;  %v3378_v55 = vperm.slane %v4413_v10, 6 }
 0x73e   : > { %v1971_v8 = vpop.xlane.xlu2 %1970 }
 0x73f   : > { %v2024_v22 = vmul.f32 %v5695_v16, %v1971_v8 }
 0x741   : > { %2012 = vadd.xlane.f32.xlu0 %v2011_v54  ;;  %v3396_v49 = vmul.f32 %v3364_v6, %v2024_v22 }
 0x743   : > { %3429 = vperm.xlu2 %4025, %v3396_v49   ;;  %v3373_v49 = vperm.slane %v4413_v10, 1 }
 0x745   : > { %2006 = vadd.xlane.f32.xlu1 %v2005_v40 }
 0x746   : > { %v1980_v20 = vpop.xlane.xlu2 %1979 }
 0x747   : > { %v2027_v58 = vmul.f32 %v5695_v16, %v1980_v20 }
 0x749   : > { %v3399_v50 = vmul.f32 %v3367_v46, %v2027_v58  ;;  %v3379_v46 = vperm.slane %v4413_v10, 7 }
 0x74b   : > { %3438 = vperm.xlu2 %4025, %v3399_v50   ;;  %v3278_v50 = vld [vmem:[%s4327_s1] sm:$0xff] }
 0x74d   : > { %2015 = vadd.xlane.f32.xlu1 %v2014_v7  ;;  %v3311_v7 = vadd.f32 %v3305_v52, %v3278_v50 }
 0x74e   : > { %v1983_v39 = vpop.xlane.xlu2 %1982 }
 0x74f   : > { %v2028_v45 = vmul.f32 %v5695_v16, %v1983_v39 }
 0x751   : > { %v3400_v17 = vmul.f32 %v3368_v3, %v2028_v45 }
 0x756   : > { %v1992_v23 = vpop.xlane.xlu2 %1991 }
 0x757   : > { %v2031_v12 = vmul.f32 %v5695_v16, %v1992_v23 }
 0x759   : > { %v3403_v26 = vmul.f32 %v3371_v2, %v2031_v12  ;;  %v5895_v2 = vlaneseq }
 0x75e   : > { %v2001_v21 = vpop.xlane.xlu2 %2000 }
 0x75f   : > { %v2034_v1 = vmul.f32 %v5695_v16, %v2001_v21 }
 0x761   : > { %v3406_v15 = vmul.f32 %v3374_v25, %v2034_v1 }
 0x766   : > { %v2010_v33 = vpop.xlane.xlu2 %2009 }
 0x767   : > { %v2037_v4 = vmul.f32 %v5695_v16, %v2010_v33 }
 0x769   : > { %v3320_v35 = vpop.permute.xlu0 %3319  ;;  %v3409_v8 = vmul.f32 %v3377_v60, %v2037_v4 }
 0x76a   : > { %3517 = vst.msk [vmem:[#allocation2] sm:$0xff] %vm926_vm1, %v3320_v35  ;;  %3914 = vmatmul.msk.f32.vlgmr.msrb.gmra.mxu1 %vm926_vm1, %v3320_v35  ;;  %v4032_v35 = vld [vmem:[%s5894_s30] ss:$0 sm:$0xff] }
 0x775   : > { %v3322_v59 = vpop.permute.xlu1 %3321 }
 0x776   : > { %3518 = vst.msk [vmem:[#allocation2 + $0x8] sm:$0xff] %vm926_vm1, %v3322_v59  ;;  %3915 = vmatmul.msk.f32.gmra.mxu1 %vm926_vm1, %v3322_v59  ;;  %vm3510_vm1 = vcmask 64512  }
 0x794   : > { %v1974_v43 = vpop.xlane.xlu0 %1973 }
 0x795   : > { %v2025_v51 = vmul.f32 %v5695_v16, %v1974_v43 }
 0x797   : > { %v3397_v37 = vmul.f32 %v3365_v30, %v2025_v51  ;;  %v3279_v51 = vld [vmem:[%s4327_s1 + $0x8] sm:$0xff] }
 0x799   : > { %3432 = vperm.xlu0 %4026, %v3397_v37  }
 0x79c   : > { %v1986_v57 = vpop.xlane.xlu0 %1985 }
 0x79d   : > { %v2029_v0 = vmul.f32 %v5695_v16, %v1986_v57 }
 0x79f   : > { %v3401_v47 = vmul.f32 %v3369_v18, %v2029_v0 }
 0x7a0   : > { %v1977_v29 = vpop.xlane.xlu1 %1976 }
 0x7a1   : > { %3444 = vperm.xlu2 %4025, %v3401_v47   ;;  %v2026_v27 = vmul.f32 %v5695_v16, %v1977_v29  ;;  %v3430_v29 = vpop.permute.xlu2 %3429 }
 0x7a3   : > { %v3398_v24 = vmul.f32 %v3366_v31, %v2026_v27 }
 0x7a4   : > { %v1995_v13 = vpop.xlane.xlu0 %1994 }
 0x7a5   : > { %v2032_v32 = vmul.f32 %v5695_v16, %v1995_v13  ;;  %3435 = vperm.xlu1 %4027, %v3398_v24  }
 0x7a7   : > { %v3404_v19 = vmul.f32 %v3372_v63, %v2032_v32  ;;  %v3477_v63 = vand.u32 127, %v5895_v2 }
 0x7a8   : > { %v1989_v41 = vpop.xlane.xlu1 %1988 }
 0x7a9   : > { %3450 = vperm.xlu2 %4025, %v3403_v26   ;;  %3453 = vperm.xlu0 %4026, %v3404_v19   ;;  %v2030_v62 = vmul.f32 %v5695_v16, %v1989_v41  ;;  %v3439_v31 = vpop.permute.xlu2 %3438  ;;  %v3478_v24 = vperm.slane %v3430_v29, %v3477_v63 }
 0x7ab   : > { %v3402_v54 = vmul.f32 %v3370_v42, %v2030_v62 }
 0x7ac   : > { %v2004_v9 = vpop.xlane.xlu0 %2003 }
 0x7ad   : > { %v2035_v36 = vmul.f32 %v5695_v16, %v2004_v9  ;;  %3441 = vperm.xlu1 %4027, %v3400_v17  }
 0x7af   : > { %v3407_v14 = vmul.f32 %v3375_v11, %v2035_v36 }
 0x7b0   : > { %v1998_v44 = vpop.xlane.xlu1 %1997 }
 0x7b1   : > { %3459 = vperm.xlu2 %4025, %v3406_v15   ;;  %3462 = vperm.xlu0 %4026, %v3407_v14   ;;  %v2033_v22 = vmul.f32 %v5695_v16, %v1998_v44 }
 0x7b3   : > { %v3405_v53 = vmul.f32 %v3373_v49, %v2033_v22 }
 0x7b4   : > { %v2013_v56 = vpop.xlane.xlu0 %2012 }
 0x7b5   : > { %v2038_v48 = vmul.f32 %v5695_v16, %v2013_v56  ;;  %3447 = vperm.xlu1 %4027, %v3402_v54  }
 0x7b7   : > { %v3410_v6 = vmul.f32 %v3378_v55, %v2038_v48 }
 0x7b8   : > { %v2007_v5 = vpop.xlane.xlu1 %2006 }
 0x7b9   : > { %3468 = vperm.xlu2 %4025, %v3409_v8   ;;  %3471 = vperm.xlu0 %4026, %v3410_v6   ;;  %v2036_v28 = vmul.f32 %v5695_v16, %v2007_v5 }
 0x7bb   : > { %v3408_v40 = vmul.f32 %v3376_v38, %v2036_v28 }
 0x7bd   : > { %3456 = vperm.xlu1 %4027, %v3405_v53  }
 0x7c0   : > { %v2016_v34 = vpop.xlane.xlu1 %2015 }
 0x7c1   : > { %v2039_v20 = vmul.f32 %v5695_v16, %v2016_v34  ;;  %v3308_v16 = vpop.f32.mrf.mxu0 }
 0x7c2   : > { %v3312_v23 = vadd.f32 %v3308_v16, %v3279_v51 }
 0x7c3   : > { %v3411_v58 = vmul.f32 %v3379_v46, %v2039_v20 }
 0x7c5   : > { %3465 = vperm.xlu1 %4027, %v3408_v40  }
 0x7cd   : > { %3474 = vperm.xlu1 %4027, %v3411_v58  }
 0x7e7   : > { %v3344_v59 = vpop.f32.mrf.mxu1 }
 0x7e8   : > { %v3350_v39 = vadd.f32 %v3344_v59, %v3311_v7 }
 0x7ea   : > { %v3356_v43 = vadd.f32 %v4032_v35, %v3350_v39 }
 0x7ec   : > { %4155 = vtanh.f32 %v3356_v43 }
 0x7f2   : > { %v4156_v30 = vpop.eup %4155 }
 0x7f3   : > { %v3360_v37 = vmul.f32 %v4156_v30, %v4394_v61  ;;  %v3347_v57 = vpop.f32.mrf.mxu1 }
 0x7f4   : > { %v3351_v18 = vadd.f32 %v3347_v57, %v3312_v23 }
 0x7f5   : > { %3362 = vst.msk [vmem:[%s4337_s17] sm:$0xff] %vm3162_vm9, %v3360_v37 }
 0x7f6   : > { %v3357_v0 = vadd.f32 %v4032_v35, %v3351_v18 }
 0x7f8   : > { %4157 = vtanh.f32 %v3357_v0 }
 0x7fb   : > { %v3445_v32 = vpop.permute.xlu2 %3444 }
 0x7fc   : > { %v3483_v25 = vperm.slane %v3445_v32, %v3477_v63 }
 0x7fe   : > { %v4158_v47 = vpop.eup %4157 }
 0x7ff   : > { %v3361_v12 = vmul.f32 %v4158_v47, %v4413_v10  ;;  %v3481_v10 = vperm.slane %v3439_v31, %v3477_v63 }
 0x801   : > { %3363 = vst.msk [vmem:[%s4337_s17 + $0x8] sm:$0xff] %vm3162_vm9, %v3361_v12 }
 0x803   : > { %v3451_v41 = vpop.permute.xlu2 %3450 }
 0x804   : > { %v3485_v15 = vperm.slane %v3451_v41, %v3477_v63 }
 0x80b   : > { %v3433_v13 = vpop.permute.xlu0 %3432  ;;  %v3460_v4 = vpop.permute.xlu2 %3459 }
 0x80c   : > { %v3479_v61 = vperm.slane %v3433_v13, %v3477_v63  ;;  %v3488_v48 = vperm.slane %v3460_v4, %v3477_v63 }
 0x80e   : > { %v3494_v19 = vsel %vm2495_vm5, %v3479_v61, %v3478_v24 }
 0x813   : > { %v3469_v49 = vpop.permute.xlu2 %3468 }
 0x814   : > { %v3491_v28 = vperm.slane %v3469_v49, %v3477_v63 }
 0x817   : > { %v3436_v27 = vpop.permute.xlu1 %3435 }
 0x818   : > { %v3480_v21 = vperm.slane %v3436_v27, %v3477_v63 }
 0x81a   : > { %v3495_v45 = vsel %vm2497_vm8, %v3480_v21, %v3494_v19 }
 0x81b   : > { %v3496_v3 = vsel %vm2499_vm11, %v3481_v10, %v3495_v45  ;;  %v3454_v36 = vpop.permute.xlu0 %3453 }
 0x81c   : > { %v3486_v56 = vperm.slane %v3454_v36, %v3477_v63 }
 0x81f   : > { %v3442_v26 = vpop.permute.xlu1 %3441 }
 0x820   : > { %v3482_v1 = vperm.slane %v3442_v26, %v3477_v63 }
 0x822   : > { %v3497_v9 = vsel %vm2501_vm12, %v3482_v1, %v3496_v3 }
 0x823   : > { %v3498_v14 = vsel %vm2503_vm13, %v3483_v25, %v3497_v9  ;;  %v3463_v60 = vpop.permute.xlu0 %3462 }
 0x824   : > { %v3489_v6 = vperm.slane %v3463_v60, %v3477_v63 }
 0x827   : > { %v3448_v11 = vpop.permute.xlu1 %3447 }
 0x828   : > { %v3484_v17 = vperm.slane %v3448_v11, %v3477_v63 }
 0x82a   : > { %v3499_v33 = vsel %vm2505_vm14, %v3484_v17, %v3498_v14 }
 0x82b   : > { %v3500_v62 = vsel %vm5896_vm10, %v3485_v15, %v3499_v33  ;;  %v3472_v38 = vpop.permute.xlu0 %3471 }
 0x82c   : > { %3511 = vst.msk [vmem:[%s4342_s29] sm:$0xff] %vm3510_vm1, %v3500_v62  ;;  %v3492_v34 = vperm.slane %v3472_v38, %v3477_v63 }
 0x82f   : > { %v3457_v44 = vpop.permute.xlu1 %3456 }
 0x830   : > { %v3487_v42 = vperm.slane %v3457_v44, %v3477_v63 }
 0x832   : > { %v3501_v55 = vsel %vm2495_vm5, %v3487_v42, %v3486_v56  ;;  %vm5897_vm5 = vmmov %vm5896_vm10 }
 0x833   : > { %v3502_v54 = vsel %vm2497_vm8, %v3488_v48, %v3501_v55 }
 0x834   : > { %v3503_v5 = vsel %vm2499_vm11, %v3489_v6, %v3502_v54 }
 0x837   : > { %v3466_v8 = vpop.permute.xlu1 %3465 }
 0x838   : > { %v3490_v22 = vperm.slane %v3466_v8, %v3477_v63 }
 0x83a   : > { %v3504_v53 = vsel %vm2501_vm12, %v3490_v22, %v3503_v5 }
 0x83b   : > { %v3505_v40 = vsel %vm2503_vm13, %v3491_v28, %v3504_v53 }
 0x83c   : > { %v3506_v58 = vsel %vm2505_vm14, %v3492_v34, %v3505_v40 }
 0x83f   : > { %v3475_v20 = vpop.permute.xlu1 %3474 }
 0x840   : > { %v3493_v46 = vperm.slane %v3475_v20, %v3477_v63 }
 0x842   : > { %v3507_v50 = vsel %vm5897_vm5, %v3493_v46, %v3506_v58 }
 0x843   : > { %3512 = vst.msk [vmem:[%s4342_s29 + $0x8] sm:$0xff] %vm3510_vm1, %v3507_v50 }
 0x844 PF: > { %s5898_s17 = sld [smem:[#allocation4_spill]] }
 0x845   : > { %s5899_s2 = sld [smem:[#allocation3_spill]] }
 0x846   : > { %s5900_s25 = sld [smem:[#allocation5_spill]] }
 0x84a   : > { %s32_s26 = sadd.s32 1, %s5898_s17  }
 0x84b   : > { %p29_p6 = scmp.ge.s32.totalorder %s32_s26, 10  }
 0x84d   :  { %31 = sbr.rel (!%p29_p6) target bundleno = 10 (0xa), region = 178 }

</bundles_post_ra>
